<compile_context>
chip_gen: v7x
topology: tpu7x:2x2x1
jax: 0.10.0
libtpu: 0.0.40
codegen_flags: <defaults>
</compile_context>

<pallas_src>
import functools
import math
import numpy as np
import jax
import jax.numpy as jnp
from jax.experimental import pallas as pl
from jax.experimental.pallas import tpu as pltpu


# ----------------------------- helpers ---------------------------------------

def _layernorm(v, w, b, n):
    # Matches the custom PyTorch LayerNorm: torch.std is unbiased (ddof=1) and
    # eps (1e-6) is added to the std, not the variance.
    mean = jnp.mean(v, axis=-1, keepdims=True)
    var = jnp.sum((v - mean) ** 2, axis=-1, keepdims=True) / (n - 1)
    std = jnp.sqrt(var)
    return (v - mean) / (std + 1e-6) * w + b


def _device_kind():
    try:
        return jax.devices()[0].device_kind.lower()
    except Exception:
        return ""


def _single_tensorcore(kind):
    # v5e / v6e have one TensorCore per chip; v4 / v5p / v7x have two.
    return any(t in kind for t in ("v5 lite", "v5e", "v5lite", "v6 lite", "v6e", "v6lite"))


def _has_bf16_eup(kind):
    # v5e (and older) have no bf16 EUP/VPU: keep the softmax exp in f32 there.
    return not any(t in kind for t in ("v5 lite", "v5e", "v5lite", "v2", "v3", "v4"))


# ----------------------------- kernel -----------------------------------------

def gpt_block_kernel(x_ref, ln1w_ref, ln1b_ref, wqkv_ref, bqkv_ref,
                     wproj_ref, bproj_ref, ln2w_ref, ln2b_ref,
                     w1_ref, b1_ref, w2_ref, b2_ref, cos_ref, sin_ref, mask_ref,
                     o_ref, *, n_head, hs, seq, bb, softmax_bf16):
    T = seq
    C = n_head * hs
    hs2 = hs // 2
    M = bb * T                                    # rows fed to every matmul

    # Fold the batch-block into the matmul M dimension (free: concat over the
    # sublane axis of already-resident (T, C) tiles).
    x = jnp.concatenate([x_ref[b] for b in range(bb)], axis=0)          # (M, C) f32

    # ---- ln_1 + fused QKV projection (bf16 operands, f32 accumulation) ----
    # 1/sqrt(hs) is pre-folded into the Q columns of wqkv/bqkv in the wrapper.
    h1 = _layernorm(x, ln1w_ref[...], ln1b_ref[...], C)
    qkv = jnp.dot(h1.astype(jnp.bfloat16), wqkv_ref[...],
                  preferred_element_type=jnp.float32) + bqkv_ref[...]   # (M, 3C)

    # Head-batched (bb*n_head, T, hs) tensors via static row/lane slices + one
    # leading-axis stack each.
    # TODO(synk): a reshape(T, n_head, hs) + layout-aware transpose (einshape)
    # would replace the per-head lane slices with a single relayout; kept as the
    # proven stack-of-slices form here for lowering robustness.
    def gather_heads(base):
        slabs = [qkv[b * T:(b + 1) * T, base + h * hs: base + (h + 1) * hs]
                 for b in range(bb) for h in range(n_head)]
        return jnp.stack(slabs, axis=0)                                  # (G, T, hs)

    q3 = gather_heads(0)          # already scaled by 1/sqrt(hs) via W_q / b_q
    k3 = gather_heads(C)
    v3 = gather_heads(2 * C)

    cosf = cos_ref[...]           # (T, hs)  = [cos | cos]
    sinf = sin_ref[...]           # (T, hs)  = [-sin | +sin]

    def rope(u):
        # Q/K output columns of W_qkv were pre-permuted per head (even/"real"
        # dims first, odd/"imag" dims second) so the interleaved complex RoPE is
        # a contiguous half-rotation; the permutation (same for Q and K) leaves
        # Q.K^T unchanged.  Single bf16 cast per slab, as in the PyTorch module.
        swapped = jnp.concatenate([u[..., hs2:], u[..., :hs2]], axis=-1)
        return (u * cosf + swapped * sinf).astype(jnp.bfloat16)

    qb, kb = rope(q3), rope(k3)                    # (G, T, hs) bf16
    vb = v3.astype(jnp.bfloat16)

    # ---- causal attention, (batch, head) batched on the MXU ----
    s = jnp.einsum('gtd,gsd->gts', qb, kb,
                   preferred_element_type=jnp.float32)                   # (G, T, T)
    s = s + mask_ref[...]                          # additive mask: 0 / -1e30 (NaN-safe)
    m = jnp.max(s, axis=-1, keepdims=True)
    e_dtype = jnp.bfloat16 if softmax_bf16 else jnp.float32
    e = jnp.exp((s - m).astype(e_dtype))           # bf16 EUP on v6e/v7x, f32 on v5e
    l = jnp.sum(e.astype(jnp.float32), axis=-1, keepdims=True)
    y = jnp.einsum('gts,gsd->gtd', e.astype(jnp.bfloat16), vb,
                   preferred_element_type=jnp.float32)                   # (G, T, hs)
    # Fold the softmax normalization in after p@v; reciprocal goes to the EUP.
    y = y * pl.reciprocal(l, approx=True)

    y2 = jnp.concatenate(
        [jnp.concatenate([y[b * n_head + h] for h in range(n_head)], axis=-1)
         for b in range(bb)], axis=0)                                    # (M, C)
    attn = jnp.dot(y2.astype(jnp.bfloat16), wproj_ref[...],
                   preferred_element_type=jnp.float32) + bproj_ref[...]
    x1 = x + attn                                                        # residual 1

    # ---- ln_2 + MLP (tanh-GELU: transcendental on the EUP) ----
    # TODO(synk): nn.GELU() default is the exact erf form; tanh-GELU deviates by
    # <1e-3 per element (well inside the test tolerance).  An exact erf would
    # need a VALU polynomial since Mosaic has no erf EUP op.
    h2 = _layernorm(x1, ln2w_ref[...], ln2b_ref[...], C)
    mlin = jnp.dot(h2.astype(jnp.bfloat16), w1_ref[...],
                   preferred_element_type=jnp.float32) + b1_ref[...]
    g = 0.5 * mlin * (1.0 + jnp.tanh(0.7978845608028654 *
                                     (mlin + 0.044715 * (mlin * mlin * mlin))))
    mout = jnp.dot(g.astype(jnp.bfloat16), w2_ref[...],
                   preferred_element_type=jnp.float32) + b2_ref[...]
    out = x1 + mout

    for b in range(bb):
        o_ref[b] = out[b * T:(b + 1) * T].astype(o_ref.dtype)

    # TODO(synk): dropout layers use attention_dropout=0.0 (identity); p>0 would
    # need pltpu.prng_seed/prng_random_bits masking.
    # TODO(synk): for production T/C (v7x's 64 MiB VMEM bites first) tile the
    # attention flash-style over KV (skipping fully-masked causal tiles) and the
    # MLP over the 4C hidden dim instead of materializing (G,T,T)/(M,4C), and
    # single-buffer the grid-invariant weight inputs (pipeline_mode=pl.Buffered(1)).


# ----------------------------- wrapper -----------------------------------------

def _vmem_limit_bytes(bb, T, C, n_head):
    f32, bf16 = 4, 2
    weights = (3 * C * C + C * C + 4 * C * C + 4 * C * C) * bf16        # 12 C^2 bf16
    consts = (2 * T * (C // n_head) + T * T + 12 * C) * f32             # rope + mask + biases/ln
    blocks = 2 * bb * T * C * f32                                       # x block + out block
    tmps = (bb * T * 3 * C * f32                                        # qkv
            + 3 * bb * T * C * f32                                      # q/k/v head slabs
            + 2 * bb * n_head * T * T * f32                             # scores + probs
            + 2 * bb * T * 4 * C * f32                                  # mlp hidden (+gelu)
            + 4 * bb * T * C * f32)                                     # ln/residual working set
    # Inputs/outputs are double-buffered by the pipeline; 2x headroom for
    # compiler scratch / spills.  Cap at 48 MiB (v7x: 64 MiB physical per TC).
    need = 2 * (weights + consts + blocks) + tmps
    return int(min(48 * 2**20, max(2 * need, 32 * 2**20)))


def gpt_block(x, params, *, n_head, batch_block=None):
    B, T, C = x.shape
    hs = C // n_head
    (ln1w, ln1b, wqkv, bqkv, wproj, bproj,
     ln2w, ln2b, w1, b1, w2, b2, cos_full, sin_signed, addmask) = params

    kind = _device_kind()
    if batch_block is None:
        # Single-TC chips (v5e/v6e): fold the whole batch into M.  Dual-core
        # chips (v7x/v5p/v4): keep the batch grid "parallel" across cores.
        batch_block = B if _single_tensorcore(kind) else 1
    if B % batch_block:
        batch_block = 1
    bb = batch_block

    kernel = functools.partial(gpt_block_kernel, n_head=n_head, hs=hs, seq=T,
                               bb=bb, softmax_bf16=_has_bf16_eup(kind))

    def full(shape):
        return pl.BlockSpec(shape, lambda b: (0,) * len(shape))

    grid_spec = pltpu.PrefetchScalarGridSpec(
        num_scalar_prefetch=0,
        grid=(B // bb,),
        in_specs=[
            pl.BlockSpec((bb, T, C), lambda b: (b, 0, 0)),  # x: bb batch rows / step
            full((1, C)), full((1, C)),                     # ln_1 weight / bias
            full((C, 3 * C)), full((1, 3 * C)),             # c_attn (QKV)  [W bf16, scale folded]
            full((C, C)), full((1, C)),                     # attn c_proj   [W bf16]
            full((1, C)), full((1, C)),                     # ln_2 weight / bias
            full((C, 4 * C)), full((1, 4 * C)),             # mlp fc        [W bf16]
            full((4 * C, C)), full((1, C)),                 # mlp proj      [W bf16]
            full((T, hs)), full((T, hs)),                   # RoPE cos / signed-sin
            full((T, T)),                                   # additive causal mask
        ],
        out_specs=pl.BlockSpec((bb, T, C), lambda b: (b, 0, 0)),
    )

    return pl.pallas_call(
        kernel,
        out_shape=jax.ShapeDtypeStruct((B, T, C), x.dtype),
        grid_spec=grid_spec,
        compiler_params=pltpu.CompilerParams(
            dimension_semantics=("parallel",),
            vmem_limit_bytes=_vmem_limit_bytes(bb, T, C, n_head)),
    )(x, ln1w, ln1b, wqkv, bqkv, wproj, bproj, ln2w, ln2b,
      w1, b1, w2, b2, cos_full, sin_signed, addmask)


# --------------------------- plain-JAX reference --------------------------------

def reference_block(x, raw, n_head):
    (ln1w, ln1b, wqkv, bqkv, wproj, bproj,
     ln2w, ln2b, w1, b1, w2, b2, cos, sin) = raw
    B, T, C = x.shape
    hs = C // n_head

    def ln(v, w, b):
        mean = v.mean(-1, keepdims=True)
        std = jnp.sqrt(((v - mean) ** 2).sum(-1, keepdims=True) / (C - 1))
        return (v - mean) / (std + 1e-6) * w + b

    h = ln(x, ln1w, ln1b)
    qkv = h @ wqkv + bqkv
    q, k, v = jnp.split(qkv, 3, axis=-1)

    def heads(u):
        return u.reshape(B, T, n_head, hs).transpose(0, 2, 1, 3)

    q, k, v = heads(q), heads(k), heads(v)

    def rope(u):   # interleaved complex rotation, exactly as the PyTorch code
        u2 = u.reshape(B, n_head, T, hs // 2, 2)
        x0, x1 = u2[..., 0], u2[..., 1]
        c, s = cos[None, None], sin[None, None]
        re = x0 * c - x1 * s
        im = x0 * s + x1 * c
        out = jnp.stack([re, im], axis=-1).reshape(B, n_head, T, hs)
        return out.astype(jnp.bfloat16).astype(jnp.float32)

    q, k = rope(q), rope(k)
    s = jnp.einsum("bhqd,bhkd->bhqk", q, k) / np.sqrt(hs)
    mask = jnp.tril(jnp.ones((T, T), bool))
    s = jnp.where(mask, s, -jnp.inf)
    p = jax.nn.softmax(s, axis=-1)
    y = jnp.einsum("bhqk,bhkd->bhqd", p, v)
    y = y.transpose(0, 2, 1, 3).reshape(B, T, C)
    x1 = x + (y @ wproj + bproj)

    h2 = ln(x1, ln2w, ln2b)
    m = h2 @ w1 + b1
    m = 0.5 * m * (1.0 + jax.lax.erf(m * 0.7071067811865476))
    m = m @ w2 + b2
    return x1 + m


# ------------------------------- main ------------------------------------------

if __name__ == "__main__":
    # Small config consistent with the module (n_embd % n_head == 0, even head
    # size).  T=128 so every matmul presents a >=128-row M dimension.
    B, T, C, n_head = 2, 128, 128, 4
    hs = C // n_head

    key = jax.random.PRNGKey(0)
    ks = jax.random.split(key, 8)
    x = jax.random.normal(ks[0], (B, T, C), jnp.float32)

    wqkv = jax.random.normal(ks[1], (C, 3 * C), jnp.float32) * 0.02
    bqkv = jax.random.normal(ks[2], (1, 3 * C), jnp.float32) * 0.01
    wproj = jax.random.normal(ks[3], (C, C), jnp.float32) * 0.02
    bproj = jax.random.normal(ks[4], (1, C), jnp.float32) * 0.01
    w1 = jax.random.normal(ks[5], (C, 4 * C), jnp.float32) * 0.02
    b1 = jax.random.normal(ks[6], (1, 4 * C), jnp.float32) * 0.01
    w2 = jax.random.normal(ks[7], (4 * C, C), jnp.float32) * 0.02
    b2 = jnp.zeros((1, C), jnp.float32)
    ln1w = jnp.ones((1, C), jnp.float32)
    ln1b = jnp.zeros((1, C), jnp.float32)
    ln2w = jnp.ones((1, C), jnp.float32)
    ln2b = jnp.zeros((1, C), jnp.float32)

    # RoPE tables (same formula as _precompute_freqs_cis).
    inv_freq = 1.0 / (10000.0 ** (np.arange(0, hs, 2)[: hs // 2] / hs))
    freqs = np.outer(np.arange(T), inv_freq).astype(np.float32)     # (T, hs//2)
    cos = jnp.asarray(np.cos(freqs))
    sin = jnp.asarray(np.sin(freqs))

    raw_params = (ln1w, ln1b, wqkv, bqkv, wproj, bproj,
                  ln2w, ln2b, w1, b1, w2, b2, cos, sin)

    # --- one-time parameter prep for the kernel (outside the timed path) ---
    # Pre-permute Q/K output columns of c_attn (even dims first, odd dims second,
    # per head) so in-kernel RoPE is a contiguous half-rotation; attention scores
    # are invariant to this per-head permutation of Q and K.  Fold 1/sqrt(hs)
    # into the Q columns (RoPE is linear, so rot(scale*q) == scale*rot(q)).
    # Weights cast to bf16 for native single-pass MXU matmuls (biases stay f32).
    scale = 1.0 / math.sqrt(hs)
    perm_head = np.concatenate([np.arange(0, hs, 2), np.arange(1, hs, 2)])
    qk_perm = np.concatenate([h * hs + perm_head for h in range(n_head)])
    full_perm = np.concatenate([qk_perm, C + qk_perm, 2 * C + np.arange(C)])
    q_scale = np.concatenate([np.full(C, scale), np.ones(2 * C)]).astype(np.float32)
    wqkv_np = np.asarray(wqkv)[:, full_perm] * q_scale
    bqkv_np = np.asarray(bqkv)[:, full_perm] * q_scale
    wqkv_k = jnp.asarray(wqkv_np).astype(jnp.bfloat16)
    bqkv_k = jnp.asarray(bqkv_np.astype(np.float32))

    # Full-width RoPE tables: cos duplicated, sin sign-folded for the half-rotation.
    cos_full = jnp.asarray(np.concatenate([np.cos(freqs), np.cos(freqs)], axis=1))
    sin_signed = jnp.asarray(np.concatenate([-np.sin(freqs), np.sin(freqs)], axis=1))

    # Precomputed additive causal mask (finite -1e30: NaN-safe if later KV-tiled).
    tri = np.tril(np.ones((T, T), dtype=bool))
    addmask = jnp.asarray(np.where(tri, 0.0, -1e30).astype(np.float32))

    kernel_params = (ln1w, ln1b, wqkv_k, bqkv_k,
                     wproj.astype(jnp.bfloat16), bproj,
                     ln2w, ln2b,
                     w1.astype(jnp.bfloat16), b1,
                     w2.astype(jnp.bfloat16), b2,
                     cos_full, sin_signed, addmask)

    out = gpt_block(x, kernel_params, n_head=n_head)
    out = jax.block_until_ready(out)

    # Reference is computed at HIGHEST matmul precision so the comparison
    # measures only the kernel's deliberate bf16 (single-MXU-pass) rounding and
    # the tanh-GELU / approx-reciprocal choices.
    with jax.default_matmul_precision("highest"):
        ref = jax.block_until_ready(reference_block(x, raw_params, n_head))

    np.testing.assert_allclose(np.asarray(out), np.asarray(ref),
                               rtol=1e-2, atol=1e-2)
    print("KERNEL_OK")
</pallas_src>

<mosaic_0001>
module attributes {stable_mosaic.version = 11 : i64} {
  func.func @gpt_block_kernel(%arg0: i32, %arg1: memref<1x128x128xf32, #tpu.memory_space<vmem>>, %arg2: memref<1x128xf32, #tpu.memory_space<vmem>>, %arg3: memref<1x128xf32, #tpu.memory_space<vmem>>, %arg4: memref<128x384xbf16, #tpu.memory_space<vmem>>, %arg5: memref<1x384xf32, #tpu.memory_space<vmem>>, %arg6: memref<128x128xbf16, #tpu.memory_space<vmem>>, %arg7: memref<1x128xf32, #tpu.memory_space<vmem>>, %arg8: memref<1x128xf32, #tpu.memory_space<vmem>>, %arg9: memref<1x128xf32, #tpu.memory_space<vmem>>, %arg10: memref<128x512xbf16, #tpu.memory_space<vmem>>, %arg11: memref<1x512xf32, #tpu.memory_space<vmem>>, %arg12: memref<512x128xbf16, #tpu.memory_space<vmem>>, %arg13: memref<1x128xf32, #tpu.memory_space<vmem>>, %arg14: memref<128x32xf32, #tpu.memory_space<vmem>>, %arg15: memref<128x32xf32, #tpu.memory_space<vmem>>, %arg16: memref<128x128xf32, #tpu.memory_space<vmem>>, %arg17: memref<1x128x128xf32, #tpu.memory_space<vmem>>) attributes {dimension_semantics = [#tpu.dimension_semantics<parallel>], iteration_bounds = array<i64: 2>, scalar_prefetch = 0 : i64, scratch_operands = 0 : i64, tpu.core_type = #tpu.core_type<tc>, window_params = [{transform_indices = @transform_0, window_bounds = array<i64: 1, 128, 128>}, {pipeline_mode = #tpu.pipeline_mode<synchronous>, transform_indices = @transform_1, window_bounds = array<i64: 1, 128>}, {pipeline_mode = #tpu.pipeline_mode<synchronous>, transform_indices = @transform_2, window_bounds = array<i64: 1, 128>}, {pipeline_mode = #tpu.pipeline_mode<synchronous>, transform_indices = @transform_3, window_bounds = array<i64: 128, 384>}, {pipeline_mode = #tpu.pipeline_mode<synchronous>, transform_indices = @transform_4, window_bounds = array<i64: 1, 384>}, {pipeline_mode = #tpu.pipeline_mode<synchronous>, transform_indices = @transform_5, window_bounds = array<i64: 128, 128>}, {pipeline_mode = #tpu.pipeline_mode<synchronous>, transform_indices = @transform_6, window_bounds = array<i64: 1, 128>}, {pipeline_mode = #tpu.pipeline_mode<synchronous>, transform_indices = @transform_7, window_bounds = array<i64: 1, 128>}, {pipeline_mode = #tpu.pipeline_mode<synchronous>, transform_indices = @transform_8, window_bounds = array<i64: 1, 128>}, {pipeline_mode = #tpu.pipeline_mode<synchronous>, transform_indices = @transform_9, window_bounds = array<i64: 128, 512>}, {pipeline_mode = #tpu.pipeline_mode<synchronous>, transform_indices = @transform_10, window_bounds = array<i64: 1, 512>}, {pipeline_mode = #tpu.pipeline_mode<synchronous>, transform_indices = @transform_11, window_bounds = array<i64: 512, 128>}, {pipeline_mode = #tpu.pipeline_mode<synchronous>, transform_indices = @transform_12, window_bounds = array<i64: 1, 128>}, {pipeline_mode = #tpu.pipeline_mode<synchronous>, transform_indices = @transform_13, window_bounds = array<i64: 128, 32>}, {pipeline_mode = #tpu.pipeline_mode<synchronous>, transform_indices = @transform_14, window_bounds = array<i64: 128, 32>}, {pipeline_mode = #tpu.pipeline_mode<synchronous>, transform_indices = @transform_15, window_bounds = array<i64: 128, 128>}, {transform_indices = @transform_16, window_bounds = array<i64: 1, 128, 128>}]} {
    %c0 = arith.constant 0 : index
    %c0_0 = arith.constant 0 : index
    %c0_1 = arith.constant 0 : index
    %0 = vector.load %arg1[%c0, %c0_0, %c0_1] : memref<1x128x128xf32, #tpu.memory_space<vmem>>, vector<1x128x128xf32>
    %1 = vector.shape_cast %0 : vector<1x128x128xf32> to vector<128x128xf32>
    %c0_2 = arith.constant 0 : index
    %c0_3 = arith.constant 0 : index
    %2 = vector.load %arg2[%c0_2, %c0_3] : memref<1x128xf32, #tpu.memory_space<vmem>>, vector<1x128xf32>
    %c0_4 = arith.constant 0 : index
    %c0_5 = arith.constant 0 : index
    %3 = vector.load %arg3[%c0_4, %c0_5] : memref<1x128xf32, #tpu.memory_space<vmem>>, vector<1x128xf32>
    %cst = arith.constant dense<0.000000e+00> : vector<128xf32>
    %4 = vector.multi_reduction <add>, %1, %cst [1] : vector<128x128xf32> to vector<128xf32>
    %5 = vector.shape_cast %4 : vector<128xf32> to vector<128x1xf32>
    %cst_6 = arith.constant 1.280000e+02 : f32
    %6 = vector.broadcast %cst_6 : f32 to vector<128x1xf32>
    %7 = arith.divf %5, %6 : vector<128x1xf32>
    %8 = vector.broadcast %7 : vector<128x1xf32> to vector<128x128xf32>
    %9 = arith.subf %1, %8 : vector<128x128xf32>
    %10 = arith.mulf %9, %9 : vector<128x128xf32>
    %cst_7 = arith.constant dense<0.000000e+00> : vector<128xf32>
    %11 = vector.multi_reduction <add>, %10, %cst_7 [1] : vector<128x128xf32> to vector<128xf32>
    %12 = vector.shape_cast %11 : vector<128xf32> to vector<128x1xf32>
    %cst_8 = arith.constant 1.270000e+02 : f32
    %13 = vector.broadcast %cst_8 : f32 to vector<128x1xf32>
    %14 = arith.divf %12, %13 : vector<128x1xf32>
    %15 = math.sqrt %14 : vector<128x1xf32>
    %16 = vector.broadcast %7 : vector<128x1xf32> to vector<128x128xf32>
    %17 = arith.subf %1, %16 : vector<128x128xf32>
    %cst_9 = arith.constant 9.99999997E-7 : f32
    %18 = vector.broadcast %cst_9 : f32 to vector<128x1xf32>
    %19 = arith.addf %15, %18 : vector<128x1xf32>
    %20 = vector.broadcast %19 : vector<128x1xf32> to vector<128x128xf32>
    %21 = arith.divf %17, %20 : vector<128x128xf32>
    %22 = vector.broadcast %2 : vector<1x128xf32> to vector<128x128xf32>
    %23 = arith.mulf %21, %22 : vector<128x128xf32>
    %24 = vector.broadcast %3 : vector<1x128xf32> to vector<128x128xf32>
    %25 = arith.addf %23, %24 : vector<128x128xf32>
    %26 = arith.truncf %25 : vector<128x128xf32> to vector<128x128xbf16>
    %c0_10 = arith.constant 0 : index
    %c0_11 = arith.constant 0 : index
    %27 = vector.load %arg4[%c0_10, %c0_11] : memref<128x384xbf16, #tpu.memory_space<vmem>>, vector<128x384xbf16>
    %cst_12 = arith.constant dense<0.000000e+00> : vector<128x384xf32>
    %28 = tpu.matmul %26, %27, %cst_12 {dimension_numbers = #tpu.dot_dimension_numbers<[1], [0], [0], [1], [0, 0, 1, 1], [], []>} : vector<128x128xbf16>, vector<128x384xbf16>, vector<128x384xf32> -> vector<128x384xf32>
    %c0_13 = arith.constant 0 : index
    %c0_14 = arith.constant 0 : index
    %29 = vector.load %arg5[%c0_13, %c0_14] : memref<1x384xf32, #tpu.memory_space<vmem>>, vector<1x384xf32>
    %30 = vector.broadcast %29 : vector<1x384xf32> to vector<128x384xf32>
    %31 = arith.addf %28, %30 : vector<128x384xf32>
    %32 = vector.extract_strided_slice %31 {offsets = [0, 0], sizes = [128, 32], strides = [1, 1]} : vector<128x384xf32> to vector<128x32xf32>
    %33 = vector.extract_strided_slice %31 {offsets = [0, 32], sizes = [128, 32], strides = [1, 1]} : vector<128x384xf32> to vector<128x32xf32>
    %34 = vector.extract_strided_slice %31 {offsets = [0, 64], sizes = [128, 32], strides = [1, 1]} : vector<128x384xf32> to vector<128x32xf32>
    %35 = vector.extract_strided_slice %31 {offsets = [0, 96], sizes = [128, 32], strides = [1, 1]} : vector<128x384xf32> to vector<128x32xf32>
    %36 = vector.shape_cast %32 : vector<128x32xf32> to vector<1x128x32xf32>
    %37 = vector.shape_cast %33 : vector<128x32xf32> to vector<1x128x32xf32>
    %38 = vector.shape_cast %34 : vector<128x32xf32> to vector<1x128x32xf32>
    %39 = vector.shape_cast %35 : vector<128x32xf32> to vector<1x128x32xf32>
    %40 = tpu.concatenate %36, %37, %38, %39 in 0 : vector<1x128x32xf32>, vector<1x128x32xf32>, vector<1x128x32xf32>, vector<1x128x32xf32> -> vector<4x128x32xf32>
    %41 = vector.extract_strided_slice %31 {offsets = [0, 128], sizes = [128, 32], strides = [1, 1]} : vector<128x384xf32> to vector<128x32xf32>
    %42 = vector.extract_strided_slice %31 {offsets = [0, 160], sizes = [128, 32], strides = [1, 1]} : vector<128x384xf32> to vector<128x32xf32>
    %43 = vector.extract_strided_slice %31 {offsets = [0, 192], sizes = [128, 32], strides = [1, 1]} : vector<128x384xf32> to vector<128x32xf32>
    %44 = vector.extract_strided_slice %31 {offsets = [0, 224], sizes = [128, 32], strides = [1, 1]} : vector<128x384xf32> to vector<128x32xf32>
    %45 = vector.shape_cast %41 : vector<128x32xf32> to vector<1x128x32xf32>
    %46 = vector.shape_cast %42 : vector<128x32xf32> to vector<1x128x32xf32>
    %47 = vector.shape_cast %43 : vector<128x32xf32> to vector<1x128x32xf32>
    %48 = vector.shape_cast %44 : vector<128x32xf32> to vector<1x128x32xf32>
    %49 = tpu.concatenate %45, %46, %47, %48 in 0 : vector<1x128x32xf32>, vector<1x128x32xf32>, vector<1x128x32xf32>, vector<1x128x32xf32> -> vector<4x128x32xf32>
    %50 = vector.extract_strided_slice %31 {offsets = [0, 256], sizes = [128, 32], strides = [1, 1]} : vector<128x384xf32> to vector<128x32xf32>
    %51 = vector.extract_strided_slice %31 {offsets = [0, 288], sizes = [128, 32], strides = [1, 1]} : vector<128x384xf32> to vector<128x32xf32>
    %52 = vector.extract_strided_slice %31 {offsets = [0, 320], sizes = [128, 32], strides = [1, 1]} : vector<128x384xf32> to vector<128x32xf32>
    %53 = vector.extract_strided_slice %31 {offsets = [0, 352], sizes = [128, 32], strides = [1, 1]} : vector<128x384xf32> to vector<128x32xf32>
    %54 = vector.shape_cast %50 : vector<128x32xf32> to vector<1x128x32xf32>
    %55 = vector.shape_cast %51 : vector<128x32xf32> to vector<1x128x32xf32>
    %56 = vector.shape_cast %52 : vector<128x32xf32> to vector<1x128x32xf32>
    %57 = vector.shape_cast %53 : vector<128x32xf32> to vector<1x128x32xf32>
    %58 = tpu.concatenate %54, %55, %56, %57 in 0 : vector<1x128x32xf32>, vector<1x128x32xf32>, vector<1x128x32xf32>, vector<1x128x32xf32> -> vector<4x128x32xf32>
    %c0_15 = arith.constant 0 : index
    %c0_16 = arith.constant 0 : index
    %59 = vector.load %arg14[%c0_15, %c0_16] : memref<128x32xf32, #tpu.memory_space<vmem>>, vector<128x32xf32>
    %c0_17 = arith.constant 0 : index
    %c0_18 = arith.constant 0 : index
    %60 = vector.load %arg15[%c0_17, %c0_18] : memref<128x32xf32, #tpu.memory_space<vmem>>, vector<128x32xf32>
    %61 = vector.extract_strided_slice %40 {offsets = [0, 0, 16], sizes = [4, 128, 16], strides = [1, 1, 1]} : vector<4x128x32xf32> to vector<4x128x16xf32>
    %62 = vector.extract_strided_slice %40 {offsets = [0, 0, 0], sizes = [4, 128, 16], strides = [1, 1, 1]} : vector<4x128x32xf32> to vector<4x128x16xf32>
    %63 = tpu.concatenate %61, %62 in 2 : vector<4x128x16xf32>, vector<4x128x16xf32> -> vector<4x128x32xf32>
    %64 = vector.shape_cast %59 : vector<128x32xf32> to vector<1x128x32xf32>
    %65 = vector.broadcast %64 : vector<1x128x32xf32> to vector<4x128x32xf32>
    %66 = arith.mulf %40, %65 : vector<4x128x32xf32>
    %67 = vector.shape_cast %60 : vector<128x32xf32> to vector<1x128x32xf32>
    %68 = vector.broadcast %67 : vector<1x128x32xf32> to vector<4x128x32xf32>
    %69 = arith.mulf %63, %68 : vector<4x128x32xf32>
    %70 = arith.addf %66, %69 : vector<4x128x32xf32>
    %71 = arith.truncf %70 : vector<4x128x32xf32> to vector<4x128x32xbf16>
    %72 = vector.extract_strided_slice %49 {offsets = [0, 0, 16], sizes = [4, 128, 16], strides = [1, 1, 1]} : vector<4x128x32xf32> to vector<4x128x16xf32>
    %73 = vector.extract_strided_slice %49 {offsets = [0, 0, 0], sizes = [4, 128, 16], strides = [1, 1, 1]} : vector<4x128x32xf32> to vector<4x128x16xf32>
    %74 = tpu.concatenate %72, %73 in 2 : vector<4x128x16xf32>, vector<4x128x16xf32> -> vector<4x128x32xf32>
    %75 = vector.shape_cast %59 : vector<128x32xf32> to vector<1x128x32xf32>
    %76 = vector.broadcast %75 : vector<1x128x32xf32> to vector<4x128x32xf32>
    %77 = arith.mulf %49, %76 : vector<4x128x32xf32>
    %78 = vector.shape_cast %60 : vector<128x32xf32> to vector<1x128x32xf32>
    %79 = vector.broadcast %78 : vector<1x128x32xf32> to vector<4x128x32xf32>
    %80 = arith.mulf %74, %79 : vector<4x128x32xf32>
    %81 = arith.addf %77, %80 : vector<4x128x32xf32>
    %82 = arith.truncf %81 : vector<4x128x32xf32> to vector<4x128x32xbf16>
    %83 = arith.truncf %58 : vector<4x128x32xf32> to vector<4x128x32xbf16>
    "tpu.trace_start"() <{level = 10 : i32, message = "gtd,gsd->gts"}> : () -> ()
    %cst_19 = arith.constant dense<0.000000e+00> : vector<4x128x128xf32>
    %84 = tpu.matmul %71, %82, %cst_19 {dimension_numbers = #tpu.dot_dimension_numbers<[2], [2], [1], [1], [0, 0, 0, 1, 1, 1], [0], [0]>} : vector<4x128x32xbf16>, vector<4x128x32xbf16>, vector<4x128x128xf32> -> vector<4x128x128xf32>
    "tpu.trace_stop"() : () -> ()
    %c0_20 = arith.constant 0 : index
    %c0_21 = arith.constant 0 : index
    %85 = vector.load %arg16[%c0_20, %c0_21] : memref<128x128xf32, #tpu.memory_space<vmem>>, vector<128x128xf32>
    %86 = vector.shape_cast %85 : vector<128x128xf32> to vector<1x128x128xf32>
    %87 = vector.broadcast %86 : vector<1x128x128xf32> to vector<4x128x128xf32>
    %88 = arith.addf %84, %87 : vector<4x128x128xf32>
    %cst_22 = arith.constant dense<0xFF800000> : vector<4x128xf32>
    %89 = vector.multi_reduction <maximumf>, %88, %cst_22 [2] : vector<4x128x128xf32> to vector<4x128xf32>
    %90 = vector.shape_cast %89 : vector<4x128xf32> to vector<4x128x1xf32>
    %91 = vector.broadcast %90 : vector<4x128x1xf32> to vector<4x128x128xf32>
    %92 = arith.subf %88, %91 : vector<4x128x128xf32>
    %93 = arith.truncf %92 : vector<4x128x128xf32> to vector<4x128x128xbf16>
    %94 = math.exp %93 : vector<4x128x128xbf16>
    %95 = arith.extf %94 : vector<4x128x128xbf16> to vector<4x128x128xf32>
    %cst_23 = arith.constant dense<0.000000e+00> : vector<4x128xf32>
    %96 = vector.multi_reduction <add>, %95, %cst_23 [2] : vector<4x128x128xf32> to vector<4x128xf32>
    %97 = vector.shape_cast %96 : vector<4x128xf32> to vector<4x128x1xf32>
    "tpu.trace_start"() <{level = 10 : i32, message = "gts,gsd->gtd"}> : () -> ()
    %cst_24 = arith.constant dense<0.000000e+00> : vector<4x128x32xf32>
    %98 = tpu.matmul %94, %83, %cst_24 {dimension_numbers = #tpu.dot_dimension_numbers<[2], [1], [1], [2], [0, 0, 0, 1, 1, 2], [0], [0]>} : vector<4x128x128xbf16>, vector<4x128x32xbf16>, vector<4x128x32xf32> -> vector<4x128x32xf32>
    "tpu.trace_stop"() : () -> ()
    %99 = tpu.reciprocal %97 {approx = true} : vector<4x128x1xf32> -> vector<4x128x1xf32>
    %100 = vector.broadcast %99 : vector<4x128x1xf32> to vector<4x128x32xf32>
    %101 = arith.mulf %98, %100 : vector<4x128x32xf32>
    %102 = vector.extract_strided_slice %101 {offsets = [0, 0, 0], sizes = [1, 128, 32], strides = [1, 1, 1]} : vector<4x128x32xf32> to vector<1x128x32xf32>
    %103 = vector.shape_cast %102 : vector<1x128x32xf32> to vector<128x32xf32>
    %104 = vector.extract_strided_slice %101 {offsets = [1, 0, 0], sizes = [1, 128, 32], strides = [1, 1, 1]} : vector<4x128x32xf32> to vector<1x128x32xf32>
    %105 = vector.shape_cast %104 : vector<1x128x32xf32> to vector<128x32xf32>
    %106 = vector.extract_strided_slice %101 {offsets = [2, 0, 0], sizes = [1, 128, 32], strides = [1, 1, 1]} : vector<4x128x32xf32> to vector<1x128x32xf32>
    %107 = vector.shape_cast %106 : vector<1x128x32xf32> to vector<128x32xf32>
    %108 = vector.extract_strided_slice %101 {offsets = [3, 0, 0], sizes = [1, 128, 32], strides = [1, 1, 1]} : vector<4x128x32xf32> to vector<1x128x32xf32>
    %109 = vector.shape_cast %108 : vector<1x128x32xf32> to vector<128x32xf32>
    %110 = tpu.concatenate %103, %105, %107, %109 in 1 : vector<128x32xf32>, vector<128x32xf32>, vector<128x32xf32>, vector<128x32xf32> -> vector<128x128xf32>
    %111 = arith.truncf %110 : vector<128x128xf32> to vector<128x128xbf16>
    %c0_25 = arith.constant 0 : index
    %c0_26 = arith.constant 0 : index
    %112 = vector.load %arg6[%c0_25, %c0_26] : memref<128x128xbf16, #tpu.memory_space<vmem>>, vector<128x128xbf16>
    %cst_27 = arith.constant dense<0.000000e+00> : vector<128x128xf32>
    %113 = tpu.matmul %111, %112, %cst_27 {dimension_numbers = #tpu.dot_dimension_numbers<[1], [0], [0], [1], [0, 0, 1, 1], [], []>} : vector<128x128xbf16>, vector<128x128xbf16>, vector<128x128xf32> -> vector<128x128xf32>
    %c0_28 = arith.constant 0 : index
    %c0_29 = arith.constant 0 : index
    %114 = vector.load %arg7[%c0_28, %c0_29] : memref<1x128xf32, #tpu.memory_space<vmem>>, vector<1x128xf32>
    %115 = vector.broadcast %114 : vector<1x128xf32> to vector<128x128xf32>
    %116 = arith.addf %113, %115 : vector<128x128xf32>
    %117 = arith.addf %1, %116 : vector<128x128xf32>
    %c0_30 = arith.constant 0 : index
    %c0_31 = arith.constant 0 : index
    %118 = vector.load %arg8[%c0_30, %c0_31] : memref<1x128xf32, #tpu.memory_space<vmem>>, vector<1x128xf32>
    %c0_32 = arith.constant 0 : index
    %c0_33 = arith.constant 0 : index
    %119 = vector.load %arg9[%c0_32, %c0_33] : memref<1x128xf32, #tpu.memory_space<vmem>>, vector<1x128xf32>
    %cst_34 = arith.constant dense<0.000000e+00> : vector<128xf32>
    %120 = vector.multi_reduction <add>, %117, %cst_34 [1] : vector<128x128xf32> to vector<128xf32>
    %121 = vector.shape_cast %120 : vector<128xf32> to vector<128x1xf32>
    %cst_35 = arith.constant 1.280000e+02 : f32
    %122 = vector.broadcast %cst_35 : f32 to vector<128x1xf32>
    %123 = arith.divf %121, %122 : vector<128x1xf32>
    %124 = vector.broadcast %123 : vector<128x1xf32> to vector<128x128xf32>
    %125 = arith.subf %117, %124 : vector<128x128xf32>
    %126 = arith.mulf %125, %125 : vector<128x128xf32>
    %cst_36 = arith.constant dense<0.000000e+00> : vector<128xf32>
    %127 = vector.multi_reduction <add>, %126, %cst_36 [1] : vector<128x128xf32> to vector<128xf32>
    %128 = vector.shape_cast %127 : vector<128xf32> to vector<128x1xf32>
    %cst_37 = arith.constant 1.270000e+02 : f32
    %129 = vector.broadcast %cst_37 : f32 to vector<128x1xf32>
    %130 = arith.divf %128, %129 : vector<128x1xf32>
    %131 = math.sqrt %130 : vector<128x1xf32>
    %132 = vector.broadcast %123 : vector<128x1xf32> to vector<128x128xf32>
    %133 = arith.subf %117, %132 : vector<128x128xf32>
    %cst_38 = arith.constant 9.99999997E-7 : f32
    %134 = vector.broadcast %cst_38 : f32 to vector<128x1xf32>
    %135 = arith.addf %131, %134 : vector<128x1xf32>
    %136 = vector.broadcast %135 : vector<128x1xf32> to vector<128x128xf32>
    %137 = arith.divf %133, %136 : vector<128x128xf32>
    %138 = vector.broadcast %118 : vector<1x128xf32> to vector<128x128xf32>
    %139 = arith.mulf %137, %138 : vector<128x128xf32>
    %140 = vector.broadcast %119 : vector<1x128xf32> to vector<128x128xf32>
    %141 = arith.addf %139, %140 : vector<128x128xf32>
    %142 = arith.truncf %141 : vector<128x128xf32> to vector<128x128xbf16>
    %c0_39 = arith.constant 0 : index
    %c0_40 = arith.constant 0 : index
    %143 = vector.load %arg10[%c0_39, %c0_40] : memref<128x512xbf16, #tpu.memory_space<vmem>>, vector<128x512xbf16>
    %cst_41 = arith.constant dense<0.000000e+00> : vector<128x512xf32>
    %144 = tpu.matmul %142, %143, %cst_41 {dimension_numbers = #tpu.dot_dimension_numbers<[1], [0], [0], [1], [0, 0, 1, 1], [], []>} : vector<128x128xbf16>, vector<128x512xbf16>, vector<128x512xf32> -> vector<128x512xf32>
    %c0_42 = arith.constant 0 : index
    %c0_43 = arith.constant 0 : index
    %145 = vector.load %arg11[%c0_42, %c0_43] : memref<1x512xf32, #tpu.memory_space<vmem>>, vector<1x512xf32>
    %146 = vector.broadcast %145 : vector<1x512xf32> to vector<128x512xf32>
    %147 = arith.addf %144, %146 : vector<128x512xf32>
    %cst_44 = arith.constant 5.000000e-01 : f32
    %148 = vector.broadcast %cst_44 : f32 to vector<128x512xf32>
    %149 = arith.mulf %148, %147 : vector<128x512xf32>
    %150 = arith.mulf %147, %147 : vector<128x512xf32>
    %151 = arith.mulf %150, %147 : vector<128x512xf32>
    %cst_45 = arith.constant 4.471500e-02 : f32
    %152 = vector.broadcast %cst_45 : f32 to vector<128x512xf32>
    %153 = arith.mulf %152, %151 : vector<128x512xf32>
    %154 = arith.addf %147, %153 : vector<128x512xf32>
    %cst_46 = arith.constant 0.797884583 : f32
    %155 = vector.broadcast %cst_46 : f32 to vector<128x512xf32>
    %156 = arith.mulf %155, %154 : vector<128x512xf32>
    %157 = math.tanh %156 : vector<128x512xf32>
    %cst_47 = arith.constant 1.000000e+00 : f32
    %158 = vector.broadcast %cst_47 : f32 to vector<128x512xf32>
    %159 = arith.addf %158, %157 : vector<128x512xf32>
    %160 = arith.mulf %149, %159 : vector<128x512xf32>
    %161 = arith.truncf %160 : vector<128x512xf32> to vector<128x512xbf16>
    %c0_48 = arith.constant 0 : index
    %c0_49 = arith.constant 0 : index
    %162 = vector.load %arg12[%c0_48, %c0_49] : memref<512x128xbf16, #tpu.memory_space<vmem>>, vector<512x128xbf16>
    %cst_50 = arith.constant dense<0.000000e+00> : vector<128x128xf32>
    %163 = tpu.matmul %161, %162, %cst_50 {dimension_numbers = #tpu.dot_dimension_numbers<[1], [0], [0], [1], [0, 0, 1, 1], [], []>} : vector<128x512xbf16>, vector<512x128xbf16>, vector<128x128xf32> -> vector<128x128xf32>
    %c0_51 = arith.constant 0 : index
    %c0_52 = arith.constant 0 : index
    %164 = vector.load %arg13[%c0_51, %c0_52] : memref<1x128xf32, #tpu.memory_space<vmem>>, vector<1x128xf32>
    %165 = vector.broadcast %164 : vector<1x128xf32> to vector<128x128xf32>
    %166 = arith.addf %163, %165 : vector<128x128xf32>
    %167 = arith.addf %117, %166 : vector<128x128xf32>
    %c0_53 = arith.constant 0 : index
    %c0_54 = arith.constant 0 : index
    %c0_55 = arith.constant 0 : index
    %168 = vector.load %arg17[%c0_53, %c0_54, %c0_55] : memref<1x128x128xf32, #tpu.memory_space<vmem>>, vector<1x128x128xf32>
    %169 = vector.shape_cast %168 : vector<1x128x128xf32> to vector<128x128xf32>
    %170 = vector.shape_cast %167 : vector<128x128xf32> to vector<1x128x128xf32>
    tpu.vector_store %arg17[%c0_53, %c0_54, %c0_55], %170 {strides = array<i32>} : memref<1x128x128xf32, #tpu.memory_space<vmem>>, vector<1x128x128xf32>,
    return
  }
  func.func @transform_0(%arg0: i32) -> (i32, i32, i32) {
    %c0_i32 = arith.constant 0 : i32
    %c0_i32_0 = arith.constant 0 : i32
    %c0_i32_1 = arith.constant 0 : i32
    return %arg0, %c0_i32, %c0_i32_0 : i32, i32, i32
  }
  func.func @transform_1(%arg0: i32) -> (i32, i32) {
    %c0_i32 = arith.constant 0 : i32
    %c0_i32_0 = arith.constant 0 : i32
    %c0_i32_1 = arith.constant 0 : i32
    return %c0_i32, %c0_i32_0 : i32, i32
  }
  func.func @transform_2(%arg0: i32) -> (i32, i32) {
    %c0_i32 = arith.constant 0 : i32
    %c0_i32_0 = arith.constant 0 : i32
    %c0_i32_1 = arith.constant 0 : i32
    return %c0_i32, %c0_i32_0 : i32, i32
  }
  func.func @transform_3(%arg0: i32) -> (i32, i32) {
    %c0_i32 = arith.constant 0 : i32
    %c0_i32_0 = arith.constant 0 : i32
    %c0_i32_1 = arith.constant 0 : i32
    return %c0_i32, %c0_i32_0 : i32, i32
  }
  func.func @transform_4(%arg0: i32) -> (i32, i32) {
    %c0_i32 = arith.constant 0 : i32
    %c0_i32_0 = arith.constant 0 : i32
    %c0_i32_1 = arith.constant 0 : i32
    return %c0_i32, %c0_i32_0 : i32, i32
  }
  func.func @transform_5(%arg0: i32) -> (i32, i32) {
    %c0_i32 = arith.constant 0 : i32
    %c0_i32_0 = arith.constant 0 : i32
    %c0_i32_1 = arith.constant 0 : i32
    return %c0_i32, %c0_i32_0 : i32, i32
  }
  func.func @transform_6(%arg0: i32) -> (i32, i32) {
    %c0_i32 = arith.constant 0 : i32
    %c0_i32_0 = arith.constant 0 : i32
    %c0_i32_1 = arith.constant 0 : i32
    return %c0_i32, %c0_i32_0 : i32, i32
  }
  func.func @transform_7(%arg0: i32) -> (i32, i32) {
    %c0_i32 = arith.constant 0 : i32
    %c0_i32_0 = arith.constant 0 : i32
    %c0_i32_1 = arith.constant 0 : i32
    return %c0_i32, %c0_i32_0 : i32, i32
  }
  func.func @transform_8(%arg0: i32) -> (i32, i32) {
    %c0_i32 = arith.constant 0 : i32
    %c0_i32_0 = arith.constant 0 : i32
    %c0_i32_1 = arith.constant 0 : i32
    return %c0_i32, %c0_i32_0 : i32, i32
  }
  func.func @transform_9(%arg0: i32) -> (i32, i32) {
    %c0_i32 = arith.constant 0 : i32
    %c0_i32_0 = arith.constant 0 : i32
    %c0_i32_1 = arith.constant 0 : i32
    return %c0_i32, %c0_i32_0 : i32, i32
  }
  func.func @transform_10(%arg0: i32) -> (i32, i32) {
    %c0_i32 = arith.constant 0 : i32
    %c0_i32_0 = arith.constant 0 : i32
    %c0_i32_1 = arith.constant 0 : i32
    return %c0_i32, %c0_i32_0 : i32, i32
  }
  func.func @transform_11(%arg0: i32) -> (i32, i32) {
    %c0_i32 = arith.constant 0 : i32
    %c0_i32_0 = arith.constant 0 : i32
    %c0_i32_1 = arith.constant 0 : i32
    return %c0_i32, %c0_i32_0 : i32, i32
  }
  func.func @transform_12(%arg0: i32) -> (i32, i32) {
    %c0_i32 = arith.constant 0 : i32
    %c0_i32_0 = arith.constant 0 : i32
    %c0_i32_1 = arith.constant 0 : i32
    return %c0_i32, %c0_i32_0 : i32, i32
  }
  func.func @transform_13(%arg0: i32) -> (i32, i32) {
    %c0_i32 = arith.constant 0 : i32
    %c0_i32_0 = arith.constant 0 : i32
    %c0_i32_1 = arith.constant 0 : i32
    return %c0_i32, %c0_i32_0 : i32, i32
  }
  func.func @transform_14(%arg0: i32) -> (i32, i32) {
    %c0_i32 = arith.constant 0 : i32
    %c0_i32_0 = arith.constant 0 : i32
    %c0_i32_1 = arith.constant 0 : i32
    return %c0_i32, %c0_i32_0 : i32, i32
  }
  func.func @transform_15(%arg0: i32) -> (i32, i32) {
    %c0_i32 = arith.constant 0 : i32
    %c0_i32_0 = arith.constant 0 : i32
    %c0_i32_1 = arith.constant 0 : i32
    return %c0_i32, %c0_i32_0 : i32, i32
  }
  func.func @transform_16(%arg0: i32) -> (i32, i32, i32) {
    %c0_i32 = arith.constant 0 : i32
    %c0_i32_0 = arith.constant 0 : i32
    %c0_i32_1 = arith.constant 0 : i32
    return %arg0, %c0_i32, %c0_i32_0 : i32, i32, i32
  }
}

</mosaic_0001>

<bundles_post_ra>
// kernel: tpu_custom_call.1
= control target key start
LH: loop header
LB: loop body
LE: loop exit
PB: predicated region body
PF: predicated region fallthrough
CT: control target
= control target key end

     0   :  { %s14766_s0 = inlined_call_operand.vmem [shape: f32[2,128,128], index: 0, kind: input, shape index: {}]   ;;  %s14767_s1 = inlined_call_operand.hbm [shape: f32[1,128], index: 1, kind: input, shape index: {}]   ;;  %s14768_s2 = inlined_call_operand.hbm [shape: f32[1,128], index: 2, kind: input, shape index: {}]   ;;  %s14769_s3 = inlined_call_operand.hbm [shape: bf16[128,384], index: 3, kind: input, shape index: {}]   ;;  %s14770_s4 = inlined_call_operand.vmem [shape: f32[1,384], index: 4, kind: input, shape index: {}]   ;;  %s14771_s5 = inlined_call_operand.vmem [shape: bf16[128,128], index: 5, kind: input, shape index: {}]   ;;  %s14772_s6 = inlined_call_operand.vmem [shape: f32[1,128], index: 6, kind: input, shape index: {}]   ;;  %s14773_s7 = inlined_call_operand.vmem [shape: f32[1,128], index: 7, kind: input, shape index: {}]   ;;  %s14774_s8 = inlined_call_operand.vmem [shape: f32[1,128], index: 8, kind: input, shape index: {}]   ;;  %s14775_s9 = inlined_call_operand.hbm [shape: bf16[128,512], index: 9, kind: input, shape index: {}]   ;;  %s14776_s10 = inlined_call_operand.vmem [shape: f32[1,512], index: 10, kind: input, shape index: {}]   ;;  %s14777_s11 = inlined_call_operand.hbm [shape: bf16[512,128], index: 11, kind: input, shape index: {}]   ;;  %s14778_s12 = inlined_call_operand.vmem [shape: f32[1,128], index: 12, kind: input, shape index: {}]   ;;  %s14779_s13 = inlined_call_operand.vmem [shape: f32[128,32], index: 13, kind: input, shape index: {}]   ;;  %s14780_s14 = inlined_call_operand.vmem [shape: f32[128,32], index: 14, kind: input, shape index: {}]   ;;  %s14781_s15 = inlined_call_operand.hbm [shape: f32[128,128], index: 15, kind: input, shape index: {}]   ;;  %s14782_s16 = inlined_call_operand.hbm [shape: f32[2,128,128], index: 16, kind: output, shape index: {}]  }
   0x1   :  { %15048 = sst [smem:[#allocation194_spill]] %s14766_s0 }
   0x2   :  { %15049 = sst [smem:[#allocation195_spill]] %s14767_s1 }
   0x3   :  { %15050 = sst [smem:[#allocation196_spill]] %s14768_s2 }
   0x4   :  { %15051 = sst [smem:[#allocation197_spill]] %s14778_s12 }
   0x5   :  { %15052 = sst [smem:[#allocation198_spill]] %s14782_s16 }
   0x6   :  { %21 = vsyncpa [#allocation3], 0 }
   0x7   :  { %22 = vsyncpa [#allocation6], 0 }
   0x8   :  { %23 = vsyncpa [#allocation9], 0 }
   0x9   :  { %24 = vsyncpa [#allocation12], 0 }
   0xa   :  { %25 = vsyncpa [#allocation4], 0 }
   0xb   :  { %27 = vsyncpa [#allocation4 + $0x1], 0  ;;  %s9497_s21 = smov 0   ;;  %s9499_s22 = smov 0  }
   0xc   :  { %s9501_s23 = smov 0   ;;  %s9503_s24 = smov 0  }
   0xd LB: > { %15053 = sst [smem:[#allocation19_spill]] %s9375_s21  ;;  %s9518_s25 = sadd.s32 4294967295, %s9387_s24   ;;  %s9387_s24 = sphi %s9503_s24, %s15795_s24   ;;  %s9383_s23 = sphi %s9501_s23, %s15797_s23   ;;  %s9379_s22 = sphi %s9499_s22, %s15799_s22   ;;  %s9375_s21 = sphi %s9497_s21, %s15798_s21  }
   0xe   : > { %15054 = sst [smem:[#allocation20_spill]] %s9383_s23  ;;  %s7315_s26 = sadd.s32 4294967294, %s9387_s24  }
   0xf   : > { %15055 = sst [smem:[#allocation21_spill]] %s9387_s24  ;;  %s9522_s27 = sadd.s32 1, %s9387_s24  }
  0x10   : > { %15056 = sst [smem:[#allocation22_spill]] %s9522_s27  ;;  %s381_s28 = sadd.s32 1, %s9383_s23 }
  0x11   : > { %s378_s29 = ssub.s32 %s9387_s24, %s9522_s27  ;;  %p391_p0 = scmp.ne.s32.totalorder %s9383_s23, %s9379_s22 }
  0x12   : > { %p379_p1 = scmp.eq.s32.totalorder %s378_s29, 0  ;;  %p392_p2 = scmp.eq.s32.totalorder %s9518_s25, 1 }
  0x13   : > { %p397_p3 = scmp.ne.s32.totalorder %s9379_s22, %s9375_s21  ;;  %p398_p4 = scmp.eq.s32.totalorder %s7315_s26, 1 }
  0x14   : > { %s9533_s30 = scalar_select %p379_p1, %s9383_s23, %s381_s28  }
  0x15   : > { %p9535_p5 = por %p392_p2, %p391_p0  ;;  %p9539_p6 = por %p398_p4, %p397_p3 }
  0x16   : > { %15057 = sst [smem:[#allocation23_spill]] %s9533_s30  ;;  %p7316_p7 = scmp.ge.s32.totalorder %s9387_s24, 1 }
  0x17   : > { %s15058_s0 = scalar_select %p9535_p5, 1, 0 }
  0x18   : > { %s15060_s17 = scalar_select %p9539_p6, 1, 0 }
  0x19   : > { %15059 = sst [smem:[#allocation24_spill]] %s15058_s0  ;;  %p405_p8 = scmp.lt.s32.totalorder %s9387_s24, 3 }
  0x1a   : > { %15061 = sst [smem:[#allocation25_spill]] %s15060_s17  ;;  %p14790_p9 = scmp.eq.s32.totalorder %s9518_s25, 0 }
  0x1b   : > { %p9546_p10 = pnand %p7316_p7, %p405_p8  ;;  %s9389_s19 = smov [#allocation5]  }
  0x1c   : > { %s429_s20 = sshll.u32 %s9389_s19, 4  ;;  %s9390_s26 = smov [#allocation8]   ;;  %s430_s20 = int_to_ptr.vmem [resolvable:$true] %s429_s20 }
  0x1d   : > { %s15062_s18 = scalar_select %p9546_p10, 1, 0 }
  0x1e   : > { %p8157_p11 = pneg %p9546_p10  ;;  %s467_s28 = sshll.u32 %s9390_s26, 4  ;;  %s9558_s28 = int_to_ptr.vmem [resolvable:$true] %s467_s28 }
  0x1f   : > { %s9391_s30 = smov [#allocation2]   ;;  %s15064_s2 = sld [smem:[#allocation196_spill]] }
  0x20   : > { %p9554_p12 = pnand %p14790_p9, %p8157_p11  ;;  %s9560_s23 = sshll.u32 %s9391_s30, 4  ;;  %s419_s23 = int_to_ptr.vmem [resolvable:$true] %s9560_s23 }
  0x22   : > { %p9570_p0 = pneg %p9554_p12 }
  0x25   : > { %s9141_s19 = scalar_lea.hbm %s15064_s2, 16 }
  0x26   : > { %p9142_p13 = scmp.ne.s32.totalorder %s15064_s2, %s9141_s19  ;;  %p9148_p3 = scmp.lt.u32.totalorder %s9141_s19, %s15064_s2 }
  0x28   : > { %p9144_p1 = pnand %p9570_p0, %p9142_p13 }
  0x2a   : > { %p9145_p2 = pneg %p9144_p1 }
  0x2c   : > { %p9150_p4 = pnand %p9148_p3, %p9145_p2 }
  0x2e   : > { %9153 = shalt.err (!%p9150_p4)
}
  0x2f   : > { %s9154_s27 = scalar_lea.vmem %s430_s20, 16  ;;  %s9161_s21 = scalar_lea.vmem %s430_s20, 32 }
  0x30   : > { %p9155_p7 = scmp.ne.s32.totalorder %s430_s20, %s9154_s27  ;;  %p9162_p9 = scmp.lt.s32.totalorder %s430_s20, %s430_s20 }
  0x31   : > { %p9163_p6 = scmp.lt.s32.totalorder %s9161_s21, %s9154_s27 }
  0x32   : > { %p9157_p8 = pnand %p9155_p7, %p9570_p0 }
  0x33   : > { %p9164_p5 = por %p9163_p6, %p9162_p9 }
  0x34   : > { %p9158_p11 = pneg %p9157_p8 }
  0x36   : > { %p9165_p10 = pnand %p9164_p5, %p9158_p11 }
  0x38   : > { %9168 = shalt.err (!%p9165_p10)
}
  0x39   : > { %8163 = dma.hbm_to_vmem [thread:$0]  (!%p9554_p12), %s15064_s2, 16, %s430_s20, [#allocation6]  }
  0x3a   : > { %s9169_s30 = scalar_lea.hbm %s14775_s9, 4096 }
  0x3b   : > { %p9170_p13 = scmp.ne.s32.totalorder %s14775_s9, %s9169_s30  ;;  %p9176_p5 = scmp.lt.u32.totalorder %s9169_s30, %s14775_s9 }
  0x3d   : > { %p9172_p1 = pnand %p9170_p13, %p9570_p0 }
  0x3f   : > { %p9173_p6 = pneg %p9172_p1 }
  0x41   : > { %p9178_p9 = pnand %p9176_p5, %p9173_p6 }
  0x43   : > { %9181 = shalt.err (!%p9178_p9)
}
  0x44   : > { %s9182_s20 = scalar_lea.vmem %s9558_s28, 4096  ;;  %p9190_p4 = scmp.lt.s32.totalorder %s9558_s28, %s9558_s28 }
  0x45   : > { %p9183_p10 = scmp.ne.s32.totalorder %s9558_s28, %s9182_s20  ;;  %p9191_p7 = scmp.lt.s32.totalorder %s9182_s20, %s9182_s20 }
  0x47   : > { %p9185_p2 = pnand %p9183_p10, %p9570_p0  ;;  %p9192_p8 = por %p9191_p7, %p9190_p4 }
  0x49   : > { %p9186_p3 = pneg %p9185_p2 }
  0x4b   : > { %p9193_p11 = pnand %p9192_p8, %p9186_p3 }
  0x4d   : > { %9196 = shalt.err (!%p9193_p11)
}
  0x4e   : > { %s9392_s12 = smov 256   ;;  %s9393_s0 = smov 16  }
  0x4f   : > { %8169 = dma.hbm_to_vmem [thread:$0]  (!%p9554_p12), %s14775_s9, 4096, %s9558_s28, [#allocation9], %s9392_s12, %s9392_s12, %s9393_s0  }
  0x50   : > { %s15066_s1 = sld [smem:[#allocation195_spill]] }
  0x56   : > { %s9197_s30 = scalar_lea.hbm %s15066_s1, 16 }
  0x57   : > { %p9198_p13 = scmp.ne.s32.totalorder %s15066_s1, %s9197_s30  ;;  %p9204_p5 = scmp.lt.u32.totalorder %s9197_s30, %s15066_s1 }
  0x59   : > { %p9200_p1 = pnand %p9198_p13, %p9570_p0 }
  0x5b   : > { %p9201_p6 = pneg %p9200_p1 }
  0x5d   : > { %p9206_p9 = pnand %p9204_p5, %p9201_p6 }
  0x5f   : > { %9209 = shalt.err (!%p9206_p9)
}
  0x60   : > { %s9210_s24 = scalar_lea.vmem %s419_s23, 16  ;;  %s9217_s28 = scalar_lea.vmem %s419_s23, 32 }
  0x61   : > { %p9211_p10 = scmp.ne.s32.totalorder %s419_s23, %s9210_s24  ;;  %p9218_p4 = scmp.lt.s32.totalorder %s419_s23, %s419_s23 }
  0x62   : > { %p9219_p7 = scmp.lt.s32.totalorder %s9217_s28, %s9210_s24 }
  0x63   : > { %p9213_p2 = pnand %p9211_p10, %p9570_p0 }
  0x64   : > { %p9220_p8 = por %p9219_p7, %p9218_p4 }
  0x65   : > { %p9214_p3 = pneg %p9213_p2 }
  0x67   : > { %p9221_p11 = pnand %p9220_p8, %p9214_p3 }
  0x69   : > { %9224 = shalt.err (!%p9221_p11)
}
  0x6a   : > { %8160 = dma.hbm_to_vmem [thread:$0]  (!%p9554_p12), %s15066_s1, 16, %s419_s23, [#allocation3]  }
  0x6b   : > { %s9394_s2 = smov [#allocation7]   ;;  %s9225_s30 = scalar_lea.hbm %s14769_s3, 3072 }
  0x6c   : > { %s439_s17 = sshll.u32 %s9394_s2, 4  ;;  %p9226_p13 = scmp.ne.s32.totalorder %s14769_s3, %s9225_s30  ;;  %s440_s17 = int_to_ptr.vmem [resolvable:$true] %s439_s17 }
  0x6d   : > { %p9232_p5 = scmp.lt.u32.totalorder %s9225_s30, %s14769_s3 }
  0x6e   : > { %p9228_p1 = pnand %p9226_p13, %p9570_p0 }
  0x70   : > { %p9229_p6 = pneg %p9228_p1 }
  0x72   : > { %p9234_p9 = pnand %p9232_p5, %p9229_p6 }
  0x74   : > { %9237 = shalt.err (!%p9234_p9)
}
  0x75   : > { %s9238_s23 = scalar_lea.vmem %s440_s17, 3072  ;;  %p9246_p4 = scmp.lt.s32.totalorder %s440_s17, %s440_s17 }
  0x76   : > { %p9239_p10 = scmp.ne.s32.totalorder %s440_s17, %s9238_s23  ;;  %p9247_p7 = scmp.lt.s32.totalorder %s9238_s23, %s9238_s23 }
  0x78   : > { %p9241_p2 = pnand %p9239_p10, %p9570_p0  ;;  %p9248_p8 = por %p9247_p7, %p9246_p4 }
  0x7a   : > { %p9242_p3 = pneg %p9241_p2 }
  0x7c   : > { %p9249_p11 = pnand %p9248_p8, %p9242_p3 }
  0x7e   : > { %9252 = shalt.err (!%p9249_p11)
}
  0x7f   : > { %s9395_s28 = smov 192   ;;  %s9396_s12 = smov 12  }
  0x80   : > { %8166 = dma.hbm_to_vmem [thread:$0]  (!%p9554_p12), %s14769_s3, 3072, %s440_s17, [#allocation6], %s9395_s28, %s9395_s28, %s9396_s12  }
  0x81   : > { %s9397_s16 = smov [#allocation10]   ;;  %s9253_s21 = scalar_lea.hbm %s14777_s11, 4096 }
  0x82   : > { %s483_s19 = sshll.u32 %s9397_s16, 4  ;;  %p9254_p13 = scmp.ne.s32.totalorder %s14777_s11, %s9253_s21  ;;  %s484_s19 = int_to_ptr.vmem [resolvable:$true] %s483_s19 }
  0x83   : > { %p9260_p5 = scmp.lt.u32.totalorder %s9253_s21, %s14777_s11 }
  0x84   : > { %p9256_p1 = pnand %p9254_p13, %p9570_p0 }
  0x86   : > { %p9257_p6 = pneg %p9256_p1 }
  0x88   : > { %p9262_p9 = pnand %p9260_p5, %p9257_p6 }
  0x8a   : > { %9265 = shalt.err (!%p9262_p9)
}
  0x8b   : > { %s9266_s17 = scalar_lea.vmem %s484_s19, 4096  ;;  %p9274_p4 = scmp.lt.s32.totalorder %s484_s19, %s484_s19 }
  0x8c   : > { %p9267_p10 = scmp.ne.s32.totalorder %s484_s19, %s9266_s17  ;;  %p9275_p7 = scmp.lt.s32.totalorder %s9266_s17, %s9266_s17 }
  0x8e   : > { %p9269_p2 = pnand %p9267_p10, %p9570_p0  ;;  %p9276_p8 = por %p9275_p7, %p9274_p4 }
  0x90   : > { %p9270_p3 = pneg %p9269_p2 }
  0x92   : > { %p9277_p11 = pnand %p9276_p8, %p9270_p3 }
  0x94   : > { %9280 = shalt.err (!%p9277_p11)
}
  0x95   : > { %s9398_s28 = smov 64   ;;  %s9399_s12 = smov 4  }
  0x96   : > { %8172 = dma.hbm_to_vmem [thread:$0]  (!%p9554_p12), %s14777_s11, 4096, %s484_s19, [#allocation9], %s9398_s28, %s9398_s28, %s9399_s12  }
  0x97   : > { %s9400_s2 = smov [#allocation11]   ;;  %s9281_s21 = scalar_lea.hbm %s14781_s15, 2048 }
  0x98   : > { %s505_s16 = sshll.u32 %s9400_s2, 4  ;;  %p9282_p13 = scmp.ne.s32.totalorder %s14781_s15, %s9281_s21  ;;  %s506_s16 = int_to_ptr.vmem [resolvable:$true] %s505_s16 }
  0x99   : > { %p9288_p5 = scmp.lt.u32.totalorder %s9281_s21, %s14781_s15 }
  0x9a   : > { %p9284_p1 = pnand %p9282_p13, %p9570_p0 }
  0x9c   : > { %p9285_p6 = pneg %p9284_p1 }
  0x9e   : > { %p9290_p9 = pnand %p9288_p5, %p9285_p6 }
  0xa0   : > { %9293 = shalt.err (!%p9290_p9)
}
  0xa1   : > { %s9294_s19 = scalar_lea.vmem %s506_s16, 2048  ;;  %p9302_p4 = scmp.lt.s32.totalorder %s506_s16, %s506_s16 }
  0xa2   : > { %p9295_p10 = scmp.ne.s32.totalorder %s506_s16, %s9294_s19  ;;  %p9303_p7 = scmp.lt.s32.totalorder %s9294_s19, %s9294_s19 }
  0xa4   : > { %p9297_p2 = pnand %p9295_p10, %p9570_p0  ;;  %p9304_p8 = por %p9303_p7, %p9302_p4 }
  0xa6   : > { %p9298_p3 = pneg %p9297_p2 }
  0xa8   : > { %p9305_p11 = pnand %p9304_p8, %p9298_p3 }
  0xaa   : > { %9308 = shalt.err (!%p9305_p11)
}
  0xab   : > { %s9401_s28 = smov 128   ;;  %s9402_s12 = smov 8  }
  0xac   : > { %8175 = dma.hbm_to_vmem [thread:$0]  (!%p9554_p12), %s14781_s15, 2048, %s506_s16, [#allocation12], %s9401_s28, %s9401_s28, %s9402_s12  }
  0xad   : > { %p15067_p13 = scmp.ne.s32.totalorder %s15062_s18, 0 }
  0xaf   : > { %529 = sbr.rel (%p15067_p13) target bundleno = 3596 (0xe0c), region = 84 }
  0xb6   : > { %p15068_p1 = scmp.eq.s32.totalorder %s9518_s25, 0 }
  0xb8   : > { %9354 = dma.done.wait (%p15068_p1), [#allocation3], 16   ;;  %p15069_p0 = pmov %p15068_p1 }
  0xba   : > { %9356 = vsyncadd (%p15069_p0), [#allocation3], 4294967280  ;;  %p15070_p6 = pmov %p15069_p0 }
  0xbb   : > { %p15071_p5 = pmov %p15069_p0 }
  0xbc   : > { %9358 = dma.done.wait (%p15070_p6), [#allocation6], 3088  }
  0xbd   : > { %9360 = vsyncadd (%p15071_p5), [#allocation6], 4294964208  ;;  %p15072_p9 = pmov %p15069_p0 }
  0xbe   : > { %p15073_p12 = pmov %p15069_p0 }
  0xbf   : > { %9362 = dma.done.wait (%p15072_p9), [#allocation9], 8192  }
  0xc0   : > { %9364 = vsyncadd (%p15073_p12), [#allocation9], 4294959104  ;;  %p15074_p10 = pmov %p15069_p0 }
  0xc1   : > { %p15075_p2 = pmov %p15069_p0 }
  0xc2   : > { %9366 = dma.done.wait (%p15074_p10), [#allocation12], 2048  }
  0xc3   : > { %9368 = vsyncadd (%p15075_p2), [#allocation12], 4294965248  ;;  %p599_p3 = scmp.lt.s32.totalorder %s9518_s25, 1  ;;  %s15076_s16 = sld [smem:[#allocation194_spill]] }
  0xc4   : > { %s9404_s20 = smov 96   ;;  %s9405_s24 = smov 112  }
  0xc5   : > { %s600_s18 = scalar_select %p599_p3, %s9518_s25, 1 }
  0xc6   : > { %s9406_s23 = smov 16   ;;  %s9407_s17 = smov 64  }
  0xc7   : > { %s7473_s29 = sshll.u32 %s600_s18, 7  ;;  %s9408_s19 = smov 32  }
  0xc8   : > { %s596_s26 = sand.u32 1, %s9379_s22   ;;  %s7474_s27 = sshll.u32 %s9518_s25, 11 }
  0xc9   : > { %s9705_s30 = scalar_lea.vmem %s15076_s16, %s7473_s29  ;;  %s7331_s2 = sshll.u32 %s596_s26, 7 }
  0xca   : > { %v605_v0 = vld [vmem:[%s9705_s30] sm:$0xff]  ;;  %v607_v1 = vld [vmem:[%s9705_s30 + $0x10] sm:$0xff]  ;;  %v606_v2 = vld [vmem:[%s9705_s30 + $0x8] sm:$0xff]  ;;  %s14667_s16 = scalar_lea.vmem [#allocation13], %s7331_s2  ;;  %s14725_s25 = scalar_lea.sflag [#allocation4], %s596_s26 }
  0xcb   : > { %623 = vadd.xlane.f32.xlu0 %v605_v0  ;;  %627 = vadd.xlane.f32.xlu1 %v607_v1  ;;  %v608_v3 = vld [vmem:[%s9705_s30 + $0x18] sm:$0xff]  ;;  %v609_v4 = vld [vmem:[%s9705_s30 + $0x20] sm:$0xff]  ;;  %v610_v5 = vld [vmem:[%s9705_s30 + $0x28] sm:$0xff]  ;;  %s7193_s21 = sshll.u32 %s14667_s16, 4  ;;  %s9409_s12 = smov [#allocation13]   ;;  %s14718_s21 = int_to_ptr.vmem [resolvable:$true] %s7193_s21 }
  0xcc   : > { %v611_v6 = vld [vmem:[%s9705_s30 + $0x30] sm:$0xff]  ;;  %v612_v7 = vld [vmem:[%s9705_s30 + $0x38] sm:$0xff]  ;;  %v613_v8 = vld [vmem:[%s9705_s30 + $0x40] sm:$0xff]  ;;  %s9309_s28 = scalar_lea.vmem %s14718_s21, 2048  ;;  %s9313_s1 = sshll.u32 %s9409_s12, 4  ;;  %s9314_s1 = int_to_ptr.vmem [resolvable:$false] %s9313_s1 }
  0xcd   : > { %v614_v9 = vld [vmem:[%s9705_s30 + $0x48] sm:$0xff]  ;;  %v9718_v10 = vld [vmem:[%s9705_s30 + $0x50] sm:$0xff]  ;;  %v9721_v11 = vld [vmem:[%s9705_s30 + $0x58] sm:$0xff]  ;;  %p9310_p4 = scmp.ne.s32.totalorder %s14718_s21, %s9309_s28  ;;  %s9315_s0 = scalar_lea.vmem %s9314_s1, 4096 }
  0xce   : > { %v9724_v12 = vld [vmem:[%s9705_s30 + $0x60] sm:$0xff]  ;;  %v9727_v13 = vld [vmem:[%s9705_s30 + $0x68] sm:$0xff]  ;;  %v9732_v14 = vld [vmem:[%s9705_s30 + $0x70] sm:$0xff]  ;;  %p9316_p13 = scmp.lt.s32.totalorder %s14718_s21, %s9314_s1  ;;  %p9317_p1 = scmp.lt.s32.totalorder %s9315_s0, %s9309_s28 }
  0xcf   : > { %625 = vadd.xlane.f32.xlu0 %v606_v2  ;;  %629 = vadd.xlane.f32.xlu1 %v608_v3  ;;  %v9735_v15 = vld [vmem:[%s9705_s30 + $0x78] sm:$0xff] }
  0xd0   : > { %p9318_p0 = por %p9317_p1, %p9316_p13 }
  0xd3   : > { %631 = vadd.xlane.f32.xlu0 %v609_v4  ;;  %633 = vadd.xlane.f32.xlu1 %v610_v5 }
  0xd7   : > { %635 = vadd.xlane.f32.xlu0 %v611_v6  ;;  %637 = vadd.xlane.f32.xlu1 %v612_v7 }
  0xdb   : > { %639 = vadd.xlane.f32.xlu0 %v613_v8  ;;  %641 = vadd.xlane.f32.xlu1 %v614_v9 }
  0xdf   : > { %643 = vadd.xlane.f32.xlu0 %v9718_v10  ;;  %645 = vadd.xlane.f32.xlu1 %v9721_v11 }
  0xe3   : > { %647 = vadd.xlane.f32.xlu0 %v9724_v12  ;;  %649 = vadd.xlane.f32.xlu1 %v9727_v13 }
  0xe7   : > { %651 = vadd.xlane.f32.xlu0 %v9732_v14  ;;  %653 = vadd.xlane.f32.xlu1 %v9735_v15 }
 0x158   : > { %v624_v16 = vpop.xlane.xlu0 %623  ;;  %v628_v17 = vpop.xlane.xlu1 %627 }
 0x159   : > { %v656_v18 = vmul.f32 0.0078125, %v624_v16  ;;  %v658_v19 = vmul.f32 0.0078125, %v628_v17 }
 0x15b   : > { %v9741_v20 = vsub.f32 %v605_v0, %v656_v18  ;;  %v9743_v21 = vsub.f32 %v607_v1, %v658_v19  ;;  %v8490_v19 = vld [vmem:[#allocation7 + $0x1c] ss:$12 sps:$4 sm:$0xff]  }
 0x15c   : > { %v626_v22 = vpop.xlane.xlu0 %625  ;;  %v630_v23 = vpop.xlane.xlu1 %629 }
 0x15d   : > { %v657_v24 = vmul.f32 0.0078125, %v626_v22  ;;  %v688_v25 = vmul.f32 %v9741_v20, %v9741_v20  ;;  %v659_v26 = vmul.f32 0.0078125, %v630_v23  ;;  %v690_v27 = vmul.f32 %v9743_v21, %v9743_v21  ;;  %v8492_v22 = vld [vmem:[#allocation7 + $0x8] ss:$12 sps:$4 sm:$0xff]  }
 0x15e   : > { %7763 = vmatprep.subr.bf16.mxu1 %v8492_v22 }
 0x15f   : > { %704 = vadd.xlane.f32.xlu0 %v688_v25  ;;  %v9749_v28 = vsub.f32 %v606_v2, %v657_v24  ;;  %v9751_v29 = vsub.f32 %v608_v3, %v659_v26  ;;  %v8493_v24 = vld [vmem:[#allocation7 + $0x18] ss:$12 sps:$4 sm:$0xff]   ;;  %7764 = vmatpush3.bf16.msra.mxu1 %v8492_v22  ;;  %v8497_v25 = vld [vmem:[#allocation7 + $0x30] ss:$12 sps:$4 sm:$0xff]  }
 0x160   : > { %v632_v30 = vpop.xlane.xlu0 %631  ;;  %v634_v31 = vpop.xlane.xlu1 %633  ;;  %v8498_v26 = vld [vmem:[#allocation7 + $0x4c] ss:$12 sps:$4 sm:$0xff]  }
 0x161   : > { %v660_v32 = vmul.f32 0.0078125, %v632_v30  ;;  %v689_v33 = vmul.f32 %v9749_v28, %v9749_v28  ;;  %v661_v34 = vmul.f32 0.0078125, %v634_v31  ;;  %v691_v35 = vmul.f32 %v9751_v29, %v9751_v29  ;;  %v8501_v30 = vld [vmem:[#allocation7 + $0x48] ss:$12 sps:$4 sm:$0xff]   ;;  %v8502_v31 = vld [vmem:[#allocation7 + $0x64] ss:$12 sps:$4 sm:$0xff]  }
 0x163   : > { %708 = vadd.xlane.f32.xlu0 %v690_v27  ;;  %706 = vadd.xlane.f32.xlu1 %v689_v33  ;;  %v9757_v36 = vsub.f32 %v609_v4, %v660_v32  ;;  %v9759_v37 = vsub.f32 %v610_v5, %v661_v34  ;;  %v8500_v27 = vld [vmem:[#allocation7 + $0x38] ss:$12 sps:$4 sm:$0xff]   ;;  %v8504_v32 = vld [vmem:[#allocation7 + $0x50] ss:$12 sps:$4 sm:$0xff]   ;;  %v8505_v33 = vld [vmem:[#allocation7 + $0x60] ss:$12 sps:$4 sm:$0xff]  }
 0x164   : > { %v636_v38 = vpop.xlane.xlu0 %635  ;;  %v638_v39 = vpop.xlane.xlu1 %637  ;;  %v8506_v34 = vld [vmem:[#allocation7 + $0x7c] ss:$12 sps:$4 sm:$0xff]  }
 0x165   : > { %v662_v40 = vmul.f32 0.0078125, %v636_v38  ;;  %v692_v41 = vmul.f32 %v9757_v36, %v9757_v36  ;;  %v663_v42 = vmul.f32 0.0078125, %v638_v39  ;;  %v693_v43 = vmul.f32 %v9759_v37, %v9759_v37  ;;  %v8509_v38 = vld [vmem:[#allocation7 + $0x78] ss:$12 sps:$4 sm:$0xff]   ;;  %v8510_v39 = vld [vmem:[#allocation7 + $0x94] ss:$12 sps:$4 sm:$0xff]  }
 0x167   : > { %710 = vadd.xlane.f32.xlu1 %v691_v35  ;;  %712 = vadd.xlane.f32.xlu0 %v692_v41  ;;  %v9765_v44 = vsub.f32 %v611_v6, %v662_v40  ;;  %v9767_v45 = vsub.f32 %v612_v7, %v663_v42  ;;  %v8508_v35 = vld [vmem:[#allocation7 + $0x68] ss:$12 sps:$4 sm:$0xff]   ;;  %v8512_v40 = vld [vmem:[#allocation7 + $0x80] ss:$12 sps:$4 sm:$0xff]   ;;  %v8513_v41 = vld [vmem:[#allocation7 + $0x90] ss:$12 sps:$4 sm:$0xff]  }
 0x168   : > { %v640_v46 = vpop.xlane.xlu0 %639  ;;  %v642_v47 = vpop.xlane.xlu1 %641  ;;  %v8514_v42 = vld [vmem:[#allocation7 + $0xac] ss:$12 sps:$4 sm:$0xff]  }
 0x169   : > { %v664_v48 = vmul.f32 0.0078125, %v640_v46  ;;  %v694_v49 = vmul.f32 %v9765_v44, %v9765_v44  ;;  %v665_v50 = vmul.f32 0.0078125, %v642_v47  ;;  %v695_v51 = vmul.f32 %v9767_v45, %v9767_v45  ;;  %v8517_v46 = vld [vmem:[#allocation7 + $0xa8] ss:$12 sps:$4 sm:$0xff]  }
 0x16a   : > { %v14798_v47 = vmov 0  }
 0x16b   : > { %714 = vadd.xlane.f32.xlu1 %v693_v43  ;;  %716 = vadd.xlane.f32.xlu0 %v694_v49  ;;  %v9773_v52 = vsub.f32 %v613_v8, %v664_v48  ;;  %v9775_v53 = vsub.f32 %v614_v9, %v665_v50  ;;  %v8516_v43 = vld [vmem:[#allocation7 + $0x98] ss:$12 sps:$4 sm:$0xff]   ;;  %v8518_v48 = vld [vmem:[#allocation7 + $0xb0] ss:$12 sps:$4 sm:$0xff]  }
 0x16c   : > { %v644_v54 = vpop.xlane.xlu0 %643  ;;  %v646_v55 = vpop.xlane.xlu1 %645  ;;  %1174 = vmatprep.mubr.bf16.mxu0 %v14798_v47 }
 0x16d   : > { %v666_v56 = vmul.f32 0.0078125, %v644_v54  ;;  %v696_v57 = vmul.f32 %v9773_v52, %v9773_v52  ;;  %v667_v58 = vmul.f32 0.0078125, %v646_v55  ;;  %v697_v59 = vmul.f32 %v9775_v53, %v9775_v53 }
 0x16f   : > { %718 = vadd.xlane.f32.xlu1 %v695_v51  ;;  %720 = vadd.xlane.f32.xlu0 %v696_v57  ;;  %v9782_v60 = vsub.f32 %v9718_v10, %v666_v56  ;;  %v9785_v61 = vsub.f32 %v9721_v11, %v667_v58  ;;  %v8487_v11 = vld [vmem:[#allocation7 + $0x4] ss:$12 sps:$4 sm:$0xff]  }
 0x170   : > { %v648_v62 = vpop.xlane.xlu0 %647  ;;  %v650_v63 = vpop.xlane.xlu1 %649  ;;  %1142 = vmatprep.subr.bf16.mxu0 %v8487_v11 }
 0x171   : > { %v668_v0 = vmul.f32 0.0078125, %v648_v62  ;;  %v698_v1 = vmul.f32 %v9782_v60, %v9782_v60  ;;  %v669_v2 = vmul.f32 0.0078125, %v650_v63  ;;  %v699_v3 = vmul.f32 %v9785_v61, %v9785_v61 }
 0x173   : > { %722 = vadd.xlane.f32.xlu1 %v697_v59  ;;  %724 = vadd.xlane.f32.xlu0 %v698_v1  ;;  %v9792_v4 = vsub.f32 %v9724_v12, %v668_v0  ;;  %v9795_v5 = vsub.f32 %v9727_v13, %v669_v2  ;;  %v8489_v13 = vld [vmem:[#allocation7] ss:$12 sps:$4 sm:$0xff]  }
 0x174   : > { %v652_v6 = vpop.xlane.xlu0 %651  ;;  %v654_v7 = vpop.xlane.xlu1 %653  ;;  %1143 = vmatpush1.bf16.msra.mxu0 %v8489_v13 }
 0x175   : > { %v670_v8 = vmul.f32 0.0078125, %v652_v6  ;;  %v700_v9 = vmul.f32 %v9792_v4, %v9792_v4  ;;  %v671_v10 = vmul.f32 0.0078125, %v654_v7  ;;  %v701_v16 = vmul.f32 %v9795_v5, %v9795_v5  ;;  %1144 = vmatprep.subr.bf16.mxu0 %v8490_v19 }
 0x177   : > { %726 = vadd.xlane.f32.xlu1 %v699_v3  ;;  %728 = vadd.xlane.f32.xlu0 %v700_v9  ;;  %v9802_v17 = vsub.f32 %v9732_v14, %v670_v8  ;;  %v9805_v12 = vsub.f32 %v9735_v15, %v671_v10  ;;  %v8494_v14 = vld [vmem:[#allocation7 + $0x34] ss:$12 sps:$4 sm:$0xff]  }
 0x178   : > { %1145 = vmatpush1.bf16.msra.mxu0 %v8493_v24  ;;  %v8496_v15 = vld [vmem:[#allocation7 + $0x20] ss:$12 sps:$4 sm:$0xff]  }
 0x179   : > { %v702_v18 = vmul.f32 %v9802_v17, %v9802_v17  ;;  %v703_v23 = vmul.f32 %v9805_v12, %v9805_v12  ;;  %1146 = vmatprep.subr.bf16.mxu0 %v8494_v14  ;;  %7765 = vmatprep.subr.bf16.mxu1 %v8496_v15 }
 0x17a   : > { %7766 = vmatpush3.bf16.msra.mxu1 %v8496_v15 }
 0x17b   : > { %730 = vadd.xlane.f32.xlu1 %v701_v16  ;;  %732 = vadd.xlane.f32.xlu0 %v702_v18 }
 0x17c   : > { %1147 = vmatpush1.bf16.msra.mxu0 %v8497_v25  ;;  %7767 = vmatprep.subr.bf16.mxu1 %v8500_v27 }
 0x17d   : > { %1148 = vmatprep.subr.bf16.mxu0 %v8498_v26 }
 0x17e   : > { %7768 = vmatpush3.bf16.msra.mxu1 %v8500_v27 }
 0x17f   : > { %734 = vadd.xlane.f32.xlu1 %v703_v23  ;;  %7769 = vmatprep.subr.bf16.mxu1 %v8504_v32 }
 0x180   : > { %1149 = vmatpush1.bf16.msra.mxu0 %v8501_v30 }
 0x181   : > { %1150 = vmatprep.subr.bf16.mxu0 %v8502_v31 }
 0x182   : > { %7770 = vmatpush3.bf16.msra.mxu1 %v8504_v32 }
 0x183   : > { %7771 = vmatprep.subr.bf16.mxu1 %v8508_v35 }
 0x184   : > { %1151 = vmatpush1.bf16.msra.mxu0 %v8505_v33 }
 0x185   : > { %1152 = vmatprep.subr.bf16.mxu0 %v8506_v34 }
 0x186   : > { %7772 = vmatpush3.bf16.msra.mxu1 %v8508_v35 }
 0x187   : > { %7773 = vmatprep.subr.bf16.mxu1 %v8512_v40 }
 0x188   : > { %1153 = vmatpush1.bf16.msra.mxu0 %v8509_v38 }
 0x189   : > { %1154 = vmatprep.subr.bf16.mxu0 %v8510_v39 }
 0x18a   : > { %7774 = vmatpush3.bf16.msra.mxu1 %v8512_v40 }
 0x18b   : > { %7775 = vmatprep.subr.bf16.mxu1 %v8516_v43 }
 0x18c   : > { %1155 = vmatpush1.bf16.msra.mxu0 %v8513_v41 }
 0x18d   : > { %1156 = vmatprep.subr.bf16.mxu0 %v8514_v42 }
 0x18e   : > { %7776 = vmatpush3.bf16.msra.mxu1 %v8516_v43 }
 0x18f   : > { %7777 = vmatprep.subr.bf16.mxu1 %v8518_v48 }
 0x190   : > { %1157 = vmatpush1.bf16.msra.mxu0 %v8517_v46 }
 0x192   : > { %7778 = vmatpush3.bf16.msra.mxu1 %v8518_v48 }
 0x1ec   : > { %v705_v49 = vpop.xlane.xlu0 %704 }
 0x1ed   : > { %v737_v50 = vmul.f32 0.007874016, %v705_v49 }
 0x1ef   : > { %8607 = vrsqrt.f32 %v737_v50  ;;  %vm755_vm0 = vcmp.eq.f32.partialorder %v737_v50, inf  ;;  %v758_v7 = vand.u32 2147483648, %v737_v50  ;;  %vm757_vm1 = vcmp.eq.f32.partialorder %v737_v50, 0.0 }
 0x1f0   : > { %v707_v51 = vpop.xlane.xlu1 %706  ;;  %v709_v54 = vpop.xlane.xlu0 %708 }
 0x1f1   : > { %v738_v55 = vmul.f32 0.007874016, %v707_v51  ;;  %v9812_v56 = vmul.f32 0.007874016, %v709_v54 }
 0x1f3   : > { %8609 = vrsqrt.f32 %v738_v55  ;;  %vm762_vm2 = vcmp.eq.f32.partialorder %v738_v55, inf  ;;  %vm764_vm3 = vcmp.eq.f32.partialorder %v738_v55, 0.0  ;;  %v765_v23 = vand.u32 2147483648, %v738_v55 }
 0x1f4   : > { %8611 = vrsqrt.f32 %v9812_v56  ;;  %v711_v57 = vpop.xlane.xlu1 %710  ;;  %v713_v58 = vpop.xlane.xlu0 %712  ;;  %vm769_vm4 = vcmp.eq.f32.partialorder %v9812_v56, inf  ;;  %vm771_vm5 = vcmp.eq.f32.partialorder %v9812_v56, 0.0  ;;  %v772_v14 = vand.u32 2147483648, %v9812_v56 }
 0x1f5   : > { %v9815_v59 = vmul.f32 0.007874016, %v711_v57  ;;  %v9817_v62 = vmul.f32 0.007874016, %v713_v58 }
 0x1f7   : > { %8613 = vrsqrt.f32 %v9815_v59  ;;  %vm776_vm6 = vcmp.eq.f32.partialorder %v9815_v59, inf  ;;  %vm778_vm7 = vcmp.eq.f32.partialorder %v9815_v59, 0.0  ;;  %v779_v25 = vand.u32 2147483648, %v9815_v59 }
 0x1f8   : > { %8615 = vrsqrt.f32 %v9817_v62  ;;  %v715_v63 = vpop.xlane.xlu1 %714  ;;  %v717_v0 = vpop.xlane.xlu0 %716  ;;  %vm783_vm8 = vcmp.eq.f32.partialorder %v9817_v62, inf  ;;  %v786_v32 = vand.u32 2147483648, %v9817_v62  ;;  %vm785_vm13 = vcmp.eq.f32.partialorder %v9817_v62, 0.0 }
 0x1f9   : > { %v8608_v1 = vpop.eup %8607  ;;  %v9821_v2 = vmul.f32 0.007874016, %v715_v63  ;;  %v9823_v3 = vmul.f32 0.007874016, %v717_v0 }
 0x1fa   : > { %v754_v6 = vmul.f32 %v8608_v1, %v737_v50 }
 0x1fb   : > { %8617 = vrsqrt.f32 %v9821_v2  ;;  %vm790_vm9 = vcmp.eq.f32.partialorder %v9821_v2, inf  ;;  %v793_v35 = vand.u32 2147483648, %v9821_v2  ;;  %vm797_vm10 = vcmp.eq.f32.partialorder %v9823_v3, inf }
 0x1fc   : > { %v756_v8 = vsel %vm755_vm0, %v737_v50, %v754_v6  ;;  %8619 = vrsqrt.f32 %v9823_v3  ;;  %v719_v9 = vpop.xlane.xlu1 %718  ;;  %v721_v10 = vpop.xlane.xlu0 %720  ;;  %v800_v42 = vand.u32 2147483648, %v9823_v3  ;;  %vm792_vm14 = vcmp.eq.f32.partialorder %v9821_v2, 0.0 }
 0x1fd   : > { %v8610_v11 = vpop.eup %8609  ;;  %v9827_v16 = vmul.f32 0.007874016, %v719_v9  ;;  %v9829_v13 = vmul.f32 0.007874016, %v721_v10  ;;  %v759_v18 = vsel %vm757_vm1, %v758_v7, %v756_v8  ;;  %vm799_vm0 = vcmp.eq.f32.partialorder %v9823_v3, 0.0 }
 0x1fe   : > { %v8612_v19 = vpop.eup %8611  ;;  %v761_v22 = vmul.f32 %v8610_v11, %v738_v55  ;;  %v865_v24 = vadd.f32 1e-06, %v759_v18 }
 0x1ff   : > { %8621 = vrsqrt.f32 %v9827_v16  ;;  %v768_v31 = vmul.f32 %v8612_v19, %v9812_v56  ;;  %vm804_vm11 = vcmp.eq.f32.partialorder %v9827_v16, inf  ;;  %v807_v50 = vand.u32 2147483648, %v9827_v16 }
 0x200   : > { %v763_v15 = vsel %vm762_vm2, %v738_v55, %v761_v22  ;;  %8623 = vrsqrt.f32 %v9829_v13  ;;  %v723_v26 = vpop.xlane.xlu1 %722  ;;  %v725_v27 = vpop.xlane.xlu0 %724  ;;  %vm811_vm12 = vcmp.eq.f32.partialorder %v9829_v13, inf  ;;  %v814_v57 = vand.u32 2147483648, %v9829_v13 }
 0x201   : > { %v8614_v30 = vpop.eup %8613  ;;  %v9843_v33 = vmul.f32 0.007874016, %v723_v26  ;;  %v9847_v38 = vmul.f32 0.007874016, %v725_v27  ;;  %8625 = vrcp.f32 %v865_v24  ;;  %v766_v40 = vsel %vm764_vm3, %v765_v23, %v763_v15 }
 0x202   : > { %v8616_v34 = vpop.eup %8615  ;;  %v775_v39 = vmul.f32 %v8614_v30, %v9815_v59  ;;  %v770_v49 = vsel %vm769_vm4, %v9812_v56, %v768_v31  ;;  %v866_v63 = vadd.f32 1e-06, %v766_v40  ;;  %vm806_vm1 = vcmp.eq.f32.partialorder %v9827_v16, 0.0 }
 0x203   : > { %8627 = vrsqrt.f32 %v9843_v33  ;;  %v782_v41 = vmul.f32 %v8616_v34, %v9817_v62  ;;  %vm818_vm15 = vcmp.eq.f32.partialorder %v9843_v33, inf  ;;  %v821_v1 = vand.u32 2147483648, %v9843_v33 }
 0x204   : > { %8629 = vrsqrt.f32 %v9847_v38  ;;  %v727_v43 = vpop.xlane.xlu1 %726  ;;  %v729_v46 = vpop.xlane.xlu0 %728  ;;  %v777_v0 = vsel %vm776_vm6, %v9815_v59, %v775_v39  ;;  %vm813_vm2 = vcmp.eq.f32.partialorder %v9829_v13, 0.0  ;;  %vm825_vm3 = vcmp.eq.f32.partialorder %v9847_v38, inf }
 0x205   : > { %v8618_v48 = vpop.eup %8617  ;;  %v9862_v51 = vmul.f32 0.007874016, %v727_v43  ;;  %v9868_v58 = vmul.f32 0.007874016, %v729_v46  ;;  %v784_v6 = vsel %vm783_vm8, %v9817_v62, %v782_v41  ;;  %v828_v11 = vand.u32 2147483648, %v9847_v38 }
 0x206   : > { %v8620_v54 = vpop.eup %8619  ;;  %v789_v55 = vmul.f32 %v8618_v48, %v9821_v2  ;;  %v773_v19 = vsel %vm771_vm5, %v772_v14, %v770_v49  ;;  %vm820_vm6 = vcmp.eq.f32.partialorder %v9843_v33, 0.0  ;;  %v780_v56 = vsel %vm778_vm7, %v779_v25, %v777_v0  ;;  %v9920_v41 = vld [vmem:[#allocation2] ss:$0 sm:$0xff] }
 0x207   : > { %8631 = vrsqrt.f32 %v9862_v51  ;;  %v796_v7 = vmul.f32 %v8620_v54, %v9823_v3  ;;  %vm832_vm4 = vcmp.eq.f32.partialorder %v9862_v51, inf  ;;  %v835_v27 = vand.u32 2147483648, %v9862_v51 }
 0x208   : > { %8633 = vrsqrt.f32 %v9868_v58  ;;  %v731_v8 = vpop.xlane.xlu1 %730  ;;  %v733_v9 = vpop.xlane.xlu0 %732  ;;  %v791_v23 = vsel %vm790_vm9, %v9821_v2, %v789_v55  ;;  %vm827_vm5 = vcmp.eq.f32.partialorder %v9847_v38, 0.0  ;;  %vm839_vm8 = vcmp.eq.f32.partialorder %v9868_v58, inf }
 0x209   : > { %v8622_v10 = vpop.eup %8621  ;;  %v9887_v18 = vmul.f32 0.007874016, %v731_v8  ;;  %v9896_v15 = vmul.f32 0.007874016, %v733_v9  ;;  %8635 = vrcp.f32 %v866_v63  ;;  %v798_v30 = vsel %vm797_vm10, %v9823_v3, %v796_v7  ;;  %v9933_v7 = vld [vmem:[#allocation5] ss:$0 sm:$0xff] }
 0x20a   : > { %v8624_v22 = vpop.eup %8623  ;;  %v803_v24 = vmul.f32 %v8622_v10, %v9827_v16  ;;  %v842_v31 = vand.u32 2147483648, %v9868_v58  ;;  %v867_v49 = vadd.f32 1e-06, %v773_v19  ;;  %v868_v54 = vadd.f32 1e-06, %v780_v56 }
 0x20b   : > { %v810_v26 = vmul.f32 %v8624_v22, %v9829_v13  ;;  %8637 = vrsqrt.f32 %v9887_v18  ;;  %v8626_v14 = vpop.eup %8625  ;;  %vm846_vm9 = vcmp.eq.f32.partialorder %v9887_v18, inf  ;;  %v849_v25 = vand.u32 2147483648, %v9887_v18 }
 0x20c   : > { %8639 = vrsqrt.f32 %v9896_v15  ;;  %v735_v34 = vpop.xlane.xlu1 %734  ;;  %v805_v59 = vsel %vm804_vm11, %v9827_v16, %v803_v24  ;;  %vm853_vm10 = vcmp.eq.f32.partialorder %v9896_v15, inf  ;;  %v882_v48 = vmul.f32 %v8626_v14, %v9741_v20 }
 0x20d   : > { %v8628_v39 = vpop.eup %8627  ;;  %v9918_v40 = vmul.f32 0.007874016, %v735_v34  ;;  %v812_v55 = vsel %vm811_vm12, %v9829_v13, %v810_v26  ;;  %vm841_vm11 = vcmp.eq.f32.partialorder %v9868_v58, 0.0  ;;  %v856_v0 = vand.u32 2147483648, %v9896_v15 }
 0x20e   : > { %v8630_v43 = vpop.eup %8629  ;;  %v817_v46 = vmul.f32 %v8628_v39, %v9843_v33  ;;  %v919_v9 = vmul.f32 %v9920_v41, %v882_v48  ;;  %vm855_vm12 = vcmp.eq.f32.partialorder %v9896_v15, 0.0  ;;  %v787_v22 = vsel %vm785_vm13, %v786_v32, %v784_v6 }
 0x20f   : > { %v824_v63 = vmul.f32 %v8630_v43, %v9847_v38  ;;  %8641 = vrsqrt.f32 %v9918_v40  ;;  %v863_v8 = vand.u32 2147483648, %v9918_v40  ;;  %vm860_vm7 = vcmp.eq.f32.partialorder %v9918_v40, inf }
 0x210   : > { %v819_v20 = vsel %vm818_vm15, %v9843_v33, %v817_v46  ;;  %8643 = vrcp.f32 %v867_v49  ;;  %v794_v24 = vsel %vm792_vm14, %v793_v35, %v791_v23  ;;  %vm862_vm15 = vcmp.eq.f32.partialorder %v9918_v40, 0.0 }
 0x211   : > { %v8632_v10 = vpop.eup %8631  ;;  %v826_v19 = vsel %vm825_vm3, %v9847_v38, %v824_v63  ;;  %8645 = vrcp.f32 %v868_v54  ;;  %v941_v14 = vadd.f32 %v9933_v7, %v919_v9  ;;  %v869_v34 = vadd.f32 1e-06, %v787_v22 }
 0x212   : > { %v8634_v26 = vpop.eup %8633  ;;  %v831_v56 = vmul.f32 %v8632_v10, %v9862_v51  ;;  %v870_v39 = vadd.f32 1e-06, %v794_v24  ;;  %v801_v62 = vsel %vm799_vm0, %v800_v42, %v798_v30  ;;  %v808_v2 = vsel %vm806_vm1, %v807_v50, %v805_v59 }
 0x213   : > { %v838_v43 = vmul.f32 %v8634_v26, %v9868_v58  ;;  %v815_v32 = vsel %vm813_vm2, %v814_v57, %v812_v55  ;;  %v8636_v35 = vpop.eup %8635  ;;  %8647 = vrcp.f32 %v869_v34  ;;  %v871_v23 = vadd.f32 1e-06, %v801_v62 }
 0x214   : > { %v833_v6 = vsel %vm832_vm4, %v9862_v51, %v831_v56  ;;  %v872_v46 = vadd.f32 1e-06, %v808_v2  ;;  %v884_v16 = vmul.f32 %v8636_v35, %v9749_v28  ;;  %8649 = vrcp.f32 %v870_v39 }
 0x215   : > { %v8638_v3 = vpop.eup %8637  ;;  %v840_v42 = vsel %vm839_vm8, %v9868_v58, %v838_v43  ;;  %v822_v13 = vsel %vm820_vm6, %v821_v1, %v819_v20  ;;  %8651 = vrcp.f32 %v871_v23  ;;  %v873_v30 = vadd.f32 1e-06, %v815_v32 }
 0x216   : > { %v8640_v50 = vpop.eup %8639  ;;  %v845_v57 = vmul.f32 %v8638_v3, %v9887_v18  ;;  %v874_v59 = vadd.f32 1e-06, %v822_v13  ;;  %v920_v49 = vmul.f32 %v9920_v41, %v884_v16  ;;  %8653 = vrcp.f32 %v872_v46 }
 0x217   : > { %v852_v48 = vmul.f32 %v8640_v50, %v9896_v15  ;;  %v829_v28 = vsel %vm827_vm5, %v828_v11, %v826_v19  ;;  %8655 = vrcp.f32 %v873_v30  ;;  %vm15077_vm13 = vcmp.eq.f32.partialorder %v9862_v51, 0.0 }
 0x218   : > { %v847_v33 = vsel %vm846_vm9, %v9887_v18, %v845_v57  ;;  %v836_v1 = vsel %vm15077_vm13, %v835_v27, %v833_v6  ;;  %v875_v54 = vadd.f32 1e-06, %v829_v28  ;;  %v942_v20 = vadd.f32 %v9933_v7, %v920_v49 }
 0x219   : > { %v8642_v55 = vpop.eup %8641  ;;  %v854_v63 = vsel %vm853_vm10, %v9896_v15, %v852_v48  ;;  %8657 = vrcp.f32 %v874_v59  ;;  %v876_v38 = vadd.f32 1e-06, %v836_v1  ;;  %v843_v51 = vsel %vm841_vm11, %v842_v31, %v840_v42 }
 0x21a   : > { %v8644_v11 = vpop.eup %8643  ;;  %v859_v9 = vmul.f32 %v8642_v55, %v9918_v40  ;;  %8659 = vrcp.f32 %v875_v54  ;;  %vm15078_vm14 = vcmp.eq.f32.partialorder %v9887_v18, 0.0  ;;  %v957_v19 = vpack.c.bf16 %v942_v20, %v941_v14 }
 0x21b   : > { %v850_v27 = vsel %vm15078_vm14, %v849_v25, %v847_v33  ;;  %v8646_v10 = vpop.eup %8645  ;;  %v886_v22 = vmul.f32 %v8644_v11, %v9743_v21  ;;  %8661 = vrcp.f32 %v876_v38  ;;  %v877_v24 = vadd.f32 1e-06, %v843_v51 }
 0x21c   : > { %v861_v26 = vsel %vm860_vm7, %v9918_v40, %v859_v9  ;;  %v888_v56 = vmul.f32 %v8646_v10, %v9751_v29  ;;  %v878_v34 = vadd.f32 1e-06, %v850_v27  ;;  %v857_v58 = vsel %vm855_vm12, %v856_v0, %v854_v63  ;;  %1175 = vmatmul.mubr.bf16.vlgmr.msra.gmra.mrb[0].mxu0 %v957_v19  ;;  %7779 = vmatprep.mubr.bf16.mxu1 %v957_v19 }
 0x21d   : > { %v921_v18 = vmul.f32 %v9920_v41, %v886_v22  ;;  %8663 = vrcp.f32 %v877_v24  ;;  %v864_v21 = vsel %vm862_vm15, %v863_v8, %v861_v26  ;;  %v879_v31 = vadd.f32 1e-06, %v857_v58  ;;  %v8648_v25 = vpop.eup %8647  ;;  %1184 = vmatprep.mubr.bf16.mxu0 %v14798_v47 }
 0x21e   : > { %v922_v29 = vmul.f32 %v9920_v41, %v888_v56  ;;  %8665 = vrcp.f32 %v878_v34  ;;  %v880_v14 = vadd.f32 1e-06, %v864_v21  ;;  %v8650_v15 = vpop.eup %8649  ;;  %v890_v0 = vmul.f32 %v8648_v25, %v9757_v36 }
 0x21f   : > { %v8652_v39 = vpop.eup %8651  ;;  %v943_v43 = vadd.f32 %v9933_v7, %v921_v18  ;;  %v892_v2 = vmul.f32 %v8650_v15, %v9759_v37  ;;  %vm2248_vm0 = vcmask 130048   ;;  %vm3257_vm1 = vcmask 261120  }
 0x220   : > { %v944_v62 = vadd.f32 %v9933_v7, %v922_v29  ;;  %8667 = vrcp.f32 %v880_v14  ;;  %v8654_v40 = vpop.eup %8653  ;;  %v923_v8 = vmul.f32 %v9920_v41, %v890_v0  ;;  %v894_v32 = vmul.f32 %v8652_v39, %v9765_v44 }
 0x221   : > { %8669 = vrcp.f32 %v879_v31  ;;  %v8656_v35 = vpop.eup %8655  ;;  %v924_v23 = vmul.f32 %v9920_v41, %v892_v2  ;;  %v896_v36 = vmul.f32 %v8654_v40, %v9767_v45  ;;  %vm5074_vm2 = vcmask 523264  }
 0x222   : > { %v958_v6 = vpack.c.bf16 %v944_v62, %v943_v43  ;;  %v925_v3 = vmul.f32 %v9920_v41, %v894_v32  ;;  %v898_v42 = vmul.f32 %v8656_v35, %v9773_v52  ;;  %v945_v37 = vadd.f32 %v9933_v7, %v923_v8 }
 0x223   : > { %v8658_v46 = vpop.eup %8657  ;;  %v946_v13 = vadd.f32 %v9933_v7, %v924_v23  ;;  %v926_v44 = vmul.f32 %v9920_v41, %v896_v36  ;;  %vm5091_vm3 = vcmask 785408  }
 0x224   : > { %v8660_v16 = vpop.eup %8659  ;;  %7780 = vmatmul.mubr.bf16.vlgmr.msra.gmra.mrb[0].mxu1 %v958_v6  ;;  %v900_v50 = vmul.f32 %v8658_v46, %v9775_v53  ;;  %1185 = vmatmul.mubr.bf16.gmra.mrb[4].mxu0 %v958_v6  ;;  %v947_v30 = vadd.f32 %v9933_v7, %v925_v3  ;;  %v927_v45 = vmul.f32 %v9920_v41, %v898_v42 }
 0x225   : > { %v8662_v57 = vpop.eup %8661  ;;  %v902_v59 = vmul.f32 %v8660_v16, %v9782_v60  ;;  %v959_v48 = vpack.c.bf16 %v946_v13, %v945_v37  ;;  %v948_v52 = vadd.f32 %v9933_v7, %v926_v44  ;;  %1194 = vmatprep.mubr.bf16.mxu0 %v14798_v47 }
 0x226   : > { %v928_v49 = vmul.f32 %v9920_v41, %v900_v50  ;;  %v904_v28 = vmul.f32 %v8662_v57, %v9785_v61  ;;  %v949_v53 = vadd.f32 %v9933_v7, %v927_v45 }
 0x227   : > { %v8664_v33 = vpop.eup %8663  ;;  %7783 = vmatprep.mubr.bf16.mxu1 %v959_v48  ;;  %v960_v54 = vpack.c.bf16 %v948_v52, %v947_v30  ;;  %v929_v9 = vmul.f32 %v9920_v41, %v902_v59 }
 0x228   : > { %v8666_v1 = vpop.eup %8665  ;;  %v950_v55 = vadd.f32 %v9933_v7, %v928_v49  ;;  %v930_v63 = vmul.f32 %v9920_v41, %v904_v28  ;;  %v906_v60 = vmul.f32 %v8664_v33, %v9792_v4 }
 0x229   : > { %v908_v20 = vmul.f32 %v8666_v1, %v9795_v5  ;;  %v951_v5 = vadd.f32 %v9933_v7, %v929_v9 }
 0x22a   : > { %v8668_v38 = vpop.eup %8667  ;;  %v961_v11 = vpack.c.bf16 %v950_v55, %v949_v53  ;;  %v931_v61 = vmul.f32 %v9920_v41, %v906_v60  ;;  %v952_v10 = vadd.f32 %v9933_v7, %v930_v63 }
 0x22b   : > { %v8670_v51 = vpop.eup %8669  ;;  %v932_v27 = vmul.f32 %v9920_v41, %v908_v20  ;;  %v912_v19 = vmul.f32 %v8668_v38, %v9805_v12 }
 0x22c   : > { %7784 = vmatmul.mubr.bf16.gmra.mrb[4].mxu1 %v960_v54  ;;  %1195 = vmatmul.mubr.bf16.gmra.mrb[8].mxu0 %v959_v48  ;;  %v910_v22 = vmul.f32 %v8670_v51, %v9802_v17  ;;  %v953_v24 = vadd.f32 %v9933_v7, %v931_v61  ;;  %v962_v26 = vpack.c.bf16 %v952_v10, %v951_v5  ;;  %v999_v17 = vlaneseq }
 0x22d   : > { %7787 = vmatprep.mubr.bf16.mxu1 %v961_v11  ;;  %v954_v4 = vadd.f32 %v9933_v7, %v932_v27  ;;  %1204 = vmatprep.mubr.bf16.mxu0 %v14798_v47  ;;  %v934_v56 = vmul.f32 %v9920_v41, %v912_v19 }
 0x22e   : > { %v933_v58 = vmul.f32 %v9920_v41, %v910_v22  ;;  %v10067_v41 = vshrl.u32 %v999_v17, 7 }
 0x22f   : > { %v963_v34 = vpack.c.bf16 %v954_v4, %v953_v24  ;;  %v956_v12 = vadd.f32 %v9933_v7, %v934_v56 }
 0x230   : > { %v955_v18 = vadd.f32 %v9933_v7, %v933_v58  ;;  %15079 = vst [vmem:[#allocation26_spill] sm:$0xff] %v10067_v41  ;;  %v14797_v31 = vsub.s32 0, %v10067_v41  ;;  %v997_v7 = vld [vmem:[%s14770_s4] sm:$0x7]  ;;  %v14796_v39 = vsub.s32 2, %v10067_v41  ;;  %v14795_v13 = vsub.s32 1, %v10067_v41 }
 0x232   : > { %v964_v21 = vpack.c.bf16 %v956_v12, %v955_v18  ;;  %v10075_v25 = vrot.slane %v997_v7, %v14797_v31  ;;  %v10090_v2 = vrot.slane %v997_v7, %v14796_v39  ;;  %v10125_v59 = vrot.slane %v997_v7, %v14795_v13 }
 0x234   : > { %7788 = vmatmul.mubr.bf16.gmra.mrb[8].mxu1 %v962_v26  ;;  %1205 = vmatmul.mubr.bf16.gmra.mrb[12].mxu0 %v960_v54 }
 0x235   : > { %7791 = vmatprep.mubr.bf16.mxu1 %v963_v34  ;;  %1214 = vmatprep.mubr.bf16.mxu0 %v14798_v47 }
 0x23c   : > { %7792 = vmatmul.mubr.bf16.gmra.mrb[12].mxu1 %v964_v21  ;;  %1215 = vmatmul.mubr.bf16.gmra.mrb[16].mxu0 %v961_v11 }
 0x23d   : > { %1224 = vmatprep.mubr.bf16.mxu0 %v14798_v47 }
 0x244   : > { %1225 = vmatmul.mubr.bf16.gmra.mrb[20].mxu0 %v962_v26 }
 0x245   : > { %1234 = vmatprep.mubr.bf16.mxu0 %v14798_v47 }
 0x24c   : > { %1235 = vmatmul.mubr.bf16.gmra.mrb[24].mxu0 %v963_v34 }
 0x24d   : > { %1244 = vmatprep.mubr.bf16.mxu0 %v14798_v47 }
 0x254   : > { %1245 = vmatmul.mubr.bf16.gmra.mrb[28].mxu0 %v964_v21 }
 0x2ef   : > { %v1176_v29 = vpop.f32.mrb[0].mxu0 }
 0x2f0   : > { %v10078_v14 = vadd.f32 %v1176_v29, %v10075_v25  ;;  %v1178_v15 = vpop.f32.mrb[1].mxu0 }
 0x2f1   : > { %v1180_v0 = vpop.f32.mrb[2].mxu0  ;;  %v10152_v27 = vadd.f32 %v1178_v15, %v10125_v59 }
 0x2f2   : > { %v10082_v43 = vadd.f32 %v1180_v0, %v10075_v25  ;;  %v1182_v62 = vpop.f32.mrb[3].mxu0  ;;  %1368 = vrot.lane.b32.xlu0 %v10078_v14, %s9404_s20 }
 0x2f3   : > { %v10161_v4 = vadd.f32 %v1182_v62, %v10125_v59 }
 0x2f4   : > { %1370 = vrot.lane.b32.xlu1 %v10082_v43, %s9404_s20 }
 0x2f6   : > { %1864 = vrot.lane.b32.xlu0 %v10078_v14, %s9405_s24 }
 0x2f7   : > { %v7781_v40 = vpop.f32.mrb[0].mxu1  ;;  %v10094_v32 = vpop.f32.mrb[4].mxu0 }
 0x2f8   : > { %v1289_v8 = vpop.f32.mrb[1].mxu1  ;;  %1866 = vrot.lane.b32.xlu1 %v10082_v43, %s9405_s24  ;;  %v10098_v6 = vpop.f32.mrb[5].mxu0  ;;  %v1298_v23 = vadd.f32 %v7781_v40, %v10090_v2 }
 0x2f9   : > { %v7782_v35 = vpop.f32.mrb[2].mxu1  ;;  %v10102_v3 = vpop.f32.mrb[6].mxu0  ;;  %v1290_v42 = vadd.f32 %v1289_v8, %v10090_v2 }
 0x2fa   : > { %v1301_v36 = vadd.f32 %v7782_v35, %v10090_v2  ;;  %v1292_v46 = vpop.f32.mrb[3].mxu1  ;;  %2056 = vrot.lane.b32.xlu0 %v10078_v14, %s9406_s23  ;;  %v10108_v37 = vpop.f32.mrb[7].mxu0 }
 0x2fb   : > { %v1293_v16 = vadd.f32 %v1292_v46, %v10090_v2 }
 0x2fc   : > { %v10111_v44 = vpack.i.bf16 %v1301_v36, %v1298_v23  ;;  %v10113_v50 = vpack.c.bf16 %v1301_v36, %v1298_v23  ;;  %2058 = vrot.lane.b32.xlu1 %v10082_v43, %s9406_s23 }
 0x2fd   : > { %v10117_v57 = vpack.i.bf16 %v1293_v16, %v1290_v42  ;;  %v10119_v30 = vpack.c.bf16 %v1293_v16, %v1290_v42 }
 0x2fe   : > { %15080 = vst [vmem:[#allocation27_spill] sm:$0xff] %v10111_v44  ;;  %15081 = vst [vmem:[#allocation28_spill] sm:$0xff] %v10113_v50  ;;  %1416 = vrot.lane.b32.xlu0 %v10078_v14, %s9407_s17  ;;  %v1851_v50 = vld [vmem:[%s14780_s14 + $0x18] sm:$0xff] }
 0x2ff   : > { %15082 = vst [vmem:[#allocation29_spill] sm:$0xff] %v10117_v57  ;;  %15083 = vst [vmem:[#allocation30_spill] sm:$0xff] %v10119_v30  ;;  %v7785_v45 = vpop.f32.mrb[4].mxu1  ;;  %v1196_v52 = vpop.f32.mrb[8].mxu0 }
 0x300   : > { %v1305_v48 = vpop.f32.mrb[5].mxu1  ;;  %v10128_v28 = vadd.f32 %v1196_v52, %v10075_v25  ;;  %1418 = vrot.lane.b32.xlu1 %v10082_v43, %s9407_s17  ;;  %v1198_v33 = vpop.f32.mrb[9].mxu0  ;;  %v1314_v53 = vadd.f32 %v7785_v45, %v10090_v2 }
 0x301   : > { %v7786_v49 = vpop.f32.mrb[6].mxu1  ;;  %v10135_v55 = vadd.f32 %v1198_v33, %v10125_v59  ;;  %v1200_v63 = vpop.f32.mrb[10].mxu0  ;;  %v1306_v60 = vadd.f32 %v1305_v48, %v10090_v2 }
 0x302   : > { %15084 = vst [vmem:[#allocation31_spill] sm:$0xff] %v10128_v28  ;;  %v1317_v1 = vadd.f32 %v7786_v49, %v10090_v2  ;;  %v1308_v54 = vpop.f32.mrb[7].mxu1  ;;  %v10140_v38 = vadd.f32 %v1200_v63, %v10075_v25  ;;  %1464 = vrot.lane.b32.xlu0 %v10078_v14, %s9408_s19  ;;  %v1202_v11 = vpop.f32.mrb[11].mxu0 }
 0x303   : > { %v1309_v20 = vadd.f32 %v1308_v54, %v10090_v2  ;;  %v10145_v9 = vadd.f32 %v1202_v11, %v10125_v59 }
 0x304   : > { %15085 = vst [vmem:[#allocation32_spill] sm:$0xff] %v10140_v38  ;;  %v10147_v51 = vpack.i.bf16 %v1317_v1, %v1314_v53  ;;  %v10149_v61 = vpack.c.bf16 %v1317_v1, %v1314_v53  ;;  %1466 = vrot.lane.b32.xlu1 %v10082_v43, %s9408_s19 }
 0x305   : > { %v10156_v10 = vpack.i.bf16 %v1309_v20, %v1306_v60  ;;  %v10158_v19 = vpack.c.bf16 %v1309_v20, %v1306_v60 }
 0x306   : > { %15086 = vst [vmem:[#allocation33_spill] sm:$0xff] %v10147_v51  ;;  %15087 = vst [vmem:[#allocation34_spill] sm:$0xff] %v10149_v61  ;;  %1528 = vrot.lane.b32.xlu0 %v10152_v27, %s9404_s20  ;;  %v1834_v61 = vld [vmem:[%s14779_s13 + $0x10] sm:$0xff] }
 0x307   : > { %15088 = vst [vmem:[#allocation35_spill] sm:$0xff] %v10156_v10  ;;  %15089 = vst [vmem:[#allocation36_spill] sm:$0xff] %v10158_v19  ;;  %v7789_v5 = vpop.f32.mrb[8].mxu1  ;;  %v1206_v24 = vpop.f32.mrb[12].mxu0  ;;  %v1835_v19 = vld [vmem:[%s14779_s13 + $0x18] sm:$0xff] }
 0x308   : > { %v1321_v22 = vpop.f32.mrb[9].mxu1  ;;  %v10166_v56 = vadd.f32 %v1206_v24, %v10075_v25  ;;  %1530 = vrot.lane.b32.xlu1 %v10161_v4, %s9404_s20  ;;  %v1208_v34 = vpop.f32.mrb[13].mxu0  ;;  %v1330_v58 = vadd.f32 %v7789_v5, %v10090_v2 }
 0x309   : > { %v7790_v26 = vpop.f32.mrb[10].mxu1  ;;  %v10173_v21 = vadd.f32 %v1208_v34, %v10125_v59  ;;  %v1210_v17 = vpop.f32.mrb[14].mxu0  ;;  %v1322_v7 = vadd.f32 %v1321_v22, %v10090_v2  ;;  %v10231_v34 = vadd.f32 %v10094_v32, %v10075_v25 }
 0x30a   : > { %15090 = vst [vmem:[#allocation37_spill] sm:$0xff] %v10166_v56  ;;  %v1333_v12 = vadd.f32 %v7790_v26, %v10090_v2  ;;  %v1324_v18 = vpop.f32.mrb[11].mxu1  ;;  %v10178_v15 = vadd.f32 %v1210_v17, %v10075_v25  ;;  %2537 = vrot.lane.b32.xlu0 %v10152_v27, %s9405_s24  ;;  %v1212_v0 = vpop.f32.mrb[15].mxu0 }
 0x30b   : > { %v1325_v29 = vadd.f32 %v1324_v18, %v10090_v2  ;;  %v10183_v62 = vadd.f32 %v1212_v0, %v10125_v59 }
 0x30c   : > { %15091 = vst [vmem:[#allocation38_spill] sm:$0xff] %v10178_v15  ;;  %v10185_v40 = vpack.i.bf16 %v1333_v12, %v1330_v58  ;;  %v10187_v8 = vpack.c.bf16 %v1333_v12, %v1330_v58  ;;  %2539 = vrot.lane.b32.xlu1 %v10161_v4, %s9405_s24 }
 0x30d   : > { %v10191_v35 = vpack.i.bf16 %v1325_v29, %v1322_v7  ;;  %v10193_v23 = vpack.c.bf16 %v1325_v29, %v1322_v7  ;;  %v10243_v7 = vadd.f32 %v10098_v6, %v10125_v59 }
 0x30e   : > { %15092 = vst [vmem:[#allocation39_spill] sm:$0xff] %v10185_v40  ;;  %15093 = vst [vmem:[#allocation40_spill] sm:$0xff] %v10187_v8  ;;  %2729 = vrot.lane.b32.xlu0 %v10152_v27, %s9406_s23 }
 0x30f   : > { %15094 = vst [vmem:[#allocation41_spill] sm:$0xff] %v10191_v35  ;;  %15095 = vst [vmem:[#allocation42_spill] sm:$0xff] %v10193_v23  ;;  %v7793_v36 = vpop.f32.mrb[12].mxu1  ;;  %v1216_v16 = vpop.f32.mrb[16].mxu0 }
 0x310   : > { %v1346_v46 = vadd.f32 %v7793_v36, %v10090_v2  ;;  %v1337_v42 = vpop.f32.mrb[13].mxu1  ;;  %v10199_v48 = vadd.f32 %v1216_v16, %v10075_v25  ;;  %2731 = vrot.lane.b32.xlu1 %v10161_v4, %s9406_s23  ;;  %v1218_v52 = vpop.f32.mrb[17].mxu0  ;;  %v10257_v36 = vadd.f32 %v10102_v3, %v10075_v25 }
 0x311   : > { %v7794_v45 = vpop.f32.mrb[14].mxu1  ;;  %v10205_v53 = vadd.f32 %v1218_v52, %v10125_v59  ;;  %v1220_v1 = vpop.f32.mrb[18].mxu0  ;;  %v1338_v54 = vadd.f32 %v1337_v42, %v10090_v2 }
 0x312   : > { %15096 = vst [vmem:[#allocation43_spill] sm:$0xff] %v10199_v48  ;;  %v1349_v49 = vadd.f32 %v7794_v45, %v10090_v2  ;;  %v1340_v33 = vpop.f32.mrb[15].mxu1  ;;  %v10210_v60 = vadd.f32 %v1220_v1, %v10075_v25  ;;  %1576 = vrot.lane.b32.xlu0 %v10152_v27, %s9407_s17  ;;  %v1222_v20 = vpop.f32.mrb[19].mxu0  ;;  %v2316_v51 = vmul.f32 %v1835_v19, %v10257_v36 }
 0x313   : > { %v1341_v63 = vadd.f32 %v1340_v33, %v10090_v2  ;;  %v10215_v11 = vadd.f32 %v1222_v20, %v10125_v59 }
 0x314   : > { %15097 = vst [vmem:[#allocation44_spill] sm:$0xff] %v10210_v60  ;;  %v10217_v5 = vpack.c.bf16 %v1349_v49, %v1346_v46  ;;  %v10219_v22 = vpack.i.bf16 %v1349_v49, %v1346_v46  ;;  %1578 = vrot.lane.b32.xlu1 %v10161_v4, %s9407_s17 }
 0x315   : > { %v10223_v24 = vpack.i.bf16 %v1341_v63, %v1338_v54  ;;  %v10225_v2 = vpack.c.bf16 %v1341_v63, %v1338_v54 }
 0x316   : > { %15098 = vst [vmem:[#allocation45_spill] sm:$0xff] %v10217_v5  ;;  %15099 = vst [vmem:[#allocation46_spill] sm:$0xff] %v10219_v22  ;;  %1624 = vrot.lane.b32.xlu0 %v10152_v27, %s9408_s19 }
 0x317   : > { %15100 = vst [vmem:[#allocation47_spill] sm:$0xff] %v10223_v24  ;;  %15101 = vst [vmem:[#allocation48_spill] sm:$0xff] %v10225_v2  ;;  %v1226_v26 = vpop.f32.mrb[20].mxu0 }
 0x318   : > { %v10234_v58 = vadd.f32 %v1226_v26, %v10075_v25  ;;  %1626 = vrot.lane.b32.xlu1 %v10161_v4, %s9408_s19  ;;  %v1228_v12 = vpop.f32.mrb[21].mxu0 }
 0x319   : > { %v10239_v18 = vadd.f32 %v1228_v12, %v10125_v59  ;;  %v1230_v17 = vpop.f32.mrb[22].mxu0 }
 0x31a   : > { %15102 = vst [vmem:[#allocation49_spill] sm:$0xff] %v10234_v58  ;;  %v10246_v29 = vadd.f32 %v1230_v17, %v10075_v25  ;;  %1372 = vrot.lane.b32.xlu0 %v10231_v34, %s9404_s20  ;;  %v1232_v32 = vpop.f32.mrb[23].mxu0 }
 0x31b   : > { %v10251_v0 = vadd.f32 %v1232_v32, %v10125_v59 }
 0x31c   : > { %15103 = vst [vmem:[#allocation50_spill] sm:$0xff] %v10246_v29  ;;  %1532 = vrot.lane.b32.xlu1 %v10243_v7, %s9404_s20 }
 0x31e   : > { %1868 = vrot.lane.b32.xlu0 %v10231_v34, %s9405_s24 }
 0x31f   : > { %v1236_v6 = vpop.f32.mrb[24].mxu0 }
 0x320   : > { %v10262_v46 = vadd.f32 %v1236_v6, %v10075_v25  ;;  %1374 = vrot.lane.b32.xlu1 %v10257_v36, %s9404_s20  ;;  %v1238_v42 = vpop.f32.mrb[25].mxu0 }
 0x321   : > { %v10267_v16 = vadd.f32 %v1238_v42, %v10125_v59  ;;  %v1240_v45 = vpop.f32.mrb[26].mxu0  ;;  %v10372_v42 = vld [vmem:[%s14780_s14] sm:$0xff] }
 0x322   : > { %15104 = vst [vmem:[#allocation51_spill] sm:$0xff] %v10262_v46  ;;  %v10270_v52 = vadd.f32 %v1240_v45, %v10075_v25  ;;  %2060 = vrot.lane.b32.xlu0 %v10231_v34, %s9406_s23  ;;  %v1242_v3 = vpop.f32.mrb[27].mxu0  ;;  %15108 = vst [vmem:[#allocation55_spill] sm:$0xff] %v10372_v42 }
 0x323   : > { %v10275_v49 = vadd.f32 %v1242_v3, %v10125_v59  ;;  %v10379_v3 = vld [vmem:[%s14779_s13] sm:$0xff] }
 0x324   : > { %15105 = vst [vmem:[#allocation52_spill] sm:$0xff] %v10270_v52  ;;  %1870 = vrot.lane.b32.xlu1 %v10257_v36, %s9405_s24  ;;  %15109 = vst [vmem:[#allocation56_spill] sm:$0xff] %v10379_v3  ;;  %v2313_v31 = vmul.f32 %v10379_v3, %v10078_v14  ;;  %v2985_v5 = vmul.f32 %v10379_v3, %v10152_v27 }
 0x326   : > { %1420 = vrot.lane.b32.xlu0 %v10231_v34, %s9407_s17 }
 0x327   : > { %v1246_v33 = vpop.f32.mrb[28].mxu0 }
 0x328   : > { %v10282_v1 = vadd.f32 %v1246_v33, %v10075_v25  ;;  %2062 = vrot.lane.b32.xlu1 %v10257_v36, %s9406_s23  ;;  %v1248_v54 = vpop.f32.mrb[29].mxu0  ;;  %v10384_v33 = vld [vmem:[%s14779_s13 + $0x8] sm:$0xff] }
 0x329   : > { %v10287_v63 = vadd.f32 %v1248_v54, %v10125_v59  ;;  %v1250_v20 = vpop.f32.mrb[30].mxu0  ;;  %15110 = vst [vmem:[#allocation57_spill] sm:$0xff] %v10384_v33  ;;  %v2314_v47 = vmul.f32 %v10384_v33, %v10082_v43  ;;  %v2986_v2 = vmul.f32 %v10384_v33, %v10161_v4 }
 0x32a   : > { %15106 = vst [vmem:[#allocation53_spill] sm:$0xff] %v10282_v1  ;;  %v10290_v26 = vadd.f32 %v1250_v20, %v10075_v25  ;;  %1468 = vrot.lane.b32.xlu0 %v10231_v34, %s9408_s19  ;;  %v1252_v12 = vpop.f32.mrb[31].mxu0  ;;  %v10305_v25 = vadd.f32 %v10108_v37, %v10125_v59  ;;  %v10390_v20 = vld [vmem:[%s14780_s14 + $0x8] sm:$0xff] }
 0x32b   : > { %v10295_v17 = vadd.f32 %v1252_v12, %v10125_v59  ;;  %15111 = vst [vmem:[#allocation58_spill] sm:$0xff] %v10390_v20 }
 0x32c   : > { %15107 = vst [vmem:[#allocation54_spill] sm:$0xff] %v10290_v26  ;;  %1422 = vrot.lane.b32.xlu1 %v10257_v36, %s9407_s17  ;;  %v2988_v33 = vmul.f32 %v1835_v19, %v10305_v25 }
 0x32e   : > { %2541 = vrot.lane.b32.xlu0 %v10243_v7, %s9405_s24 }
 0x330   : > { %1470 = vrot.lane.b32.xlu1 %v10257_v36, %s9408_s19 }
 0x332   : > { %2733 = vrot.lane.b32.xlu0 %v10243_v7, %s9406_s23 }
 0x334   : > { %1534 = vrot.lane.b32.xlu1 %v10305_v25, %s9404_s20 }
 0x336   : > { %1580 = vrot.lane.b32.xlu0 %v10243_v7, %s9407_s17 }
 0x338   : > { %2543 = vrot.lane.b32.xlu1 %v10305_v25, %s9405_s24 }
 0x33a   : > { %1628 = vrot.lane.b32.xlu0 %v10243_v7, %s9408_s19 }
 0x33c   : > { %2735 = vrot.lane.b32.xlu1 %v10305_v25, %s9406_s23 }
 0x33e   : > { %1376 = vrot.lane.b32.xlu0 %v10128_v28, %s9404_s20 }
 0x340   : > { %1582 = vrot.lane.b32.xlu1 %v10305_v25, %s9407_s17 }
 0x342   : > { %1424 = vrot.lane.b32.xlu0 %v10128_v28, %s9407_s17 }
 0x344   : > { %1630 = vrot.lane.b32.xlu1 %v10305_v25, %s9408_s19 }
 0x346   : > { %1472 = vrot.lane.b32.xlu0 %v10128_v28, %s9408_s19 }
 0x348   : > { %1378 = vrot.lane.b32.xlu1 %v10140_v38, %s9404_s20 }
 0x34a   : > { %1872 = vrot.lane.b32.xlu0 %v10128_v28, %s9405_s24 }
 0x34c   : > { %1426 = vrot.lane.b32.xlu1 %v10140_v38, %s9407_s17 }
 0x34e   : > { %2064 = vrot.lane.b32.xlu0 %v10128_v28, %s9406_s23 }
 0x350   : > { %1474 = vrot.lane.b32.xlu1 %v10140_v38, %s9408_s19 }
 0x352   : > { %1536 = vrot.lane.b32.xlu0 %v10135_v55, %s9404_s20 }
 0x354   : > { %1874 = vrot.lane.b32.xlu1 %v10140_v38, %s9405_s24 }
 0x356   : > { %2545 = vrot.lane.b32.xlu0 %v10135_v55, %s9405_s24 }
 0x358   : > { %2066 = vrot.lane.b32.xlu1 %v10140_v38, %s9406_s23 }
 0x35a   : > { %2737 = vrot.lane.b32.xlu0 %v10135_v55, %s9406_s23 }
 0x35c   : > { %1538 = vrot.lane.b32.xlu1 %v10145_v9, %s9404_s20 }
 0x35e   : > { %1584 = vrot.lane.b32.xlu0 %v10135_v55, %s9407_s17 }
 0x360   : > { %2547 = vrot.lane.b32.xlu1 %v10145_v9, %s9405_s24 }
 0x362   : > { %1632 = vrot.lane.b32.xlu0 %v10135_v55, %s9408_s19 }
 0x364   : > { %2739 = vrot.lane.b32.xlu1 %v10145_v9, %s9406_s23  ;;  %v10359_v37 = vpop.permute.xlu0 %1368 }
 0x366   : > { %v10361_v59 = vpop.permute.xlu1 %1370  ;;  %1380 = vrot.lane.b32.xlu0 %v10166_v56, %s9404_s20 }
 0x368   : > { %1586 = vrot.lane.b32.xlu1 %v10145_v9, %s9407_s17  ;;  %v1865_v32 = vpop.permute.xlu0 %1864 }
 0x36a   : > { %v1867_v6 = vpop.permute.xlu1 %1866  ;;  %1428 = vrot.lane.b32.xlu0 %v10166_v56, %s9407_s17 }
 0x36c   : > { %1634 = vrot.lane.b32.xlu1 %v10145_v9, %s9408_s19  ;;  %v2057_v45 = vpop.permute.xlu0 %2056 }
 0x36d   : > { %v2249_v54 = vsel %vm2248_vm0, %v1865_v32, %v2057_v45 }
 0x36e   : > { %v2377_v12 = vmul.f32 %v2249_v54, %v10372_v42  ;;  %v2059_v13 = vpop.permute.xlu1 %2058  ;;  %1476 = vrot.lane.b32.xlu0 %v10166_v56, %s9408_s19 }
 0x36f   : > { %v2250_v39 = vsel %vm2248_vm0, %v1867_v6, %v2059_v13 }
 0x370   : > { %v2378_v32 = vmul.f32 %v2250_v39, %v10390_v20  ;;  %1382 = vrot.lane.b32.xlu1 %v10178_v15, %s9404_s20  ;;  %v10403_v45 = vpop.permute.xlu0 %1416  ;;  %v2441_v54 = vadd.f32 %v2377_v12, %v2313_v31 }
 0x371   : > { %15112 = vst [vmem:[#allocation59_spill] sm:$0xff] %v10403_v45 }
 0x372   : > { %v2442_v41 = vadd.f32 %v2378_v32, %v2314_v47  ;;  %v10405_v22 = vpop.permute.xlu1 %1418  ;;  %1876 = vrot.lane.b32.xlu0 %v10166_v56, %s9405_s24 }
 0x373   : > { %15113 = vst [vmem:[#allocation60_spill] sm:$0xff] %v10405_v22 }
 0x374   : > { %v2505_v13 = vpack.c.bf16 %v2442_v41, %v2441_v54  ;;  %1430 = vrot.lane.b32.xlu1 %v10178_v15, %s9407_s17  ;;  %v10411_v14 = vpop.permute.xlu0 %1464 }
 0x375   : > { %15114 = vst [vmem:[#allocation61_spill] sm:$0xff] %v10411_v14 }
 0x376   : > { %v10413_v39 = vpop.permute.xlu1 %1466  ;;  %2068 = vrot.lane.b32.xlu0 %v10166_v56, %s9406_s23  ;;  %7811 = vmatprep.mubr.msk.bf16.mxu0 %vm3257_vm1, %v2505_v13 }
 0x377   : > { %15115 = vst [vmem:[#allocation62_spill] sm:$0xff] %v10413_v39 }
 0x378   : > { %1478 = vrot.lane.b32.xlu1 %v10178_v15, %s9408_s19  ;;  %v10420_v47 = vpop.permute.xlu0 %1528 }
 0x379   : > { %15116 = vst [vmem:[#allocation63_spill] sm:$0xff] %v10420_v47 }
 0x37a   : > { %v10422_v31 = vpop.permute.xlu1 %1530  ;;  %1540 = vrot.lane.b32.xlu0 %v10173_v21, %s9404_s20 }
 0x37c   : > { %1878 = vrot.lane.b32.xlu1 %v10178_v15, %s9405_s24  ;;  %v2538_v41 = vpop.permute.xlu0 %2537 }
 0x37e   : > { %v2540_v43 = vpop.permute.xlu1 %2539  ;;  %2549 = vrot.lane.b32.xlu0 %v10173_v21, %s9405_s24 }
 0x380   : > { %2070 = vrot.lane.b32.xlu1 %v10178_v15, %s9406_s23  ;;  %v2730_v6 = vpop.permute.xlu0 %2729 }
 0x381   : > { %v2921_v12 = vsel %vm2248_vm0, %v2538_v41, %v2730_v6 }
 0x382   : > { %v3049_v32 = vmul.f32 %v2921_v12, %v10372_v42  ;;  %v2732_v54 = vpop.permute.xlu1 %2731  ;;  %2741 = vrot.lane.b32.xlu0 %v10173_v21, %s9406_s23 }
 0x383   : > { %v2922_v13 = vsel %vm2248_vm0, %v2540_v43, %v2732_v54 }
 0x384   : > { %v3050_v8 = vmul.f32 %v2922_v13, %v10390_v20  ;;  %1542 = vrot.lane.b32.xlu1 %v10183_v62, %s9404_s20  ;;  %v10444_v41 = vpop.permute.xlu0 %1576  ;;  %v3113_v6 = vadd.f32 %v3049_v32, %v2985_v5  ;;  %v2987_v20 = vmul.f32 %v1834_v61, %v10243_v7 }
 0x386   : > { %v3114_v12 = vadd.f32 %v3050_v8, %v2986_v2  ;;  %v10446_v23 = vpop.permute.xlu1 %1578  ;;  %1588 = vrot.lane.b32.xlu0 %v10173_v21, %s9407_s17 }
 0x388   : > { %v3177_v43 = vpack.c.bf16 %v3114_v12, %v3113_v6  ;;  %2551 = vrot.lane.b32.xlu1 %v10183_v62, %s9405_s24  ;;  %v10452_v27 = vpop.permute.xlu0 %1624  ;;  %v1850_v12 = vld [vmem:[%s14780_s14 + $0x10] sm:$0xff] }
 0x389   : > { %15117 = vst [vmem:[#allocation64_spill] sm:$0xff] %v10452_v27 }
 0x38a   : > { %v10454_v4 = vpop.permute.xlu1 %1626  ;;  %1636 = vrot.lane.b32.xlu0 %v10173_v21, %s9408_s19  ;;  %8099 = vmatprep.subr.msk.bf16.mxu0 %vm3257_vm1, %v3177_v43  ;;  %v3283_v8 = vsel %vm3257_vm1, %v3177_v43, 0 }
 0x38b   : > { %15118 = vst [vmem:[#allocation65_spill] sm:$0xff] %v10454_v4  ;;  %7796 = vmatpush3.bf16.xpose.msra.mxu0 %v3283_v8 }
 0x38c   : > { %2743 = vrot.lane.b32.xlu1 %v10183_v62, %s9406_s23  ;;  %v10462_v5 = vpop.permute.xlu0 %1372 }
 0x38d   : > { %15119 = vst [vmem:[#allocation66_spill] sm:$0xff] %v10462_v5 }
 0x38e   : > { %v10464_v2 = vpop.permute.xlu1 %1532  ;;  %1384 = vrot.lane.b32.xlu0 %v10199_v48, %s9404_s20 }
 0x390   : > { %1590 = vrot.lane.b32.xlu1 %v10183_v62, %s9407_s17  ;;  %v1869_v32 = vpop.permute.xlu0 %1868 }
 0x392   : > { %v10470_v54 = vpop.permute.xlu1 %1374  ;;  %1432 = vrot.lane.b32.xlu0 %v10199_v48, %s9407_s17 }
 0x393   : > { %15120 = vst [vmem:[#allocation67_spill] sm:$0xff] %v10470_v54 }
 0x394   : > { %1638 = vrot.lane.b32.xlu1 %v10183_v62, %s9408_s19  ;;  %v2061_v13 = vpop.permute.xlu0 %2060 }
 0x395   : > { %v2251_v43 = vsel %vm2248_vm0, %v1869_v32, %v2061_v13  ;;  %v2315_v13 = vmul.f32 %v1834_v61, %v10231_v34 }
 0x396   : > { %v1871_v6 = vpop.permute.xlu1 %1870  ;;  %1480 = vrot.lane.b32.xlu0 %v10199_v48, %s9408_s19  ;;  %v2379_v30 = vmul.f32 %v2251_v43, %v1850_v12 }
 0x398   : > { %1386 = vrot.lane.b32.xlu1 %v10210_v60, %s9404_s20  ;;  %v10484_v8 = vpop.permute.xlu0 %1420  ;;  %v10504_v35 = vadd.f32 %v2379_v30, %v2315_v13 }
 0x399   : > { %15121 = vst [vmem:[#allocation68_spill] sm:$0xff] %v10484_v8 }
 0x39a   : > { %v2063_v40 = vpop.permute.xlu1 %2062  ;;  %1880 = vrot.lane.b32.xlu0 %v10199_v48, %s9405_s24  ;;  %15123 = vst [vmem:[#allocation70_spill] sm:$0xff] %v10504_v35 }
 0x39b   : > { %v2252_v32 = vsel %vm2248_vm0, %v1871_v6, %v2063_v40 }
 0x39c   : > { %v2380_v24 = vmul.f32 %v2252_v32, %v1851_v50  ;;  %1434 = vrot.lane.b32.xlu1 %v10210_v60, %s9407_s17  ;;  %v10502_v44 = vpop.permute.xlu0 %1468 }
 0x39d   : > { %15122 = vst [vmem:[#allocation69_spill] sm:$0xff] %v10502_v44 }
 0x39e   : > { %v10506_v10 = vadd.f32 %v2380_v24, %v2316_v51  ;;  %v10508_v43 = vpop.permute.xlu1 %1422  ;;  %2072 = vrot.lane.b32.xlu0 %v10199_v48, %s9406_s23 }
 0x39f   : > { %15125 = vst [vmem:[#allocation72_spill] sm:$0xff] %v10508_v43 }
 0x3a0   : > { %15124 = vst [vmem:[#allocation71_spill] sm:$0xff] %v10506_v10  ;;  %1482 = vrot.lane.b32.xlu1 %v10210_v60, %s9408_s19  ;;  %v2542_v34 = vpop.permute.xlu0 %2541  ;;  %v10628_v10 = vld [vmem:[%s14780_s14 + $0x20] sm:$0xff] }
 0x3a1   : > { %15138 = vst [vmem:[#allocation85_spill] sm:$0xff] %v10628_v10 }
 0x3a2   : > { %v10516_v36 = vpop.permute.xlu1 %1470  ;;  %1544 = vrot.lane.b32.xlu0 %v10205_v53, %s9404_s20 }
 0x3a3   : > { %15126 = vst [vmem:[#allocation73_spill] sm:$0xff] %v10516_v36 }
 0x3a4   : > { %1882 = vrot.lane.b32.xlu1 %v10210_v60, %s9405_s24  ;;  %v2734_v30 = vpop.permute.xlu0 %2733 }
 0x3a5   : > { %v2923_v32 = vsel %vm2248_vm0, %v2542_v34, %v2734_v30 }
 0x3a6   : > { %v10522_v51 = vpop.permute.xlu1 %1534  ;;  %2553 = vrot.lane.b32.xlu0 %v10205_v53, %s9405_s24  ;;  %v3051_v40 = vmul.f32 %v2923_v32, %v1850_v12 }
 0x3a8   : > { %2074 = vrot.lane.b32.xlu1 %v10210_v60, %s9406_s23  ;;  %v10528_v24 = vpop.permute.xlu0 %1580  ;;  %v3115_v30 = vadd.f32 %v3051_v40, %v2987_v20 }
 0x3aa   : > { %v2544_v6 = vpop.permute.xlu1 %2543  ;;  %2745 = vrot.lane.b32.xlu0 %v10205_v53, %s9406_s23 }
 0x3ac   : > { %1546 = vrot.lane.b32.xlu1 %v10215_v11, %s9404_s20  ;;  %v10535_v13 = vpop.permute.xlu0 %1628 }
 0x3ad   : > { %15127 = vst [vmem:[#allocation74_spill] sm:$0xff] %v10535_v13 }
 0x3ae   : > { %v2736_v57 = vpop.permute.xlu1 %2735  ;;  %1592 = vrot.lane.b32.xlu0 %v10205_v53, %s9407_s17 }
 0x3af   : > { %v2924_v48 = vsel %vm2248_vm0, %v2544_v6, %v2736_v57 }
 0x3b0   : > { %v3052_v3 = vmul.f32 %v2924_v48, %v1851_v50  ;;  %2555 = vrot.lane.b32.xlu1 %v10215_v11, %s9405_s24  ;;  %v10544_v34 = vpop.permute.xlu0 %1376 }
 0x3b1   : > { %15128 = vst [vmem:[#allocation75_spill] sm:$0xff] %v10544_v34 }
 0x3b2   : > { %v3116_v60 = vadd.f32 %v3052_v3, %v2988_v33  ;;  %v10546_v56 = vpop.permute.xlu1 %1582  ;;  %1640 = vrot.lane.b32.xlu0 %v10205_v53, %s9408_s19 }
 0x3b4   : > { %v3178_v12 = vpack.c.bf16 %v3116_v60, %v3115_v30  ;;  %2747 = vrot.lane.b32.xlu1 %v10215_v11, %s9406_s23  ;;  %v10552_v57 = vpop.permute.xlu0 %1424 }
 0x3b5   : > { %15129 = vst [vmem:[#allocation76_spill] sm:$0xff] %v10552_v57 }
 0x3b6   : > { %v10554_v61 = vpop.permute.xlu1 %1630  ;;  %1388 = vrot.lane.b32.xlu0 %v10234_v58, %s9404_s20  ;;  %8100 = vmatprep.subr.msk.bf16.mxu0 %vm3257_vm1, %v3178_v12  ;;  %v3286_v50 = vsel %vm3257_vm1, %v3178_v12, 0 }
 0x3b7   : > { %15130 = vst [vmem:[#allocation77_spill] sm:$0xff] %v10554_v61  ;;  %7798 = vmatpush3.bf16.xpose.msra.mxu0 %v3286_v50 }
 0x3b8   : > { %1594 = vrot.lane.b32.xlu1 %v10215_v11, %s9407_s17  ;;  %v10562_v19 = vpop.permute.xlu0 %1472 }
 0x3b9   : > { %15131 = vst [vmem:[#allocation78_spill] sm:$0xff] %v10562_v19 }
 0x3ba   : > { %v10564_v48 = vpop.permute.xlu1 %1378  ;;  %1436 = vrot.lane.b32.xlu0 %v10234_v58, %s9407_s17 }
 0x3bb   : > { %15132 = vst [vmem:[#allocation79_spill] sm:$0xff] %v10564_v48 }
 0x3bc   : > { %1642 = vrot.lane.b32.xlu1 %v10215_v11, %s9408_s19  ;;  %v10570_v60 = vpop.permute.xlu0 %1872 }
 0x3be   : > { %v10572_v7 = vpop.permute.xlu1 %1426  ;;  %1484 = vrot.lane.b32.xlu0 %v10234_v58, %s9408_s19 }
 0x3bf   : > { %15133 = vst [vmem:[#allocation80_spill] sm:$0xff] %v10572_v7 }
 0x3c0   : > { %1390 = vrot.lane.b32.xlu1 %v10246_v29, %s9404_s20  ;;  %v10578_v25 = vpop.permute.xlu0 %2064 }
 0x3c2   : > { %v10580_v3 = vpop.permute.xlu1 %1474  ;;  %1884 = vrot.lane.b32.xlu0 %v10234_v58, %s9405_s24 }
 0x3c3   : > { %15134 = vst [vmem:[#allocation81_spill] sm:$0xff] %v10580_v3 }
 0x3c4   : > { %1438 = vrot.lane.b32.xlu1 %v10246_v29, %s9407_s17  ;;  %v10586_v33 = vpop.permute.xlu0 %1536 }
 0x3c6   : > { %v10588_v20 = vpop.permute.xlu1 %1874  ;;  %2076 = vrot.lane.b32.xlu0 %v10234_v58, %s9406_s23 }
 0x3c8   : > { %1486 = vrot.lane.b32.xlu1 %v10246_v29, %s9408_s19  ;;  %v2546_v40 = vpop.permute.xlu0 %2545 }
 0x3ca   : > { %v10594_v6 = vpop.permute.xlu1 %2066  ;;  %1548 = vrot.lane.b32.xlu0 %v10239_v18, %s9404_s20 }
 0x3cc   : > { %1886 = vrot.lane.b32.xlu1 %v10246_v29, %s9405_s24  ;;  %v2738_v32 = vpop.permute.xlu0 %2737 }
 0x3cd   : > { %v2925_v58 = vsel %vm2248_vm0, %v2546_v40, %v2738_v32 }
 0x3ce   : > { %v10600_v30 = vpop.permute.xlu1 %1538  ;;  %2557 = vrot.lane.b32.xlu0 %v10239_v18, %s9405_s24  ;;  %v3053_v40 = vmul.f32 %v2925_v58, %v10628_v10 }
 0x3cf   : > { %15135 = vst [vmem:[#allocation82_spill] sm:$0xff] %v10600_v30  ;;  %v10618_v30 = vld [vmem:[%s14779_s13 + $0x20] sm:$0xff] }
 0x3d0   : > { %2078 = vrot.lane.b32.xlu1 %v10246_v29, %s9406_s23  ;;  %v10606_v12 = vpop.permute.xlu0 %1584  ;;  %v10623_v29 = vld [vmem:[%s14779_s13 + $0x28] sm:$0xff]  ;;  %v2989_v42 = vmul.f32 %v10618_v30, %v10135_v55 }
 0x3d1   : > { %15136 = vst [vmem:[#allocation83_spill] sm:$0xff] %v10606_v12  ;;  %v2990_v15 = vmul.f32 %v10623_v29, %v10145_v9 }
 0x3d2   : > { %v2548_v50 = vpop.permute.xlu1 %2547  ;;  %2749 = vrot.lane.b32.xlu0 %v10239_v18, %s9406_s23  ;;  %v3117_v3 = vadd.f32 %v3053_v40, %v2989_v42 }
 0x3d4   : > { %1550 = vrot.lane.b32.xlu1 %v10251_v0, %s9404_s20  ;;  %v10613_v35 = vpop.permute.xlu0 %1632 }
 0x3d5   : > { %15137 = vst [vmem:[#allocation84_spill] sm:$0xff] %v10613_v35  ;;  %v10636_v35 = vld [vmem:[%s14780_s14 + $0x28] sm:$0xff] }
 0x3d6   : > { %v2740_v32 = vpop.permute.xlu1 %2739  ;;  %1596 = vrot.lane.b32.xlu0 %v10239_v18, %s9407_s17 }
 0x3d7   : > { %v2926_v12 = vsel %vm2248_vm0, %v2548_v50, %v2740_v32 }
 0x3d8   : > { %v3054_v28 = vmul.f32 %v2926_v12, %v10636_v35  ;;  %2559 = vrot.lane.b32.xlu1 %v10251_v0, %s9405_s24  ;;  %v10646_v58 = vpop.permute.xlu0 %1380 }
 0x3d9   : > { %15139 = vst [vmem:[#allocation86_spill] sm:$0xff] %v10646_v58  ;;  %v10730_v58 = vld [vmem:[%s14780_s14 + $0x30] sm:$0xff] }
 0x3da   : > { %v3118_v38 = vadd.f32 %v3054_v28, %v2990_v15  ;;  %v10648_v10 = vpop.permute.xlu1 %1586  ;;  %1644 = vrot.lane.b32.xlu0 %v10239_v18, %s9408_s19  ;;  %15156 = vst [vmem:[#allocation103_spill] sm:$0xff] %v10730_v58 }
 0x3db   : > { %15140 = vst [vmem:[#allocation87_spill] sm:$0xff] %v10648_v10 }
 0x3dc   : > { %v3179_v50 = vpack.c.bf16 %v3118_v38, %v3117_v3  ;;  %2751 = vrot.lane.b32.xlu1 %v10251_v0, %s9406_s23  ;;  %v10654_v55 = vpop.permute.xlu0 %1428 }
 0x3dd   : > { %15141 = vst [vmem:[#allocation88_spill] sm:$0xff] %v10654_v55 }
 0x3de   : > { %v10656_v9 = vpop.permute.xlu1 %1634  ;;  %1392 = vrot.lane.b32.xlu0 %v10262_v46, %s9404_s20  ;;  %8101 = vmatprep.subr.msk.bf16.mxu0 %vm3257_vm1, %v3179_v50  ;;  %v3289_v28 = vsel %vm3257_vm1, %v3179_v50, 0 }
 0x3df   : > { %15142 = vst [vmem:[#allocation89_spill] sm:$0xff] %v10656_v9  ;;  %7800 = vmatpush3.bf16.xpose.msra.mxu0 %v3289_v28 }
 0x3e0   : > { %1598 = vrot.lane.b32.xlu1 %v10251_v0, %s9407_s17  ;;  %v10664_v15 = vpop.permute.xlu0 %1476 }
 0x3e1   : > { %15143 = vst [vmem:[#allocation90_spill] sm:$0xff] %v10664_v15 }
 0x3e2   : > { %v10666_v38 = vpop.permute.xlu1 %1382  ;;  %1440 = vrot.lane.b32.xlu0 %v10262_v46, %s9407_s17 }
 0x3e3   : > { %15144 = vst [vmem:[#allocation91_spill] sm:$0xff] %v10666_v38 }
 0x3e4   : > { %1646 = vrot.lane.b32.xlu1 %v10251_v0, %s9408_s19  ;;  %v10672_v42 = vpop.permute.xlu0 %1876 }
 0x3e5   : > { %15145 = vst [vmem:[#allocation92_spill] sm:$0xff] %v10672_v42 }
 0x3e6   : > { %v10674_v3 = vpop.permute.xlu1 %1430  ;;  %1488 = vrot.lane.b32.xlu0 %v10262_v46, %s9408_s19 }
 0x3e7   : > { %15146 = vst [vmem:[#allocation93_spill] sm:$0xff] %v10674_v3 }
 0x3e8   : > { %1394 = vrot.lane.b32.xlu1 %v10270_v52, %s9404_s20  ;;  %v10680_v12 = vpop.permute.xlu0 %2068 }
 0x3e9   : > { %15147 = vst [vmem:[#allocation94_spill] sm:$0xff] %v10680_v12 }
 0x3ea   : > { %v10682_v40 = vpop.permute.xlu1 %1478  ;;  %1888 = vrot.lane.b32.xlu0 %v10262_v46, %s9405_s24 }
 0x3eb   : > { %15148 = vst [vmem:[#allocation95_spill] sm:$0xff] %v10682_v40 }
 0x3ec   : > { %1442 = vrot.lane.b32.xlu1 %v10270_v52, %s9407_s17  ;;  %v10688_v32 = vpop.permute.xlu0 %1540 }
 0x3ed   : > { %15149 = vst [vmem:[#allocation96_spill] sm:$0xff] %v10688_v32 }
 0x3ee   : > { %v10690_v50 = vpop.permute.xlu1 %1878  ;;  %2080 = vrot.lane.b32.xlu0 %v10262_v46, %s9406_s23 }
 0x3ef   : > { %15150 = vst [vmem:[#allocation97_spill] sm:$0xff] %v10690_v50 }
 0x3f0   : > { %1490 = vrot.lane.b32.xlu1 %v10270_v52, %s9408_s19  ;;  %v2550_v28 = vpop.permute.xlu0 %2549 }
 0x3f2   : > { %v10696_v3 = vpop.permute.xlu1 %2070  ;;  %1552 = vrot.lane.b32.xlu0 %v10267_v16, %s9404_s20 }
 0x3f4   : > { %1890 = vrot.lane.b32.xlu1 %v10270_v52, %s9405_s24  ;;  %v2742_v40 = vpop.permute.xlu0 %2741 }
 0x3f5   : > { %v2927_v55 = vsel %vm2248_vm0, %v2550_v28, %v2742_v40 }
 0x3f6   : > { %v10702_v15 = vpop.permute.xlu1 %1542  ;;  %2561 = vrot.lane.b32.xlu0 %v10267_v16, %s9405_s24  ;;  %v3055_v40 = vmul.f32 %v2927_v55, %v10730_v58 }
 0x3f7   : > { %15151 = vst [vmem:[#allocation98_spill] sm:$0xff] %v10702_v15  ;;  %v10720_v15 = vld [vmem:[%s14779_s13 + $0x30] sm:$0xff] }
 0x3f8   : > { %2082 = vrot.lane.b32.xlu1 %v10270_v52, %s9406_s23  ;;  %v10708_v32 = vpop.permute.xlu0 %1588  ;;  %15154 = vst [vmem:[#allocation101_spill] sm:$0xff] %v10720_v15  ;;  %v2991_v10 = vmul.f32 %v10720_v15, %v10173_v21 }
 0x3f9   : > { %15152 = vst [vmem:[#allocation99_spill] sm:$0xff] %v10708_v32  ;;  %v10725_v32 = vld [vmem:[%s14779_s13 + $0x38] sm:$0xff] }
 0x3fa   : > { %v2552_v38 = vpop.permute.xlu1 %2551  ;;  %2753 = vrot.lane.b32.xlu0 %v10267_v16, %s9406_s23  ;;  %15155 = vst [vmem:[#allocation102_spill] sm:$0xff] %v10725_v32  ;;  %v2992_v52 = vmul.f32 %v10725_v32, %v10183_v62  ;;  %v3119_v58 = vadd.f32 %v3055_v40, %v2991_v10 }
 0x3fc   : > { %1554 = vrot.lane.b32.xlu1 %v10275_v49, %s9404_s20  ;;  %v10715_v9 = vpop.permute.xlu0 %1636 }
 0x3fd   : > { %15153 = vst [vmem:[#allocation100_spill] sm:$0xff] %v10715_v9  ;;  %v10738_v9 = vld [vmem:[%s14780_s14 + $0x38] sm:$0xff] }
 0x3fe   : > { %v2744_v28 = vpop.permute.xlu1 %2743  ;;  %1600 = vrot.lane.b32.xlu0 %v10267_v16, %s9407_s17 }
 0x3ff   : > { %v2928_v46 = vsel %vm2248_vm0, %v2552_v38, %v2744_v28 }
 0x400   : > { %v3056_v42 = vmul.f32 %v2928_v46, %v10738_v9  ;;  %2563 = vrot.lane.b32.xlu1 %v10275_v49, %s9405_s24  ;;  %v10748_v55 = vpop.permute.xlu0 %1384 }
 0x401   : > { %15157 = vst [vmem:[#allocation104_spill] sm:$0xff] %v10748_v55 }
 0x402   : > { %v3120_v12 = vadd.f32 %v3056_v42, %v2992_v52  ;;  %v10750_v50 = vpop.permute.xlu1 %1590  ;;  %1648 = vrot.lane.b32.xlu0 %v10267_v16, %s9408_s19 }
 0x403   : > { %15158 = vst [vmem:[#allocation105_spill] sm:$0xff] %v10750_v50 }
 0x404   : > { %v3180_v38 = vpack.c.bf16 %v3120_v12, %v3119_v58  ;;  %2755 = vrot.lane.b32.xlu1 %v10275_v49, %s9406_s23  ;;  %v10756_v21 = vpop.permute.xlu0 %1432 }
 0x405   : > { %15159 = vst [vmem:[#allocation106_spill] sm:$0xff] %v10756_v21 }
 0x406   : > { %v10758_v62 = vpop.permute.xlu1 %1638  ;;  %1396 = vrot.lane.b32.xlu0 %v10282_v1, %s9404_s20  ;;  %8102 = vmatprep.subr.msk.bf16.mxu0 %vm3257_vm1, %v3180_v38  ;;  %v3292_v10 = vsel %vm3257_vm1, %v3180_v38, 0 }
 0x407   : > { %15160 = vst [vmem:[#allocation107_spill] sm:$0xff] %v10758_v62  ;;  %7802 = vmatpush3.bf16.xpose.msra.mxu0 %v3292_v10  ;;  %v10832_v62 = vld [vmem:[%s14780_s14 + $0x40] sm:$0xff] }
 0x408   : > { %1602 = vrot.lane.b32.xlu1 %v10275_v49, %s9407_s17  ;;  %v10766_v46 = vpop.permute.xlu0 %1480  ;;  %15170 = vst [vmem:[#allocation117_spill] sm:$0xff] %v10832_v62 }
 0x409   : > { %15161 = vst [vmem:[#allocation108_spill] sm:$0xff] %v10766_v46 }
 0x40a   : > { %v10768_v52 = vpop.permute.xlu1 %1386  ;;  %1444 = vrot.lane.b32.xlu0 %v10282_v1, %s9407_s17 }
 0x40b   : > { %15162 = vst [vmem:[#allocation109_spill] sm:$0xff] %v10768_v52 }
 0x40c   : > { %1650 = vrot.lane.b32.xlu1 %v10275_v49, %s9408_s19  ;;  %v10774_v58 = vpop.permute.xlu0 %1880 }
 0x40d   : > { %15163 = vst [vmem:[#allocation110_spill] sm:$0xff] %v10774_v58 }
 0x40e   : > { %v10776_v42 = vpop.permute.xlu1 %1434  ;;  %1492 = vrot.lane.b32.xlu0 %v10282_v1, %s9408_s19 }
 0x40f   : > { %15164 = vst [vmem:[#allocation111_spill] sm:$0xff] %v10776_v42 }
 0x410   : > { %1398 = vrot.lane.b32.xlu1 %v10290_v26, %s9404_s20  ;;  %v10782_v12 = vpop.permute.xlu0 %2072 }
 0x412   : > { %v10784_v40 = vpop.permute.xlu1 %1482  ;;  %1892 = vrot.lane.b32.xlu0 %v10282_v1, %s9405_s24 }
 0x413   : > { %15165 = vst [vmem:[#allocation112_spill] sm:$0xff] %v10784_v40 }
 0x414   : > { %1446 = vrot.lane.b32.xlu1 %v10290_v26, %s9407_s17  ;;  %v10790_v28 = vpop.permute.xlu0 %1544 }
 0x415   : > { %15166 = vst [vmem:[#allocation113_spill] sm:$0xff] %v10790_v28 }
 0x416   : > { %v10792_v38 = vpop.permute.xlu1 %1882  ;;  %2084 = vrot.lane.b32.xlu0 %v10282_v1, %s9406_s23 }
 0x418   : > { %1494 = vrot.lane.b32.xlu1 %v10290_v26, %s9408_s19  ;;  %v2554_v10 = vpop.permute.xlu0 %2553 }
 0x41a   : > { %v10798_v46 = vpop.permute.xlu1 %2074  ;;  %1556 = vrot.lane.b32.xlu0 %v10287_v63, %s9404_s20 }
 0x41c   : > { %1894 = vrot.lane.b32.xlu1 %v10290_v26, %s9405_s24  ;;  %v2746_v40 = vpop.permute.xlu0 %2745 }
 0x41d   : > { %v2929_v52 = vsel %vm2248_vm0, %v2554_v10, %v2746_v40 }
 0x41e   : > { %v10804_v21 = vpop.permute.xlu1 %1546  ;;  %2565 = vrot.lane.b32.xlu0 %v10287_v63, %s9405_s24  ;;  %v3057_v40 = vmul.f32 %v2929_v52, %v10832_v62 }
 0x41f   : > { %15167 = vst [vmem:[#allocation114_spill] sm:$0xff] %v10804_v21  ;;  %v10822_v21 = vld [vmem:[%s14779_s13 + $0x40] sm:$0xff] }
 0x420   : > { %2086 = vrot.lane.b32.xlu1 %v10290_v26, %s9406_s23  ;;  %v10810_v42 = vpop.permute.xlu0 %1592  ;;  %v2993_v1 = vmul.f32 %v10822_v21, %v10205_v53 }
 0x421   : > { %15168 = vst [vmem:[#allocation115_spill] sm:$0xff] %v10810_v42  ;;  %v10827_v42 = vld [vmem:[%s14779_s13 + $0x48] sm:$0xff] }
 0x422   : > { %v2556_v28 = vpop.permute.xlu1 %2555  ;;  %2757 = vrot.lane.b32.xlu0 %v10287_v63, %s9406_s23  ;;  %v2994_v26 = vmul.f32 %v10827_v42, %v10215_v11  ;;  %v3121_v62 = vadd.f32 %v3057_v40, %v2993_v1 }
 0x424   : > { %1558 = vrot.lane.b32.xlu1 %v10295_v17, %s9404_s20  ;;  %v10817_v55 = vpop.permute.xlu0 %1640 }
 0x425   : > { %15169 = vst [vmem:[#allocation116_spill] sm:$0xff] %v10817_v55  ;;  %v10840_v55 = vld [vmem:[%s14780_s14 + $0x48] sm:$0xff] }
 0x426   : > { %v2748_v10 = vpop.permute.xlu1 %2747  ;;  %1604 = vrot.lane.b32.xlu0 %v10287_v63, %s9407_s17 }
 0x427   : > { %v2930_v50 = vsel %vm2248_vm0, %v2556_v28, %v2748_v10 }
 0x428   : > { %v3058_v15 = vmul.f32 %v2930_v50, %v10840_v55  ;;  %2567 = vrot.lane.b32.xlu1 %v10295_v17, %s9405_s24  ;;  %v10850_v52 = vpop.permute.xlu0 %1388 }
 0x429   : > { %15171 = vst [vmem:[#allocation118_spill] sm:$0xff] %v10850_v52  ;;  %v10934_v52 = vld [vmem:[%s14780_s14 + $0x50] sm:$0xff] }
 0x42a   : > { %v3122_v32 = vadd.f32 %v3058_v15, %v2994_v26  ;;  %v10852_v58 = vpop.permute.xlu1 %1594  ;;  %1652 = vrot.lane.b32.xlu0 %v10287_v63, %s9408_s19  ;;  %15183 = vst [vmem:[#allocation130_spill] sm:$0xff] %v10934_v52 }
 0x42b   : > { %15172 = vst [vmem:[#allocation119_spill] sm:$0xff] %v10852_v58 }
 0x42c   : > { %v3181_v28 = vpack.c.bf16 %v3122_v32, %v3121_v62  ;;  %2759 = vrot.lane.b32.xlu1 %v10295_v17, %s9406_s23  ;;  %v10858_v53 = vpop.permute.xlu0 %1436 }
 0x42d   : > { %15173 = vst [vmem:[#allocation120_spill] sm:$0xff] %v10858_v53 }
 0x42e   : > { %v10860_v11 = vpop.permute.xlu1 %1642  ;;  %1896 = vrot.lane.b32.xlu0 %v10359_v37, %s9405_s24  ;;  %8103 = vmatprep.subr.msk.bf16.mxu0 %vm3257_vm1, %v3181_v28  ;;  %v3295_v1 = vsel %vm3257_vm1, %v3181_v28, 0 }
 0x42f   : > { %15174 = vst [vmem:[#allocation121_spill] sm:$0xff] %v10860_v11  ;;  %7804 = vmatpush3.bf16.xpose.msra.mxu0 %v3295_v1 }
 0x430   : > { %1606 = vrot.lane.b32.xlu1 %v10295_v17, %s9407_s17  ;;  %v10868_v26 = vpop.permute.xlu0 %1484 }
 0x431   : > { %15175 = vst [vmem:[#allocation122_spill] sm:$0xff] %v10868_v26 }
 0x432   : > { %v10870_v15 = vpop.permute.xlu1 %1390  ;;  %2088 = vrot.lane.b32.xlu0 %v10359_v37, %s9406_s23 }
 0x433   : > { %15176 = vst [vmem:[#allocation123_spill] sm:$0xff] %v10870_v15 }
 0x434   : > { %1654 = vrot.lane.b32.xlu1 %v10295_v17, %s9408_s19  ;;  %v10876_v32 = vpop.permute.xlu0 %1884 }
 0x436   : > { %v10878_v50 = vpop.permute.xlu1 %1438  ;;  %1928 = vrot.lane.b32.xlu0 %v10403_v45, %s9405_s24 }
 0x437   : > { %15177 = vst [vmem:[#allocation124_spill] sm:$0xff] %v10878_v50 }
 0x438   : > { %1898 = vrot.lane.b32.xlu1 %v10361_v59, %s9405_s24  ;;  %v10884_v62 = vpop.permute.xlu0 %2076 }
 0x43a   : > { %v10886_v40 = vpop.permute.xlu1 %1486  ;;  %2120 = vrot.lane.b32.xlu0 %v10403_v45, %s9406_s23 }
 0x43b   : > { %15178 = vst [vmem:[#allocation125_spill] sm:$0xff] %v10886_v40 }
 0x43c   : > { %2090 = vrot.lane.b32.xlu1 %v10361_v59, %s9406_s23  ;;  %v10892_v10 = vpop.permute.xlu0 %1548 }
 0x43d   : > { %15179 = vst [vmem:[#allocation126_spill] sm:$0xff] %v10892_v10 }
 0x43e   : > { %v10894_v28 = vpop.permute.xlu1 %1886  ;;  %1960 = vrot.lane.b32.xlu0 %v10411_v14, %s9405_s24 }
 0x440   : > { %1930 = vrot.lane.b32.xlu1 %v10405_v22, %s9405_s24  ;;  %v2558_v1 = vpop.permute.xlu0 %2557 }
 0x442   : > { %v10900_v26 = vpop.permute.xlu1 %2078  ;;  %2152 = vrot.lane.b32.xlu0 %v10411_v14, %s9406_s23 }
 0x444   : > { %2122 = vrot.lane.b32.xlu1 %v10405_v22, %s9406_s23  ;;  %v2750_v40 = vpop.permute.xlu0 %2749 }
 0x445   : > { %v2931_v14 = vsel %vm2248_vm0, %v2558_v1, %v2750_v40 }
 0x446   : > { %v10906_v50 = vpop.permute.xlu1 %1550  ;;  %2569 = vrot.lane.b32.xlu0 %v10420_v47, %s9405_s24  ;;  %v3059_v40 = vmul.f32 %v2931_v14, %v10934_v52 }
 0x447   : > { %15180 = vst [vmem:[#allocation127_spill] sm:$0xff] %v10906_v50  ;;  %v10924_v50 = vld [vmem:[%s14779_s13 + $0x50] sm:$0xff] }
 0x448   : > { %1962 = vrot.lane.b32.xlu1 %v10413_v39, %s9405_s24  ;;  %v10912_v53 = vpop.permute.xlu0 %1596  ;;  %v2995_v11 = vmul.f32 %v10924_v50, %v10239_v18 }
 0x449   : > { %15181 = vst [vmem:[#allocation128_spill] sm:$0xff] %v10912_v53  ;;  %v10929_v53 = vld [vmem:[%s14779_s13 + $0x58] sm:$0xff] }
 0x44a   : > { %v2560_v10 = vpop.permute.xlu1 %2559  ;;  %2761 = vrot.lane.b32.xlu0 %v10420_v47, %s9406_s23  ;;  %v2996_v58 = vmul.f32 %v10929_v53, %v10251_v0  ;;  %v3123_v45 = vadd.f32 %v3059_v40, %v2995_v11 }
 0x44c   : > { %2154 = vrot.lane.b32.xlu1 %v10413_v39, %s9406_s23  ;;  %v10919_v15 = vpop.permute.xlu0 %1644  ;;  %v10942_v39 = vld [vmem:[%s14780_s14 + $0x58] sm:$0xff] }
 0x44d   : > { %15182 = vst [vmem:[#allocation129_spill] sm:$0xff] %v10919_v15 }
 0x44e   : > { %v2752_v1 = vpop.permute.xlu1 %2751  ;;  %2601 = vrot.lane.b32.xlu0 %v10444_v41, %s9405_s24 }
 0x44f   : > { %v2932_v15 = vsel %vm2248_vm0, %v2560_v10, %v2752_v1 }
 0x450   : > { %v3060_v47 = vmul.f32 %v2932_v15, %v10942_v39  ;;  %2571 = vrot.lane.b32.xlu1 %v10422_v31, %s9405_s24  ;;  %v10952_v14 = vpop.permute.xlu0 %1392 }
 0x451   : > { %15184 = vst [vmem:[#allocation131_spill] sm:$0xff] %v10952_v14 }
 0x452   : > { %v3124_v22 = vadd.f32 %v3060_v47, %v2996_v58  ;;  %v10954_v52 = vpop.permute.xlu1 %1598  ;;  %2793 = vrot.lane.b32.xlu0 %v10444_v41, %s9406_s23 }
 0x453   : > { %15185 = vst [vmem:[#allocation132_spill] sm:$0xff] %v10954_v52 }
 0x454   : > { %v3182_v10 = vpack.c.bf16 %v3124_v22, %v3123_v45  ;;  %2763 = vrot.lane.b32.xlu1 %v10422_v31, %s9406_s23  ;;  %v10960_v18 = vpop.permute.xlu0 %1440 }
 0x455   : > { %15186 = vst [vmem:[#allocation133_spill] sm:$0xff] %v10960_v18  ;;  %v11031_v18 = vld [vmem:[%s14779_s13 + $0x68] sm:$0xff] }
 0x456   : > { %v10962_v0 = vpop.permute.xlu1 %1646  ;;  %2633 = vrot.lane.b32.xlu0 %v10452_v27, %s9405_s24  ;;  %8104 = vmatprep.subr.msk.bf16.mxu0 %vm3257_vm1, %v3182_v10  ;;  %v3298_v47 = vsel %vm3257_vm1, %v3182_v10, 0 }
 0x457   : > { %15187 = vst [vmem:[#allocation134_spill] sm:$0xff] %v10962_v0  ;;  %7806 = vmatpush3.bf16.xpose.msra.mxu0 %v3298_v47 }
 0x458   : > { %2603 = vrot.lane.b32.xlu1 %v10446_v23, %s9405_s24  ;;  %v10970_v58 = vpop.permute.xlu0 %1488 }
 0x459   : > { %15188 = vst [vmem:[#allocation135_spill] sm:$0xff] %v10970_v58 }
 0x45a   : > { %v10972_v22 = vpop.permute.xlu1 %1394  ;;  %2825 = vrot.lane.b32.xlu0 %v10452_v27, %s9406_s23 }
 0x45b   : > { %15189 = vst [vmem:[#allocation136_spill] sm:$0xff] %v10972_v22 }
 0x45c   : > { %2795 = vrot.lane.b32.xlu1 %v10446_v23, %s9406_s23  ;;  %v10978_v45 = vpop.permute.xlu0 %1888 }
 0x45e   : > { %v10980_v11 = vpop.permute.xlu1 %1442  ;;  %1900 = vrot.lane.b32.xlu0 %v10462_v5, %s9405_s24 }
 0x45f   : > { %15190 = vst [vmem:[#allocation137_spill] sm:$0xff] %v10980_v11  ;;  %v11026_v11 = vld [vmem:[%s14779_s13 + $0x60] sm:$0xff] }
 0x460   : > { %2635 = vrot.lane.b32.xlu1 %v10454_v4, %s9405_s24  ;;  %v10986_v15 = vpop.permute.xlu0 %2080 }
 0x462   : > { %v10988_v40 = vpop.permute.xlu1 %1490  ;;  %2092 = vrot.lane.b32.xlu0 %v10462_v5, %s9406_s23 }
 0x463   : > { %15191 = vst [vmem:[#allocation138_spill] sm:$0xff] %v10988_v40 }
 0x464   : > { %2827 = vrot.lane.b32.xlu1 %v10454_v4, %s9406_s23  ;;  %v10994_v1 = vpop.permute.xlu0 %1552 }
 0x465   : > { %15192 = vst [vmem:[#allocation139_spill] sm:$0xff] %v10994_v1 }
 0x466   : > { %v10996_v10 = vpop.permute.xlu1 %1890  ;;  %1932 = vrot.lane.b32.xlu0 %v10484_v8, %s9405_s24 }
 0x468   : > { %1902 = vrot.lane.b32.xlu1 %v10470_v54, %s9405_s24  ;;  %v2562_v47 = vpop.permute.xlu0 %2561 }
 0x46a   : > { %v11002_v27 = vpop.permute.xlu1 %2082  ;;  %2124 = vrot.lane.b32.xlu0 %v10484_v8, %s9406_s23 }
 0x46c   : > { %2094 = vrot.lane.b32.xlu1 %v10470_v54, %s9406_s23  ;;  %v2754_v5 = vpop.permute.xlu0 %2753 }
 0x46d   : > { %v2933_v8 = vsel %vm2248_vm0, %v2562_v47, %v2754_v5 }
 0x46e   : > { %v11008_v4 = vpop.permute.xlu1 %1554  ;;  %1964 = vrot.lane.b32.xlu0 %v10502_v44, %s9405_s24 }
 0x46f   : > { %15193 = vst [vmem:[#allocation140_spill] sm:$0xff] %v11008_v4  ;;  %v2998_v4 = vmul.f32 %v11031_v18, %v10275_v49 }
 0x470   : > { %1934 = vrot.lane.b32.xlu1 %v10508_v43, %s9405_s24  ;;  %v11014_v40 = vpop.permute.xlu0 %1600 }
 0x471   : > { %15194 = vst [vmem:[#allocation141_spill] sm:$0xff] %v11014_v40  ;;  %v2997_v40 = vmul.f32 %v11026_v11, %v10267_v16 }
 0x472   : > { %v2564_v58 = vpop.permute.xlu1 %2563  ;;  %2156 = vrot.lane.b32.xlu0 %v10502_v44, %s9406_s23  ;;  %v11036_v44 = vld [vmem:[%s14780_s14 + $0x60] sm:$0xff] }
 0x473   : > { %v3061_v5 = vmul.f32 %v2933_v8, %v11036_v44 }
 0x474   : > { %2126 = vrot.lane.b32.xlu1 %v10508_v43, %s9406_s23  ;;  %v11021_v54 = vpop.permute.xlu0 %1648  ;;  %v11044_v43 = vld [vmem:[%s14780_s14 + $0x68] sm:$0xff] }
 0x475   : > { %15195 = vst [vmem:[#allocation142_spill] sm:$0xff] %v11021_v54  ;;  %v3125_v22 = vadd.f32 %v3061_v5, %v2997_v40 }
 0x476   : > { %v2756_v47 = vpop.permute.xlu1 %2755  ;;  %2573 = vrot.lane.b32.xlu0 %v10464_v2, %s9405_s24 }
 0x477   : > { %v2934_v54 = vsel %vm2248_vm0, %v2564_v58, %v2756_v47 }
 0x478   : > { %v3062_v1 = vmul.f32 %v2934_v54, %v11044_v43  ;;  %1966 = vrot.lane.b32.xlu1 %v10516_v36, %s9405_s24  ;;  %v11054_v8 = vpop.permute.xlu0 %1396 }
 0x479   : > { %15196 = vst [vmem:[#allocation143_spill] sm:$0xff] %v11054_v8  ;;  %v2254_v8 = vsel %vm2248_vm0, %v10588_v20, %v10594_v6  ;;  %v15210_v6 = vld [vmem:[#allocation85_spill] sm:$0xff] }
 0x47a   : > { %v3126_v14 = vadd.f32 %v3062_v1, %v2998_v4  ;;  %v11056_v0 = vpop.permute.xlu1 %1602  ;;  %2765 = vrot.lane.b32.xlu0 %v10464_v2, %s9406_s23 }
 0x47b   : > { %15197 = vst [vmem:[#allocation144_spill] sm:$0xff] %v11056_v0 }
 0x47c   : > { %v3183_v58 = vpack.c.bf16 %v3126_v14, %v3125_v22  ;;  %2158 = vrot.lane.b32.xlu1 %v10516_v36, %s9406_s23  ;;  %v11062_v16 = vpop.permute.xlu0 %1444 }
 0x47d   : > { %15198 = vst [vmem:[#allocation145_spill] sm:$0xff] %v11062_v16  ;;  %v11128_v16 = vld [vmem:[%s14779_s13 + $0x70] sm:$0xff] }
 0x47e   : > { %v11064_v49 = vpop.permute.xlu1 %1650  ;;  %2605 = vrot.lane.b32.xlu0 %v10528_v24, %s9405_s24  ;;  %8105 = vmatprep.subr.msk.bf16.mxu0 %vm3257_vm1, %v3183_v58  ;;  %v3301_v4 = vsel %vm3257_vm1, %v3183_v58, 0 }
 0x47f   : > { %15199 = vst [vmem:[#allocation146_spill] sm:$0xff] %v11064_v49  ;;  %7808 = vmatpush3.bf16.xpose.msra.mxu0 %v3301_v4 }
 0x480   : > { %2575 = vrot.lane.b32.xlu1 %v10522_v51, %s9405_s24  ;;  %v11072_v54 = vpop.permute.xlu0 %1492 }
 0x481   : > { %15200 = vst [vmem:[#allocation147_spill] sm:$0xff] %v11072_v54 }
 0x482   : > { %v11074_v14 = vpop.permute.xlu1 %1398  ;;  %2797 = vrot.lane.b32.xlu0 %v10528_v24, %s9406_s23 }
 0x483   : > { %15201 = vst [vmem:[#allocation148_spill] sm:$0xff] %v11074_v14 }
 0x484   : > { %2767 = vrot.lane.b32.xlu1 %v10522_v51, %s9406_s23  ;;  %v11080_v22 = vpop.permute.xlu0 %1892 }
 0x486   : > { %v11082_v40 = vpop.permute.xlu1 %1446  ;;  %2637 = vrot.lane.b32.xlu0 %v10535_v13, %s9405_s24 }
 0x487   : > { %15202 = vst [vmem:[#allocation149_spill] sm:$0xff] %v11082_v40 }
 0x488   : > { %2607 = vrot.lane.b32.xlu1 %v10546_v56, %s9405_s24  ;;  %v11088_v1 = vpop.permute.xlu0 %2084 }
 0x48a   : > { %v11090_v5 = vpop.permute.xlu1 %1494  ;;  %2829 = vrot.lane.b32.xlu0 %v10535_v13, %s9406_s23 }
 0x48b   : > { %15203 = vst [vmem:[#allocation150_spill] sm:$0xff] %v11090_v5 }
 0x48c   : > { %2799 = vrot.lane.b32.xlu1 %v10546_v56, %s9406_s23  ;;  %v11096_v47 = vpop.permute.xlu0 %1556 }
 0x48d   : > { %15204 = vst [vmem:[#allocation151_spill] sm:$0xff] %v11096_v47 }
 0x48e   : > { %v11098_v58 = vpop.permute.xlu1 %1894  ;;  %1904 = vrot.lane.b32.xlu0 %v10544_v34, %s9405_s24 }
 0x490   : > { %2639 = vrot.lane.b32.xlu1 %v10554_v61, %s9405_s24  ;;  %v2566_v4 = vpop.permute.xlu0 %2565 }
 0x492   : > { %v11104_v36 = vpop.permute.xlu1 %2086  ;;  %2096 = vrot.lane.b32.xlu0 %v10544_v34, %s9406_s23 }
 0x494   : > { %2831 = vrot.lane.b32.xlu1 %v10554_v61, %s9406_s23  ;;  %v2758_v13 = vpop.permute.xlu0 %2757 }
 0x495   : > { %v2935_v34 = vsel %vm2248_vm0, %v2566_v4, %v2758_v13 }
 0x496   : > { %v11110_v5 = vpop.permute.xlu1 %1558  ;;  %1936 = vrot.lane.b32.xlu0 %v10552_v57, %s9405_s24 }
 0x497   : > { %15205 = vst [vmem:[#allocation152_spill] sm:$0xff] %v11110_v5  ;;  %v2999_v5 = vmul.f32 %v11128_v16, %v10287_v63  ;;  %v2253_v63 = vsel %vm2248_vm0, %v10570_v60, %v10578_v25  ;;  %v15212_v25 = vld [vmem:[#allocation81_spill] sm:$0xff] }
 0x498   : > { %1906 = vrot.lane.b32.xlu1 %v10564_v48, %s9405_s24  ;;  %v11116_v54 = vpop.permute.xlu0 %1604 }
 0x499   : > { %15206 = vst [vmem:[#allocation153_spill] sm:$0xff] %v11116_v54  ;;  %v11133_v54 = vld [vmem:[%s14779_s13 + $0x78] sm:$0xff] }
 0x49a   : > { %v2568_v40 = vpop.permute.xlu1 %2567  ;;  %2128 = vrot.lane.b32.xlu0 %v10552_v57, %s9406_s23  ;;  %v11138_v57 = vld [vmem:[%s14780_s14 + $0x70] sm:$0xff]  ;;  %v3000_v47 = vmul.f32 %v11133_v54, %v10295_v17 }
 0x49b   : > { %v3063_v13 = vmul.f32 %v2935_v34, %v11138_v57 }
 0x49c   : > { %2098 = vrot.lane.b32.xlu1 %v10564_v48, %s9406_s23  ;;  %v11123_v61 = vpop.permute.xlu0 %1652  ;;  %v11146_v48 = vld [vmem:[%s14780_s14 + $0x78] sm:$0xff] }
 0x49d   : > { %15207 = vst [vmem:[#allocation154_spill] sm:$0xff] %v11123_v61  ;;  %v3127_v49 = vadd.f32 %v3063_v13, %v2999_v5  ;;  %v15211_v5 = vld [vmem:[#allocation32_spill] sm:$0xff] }
 0x49e   : > { %v2760_v4 = vpop.permute.xlu1 %2759  ;;  %1968 = vrot.lane.b32.xlu0 %v10562_v19, %s9405_s24  ;;  %v2318_v60 = vmul.f32 %v10623_v29, %v15211_v5 }
 0x49f   : > { %v2936_v61 = vsel %vm2248_vm0, %v2568_v40, %v2760_v4  ;;  %v2382_v40 = vmul.f32 %v2254_v8, %v10636_v35  ;;  %v15213_v35 = vld [vmem:[#allocation31_spill] sm:$0xff] }
 0x4a0   : > { %v3064_v14 = vmul.f32 %v2936_v61, %v11146_v48  ;;  %1938 = vrot.lane.b32.xlu1 %v10572_v7, %s9405_s24  ;;  %v1897_v34 = vpop.permute.xlu0 %1896  ;;  %v2317_v8 = vmul.f32 %v10618_v30, %v15213_v35  ;;  %v15218_v35 = vld [vmem:[#allocation103_spill] sm:$0xff] }
 0x4a2   : > { %v3128_v0 = vadd.f32 %v3064_v14, %v3000_v47  ;;  %v11159_v52 = vpop.permute.xlu1 %1606  ;;  %2160 = vrot.lane.b32.xlu0 %v10562_v19, %s9406_s23  ;;  %v2381_v14 = vmul.f32 %v2253_v63, %v15210_v6  ;;  %v15214_v47 = vld [vmem:[#allocation97_spill] sm:$0xff]  ;;  %v2258_v63 = vsel %vm2248_vm0, %v10792_v38, %v10798_v46  ;;  %v15216_v6 = vld [vmem:[#allocation92_spill] sm:$0xff] }
 0x4a3   : > { %15208 = vst [vmem:[#allocation155_spill] sm:$0xff] %v11159_v52  ;;  %v2256_v13 = vsel %vm2248_vm0, %v15214_v47, %v10696_v3  ;;  %v15219_v47 = vld [vmem:[#allocation38_spill] sm:$0xff] }
 0x4a4   : > { %v3184_v17 = vpack.c.bf16 %v3128_v0, %v3127_v49  ;;  %2130 = vrot.lane.b32.xlu1 %v10572_v7, %s9406_s23  ;;  %v2089_v61 = vpop.permute.xlu0 %2088  ;;  %v2446_v49 = vadd.f32 %v2382_v40, %v2318_v60  ;;  %v2445_v29 = vadd.f32 %v2381_v14, %v2317_v8  ;;  %v2384_v40 = vmul.f32 %v2256_v13, %v10738_v9  ;;  %v15217_v60 = vld [vmem:[#allocation110_spill] sm:$0xff]  ;;  %v15222_v13 = vld [vmem:[#allocation83_spill] sm:$0xff] }
 0x4a5   : > { %v2265_v30 = vsel %vm2248_vm0, %v1897_v34, %v2089_v61  ;;  %v2257_v3 = vsel %vm2248_vm0, %v15217_v60, %v10782_v12  ;;  %v2386_v14 = vmul.f32 %v2258_v63, %v10840_v55  ;;  %v15221_v34 = vld [vmem:[#allocation55_spill] sm:$0xff]  ;;  %v15224_v60 = vld [vmem:[#allocation70_spill] sm:$0xff]  ;;  %v15228_v55 = vld [vmem:[#allocation117_spill] sm:$0xff] }
 0x4a6   : > { %v11169_v4 = vpop.permute.xlu1 %1654  ;;  %2577 = vrot.lane.b32.xlu0 %v10586_v33, %s9405_s24  ;;  %8106 = vmatprep.subr.msk.bf16.mxu0 %vm3257_vm1, %v3184_v17  ;;  %v3304_v20 = vsel %vm3257_vm1, %v3184_v17, 0  ;;  %v2507_v38 = vpack.c.bf16 %v2446_v49, %v2445_v29  ;;  %v2393_v61 = vmul.f32 %v2265_v30, %v15221_v34  ;;  %v15223_v12 = vld [vmem:[#allocation71_spill] sm:$0xff]  ;;  %v15227_v49 = vld [vmem:[#allocation101_spill] sm:$0xff]  ;;  %v2385_v63 = vmul.f32 %v2257_v3, %v15228_v55  ;;  %v15230_v30 = vld [vmem:[#allocation56_spill] sm:$0xff] }
 0x4a7   : > { %15209 = vst [vmem:[#allocation156_spill] sm:$0xff] %v11169_v4  ;;  %7810 = vmatpush3.bf16.xpose.msra.mxu0 %v3304_v20  ;;  %v15215_v20 = vld [vmem:[#allocation94_spill] sm:$0xff]  ;;  %v15225_v19 = vpack.c.bf16 %v15223_v12, %v15224_v60  ;;  %v15231_v34 = vld [vmem:[#allocation57_spill] sm:$0xff] }
 0x4a8   : > { %1970 = vrot.lane.b32.xlu1 %v15212_v25, %s9405_s24  ;;  %v11180_v0 = vpop.permute.xlu0 %1928  ;;  %v2255_v5 = vsel %vm2248_vm0, %v15216_v6, %v15215_v20  ;;  %v15220_v20 = vld [vmem:[#allocation102_spill] sm:$0xff]  ;;  %v2330_v12 = vmul.f32 %v15231_v34, %v10361_v59  ;;  %v2262_v59 = vsel %vm2248_vm0, %v10996_v10, %v11002_v27 }
 0x4a9   : > { %v2383_v8 = vmul.f32 %v2255_v5, %v15218_v35  ;;  %v2320_v6 = vmul.f32 %v15220_v20, %v15219_v47  ;;  %v15229_v5 = vld [vmem:[#allocation44_spill] sm:$0xff]  ;;  %v2329_v20 = vmul.f32 %v15230_v30, %v10359_v37  ;;  %v2390_v10 = vmul.f32 %v2262_v59, %v11044_v43  ;;  %v15241_v43 = vld [vmem:[#allocation49_spill] sm:$0xff] }
 0x4aa   : > { %v1899_v17 = vpop.permute.xlu1 %1898  ;;  %2769 = vrot.lane.b32.xlu0 %v10586_v33, %s9406_s23  ;;  %v2322_v35 = vmul.f32 %v10827_v42, %v15229_v5 }
 0x4ab   : > { %v2448_v60 = vadd.f32 %v2384_v40, %v2320_v6  ;;  %v2457_v40 = vadd.f32 %v2393_v61, %v2329_v20  ;;  %v15243_v20 = vld [vmem:[#allocation51_spill] sm:$0xff] }
 0x4ac   : > { %2162 = vrot.lane.b32.xlu1 %v15212_v25, %s9406_s23  ;;  %v11202_v46 = vpop.permute.xlu0 %2120  ;;  %v15226_v25 = vld [vmem:[#allocation37_spill] sm:$0xff]  ;;  %v2325_v34 = vmul.f32 %v11026_v11, %v15243_v20 }
 0x4ad   : > { %v2319_v29 = vmul.f32 %v15227_v49, %v15226_v25  ;;  %v15233_v25 = vld [vmem:[#allocation82_spill] sm:$0xff]  ;;  %v15235_v49 = vld [vmem:[#allocation43_spill] sm:$0xff] }
 0x4ae   : > { %v2091_v9 = vpop.permute.xlu1 %2090  ;;  %2609 = vrot.lane.b32.xlu0 %v15222_v13, %s9405_s24  ;;  %7812 = vmatmul.mubr.msk.bf16.vlgmr.msra.gmra.mrb[32].mxu0 %vm3257_vm1, %v15225_v19  ;;  %v15232_v19 = vld [vmem:[#allocation58_spill] sm:$0xff]  ;;  %v2321_v42 = vmul.f32 %v10822_v21, %v15235_v49  ;;  %v2259_v21 = vsel %vm2248_vm0, %v10876_v32, %v10884_v62  ;;  %v2263_v49 = vsel %vm2248_vm0, %v11080_v22, %v11088_v1 }
 0x4af   : > { %v2266_v47 = vsel %vm2248_vm0, %v1899_v17, %v2091_v9  ;;  %7815 = vmatprep.mubr.msk.bf16.mxu0 %vm3257_vm1, %v2507_v38  ;;  %v2450_v17 = vadd.f32 %v2386_v14, %v2322_v35  ;;  %v2260_v38 = vsel %vm2248_vm0, %v10894_v28, %v10900_v26  ;;  %v2447_v37 = vadd.f32 %v2383_v8, %v2319_v29  ;;  %v15237_v8 = vld [vmem:[#allocation130_spill] sm:$0xff] }
 0x4b0   : > { %v2394_v7 = vmul.f32 %v2266_v47, %v15232_v19  ;;  %2579 = vrot.lane.b32.xlu1 %v15233_v25, %s9405_s24  ;;  %v11229_v3 = vpop.permute.xlu0 %1960  ;;  %v2449_v55 = vadd.f32 %v2385_v63, %v2321_v42  ;;  %v2388_v5 = vmul.f32 %v2260_v38, %v10942_v39  ;;  %v2261_v26 = vsel %vm2248_vm0, %v10978_v45, %v10986_v15  ;;  %v15238_v29 = vld [vmem:[#allocation50_spill] sm:$0xff]  ;;  %v15239_v39 = vld [vmem:[#allocation84_spill] sm:$0xff] }
 0x4b1   : > { %15234 = vst [vmem:[#allocation85_spill] sm:$0xff] %v11229_v3  ;;  %v2508_v14 = vpack.c.bf16 %v2448_v60, %v2447_v37  ;;  %v2387_v61 = vmul.f32 %v2259_v21, %v15237_v8  ;;  %v2324_v32 = vmul.f32 %v10929_v53, %v15238_v29  ;;  %v2389_v45 = vmul.f32 %v2261_v26, %v11036_v44  ;;  %v15240_v15 = vld [vmem:[#allocation52_spill] sm:$0xff]  ;;  %v15242_v53 = vld [vmem:[#allocation87_spill] sm:$0xff]  ;;  %v15245_v1 = vld [vmem:[#allocation54_spill] sm:$0xff] }
 0x4b2   : > { %v2458_v6 = vadd.f32 %v2394_v7, %v2330_v12  ;;  %v1931_v9 = vpop.permute.xlu1 %1930  ;;  %2801 = vrot.lane.b32.xlu0 %v15222_v13, %s9406_s23  ;;  %v2509_v7 = vpack.c.bf16 %v2450_v17, %v2449_v55  ;;  %v2326_v63 = vmul.f32 %v11031_v18, %v15240_v15  ;;  %v2323_v35 = vmul.f32 %v10924_v50, %v15241_v43  ;;  %v11290_v38 = vld [vmem:[%s14780_s14 + $0x8] sm:$0xff]  ;;  %v11322_v26 = vld [vmem:[%s14779_s13] sm:$0xff]  ;;  %v15253_v43 = vld [vmem:[#allocation88_spill] sm:$0xff] }
 0x4b3   : > { %v2452_v47 = vadd.f32 %v2388_v5, %v2324_v32  ;;  %v2264_v44 = vsel %vm2248_vm0, %v11098_v58, %v11104_v36  ;;  %v2453_v50 = vadd.f32 %v2389_v45, %v2325_v34  ;;  %v2281_v36 = vsel %vm2248_vm0, %v11180_v0, %v11202_v46  ;;  %v15247_v0 = vld [vmem:[#allocation86_spill] sm:$0xff]  ;;  %v15315_v3 = vld [vmem:[#allocation131_spill] sm:$0xff] }
 0x4b4   : > { %v2513_v28 = vpack.c.bf16 %v2458_v6, %v2457_v40  ;;  %2771 = vrot.lane.b32.xlu1 %v15233_v25, %s9406_s23  ;;  %v11250_v27 = vpop.permute.xlu0 %2152  ;;  %v2454_v12 = vadd.f32 %v2390_v10, %v2326_v63  ;;  %v2451_v18 = vadd.f32 %v2387_v61, %v2323_v35  ;;  %v2392_v11 = vmul.f32 %v2264_v44, %v11146_v48  ;;  %v11304_v46 = vld [vmem:[%s14779_s13 + $0x8] sm:$0xff]  ;;  %v15248_v40 = vld [vmem:[#allocation60_spill] sm:$0xff] }
 0x4b5   : > { %15236 = vst [vmem:[#allocation32_spill] sm:$0xff] %v11250_v27  ;;  %v2391_v22 = vmul.f32 %v2263_v49, %v11138_v57  ;;  %v2328_v48 = vmul.f32 %v11133_v54, %v15245_v1  ;;  %v2346_v6 = vmul.f32 %v11304_v46, %v15248_v40  ;;  %v11311_v57 = vld [vmem:[%s14780_s14] sm:$0xff]  ;;  %v3002_v20 = vmul.f32 %v11304_v46, %v10422_v31 }
 0x4b6   : > { %v2123_v62 = vpop.permute.xlu1 %2122  ;;  %2641 = vrot.lane.b32.xlu0 %v15239_v39, %s9405_s24  ;;  %7816 = vmatmul.mubr.msk.bf16.gmra.mrb[36].mxu0 %vm3257_vm1, %v2508_v14  ;;  %v2510_v42 = vpack.c.bf16 %v2452_v47, %v2451_v18  ;;  %v2511_v17 = vpack.c.bf16 %v2454_v12, %v2453_v50  ;;  %15249 = vst [vmem:[#allocation94_spill] sm:$0xff] %v11311_v57  ;;  %v15251_v14 = vld [vmem:[#allocation89_spill] sm:$0xff]  ;;  %v15254_v47 = vld [vmem:[#allocation63_spill] sm:$0xff] }
 0x4b7   : > { %7843 = vmatprep.mubr.msk.bf16.mxu1 %vm3257_vm1, %v2513_v28  ;;  %7819 = vmatprep.mubr.msk.bf16.mxu0 %vm3257_vm1, %v2509_v7  ;;  %v2282_v60 = vsel %vm2248_vm0, %v1931_v9, %v2123_v62  ;;  %v2409_v54 = vmul.f32 %v11311_v57, %v2281_v36  ;;  %v15250_v9 = vld [vmem:[#allocation53_spill] sm:$0xff]  ;;  %v2456_v21 = vadd.f32 %v2392_v11, %v2328_v48  ;;  %v15252_v28 = vld [vmem:[#allocation59_spill] sm:$0xff] }
 0x4b8   : > { %2611 = vrot.lane.b32.xlu1 %v15242_v53, %s9405_s24  ;;  %v2570_v30 = vpop.permute.xlu0 %2569  ;;  %v2410_v37 = vmul.f32 %v11290_v38, %v2282_v60  ;;  %v2327_v55 = vmul.f32 %v11128_v16, %v15250_v9  ;;  %v2345_v7 = vmul.f32 %v11322_v26, %v15252_v28  ;;  %v15255_v12 = vld [vmem:[#allocation91_spill] sm:$0xff]  ;;  %v3018_v1 = vmul.f32 %v11304_v46, %v10446_v23  ;;  %v15257_v40 = vld [vmem:[#allocation93_spill] sm:$0xff] }
 0x4ba   : > { %v11274_v19 = vpop.permute.xlu1 %1962  ;;  %2833 = vrot.lane.b32.xlu0 %v15239_v39, %s9406_s23  ;;  %v2474_v10 = vadd.f32 %v2410_v37, %v2346_v6  ;;  %v2455_v8 = vadd.f32 %v2391_v22, %v2327_v55  ;;  %v2473_v16 = vadd.f32 %v2409_v54, %v2345_v7  ;;  %v3017_v22 = vmul.f32 %v11322_v26, %v10444_v41  ;;  %v15261_v7 = vld [vmem:[#allocation95_spill] sm:$0xff] }
 0x4bb   : > { %15244 = vst [vmem:[#allocation31_spill] sm:$0xff] %v11274_v19 }
 0x4bc   : > { %2803 = vrot.lane.b32.xlu1 %v15242_v53, %s9406_s23  ;;  %v2762_v58 = vpop.permute.xlu0 %2761  ;;  %v2512_v32 = vpack.c.bf16 %v2456_v21, %v2455_v8  ;;  %v2521_v45 = vpack.c.bf16 %v2474_v10, %v2473_v16 }
 0x4bd   : > { %v2937_v29 = vsel %vm2248_vm0, %v2570_v30, %v2762_v58  ;;  %v3001_v30 = vmul.f32 %v11322_v26, %v15254_v47  ;;  %v15256_v58 = vld [vmem:[#allocation90_spill] sm:$0xff]  ;;  %v15273_v47 = vld [vmem:[#allocation100_spill] sm:$0xff] }
 0x4be   : > { %v11296_v59 = vpop.permute.xlu1 %2154  ;;  %1908 = vrot.lane.b32.xlu0 %v15247_v0, %s9405_s24  ;;  %7820 = vmatmul.mubr.msk.bf16.gmra.mrb[40].mxu0 %vm3257_vm1, %v2510_v42  ;;  %v3065_v15 = vmul.f32 %v11311_v57, %v2937_v29 }
 0x4bf   : > { %15246 = vst [vmem:[#allocation97_spill] sm:$0xff] %v11296_v59  ;;  %7823 = vmatprep.mubr.msk.bf16.mxu0 %vm3257_vm1, %v2511_v17 }
 0x4c0   : > { %2643 = vrot.lane.b32.xlu1 %v15251_v14, %s9405_s24  ;;  %v2602_v5 = vpop.permute.xlu0 %2601  ;;  %v3129_v18 = vadd.f32 %v3065_v15, %v3001_v30  ;;  %v15270_v15 = vld [vmem:[#allocation105_spill] sm:$0xff] }
 0x4c2   : > { %v2572_v61 = vpop.permute.xlu1 %2571  ;;  %2100 = vrot.lane.b32.xlu0 %v15247_v0, %s9406_s23 }
 0x4c4   : > { %2835 = vrot.lane.b32.xlu1 %v15251_v14, %s9406_s23  ;;  %v2794_v62 = vpop.permute.xlu0 %2793 }
 0x4c5   : > { %v2953_v49 = vsel %vm2248_vm0, %v2602_v5, %v2794_v62  ;;  %v15260_v5 = vld [vmem:[#allocation96_spill] sm:$0xff] }
 0x4c6   : > { %v2764_v63 = vpop.permute.xlu1 %2763  ;;  %1940 = vrot.lane.b32.xlu0 %v15253_v43, %s9405_s24  ;;  %7824 = vmatmul.mubr.msk.bf16.gmra.mrb[44].mxu0 %vm3257_vm1, %v2512_v32  ;;  %v3081_v11 = vmul.f32 %v11311_v57, %v2953_v49  ;;  %v15267_v32 = vld [vmem:[#allocation99_spill] sm:$0xff] }
 0x4c7   : > { %v2938_v35 = vsel %vm2248_vm0, %v2572_v61, %v2764_v63  ;;  %7875 = vmatprep.mubr.msk.bf16.mxu0 %vm3257_vm1, %v2521_v45  ;;  %v15264_v61 = vld [vmem:[#allocation98_spill] sm:$0xff] }
 0x4c8   : > { %v3066_v34 = vmul.f32 %v11290_v38, %v2938_v35  ;;  %1910 = vrot.lane.b32.xlu1 %v15255_v12, %s9405_s24  ;;  %v11344_v44 = vpop.permute.xlu0 %2633  ;;  %v3145_v54 = vadd.f32 %v3081_v11, %v3017_v22 }
 0x4ca   : > { %v3130_v60 = vadd.f32 %v3066_v34, %v3002_v20  ;;  %v2604_v50 = vpop.permute.xlu1 %2603  ;;  %2132 = vrot.lane.b32.xlu0 %v15253_v43, %s9406_s23  ;;  %v15275_v34 = vld [vmem:[#allocation107_spill] sm:$0xff] }
 0x4cc   : > { %v3185_v42 = vpack.c.bf16 %v3130_v60, %v3129_v18  ;;  %2102 = vrot.lane.b32.xlu1 %v15255_v12, %s9406_s23  ;;  %v11351_v31 = vpop.permute.xlu0 %2825 }
 0x4ce   : > { %v2796_v36 = vpop.permute.xlu1 %2795  ;;  %1972 = vrot.lane.b32.xlu0 %v15256_v58, %s9405_s24  ;;  %8107 = vmatprep.subr.msk.bf16.mxu1 %vm3257_vm1, %v3185_v42  ;;  %v3428_v17 = vsel %vm3257_vm1, %v3185_v42, 0 }
 0x4cf   : > { %v2954_v37 = vsel %vm2248_vm0, %v2604_v50, %v2796_v36  ;;  %7828 = vmatpush3.bf16.xpose.msra.mxu1 %v3428_v17  ;;  %v15277_v50 = vld [vmem:[#allocation104_spill] sm:$0xff]  ;;  %v15278_v36 = vld [vmem:[#allocation109_spill] sm:$0xff] }
 0x4d0   : > { %v3082_v48 = vmul.f32 %v11290_v38, %v2954_v37  ;;  %1942 = vrot.lane.b32.xlu1 %v15257_v40, %s9405_s24  ;;  %v11366_v6 = vpop.permute.xlu0 %1900  ;;  %v11436_v37 = vld [vmem:[%s14780_s14 + $0x10] sm:$0xff] }
 0x4d1   : > { %15258 = vst [vmem:[#allocation92_spill] sm:$0xff] %v11366_v6  ;;  %15279 = vst [vmem:[#allocation44_spill] sm:$0xff] %v11436_v37 }
 0x4d2   : > { %v3146_v9 = vadd.f32 %v3082_v48, %v3018_v1  ;;  %v11368_v55 = vpop.permute.xlu1 %2635  ;;  %2164 = vrot.lane.b32.xlu0 %v15256_v58, %s9406_s23  ;;  %v15280_v48 = vld [vmem:[#allocation113_spill] sm:$0xff] }
 0x4d4   : > { %v3193_v21 = vpack.c.bf16 %v3146_v9, %v3145_v54  ;;  %2134 = vrot.lane.b32.xlu1 %v15257_v40, %s9406_s23  ;;  %v11374_v41 = vpop.permute.xlu0 %2092  ;;  %v11445_v9 = vld [vmem:[%s14779_s13 + $0x10] sm:$0xff] }
 0x4d5   : > { %15259 = vst [vmem:[#allocation110_spill] sm:$0xff] %v11374_v41  ;;  %v15313_v41 = vld [vmem:[#allocation134_spill] sm:$0xff] }
 0x4d6   : > { %v11376_v23 = vpop.permute.xlu1 %2827  ;;  %2581 = vrot.lane.b32.xlu0 %v15260_v5, %s9405_s24  ;;  %8115 = vmatprep.subr.msk.bf16.mxu0 %vm3257_vm1, %v3193_v21  ;;  %v3573_v28 = vsel %vm3257_vm1, %v3193_v21, 0  ;;  %v3003_v21 = vmul.f32 %v11445_v9, %v10464_v2 }
 0x4d7   : > { %7860 = vmatpush3.bf16.xpose.msra.mxu0 %v3573_v28  ;;  %v11452_v28 = vld [vmem:[%s14779_s13 + $0x18] sm:$0xff] }
 0x4d8   : > { %1974 = vrot.lane.b32.xlu1 %v15261_v7, %s9405_s24  ;;  %v11384_v10 = vpop.permute.xlu0 %1932 }
 0x4d9   : > { %15262 = vst [vmem:[#allocation103_spill] sm:$0xff] %v11384_v10  ;;  %v15285_v10 = vld [vmem:[#allocation115_spill] sm:$0xff] }
 0x4da   : > { %v11386_v8 = vpop.permute.xlu1 %1902  ;;  %2773 = vrot.lane.b32.xlu0 %v15260_v5, %s9406_s23 }
 0x4db   : > { %15263 = vst [vmem:[#allocation38_spill] sm:$0xff] %v11386_v8 }
 0x4dc   : > { %2583 = vrot.lane.b32.xlu1 %v15264_v61, %s9405_s24  ;;  %v11392_v16 = vpop.permute.xlu0 %2124 }
 0x4dd   : > { %15265 = vst [vmem:[#allocation102_spill] sm:$0xff] %v11392_v16 }
 0x4de   : > { %v11394_v29 = vpop.permute.xlu1 %2094  ;;  %2613 = vrot.lane.b32.xlu0 %v15267_v32, %s9405_s24 }
 0x4df   : > { %15266 = vst [vmem:[#allocation55_spill] sm:$0xff] %v11394_v29 }
 0x4e0   : > { %2775 = vrot.lane.b32.xlu1 %v15264_v61, %s9406_s23  ;;  %v11400_v62 = vpop.permute.xlu0 %1964 }
 0x4e1   : > { %15268 = vst [vmem:[#allocation83_spill] sm:$0xff] %v11400_v62 }
 0x4e2   : > { %v11402_v45 = vpop.permute.xlu1 %1934  ;;  %2805 = vrot.lane.b32.xlu0 %v15267_v32, %s9406_s23 }
 0x4e3   : > { %15269 = vst [vmem:[#allocation71_spill] sm:$0xff] %v11402_v45  ;;  %v11572_v45 = vld [vmem:[%s14779_s13 + $0x28] sm:$0xff] }
 0x4e4   : > { %2615 = vrot.lane.b32.xlu1 %v15270_v15, %s9405_s24  ;;  %v11408_v63 = vpop.permute.xlu0 %2156 }
 0x4e5   : > { %15271 = vst [vmem:[#allocation70_spill] sm:$0xff] %v11408_v63  ;;  %v15283_v63 = vld [vmem:[#allocation114_spill] sm:$0xff] }
 0x4e6   : > { %v11410_v35 = vpop.permute.xlu1 %2126  ;;  %2645 = vrot.lane.b32.xlu0 %v15273_v47, %s9405_s24 }
 0x4e7   : > { %15272 = vst [vmem:[#allocation37_spill] sm:$0xff] %v11410_v35 }
 0x4e8   : > { %2807 = vrot.lane.b32.xlu1 %v15270_v15, %s9406_s23  ;;  %v2574_v30 = vpop.permute.xlu0 %2573 }
 0x4ea   : > { %v11416_v20 = vpop.permute.xlu1 %1966  ;;  %2837 = vrot.lane.b32.xlu0 %v15273_v47, %s9406_s23 }
 0x4eb   : > { %15274 = vst [vmem:[#allocation101_spill] sm:$0xff] %v11416_v20 }
 0x4ec   : > { %2647 = vrot.lane.b32.xlu1 %v15275_v34, %s9405_s24  ;;  %v2766_v18 = vpop.permute.xlu0 %2765 }
 0x4ed   : > { %v2939_v11 = vsel %vm2248_vm0, %v2574_v30, %v2766_v18  ;;  %v3004_v30 = vmul.f32 %v11452_v28, %v10522_v51  ;;  %v11459_v18 = vld [vmem:[%s14780_s14 + $0x18] sm:$0xff] }
 0x4ee   : > { %v11422_v60 = vpop.permute.xlu1 %2158  ;;  %1912 = vrot.lane.b32.xlu0 %v15277_v50, %s9405_s24  ;;  %v3067_v22 = vmul.f32 %v11436_v37, %v2939_v11  ;;  %15281 = vst [vmem:[#allocation56_spill] sm:$0xff] %v11459_v18 }
 0x4ef   : > { %15276 = vst [vmem:[#allocation117_spill] sm:$0xff] %v11422_v60 }
 0x4f0   : > { %2839 = vrot.lane.b32.xlu1 %v15275_v34, %s9406_s23  ;;  %v2606_v49 = vpop.permute.xlu0 %2605  ;;  %v3131_v2 = vadd.f32 %v3067_v22, %v3003_v21 }
 0x4f2   : > { %v2576_v42 = vpop.permute.xlu1 %2575  ;;  %2104 = vrot.lane.b32.xlu0 %v15277_v50, %s9406_s23 }
 0x4f4   : > { %1914 = vrot.lane.b32.xlu1 %v15278_v36, %s9405_s24  ;;  %v2798_v17 = vpop.permute.xlu0 %2797 }
 0x4f5   : > { %v2955_v51 = vsel %vm2248_vm0, %v2606_v49, %v2798_v17  ;;  %v3019_v49 = vmul.f32 %v11445_v9, %v10528_v24  ;;  %v3020_v17 = vmul.f32 %v11452_v28, %v10546_v56  ;;  %v15288_v24 = vld [vmem:[#allocation119_spill] sm:$0xff] }
 0x4f6   : > { %v2768_v1 = vpop.permute.xlu1 %2767  ;;  %2585 = vrot.lane.b32.xlu0 %v15280_v48, %s9405_s24 }
 0x4f7   : > { %v2940_v54 = vsel %vm2248_vm0, %v2576_v42, %v2768_v1 }
 0x4f8   : > { %v3068_v42 = vmul.f32 %v11459_v18, %v2940_v54  ;;  %2106 = vrot.lane.b32.xlu1 %v15278_v36, %s9406_s23  ;;  %v11464_v11 = vpop.permute.xlu0 %2637  ;;  %v3083_v54 = vmul.f32 %v11436_v37, %v2955_v51 }
 0x4f9   : > { %15282 = vst [vmem:[#allocation57_spill] sm:$0xff] %v11464_v11 }
 0x4fa   : > { %v3132_v1 = vadd.f32 %v3068_v42, %v3004_v30  ;;  %v2608_v58 = vpop.permute.xlu1 %2607  ;;  %2777 = vrot.lane.b32.xlu0 %v15280_v48, %s9406_s23 }
 0x4fc   : > { %v3186_v62 = vpack.c.bf16 %v3132_v1, %v3131_v2  ;;  %2587 = vrot.lane.b32.xlu1 %v15283_v63, %s9405_s24  ;;  %v11471_v20 = vpop.permute.xlu0 %2829  ;;  %v3147_v2 = vadd.f32 %v3083_v54, %v3019_v49  ;;  %v15294_v49 = vld [vmem:[#allocation121_spill] sm:$0xff] }
 0x4fd   : > { %15284 = vst [vmem:[#allocation58_spill] sm:$0xff] %v11471_v20  ;;  %v15308_v20 = vld [vmem:[#allocation132_spill] sm:$0xff] }
 0x4fe   : > { %v2800_v60 = vpop.permute.xlu1 %2799  ;;  %2617 = vrot.lane.b32.xlu0 %v15285_v10, %s9405_s24  ;;  %8108 = vmatprep.subr.msk.bf16.mxu1 %vm3257_vm1, %v3186_v62  ;;  %v3431_v22 = vsel %vm3257_vm1, %v3186_v62, 0 }
 0x4ff   : > { %v2956_v21 = vsel %vm2248_vm0, %v2608_v58, %v2800_v60  ;;  %7830 = vmatpush3.bf16.xpose.msra.mxu1 %v3431_v22  ;;  %v15291_v60 = vld [vmem:[#allocation116_spill] sm:$0xff] }
 0x500   : > { %v3084_v30 = vmul.f32 %v11459_v18, %v2956_v21  ;;  %2779 = vrot.lane.b32.xlu1 %v15283_v63, %s9406_s23  ;;  %v11486_v42 = vpop.permute.xlu0 %1904  ;;  %v15303_v18 = vld [vmem:[#allocation126_spill] sm:$0xff] }
 0x501   : > { %15286 = vst [vmem:[#allocation82_spill] sm:$0xff] %v11486_v42 }
 0x502   : > { %v3148_v1 = vadd.f32 %v3084_v30, %v3020_v17  ;;  %v11488_v51 = vpop.permute.xlu1 %2639  ;;  %2809 = vrot.lane.b32.xlu0 %v15285_v10, %s9406_s23 }
 0x503   : > { %15287 = vst [vmem:[#allocation43_spill] sm:$0xff] %v11488_v51 }
 0x504   : > { %v3194_v58 = vpack.c.bf16 %v3148_v1, %v3147_v2  ;;  %2619 = vrot.lane.b32.xlu1 %v15288_v24, %s9405_s24  ;;  %v11494_v62 = vpop.permute.xlu0 %2096  ;;  %v15297_v2 = vld [vmem:[#allocation118_spill] sm:$0xff] }
 0x505   : > { %15289 = vst [vmem:[#allocation130_spill] sm:$0xff] %v11494_v62 }
 0x506   : > { %v11496_v56 = vpop.permute.xlu1 %2831  ;;  %2649 = vrot.lane.b32.xlu0 %v15291_v60, %s9405_s24  ;;  %8116 = vmatprep.subr.msk.bf16.mxu0 %vm3257_vm1, %v3194_v58  ;;  %v3576_v54 = vsel %vm3257_vm1, %v3194_v58, 0 }
 0x507   : > { %15290 = vst [vmem:[#allocation50_spill] sm:$0xff] %v11496_v56  ;;  %7862 = vmatpush3.bf16.xpose.msra.mxu0 %v3576_v54  ;;  %v15300_v54 = vld [vmem:[#allocation123_spill] sm:$0xff]  ;;  %v15310_v56 = vld [vmem:[#allocation129_spill] sm:$0xff] }
 0x508   : > { %2811 = vrot.lane.b32.xlu1 %v15288_v24, %s9406_s23  ;;  %v11504_v22 = vpop.permute.xlu0 %1936 }
 0x509   : > { %15292 = vst [vmem:[#allocation84_spill] sm:$0xff] %v11504_v22 }
 0x50a   : > { %v11506_v21 = vpop.permute.xlu1 %1906  ;;  %2841 = vrot.lane.b32.xlu0 %v15291_v60, %s9406_s23 }
 0x50b   : > { %15293 = vst [vmem:[#allocation52_spill] sm:$0xff] %v11506_v21 }
 0x50c   : > { %2651 = vrot.lane.b32.xlu1 %v15294_v49, %s9405_s24  ;;  %v11512_v17 = vpop.permute.xlu0 %2128 }
 0x50d   : > { %15295 = vst [vmem:[#allocation49_spill] sm:$0xff] %v11512_v17 }
 0x50e   : > { %v11514_v30 = vpop.permute.xlu1 %2098  ;;  %1916 = vrot.lane.b32.xlu0 %v15297_v2, %s9405_s24 }
 0x50f   : > { %15296 = vst [vmem:[#allocation87_spill] sm:$0xff] %v11514_v30 }
 0x510   : > { %2843 = vrot.lane.b32.xlu1 %v15294_v49, %s9406_s23  ;;  %v11520_v1 = vpop.permute.xlu0 %1968 }
 0x511   : > { %15298 = vst [vmem:[#allocation51_spill] sm:$0xff] %v11520_v1 }
 0x512   : > { %v11522_v58 = vpop.permute.xlu1 %1938  ;;  %2108 = vrot.lane.b32.xlu0 %v15297_v2, %s9406_s23 }
 0x513   : > { %15299 = vst [vmem:[#allocation54_spill] sm:$0xff] %v11522_v58  ;;  %v15305_v58 = vld [vmem:[#allocation127_spill] sm:$0xff] }
 0x514   : > { %1918 = vrot.lane.b32.xlu1 %v15300_v54, %s9405_s24  ;;  %v11528_v22 = vpop.permute.xlu0 %2160 }
 0x515   : > { %15301 = vst [vmem:[#allocation86_spill] sm:$0xff] %v11528_v22  ;;  %v15307_v22 = vld [vmem:[#allocation128_spill] sm:$0xff] }
 0x516   : > { %v11530_v17 = vpop.permute.xlu1 %2130  ;;  %2589 = vrot.lane.b32.xlu0 %v15303_v18, %s9405_s24 }
 0x517   : > { %15302 = vst [vmem:[#allocation60_spill] sm:$0xff] %v11530_v17 }
 0x518   : > { %2110 = vrot.lane.b32.xlu1 %v15300_v54, %s9406_s23  ;;  %v2578_v37 = vpop.permute.xlu0 %2577 }
 0x51a   : > { %v11536_v1 = vpop.permute.xlu1 %1970  ;;  %2781 = vrot.lane.b32.xlu0 %v15303_v18, %s9406_s23 }
 0x51b   : > { %15304 = vst [vmem:[#allocation53_spill] sm:$0xff] %v11536_v1 }
 0x51c   : > { %2591 = vrot.lane.b32.xlu1 %v15305_v58, %s9405_s24  ;;  %v2770_v42 = vpop.permute.xlu0 %2769 }
 0x51d   : > { %v2941_v1 = vsel %vm2248_vm0, %v2578_v37, %v2770_v42  ;;  %v11565_v37 = vld [vmem:[%s14779_s13 + $0x20] sm:$0xff] }
 0x51e   : > { %v11542_v62 = vpop.permute.xlu1 %2162  ;;  %2621 = vrot.lane.b32.xlu0 %v15307_v22, %s9405_s24  ;;  %v3005_v42 = vmul.f32 %v11565_v37, %v10586_v33 }
 0x51f   : > { %15306 = vst [vmem:[#allocation89_spill] sm:$0xff] %v11542_v62  ;;  %v11556_v62 = vld [vmem:[%s14780_s14 + $0x20] sm:$0xff] }
 0x520   : > { %2783 = vrot.lane.b32.xlu1 %v15305_v58, %s9406_s23  ;;  %v2610_v17 = vpop.permute.xlu0 %2609  ;;  %15309 = vst [vmem:[#allocation59_spill] sm:$0xff] %v11556_v62  ;;  %v3069_v30 = vmul.f32 %v11556_v62, %v2941_v1  ;;  %v3006_v1 = vmul.f32 %v11572_v45, %v15233_v25 }
 0x522   : > { %v2580_v11 = vpop.permute.xlu1 %2579  ;;  %2813 = vrot.lane.b32.xlu0 %v15307_v22, %s9406_s23  ;;  %v3133_v33 = vadd.f32 %v3069_v30, %v3005_v42 }
 0x524   : > { %2623 = vrot.lane.b32.xlu1 %v15308_v20, %s9405_s24  ;;  %v2802_v21 = vpop.permute.xlu0 %2801 }
 0x525   : > { %v2957_v25 = vsel %vm2248_vm0, %v2610_v17, %v2802_v21  ;;  %v3022_v21 = vmul.f32 %v11572_v45, %v15242_v53 }
 0x526   : > { %v2772_v51 = vpop.permute.xlu1 %2771  ;;  %2653 = vrot.lane.b32.xlu0 %v15310_v56, %s9405_s24 }
 0x527   : > { %v2942_v16 = vsel %vm2248_vm0, %v2580_v11, %v2772_v51  ;;  %v11579_v11 = vld [vmem:[%s14780_s14 + $0x28] sm:$0xff] }
 0x528   : > { %15311 = vst [vmem:[#allocation88_spill] sm:$0xff] %v11579_v11  ;;  %v3070_v51 = vmul.f32 %v11579_v11, %v2942_v16  ;;  %2815 = vrot.lane.b32.xlu1 %v15308_v20, %s9406_s23  ;;  %v11584_v35 = vpop.permute.xlu0 %2641  ;;  %v3085_v16 = vmul.f32 %v11556_v62, %v2957_v25 }
 0x529   : > { %15312 = vst [vmem:[#allocation63_spill] sm:$0xff] %v11584_v35 }
 0x52a   : > { %v3134_v8 = vadd.f32 %v3070_v51, %v3006_v1  ;;  %v2612_v29 = vpop.permute.xlu1 %2611  ;;  %2845 = vrot.lane.b32.xlu0 %v15310_v56, %s9406_s23 }
 0x52c   : > { %v3187_v6 = vpack.c.bf16 %v3134_v8, %v3133_v33  ;;  %2655 = vrot.lane.b32.xlu1 %v15313_v41, %s9405_s24  ;;  %v11591_v19 = vpop.permute.xlu0 %2833  ;;  %v3021_v8 = vmul.f32 %v11565_v37, %v15222_v13  ;;  %v15318_v13 = vld [vmem:[#allocation136_spill] sm:$0xff] }
 0x52d   : > { %15314 = vst [vmem:[#allocation91_spill] sm:$0xff] %v11591_v19 }
 0x52e   : > { %v2804_v59 = vpop.permute.xlu1 %2803  ;;  %1920 = vrot.lane.b32.xlu0 %v15315_v3, %s9405_s24  ;;  %8109 = vmatprep.subr.msk.bf16.mxu1 %vm3257_vm1, %v3187_v6  ;;  %v3434_v30 = vsel %vm3257_vm1, %v3187_v6, 0  ;;  %v3149_v51 = vadd.f32 %v3085_v16, %v3021_v8  ;;  %v15324_v8 = vld [vmem:[#allocation140_spill] sm:$0xff] }
 0x52f   : > { %v2958_v42 = vsel %vm2248_vm0, %v2612_v29, %v2804_v59  ;;  %7832 = vmatpush3.bf16.xpose.msra.mxu1 %v3434_v30  ;;  %v15321_v29 = vld [vmem:[#allocation139_spill] sm:$0xff] }
 0x530   : > { %v3086_v17 = vmul.f32 %v11579_v11, %v2958_v42  ;;  %2847 = vrot.lane.b32.xlu1 %v15313_v41, %s9406_s23  ;;  %v11606_v1 = vpop.permute.xlu0 %1908  ;;  %v15340_v11 = vld [vmem:[#allocation151_spill] sm:$0xff] }
 0x531   : > { %15316 = vst [vmem:[#allocation93_spill] sm:$0xff] %v11606_v1 }
 0x532   : > { %v3150_v33 = vadd.f32 %v3086_v17, %v3022_v21  ;;  %v11608_v25 = vpop.permute.xlu1 %2643  ;;  %2112 = vrot.lane.b32.xlu0 %v15315_v3, %s9406_s23 }
 0x533   : > { %15317 = vst [vmem:[#allocation96_spill] sm:$0xff] %v11608_v25 }
 0x534   : > { %v3195_v59 = vpack.c.bf16 %v3150_v33, %v3149_v51  ;;  %1922 = vrot.lane.b32.xlu1 %v15318_v13, %s9405_s24  ;;  %v11614_v6 = vpop.permute.xlu0 %2100  ;;  %v15327_v51 = vld [vmem:[#allocation141_spill] sm:$0xff] }
 0x535   : > { %15319 = vst [vmem:[#allocation98_spill] sm:$0xff] %v11614_v6  ;;  %v15339_v6 = vld [vmem:[#allocation148_spill] sm:$0xff] }
 0x536   : > { %v11616_v53 = vpop.permute.xlu1 %2835  ;;  %2593 = vrot.lane.b32.xlu0 %v15321_v29, %s9405_s24  ;;  %8117 = vmatprep.subr.msk.bf16.mxu0 %vm3257_vm1, %v3195_v59  ;;  %v3579_v16 = vsel %vm3257_vm1, %v3195_v59, 0 }
 0x537   : > { %15320 = vst [vmem:[#allocation99_spill] sm:$0xff] %v11616_v53  ;;  %7864 = vmatpush3.bf16.xpose.msra.mxu0 %v3579_v16  ;;  %v15330_v16 = vld [vmem:[#allocation144_spill] sm:$0xff] }
 0x538   : > { %2114 = vrot.lane.b32.xlu1 %v15318_v13, %s9406_s23  ;;  %v11624_v30 = vpop.permute.xlu0 %1940 }
 0x539   : > { %15322 = vst [vmem:[#allocation105_spill] sm:$0xff] %v11624_v30  ;;  %v15333_v30 = vld [vmem:[#allocation142_spill] sm:$0xff] }
 0x53a   : > { %v11626_v42 = vpop.permute.xlu1 %1910  ;;  %2785 = vrot.lane.b32.xlu0 %v15321_v29, %s9406_s23 }
 0x53b   : > { %15323 = vst [vmem:[#allocation100_spill] sm:$0xff] %v11626_v42 }
 0x53c   : > { %2595 = vrot.lane.b32.xlu1 %v15324_v8, %s9405_s24  ;;  %v11632_v21 = vpop.permute.xlu0 %2132 }
 0x53d   : > { %15325 = vst [vmem:[#allocation107_spill] sm:$0xff] %v11632_v21 }
 0x53e   : > { %v11634_v17 = vpop.permute.xlu1 %2102  ;;  %2625 = vrot.lane.b32.xlu0 %v15327_v51, %s9405_s24 }
 0x53f   : > { %15326 = vst [vmem:[#allocation104_spill] sm:$0xff] %v11634_v17 }
 0x540   : > { %2787 = vrot.lane.b32.xlu1 %v15324_v8, %s9406_s23  ;;  %v11640_v33 = vpop.permute.xlu0 %1972 }
 0x541   : > { %15328 = vst [vmem:[#allocation109_spill] sm:$0xff] %v11640_v33 }
 0x542   : > { %v11642_v59 = vpop.permute.xlu1 %1942  ;;  %2817 = vrot.lane.b32.xlu0 %v15327_v51, %s9406_s23 }
 0x543   : > { %15329 = vst [vmem:[#allocation113_spill] sm:$0xff] %v11642_v59  ;;  %v15335_v59 = vld [vmem:[#allocation146_spill] sm:$0xff] }
 0x544   : > { %2627 = vrot.lane.b32.xlu1 %v15330_v16, %s9405_s24  ;;  %v11648_v56 = vpop.permute.xlu0 %2164 }
 0x545   : > { %15331 = vst [vmem:[#allocation114_spill] sm:$0xff] %v11648_v56  ;;  %v15336_v56 = vld [vmem:[#allocation143_spill] sm:$0xff] }
 0x546   : > { %v11650_v41 = vpop.permute.xlu1 %2134  ;;  %2657 = vrot.lane.b32.xlu0 %v15333_v30, %s9405_s24 }
 0x547   : > { %15332 = vst [vmem:[#allocation115_spill] sm:$0xff] %v11650_v41 }
 0x548   : > { %2819 = vrot.lane.b32.xlu1 %v15330_v16, %s9406_s23  ;;  %v2582_v21 = vpop.permute.xlu0 %2581 }
 0x54a   : > { %v11656_v33 = vpop.permute.xlu1 %1974  ;;  %2849 = vrot.lane.b32.xlu0 %v15333_v30, %s9406_s23 }
 0x54b   : > { %15334 = vst [vmem:[#allocation119_spill] sm:$0xff] %v11656_v33  ;;  %v11670_v33 = vld [vmem:[%s14780_s14 + $0x30] sm:$0xff] }
 0x54c   : > { %2659 = vrot.lane.b32.xlu1 %v15335_v59, %s9405_s24  ;;  %v2774_v35 = vpop.permute.xlu0 %2773  ;;  %15337 = vst [vmem:[#allocation116_spill] sm:$0xff] %v11670_v33 }
 0x54d   : > { %v2943_v41 = vsel %vm2248_vm0, %v2582_v21, %v2774_v35  ;;  %v11679_v35 = vld [vmem:[%s14779_s13 + $0x30] sm:$0xff] }
 0x54e   : > { %v2584_v19 = vpop.permute.xlu1 %2583  ;;  %1924 = vrot.lane.b32.xlu0 %v15336_v56, %s9405_s24  ;;  %v3071_v30 = vmul.f32 %v11670_v33, %v2943_v41  ;;  %v3007_v21 = vmul.f32 %v11679_v35, %v15260_v5 }
 0x550   : > { %2851 = vrot.lane.b32.xlu1 %v15335_v59, %s9406_s23  ;;  %v2614_v25 = vpop.permute.xlu0 %2613  ;;  %v11686_v59 = vld [vmem:[%s14779_s13 + $0x38] sm:$0xff]  ;;  %v3135_v5 = vadd.f32 %v3071_v30, %v3007_v21 }
 0x551   : > { %v3008_v41 = vmul.f32 %v11686_v59, %v15264_v61 }
 0x552   : > { %v2776_v53 = vpop.permute.xlu1 %2775  ;;  %2116 = vrot.lane.b32.xlu0 %v15336_v56, %s9406_s23 }
 0x553   : > { %v2944_v1 = vsel %vm2248_vm0, %v2584_v19, %v2776_v53  ;;  %v11693_v19 = vld [vmem:[%s14780_s14 + $0x38] sm:$0xff] }
 0x554   : > { %15338 = vst [vmem:[#allocation121_spill] sm:$0xff] %v11693_v19  ;;  %v3072_v53 = vmul.f32 %v11693_v19, %v2944_v1  ;;  %1926 = vrot.lane.b32.xlu1 %v15339_v6, %s9405_s24  ;;  %v2806_v42 = vpop.permute.xlu0 %2805 }
 0x555   : > { %v2959_v27 = vsel %vm2248_vm0, %v2614_v25, %v2806_v42  ;;  %v3023_v25 = vmul.f32 %v11679_v35, %v15267_v32  ;;  %v3024_v42 = vmul.f32 %v11686_v59, %v15270_v15 }
 0x556   : > { %v3136_v17 = vadd.f32 %v3072_v53, %v3008_v41  ;;  %v2616_v62 = vpop.permute.xlu1 %2615  ;;  %2597 = vrot.lane.b32.xlu0 %v15340_v11, %s9405_s24  ;;  %v3087_v1 = vmul.f32 %v11670_v33, %v2959_v27  ;;  %v15342_v27 = vld [vmem:[#allocation152_spill] sm:$0xff]  ;;  %v11774_v33 = vld [vmem:[%s14779_s13 + $0x48] sm:$0xff] }
 0x558   : > { %v3188_v61 = vpack.c.bf16 %v3136_v17, %v3135_v5  ;;  %2118 = vrot.lane.b32.xlu1 %v15339_v6, %s9406_s23  ;;  %v11703_v57 = vpop.permute.xlu0 %2645  ;;  %v3151_v53 = vadd.f32 %v3087_v1, %v3023_v25  ;;  %v15351_v25 = vld [vmem:[#allocation111_spill] sm:$0xff] }
 0x559   : > { %15341 = vst [vmem:[#allocation118_spill] sm:$0xff] %v11703_v57 }
 0x55a   : > { %v2808_v56 = vpop.permute.xlu1 %2807  ;;  %2789 = vrot.lane.b32.xlu0 %v15340_v11, %s9406_s23  ;;  %8110 = vmatprep.subr.msk.bf16.mxu1 %vm3257_vm1, %v3188_v61  ;;  %v3437_v30 = vsel %vm3257_vm1, %v3188_v61, 0 }
 0x55b   : > { %v2960_v21 = vsel %vm2248_vm0, %v2616_v62, %v2808_v56  ;;  %7834 = vmatpush3.bf16.xpose.msra.mxu1 %v3437_v30  ;;  %v15345_v62 = vld [vmem:[#allocation153_spill] sm:$0xff] }
 0x55c   : > { %v3088_v17 = vmul.f32 %v11693_v19, %v2960_v21  ;;  %2599 = vrot.lane.b32.xlu1 %v15342_v27, %s9405_s24  ;;  %v11718_v41 = vpop.permute.xlu0 %2837  ;;  %v15350_v21 = vld [vmem:[#allocation154_spill] sm:$0xff] }
 0x55d   : > { %15343 = vst [vmem:[#allocation123_spill] sm:$0xff] %v11718_v41  ;;  %v11758_v41 = vld [vmem:[%s14780_s14 + $0x40] sm:$0xff] }
 0x55e   : > { %v3152_v5 = vadd.f32 %v3088_v17, %v3024_v42  ;;  %v11720_v57 = vpop.permute.xlu1 %2647  ;;  %2629 = vrot.lane.b32.xlu0 %v15345_v62, %s9405_s24  ;;  %15354 = vst [vmem:[#allocation139_spill] sm:$0xff] %v11758_v41 }
 0x55f   : > { %15344 = vst [vmem:[#allocation126_spill] sm:$0xff] %v11720_v57 }
 0x560   : > { %v3196_v56 = vpack.c.bf16 %v3152_v5, %v3151_v53  ;;  %2791 = vrot.lane.b32.xlu1 %v15342_v27, %s9406_s23  ;;  %v11726_v32 = vpop.permute.xlu0 %1912  ;;  %v15358_v27 = vld [vmem:[#allocation108_spill] sm:$0xff] }
 0x561   : > { %15346 = vst [vmem:[#allocation127_spill] sm:$0xff] %v11726_v32 }
 0x562   : > { %v11728_v15 = vpop.permute.xlu1 %2839  ;;  %2821 = vrot.lane.b32.xlu0 %v15345_v62, %s9406_s23  ;;  %8118 = vmatprep.subr.msk.bf16.mxu0 %vm3257_vm1, %v3196_v56  ;;  %v3582_v61 = vsel %vm3257_vm1, %v3196_v56, 0  ;;  %v15353_v56 = vld [vmem:[#allocation106_spill] sm:$0xff] }
 0x563   : > { %15347 = vst [vmem:[#allocation128_spill] sm:$0xff] %v11728_v15  ;;  %7866 = vmatpush3.bf16.xpose.msra.mxu0 %v3582_v61 }
 0x564   : > { %2166 = vrot.lane.b32.xlu1 %v15261_v7, %s9406_s23  ;;  %v11736_v1 = vpop.permute.xlu0 %2104 }
 0x565   : > { %15348 = vst [vmem:[#allocation132_spill] sm:$0xff] %v11736_v1 }
 0x566   : > { %v11738_v30 = vpop.permute.xlu1 %1914  ;;  %2661 = vrot.lane.b32.xlu0 %v15350_v21, %s9405_s24 }
 0x567   : > { %15349 = vst [vmem:[#allocation131_spill] sm:$0xff] %v11738_v30 }
 0x568   : > { %1946 = vrot.lane.b32.xlu1 %v15351_v25, %s9405_s24  ;;  %v2586_v42 = vpop.permute.xlu0 %2585 }
 0x56a   : > { %v11744_v17 = vpop.permute.xlu1 %2106  ;;  %2853 = vrot.lane.b32.xlu0 %v15350_v21, %s9406_s23 }
 0x56b   : > { %15352 = vst [vmem:[#allocation136_spill] sm:$0xff] %v11744_v17  ;;  %v15356_v17 = vld [vmem:[#allocation120_spill] sm:$0xff] }
 0x56c   : > { %2631 = vrot.lane.b32.xlu1 %v11159_v52, %s9405_s24  ;;  %v2778_v53 = vpop.permute.xlu0 %2777 }
 0x56d   : > { %v2945_v61 = vsel %vm2248_vm0, %v2586_v42, %v2778_v53  ;;  %v11767_v42 = vld [vmem:[%s14779_s13 + $0x40] sm:$0xff] }
 0x56e   : > { %v2588_v5 = vpop.permute.xlu1 %2587  ;;  %1944 = vrot.lane.b32.xlu0 %v15353_v56, %s9405_s24  ;;  %v3073_v21 = vmul.f32 %v11758_v41, %v2945_v61  ;;  %v3009_v53 = vmul.f32 %v11767_v42, %v15280_v48  ;;  %v3010_v61 = vmul.f32 %v11774_v33, %v15283_v63 }
 0x570   : > { %2823 = vrot.lane.b32.xlu1 %v11159_v52, %s9406_s23  ;;  %v2618_v7 = vpop.permute.xlu0 %2617  ;;  %v3137_v48 = vadd.f32 %v3073_v21, %v3009_v53 }
 0x572   : > { %v2780_v57 = vpop.permute.xlu1 %2779  ;;  %2136 = vrot.lane.b32.xlu0 %v15353_v56, %s9406_s23 }
 0x573   : > { %v2946_v15 = vsel %vm2248_vm0, %v2588_v5, %v2780_v57  ;;  %v11781_v57 = vld [vmem:[%s14780_s14 + $0x48] sm:$0xff] }
 0x574   : > { %15355 = vst [vmem:[#allocation140_spill] sm:$0xff] %v11781_v57  ;;  %v3074_v5 = vmul.f32 %v11781_v57, %v2946_v15  ;;  %2663 = vrot.lane.b32.xlu1 %v11169_v4, %s9405_s24  ;;  %v2810_v32 = vpop.permute.xlu0 %2809 }
 0x575   : > { %v2961_v19 = vsel %vm2248_vm0, %v2618_v7, %v2810_v32  ;;  %v3025_v7 = vmul.f32 %v11767_v42, %v15285_v10  ;;  %v3026_v32 = vmul.f32 %v11774_v33, %v15288_v24  ;;  %v15361_v10 = vld [vmem:[#allocation124_spill] sm:$0xff] }
 0x576   : > { %v3138_v1 = vadd.f32 %v3074_v5, %v3010_v61  ;;  %v2620_v30 = vpop.permute.xlu1 %2619  ;;  %1948 = vrot.lane.b32.xlu0 %v15356_v17, %s9405_s24  ;;  %v3089_v15 = vmul.f32 %v11758_v41, %v2961_v19 }
 0x578   : > { %v3189_v63 = vpack.c.bf16 %v3138_v1, %v3137_v48  ;;  %2855 = vrot.lane.b32.xlu1 %v11169_v4, %s9406_s23  ;;  %v11791_v52 = vpop.permute.xlu0 %2649  ;;  %v3153_v61 = vadd.f32 %v3089_v15, %v3025_v7  ;;  %v15367_v7 = vld [vmem:[#allocation112_spill] sm:$0xff] }
 0x579   : > { %15357 = vst [vmem:[#allocation141_spill] sm:$0xff] %v11791_v52 }
 0x57a   : > { %v2812_v62 = vpop.permute.xlu1 %2811  ;;  %1976 = vrot.lane.b32.xlu0 %v15358_v27, %s9405_s24  ;;  %8111 = vmatprep.subr.msk.bf16.mxu1 %vm3257_vm1, %v3189_v63  ;;  %v3440_v21 = vsel %vm3257_vm1, %v3189_v63, 0 }
 0x57b   : > { %v2962_v53 = vsel %vm2248_vm0, %v2620_v30, %v2812_v62  ;;  %7836 = vmatpush3.bf16.xpose.msra.mxu1 %v3440_v21 }
 0x57c   : > { %v3090_v1 = vmul.f32 %v11781_v57, %v2962_v53  ;;  %2138 = vrot.lane.b32.xlu1 %v15351_v25, %s9406_s23  ;;  %v11806_v19 = vpop.permute.xlu0 %2841  ;;  %v15386_v57 = vld [vmem:[#allocation145_spill] sm:$0xff] }
 0x57d   : > { %15359 = vst [vmem:[#allocation144_spill] sm:$0xff] %v11806_v19 }
 0x57e   : > { %v3154_v5 = vadd.f32 %v3090_v1, %v3026_v32  ;;  %v11808_v48 = vpop.permute.xlu1 %2651  ;;  %2140 = vrot.lane.b32.xlu0 %v15356_v17, %s9406_s23 }
 0x57f   : > { %15360 = vst [vmem:[#allocation148_spill] sm:$0xff] %v11808_v48 }
 0x580   : > { %v3197_v62 = vpack.c.bf16 %v3154_v5, %v3153_v61  ;;  %1950 = vrot.lane.b32.xlu1 %v15361_v10, %s9405_s24  ;;  %v11814_v30 = vpop.permute.xlu0 %1916  ;;  %v15371_v5 = vld [vmem:[#allocation122_spill] sm:$0xff] }
 0x581   : > { %15362 = vst [vmem:[#allocation111_spill] sm:$0xff] %v11814_v30  ;;  %v11816_v24 = vpop.f32.mrb[32].mxu0  ;;  %v15377_v30 = vld [vmem:[#allocation133_spill] sm:$0xff] }
 0x582   : > { %15363 = vst [vmem:[#allocation106_spill] sm:$0xff] %v11816_v24  ;;  %v11818_v63 = vpop.permute.xlu1 %2843  ;;  %v11820_v21 = vpop.f32.mrb[33].mxu0  ;;  %2168 = vrot.lane.b32.xlu0 %v15358_v27, %s9406_s23  ;;  %8119 = vmatprep.subr.msk.bf16.mxu0 %vm3257_vm1, %v3197_v62  ;;  %v3585_v15 = vsel %vm3257_vm1, %v3197_v62, 0 }
 0x583   : > { %15364 = vst [vmem:[#allocation120_spill] sm:$0xff] %v11818_v63  ;;  %15365 = vst [vmem:[#allocation124_spill] sm:$0xff] %v11820_v21  ;;  %v11826_v53 = vpop.f32.mrb[34].mxu0  ;;  %7868 = vmatpush3.bf16.xpose.msra.mxu0 %v3585_v15 }
 0x584   : > { %15366 = vst [vmem:[#allocation157_spill] sm:$0xff] %v11826_v53  ;;  %1978 = vrot.lane.b32.xlu1 %v15367_v7, %s9405_s24  ;;  %v11830_v32 = vpop.f32.mrb[35].mxu0  ;;  %v11832_v1 = vpop.permute.xlu0 %2108  ;;  %v15387_v53 = vld [vmem:[#allocation137_spill] sm:$0xff] }
 0x585   : > { %15368 = vst [vmem:[#allocation158_spill] sm:$0xff] %v11830_v32  ;;  %15369 = vst [vmem:[#allocation159_spill] sm:$0xff] %v11832_v1 }
 0x586   : > { %v11834_v61 = vpop.permute.xlu1 %1918  ;;  %1980 = vrot.lane.b32.xlu0 %v15371_v5, %s9405_s24 }
 0x587   : > { %15370 = vst [vmem:[#allocation160_spill] sm:$0xff] %v11834_v61 }
 0x588   : > { %2142 = vrot.lane.b32.xlu1 %v15361_v10, %s9406_s23  ;;  %v2590_v27 = vpop.permute.xlu0 %2589 }
 0x589   : > { %v11840_v62 = vpop.f32.mrb[36].mxu0 }
 0x58a   : > { %15372 = vst [vmem:[#allocation161_spill] sm:$0xff] %v11840_v62  ;;  %v11842_v4 = vpop.permute.xlu1 %2110  ;;  %v11844_v15 = vpop.f32.mrb[37].mxu0  ;;  %2172 = vrot.lane.b32.xlu0 %v15371_v5, %s9406_s23  ;;  %v15378_v62 = vld [vmem:[#allocation125_spill] sm:$0xff]  ;;  %v11864_v5 = vld [vmem:[%s14780_s14 + $0x50] sm:$0xff] }
 0x58b   : > { %15373 = vst [vmem:[#allocation162_spill] sm:$0xff] %v11842_v4  ;;  %15374 = vst [vmem:[#allocation163_spill] sm:$0xff] %v11844_v15  ;;  %v11848_v52 = vpop.f32.mrb[38].mxu0 }
 0x58c   : > { %15375 = vst [vmem:[#allocation164_spill] sm:$0xff] %v11848_v52  ;;  %2170 = vrot.lane.b32.xlu1 %v15367_v7, %s9406_s23  ;;  %v11852_v19 = vpop.f32.mrb[39].mxu0  ;;  %v2782_v48 = vpop.permute.xlu0 %2781  ;;  %15380 = vst [vmem:[#allocation167_spill] sm:$0xff] %v11864_v5 }
 0x58d   : > { %15376 = vst [vmem:[#allocation165_spill] sm:$0xff] %v11852_v19  ;;  %v2947_v1 = vsel %vm2248_vm0, %v2590_v27, %v2782_v48 }
 0x58e   : > { %v2592_v63 = vpop.permute.xlu1 %2591  ;;  %1952 = vrot.lane.b32.xlu0 %v15377_v30, %s9405_s24  ;;  %v3075_v7 = vmul.f32 %v11864_v5, %v2947_v1  ;;  %v11884_v1 = vld [vmem:[%s14779_s13 + $0x58] sm:$0xff] }
 0x58f   : > { %15384 = vst [vmem:[#allocation171_spill] sm:$0xff] %v11884_v1 }
 0x590   : > { %1982 = vrot.lane.b32.xlu1 %v15378_v62, %s9405_s24  ;;  %v2622_v15 = vpop.permute.xlu0 %2621 }
 0x591   : > { %v11859_v61 = vpop.f32.mrb[40].mxu0 }
 0x592   : > { %15379 = vst [vmem:[#allocation166_spill] sm:$0xff] %v11859_v61  ;;  %v2784_v19 = vpop.permute.xlu1 %2783  ;;  %v11867_v4 = vpop.f32.mrb[41].mxu0  ;;  %2144 = vrot.lane.b32.xlu0 %v15377_v30, %s9406_s23  ;;  %v11877_v61 = vld [vmem:[%s14779_s13 + $0x50] sm:$0xff]  ;;  %v3012_v30 = vmul.f32 %v11884_v1, %v15305_v58 }
 0x593   : > { %15381 = vst [vmem:[#allocation168_spill] sm:$0xff] %v11867_v4  ;;  %v2948_v27 = vsel %vm2248_vm0, %v2592_v63, %v2784_v19  ;;  %v11872_v48 = vpop.f32.mrb[42].mxu0  ;;  %15383 = vst [vmem:[#allocation170_spill] sm:$0xff] %v11877_v61  ;;  %v3011_v52 = vmul.f32 %v11877_v61, %v15303_v18  ;;  %v11891_v19 = vld [vmem:[%s14780_s14 + $0x58] sm:$0xff] }
 0x594   : > { %15382 = vst [vmem:[#allocation169_spill] sm:$0xff] %v11872_v48  ;;  %v3076_v63 = vmul.f32 %v11891_v19, %v2948_v27  ;;  %2174 = vrot.lane.b32.xlu1 %v15378_v62, %s9406_s23  ;;  %v11896_v4 = vpop.f32.mrb[43].mxu0  ;;  %v2814_v18 = vpop.permute.xlu0 %2813 }
 0x595   : > { %15385 = vst [vmem:[#allocation172_spill] sm:$0xff] %v11896_v4  ;;  %v3139_v48 = vadd.f32 %v3075_v7, %v3011_v52  ;;  %v2963_v58 = vsel %vm2248_vm0, %v2622_v15, %v2814_v18  ;;  %v15391_v52 = vld [vmem:[#allocation135_spill] sm:$0xff]  ;;  %v3027_v15 = vmul.f32 %v11877_v61, %v15307_v22 }
 0x596   : > { %v3140_v41 = vadd.f32 %v3076_v63, %v3012_v30  ;;  %v2624_v21 = vpop.permute.xlu1 %2623  ;;  %1956 = vrot.lane.b32.xlu0 %v15386_v57, %s9405_s24  ;;  %v3091_v62 = vmul.f32 %v11864_v5, %v2963_v58  ;;  %v15408_v5 = vld [vmem:[#allocation27_spill] sm:$0xff] }
 0x598   : > { %v3190_v32 = vpack.c.bf16 %v3140_v41, %v3139_v48  ;;  %1954 = vrot.lane.b32.xlu1 %v15387_v53, %s9405_s24  ;;  %v11903_v24 = vpop.permute.xlu0 %2653  ;;  %v3028_v48 = vmul.f32 %v11884_v1, %v15308_v20 }
 0x599   : > { %15388 = vst [vmem:[#allocation173_spill] sm:$0xff] %v11903_v24  ;;  %v11905_v27 = vpop.f32.mrb[44].mxu0  ;;  %v11966_v24 = vld [vmem:[%s14780_s14 + $0x60] sm:$0xff] }
 0x59a   : > { %15389 = vst [vmem:[#allocation174_spill] sm:$0xff] %v11905_v27  ;;  %v2816_v4 = vpop.permute.xlu1 %2815  ;;  %v11908_v11 = vpop.f32.mrb[45].mxu0  ;;  %1984 = vrot.lane.b32.xlu0 %v15391_v52, %s9405_s24  ;;  %8112 = vmatprep.subr.msk.bf16.mxu1 %vm3257_vm1, %v3190_v32  ;;  %v3443_v30 = vsel %vm3257_vm1, %v3190_v32, 0  ;;  %v3155_v32 = vadd.f32 %v3091_v62, %v3027_v15  ;;  %v15399_v15 = vld [vmem:[#allocation138_spill] sm:$0xff] }
 0x59b   : > { %15390 = vst [vmem:[#allocation175_spill] sm:$0xff] %v11908_v11  ;;  %v2964_v41 = vsel %vm2248_vm0, %v2624_v21, %v2816_v4  ;;  %v11915_v7 = vpop.f32.mrb[46].mxu0  ;;  %7838 = vmatpush3.bf16.xpose.msra.mxu1 %v3443_v30  ;;  %v15396_v30 = vld [vmem:[#allocation149_spill] sm:$0xff]  ;;  %v15403_v27 = vld [vmem:[#allocation150_spill] sm:$0xff] }
 0x59c   : > { %15392 = vst [vmem:[#allocation176_spill] sm:$0xff] %v11915_v7  ;;  %v3092_v63 = vmul.f32 %v11891_v19, %v2964_v41  ;;  %2146 = vrot.lane.b32.xlu1 %v15387_v53, %s9406_s23  ;;  %v11924_v18 = vpop.f32.mrb[47].mxu0  ;;  %v11926_v58 = vpop.permute.xlu0 %2845  ;;  %v15407_v11 = vld [vmem:[#allocation41_spill] sm:$0xff] }
 0x59d   : > { %15393 = vst [vmem:[#allocation177_spill] sm:$0xff] %v11924_v18  ;;  %15394 = vst [vmem:[#allocation178_spill] sm:$0xff] %v11926_v58 }
 0x59e   : > { %v3156_v4 = vadd.f32 %v3092_v63, %v3028_v48  ;;  %v11928_v21 = vpop.permute.xlu1 %2655  ;;  %2148 = vrot.lane.b32.xlu0 %v15386_v57, %s9406_s23  ;;  %v15402_v57 = vld [vmem:[#allocation29_spill] sm:$0xff] }
 0x59f   : > { %15395 = vst [vmem:[#allocation179_spill] sm:$0xff] %v11928_v21 }
 0x5a0   : > { %v3198_v22 = vpack.c.bf16 %v3156_v4, %v3155_v32  ;;  %1958 = vrot.lane.b32.xlu1 %v15396_v30, %s9405_s24  ;;  %v11934_v20 = vpop.permute.xlu0 %1920  ;;  %v15401_v32 = vld [vmem:[#allocation147_spill] sm:$0xff] }
 0x5a1   : > { %15397 = vst [vmem:[#allocation180_spill] sm:$0xff] %v11934_v20 }
 0x5a2   : > { %v11936_v41 = vpop.permute.xlu1 %2847  ;;  %2176 = vrot.lane.b32.xlu0 %v15391_v52, %s9406_s23  ;;  %8120 = vmatprep.subr.msk.bf16.mxu0 %vm3257_vm1, %v3198_v22  ;;  %v3588_v62 = vsel %vm3257_vm1, %v3198_v22, 0 }
 0x5a3   : > { %15398 = vst [vmem:[#allocation181_spill] sm:$0xff] %v11936_v41  ;;  %7870 = vmatpush3.bf16.xpose.msra.mxu0 %v3588_v62 }
 0x5a4   : > { %1986 = vrot.lane.b32.xlu1 %v15399_v15, %s9405_s24  ;;  %v11944_v48 = vpop.permute.xlu0 %2112 }
 0x5a5   : > { %15400 = vst [vmem:[#allocation182_spill] sm:$0xff] %v11944_v48 }
 0x5a6   : > { %v11946_v63 = vpop.permute.xlu1 %1922  ;;  %1988 = vrot.lane.b32.xlu0 %v15401_v32, %s9405_s24 }
 0x5a8   : > { %2150 = vrot.lane.b32.xlu1 %v15396_v30, %s9406_s23  ;;  %v2594_v4 = vpop.permute.xlu0 %2593 }
 0x5aa   : > { %v11952_v52 = vpop.permute.xlu1 %2114  ;;  %2180 = vrot.lane.b32.xlu0 %v15401_v32, %s9406_s23 }
 0x5ac   : > { %2178 = vrot.lane.b32.xlu1 %v15399_v15, %s9406_s23  ;;  %v2786_v22 = vpop.permute.xlu0 %2785  ;;  %v15404_v15 = vld [vmem:[#allocation35_spill] sm:$0xff] }
 0x5ad   : > { %v2949_v53 = vsel %vm2248_vm0, %v2594_v4, %v2786_v22  ;;  %v11975_v4 = vld [vmem:[%s14779_s13 + $0x60] sm:$0xff] }
 0x5ae   : > { %v2596_v62 = vpop.permute.xlu1 %2595  ;;  %8248 = vrot.lane.b32.xlu0 %v15402_v57, %s9404_s20  ;;  %v3077_v32 = vmul.f32 %v11966_v24, %v2949_v53  ;;  %15405 = vst [vmem:[#allocation183_spill] sm:$0xff] %v11975_v4  ;;  %v3013_v22 = vmul.f32 %v11975_v4, %v15321_v29  ;;  %v11982_v57 = vld [vmem:[%s14779_s13 + $0x68] sm:$0xff] }
 0x5af   : > { %15406 = vst [vmem:[#allocation184_spill] sm:$0xff] %v11982_v57  ;;  %v3014_v53 = vmul.f32 %v11982_v57, %v15324_v8 }
 0x5b0   : > { %1990 = vrot.lane.b32.xlu1 %v15403_v27, %s9405_s24  ;;  %v2626_v30 = vpop.permute.xlu0 %2625  ;;  %v3141_v29 = vadd.f32 %v3077_v32, %v3013_v22  ;;  %s15771_s24 = sld [smem:[#allocation197_spill]] }
 0x5b2   : > { %v2788_v58 = vpop.permute.xlu1 %2787  ;;  %8258 = vrot.lane.b32.xlu0 %v15404_v15, %s9404_s20 }
 0x5b3   : > { %v2950_v7 = vsel %vm2248_vm0, %v2596_v62, %v2788_v58  ;;  %v11989_v58 = vld [vmem:[%s14780_s14 + $0x68] sm:$0xff] }
 0x5b4   : > { %v3078_v62 = vmul.f32 %v11989_v58, %v2950_v7  ;;  %2182 = vrot.lane.b32.xlu1 %v15403_v27, %s9406_s23  ;;  %v2818_v15 = vpop.permute.xlu0 %2817  ;;  %v15410_v27 = vld [vmem:[#allocation47_spill] sm:$0xff]  ;;  %s15786_s23 = sld [smem:[#allocation24_spill]] }
 0x5b5   : > { %v2965_v18 = vsel %vm2248_vm0, %v2626_v30, %v2818_v15  ;;  %v3030_v30 = vmul.f32 %v11982_v57, %v15330_v16 }
 0x5b6   : > { %v3142_v21 = vadd.f32 %v3078_v62, %v3014_v53  ;;  %v2628_v41 = vpop.permute.xlu1 %2627  ;;  %8268 = vrot.lane.b32.xlu0 %v15407_v11, %s9404_s20  ;;  %v3093_v7 = vmul.f32 %v11966_v24, %v2965_v18  ;;  %v15411_v18 = vld [vmem:[#allocation33_spill] sm:$0xff] }
 0x5b8   : > { %v3191_v8 = vpack.c.bf16 %v3142_v21, %v3141_v29  ;;  %8253 = vrot.lane.b32.xlu1 %v15408_v5, %s9404_s20  ;;  %v11999_v20 = vpop.permute.xlu0 %2657  ;;  %v3029_v21 = vmul.f32 %v11975_v4, %v15327_v51  ;;  %v15426_v5 = vld [vmem:[#allocation67_spill] sm:$0xff] }
 0x5b9   : > { %15409 = vst [vmem:[#allocation185_spill] sm:$0xff] %v11999_v20  ;;  %v15427_v20 = vld [vmem:[#allocation68_spill] sm:$0xff] }
 0x5ba   : > { %v2820_v48 = vpop.permute.xlu1 %2819  ;;  %8278 = vrot.lane.b32.xlu0 %v15410_v27, %s9404_s20  ;;  %8113 = vmatprep.subr.msk.bf16.mxu1 %vm3257_vm1, %v3191_v8  ;;  %v3446_v32 = vsel %vm3257_vm1, %v3191_v8, 0  ;;  %v3157_v62 = vadd.f32 %v3093_v7, %v3029_v21  ;;  %v15419_v7 = vld [vmem:[#allocation61_spill] sm:$0xff]  ;;  %p15790_p7 = scmp.ne.s32.totalorder %s15786_s23, 0 }
 0x5bb   : > { %v2966_v22 = vsel %vm2248_vm0, %v2628_v41, %v2820_v48  ;;  %7840 = vmatpush3.bf16.xpose.msra.mxu1 %v3446_v32  ;;  %v15414_v41 = vld [vmem:[#allocation39_spill] sm:$0xff]  ;;  %v12032_v21 = vmul.f32 %v11322_v26, %v15419_v7  ;;  %v12050_v7 = vmul.f32 %v11452_v28, %v15426_v5 }
 0x5bc   : > { %v3094_v15 = vmul.f32 %v11989_v58, %v2966_v22  ;;  %8263 = vrot.lane.b32.xlu1 %v15411_v18, %s9404_s20  ;;  %v12014_v53 = vpop.permute.xlu0 %2849  ;;  %p9311_p8 = pnand %p9310_p4, %p15790_p7 }
 0x5bd   : > { %15412 = vst [vmem:[#allocation186_spill] sm:$0xff] %v12014_v53  ;;  %15420 = vst [vmem:[#allocation61_spill] sm:$0xff] %v12032_v21  ;;  %v15428_v53 = vld [vmem:[#allocation72_spill] sm:$0xff] }
 0x5be   : > { %v3158_v29 = vadd.f32 %v3094_v15, %v3030_v30  ;;  %v12016_v27 = vpop.permute.xlu1 %2659  ;;  %v15421_v30 = vld [vmem:[#allocation62_spill] sm:$0xff]  ;;  %p9312_p11 = pneg %p9311_p8 }
 0x5bf   : > { %15413 = vst [vmem:[#allocation187_spill] sm:$0xff] %v12016_v27  ;;  %v12036_v15 = vmul.f32 %v11304_v46, %v15421_v30  ;;  %v12054_v30 = vmul.f32 %v11445_v9, %v15427_v20  ;;  %v15431_v27 = vld [vmem:[#allocation76_spill] sm:$0xff] }
 0x5c0   : > { %v3199_v8 = vpack.c.bf16 %v3158_v29, %v3157_v62  ;;  %8273 = vrot.lane.b32.xlu1 %v15414_v41, %s9404_s20  ;;  %v12020_v48 = vpop.permute.xlu0 %1924  ;;  %v15423_v62 = vld [vmem:[#allocation64_spill] sm:$0xff]  ;;  %v15424_v41 = vld [vmem:[#allocation65_spill] sm:$0xff]  ;;  %v12070_v5 = vmul.f32 %v11565_v37, %v15431_v27  ;;  %v12092_v27 = vmul.f32 %v11679_v35, %v15247_v0  ;;  %v12112_v0 = vmul.f32 %v11679_v35, %v15273_v47  ;;  %p9319_p6 = pnand %p9318_p0, %p9312_p11 }
 0x5c1   : > { %15415 = vst [vmem:[#allocation188_spill] sm:$0xff] %v12020_v48  ;;  %15422 = vst [vmem:[#allocation62_spill] sm:$0xff] %v12036_v15  ;;  %v12040_v29 = vmul.f32 %v11322_v26, %v15423_v62  ;;  %v12058_v26 = vmul.f32 %v11452_v28, %v15428_v53  ;;  %v15429_v62 = vld [vmem:[#allocation74_spill] sm:$0xff]  ;;  %v15433_v15 = vld [vmem:[#allocation79_spill] sm:$0xff]  ;;  %v12135_v47 = vmul.f32 %v11774_v33, %v15351_v25 }
 0x5c2   : > { %v12022_v51 = vpop.permute.xlu1 %2851  ;;  %8121 = vmatprep.subr.msk.bf16.mxu0 %vm3257_vm1, %v3199_v8  ;;  %v3591_v16 = vsel %vm3257_vm1, %v3199_v8, 0  ;;  %v3034_v8 = vmul.f32 %v11304_v46, %v15424_v41  ;;  %v12062_v46 = vmul.f32 %v11445_v9, %v15429_v62  ;;  %v15430_v41 = vld [vmem:[#allocation75_spill] sm:$0xff]  ;;  %v12078_v53 = vmul.f32 %v11572_v45, %v15433_v15 }
 0x5c3   : > { %15416 = vst [vmem:[#allocation189_spill] sm:$0xff] %v12022_v51  ;;  %7872 = vmatpush3.bf16.xpose.msra.mxu0 %v3591_v16  ;;  %v15425_v16 = vld [vmem:[#allocation66_spill] sm:$0xff]  ;;  %v15432_v51 = vld [vmem:[#allocation77_spill] sm:$0xff]  ;;  %v12104_v15 = vmul.f32 %v11686_v59, %v15255_v12  ;;  %v12124_v12 = vmul.f32 %v11686_v59, %v15275_v34  ;;  %15440 = vst [vmem:[#allocation72_spill] sm:$0xff] %v12135_v47  ;;  %v2969_v34 = vsel %vm2248_vm0, %v11344_v44, %v11351_v31 }
 0x5c4   : > { %v12026_v32 = vpop.permute.xlu0 %2116  ;;  %v12046_v11 = vmul.f32 %v11445_v9, %v15425_v16  ;;  %v12066_v16 = vmul.f32 %v11565_v37, %v15430_v41  ;;  %v12074_v20 = vmul.f32 %v11452_v28, %v15432_v51  ;;  %v15434_v9 = vld [vmem:[#allocation80_spill] sm:$0xff]  ;;  %v12088_v41 = vmul.f32 %v11565_v37, %v15239_v39  ;;  %15437 = vst [vmem:[#allocation66_spill] sm:$0xff] %v12112_v0  ;;  %v15474_v0 = vld [vmem:[#allocation82_spill] sm:$0xff] }
 0x5c5   : > { %15417 = vst [vmem:[#allocation190_spill] sm:$0xff] %v12026_v32  ;;  %v12084_v62 = vmul.f32 %v11572_v45, %v15434_v9  ;;  %v12096_v28 = vmul.f32 %v11679_v35, %v15253_v43  ;;  %v12100_v51 = vmul.f32 %v11572_v45, %v15251_v14  ;;  %v12108_v39 = vmul.f32 %v11686_v59, %v15257_v40 }
 0x5c6   : > { %v12028_v22 = vpop.permute.xlu1 %1926  ;;  %v12116_v43 = vmul.f32 %v11767_v42, %v15277_v50  ;;  %v12120_v14 = vmul.f32 %v11767_v42, %v15353_v56  ;;  %15439 = vst [vmem:[#allocation68_spill] sm:$0xff] %v12124_v12  ;;  %v2970_v40 = vsel %vm2248_vm0, %v11368_v55, %v11376_v23  ;;  %v12131_v45 = vmul.f32 %v11774_v33, %v15278_v36  ;;  %v15477_v12 = vld [vmem:[#allocation106_spill] sm:$0xff] }
 0x5c7   : > { %15418 = vst [vmem:[#allocation191_spill] sm:$0xff] %v12028_v22  ;;  %15435 = vst [vmem:[#allocation64_spill] sm:$0xff] %v12096_v28  ;;  %v12139_v50 = vmul.f32 %v11767_v42, %v15291_v60  ;;  %v12146_v55 = vmul.f32 %v11877_v61, %v15297_v2  ;;  %v12150_v23 = vmul.f32 %v11877_v61, %v15356_v17  ;;  %v15452_v42 = vld [vmem:[#allocation151_spill] sm:$0xff]  ;;  %v3244_v22 = vld [vmem:[#allocation11 + $0x18] sm:$0xff] }
 0x5c8   : > { %v2598_v18 = vpop.permute.xlu0 %2597  ;;  %15436 = vst [vmem:[#allocation65_spill] sm:$0xff] %v12108_v39  ;;  %15438 = vst [vmem:[#allocation67_spill] sm:$0xff] %v12120_v14  ;;  %v12154_v36 = vmul.f32 %v11774_v33, %v15294_v49  ;;  %v12159_v35 = vmul.f32 %v11884_v1, %v15300_v54  ;;  %v12163_v44 = vmul.f32 %v11884_v1, %v15361_v10  ;;  %v12179_v54 = vld [vmem:[%s14779_s13 + $0x70] sm:$0xff]  ;;  %v15462_v14 = vld [vmem:[#allocation38_spill] sm:$0xff] }
 0x5c9   : > { %15441 = vst [vmem:[#allocation74_spill] sm:$0xff] %v12139_v50  ;;  %15442 = vst [vmem:[#allocation75_spill] sm:$0xff] %v12146_v55  ;;  %v12167_v31 = vmul.f32 %v11975_v4, %v15315_v3  ;;  %v3098_v2 = vmul.f32 %v11290_v38, %v2970_v40  ;;  %v12174_v49 = vmul.f32 %v11982_v57, %v15318_v13  ;;  %v15448_v33 = vld [vmem:[#allocation143_spill] sm:$0xff]  ;;  %v12188_v3 = vld [vmem:[%s14779_s13 + $0x78] sm:$0xff] }
 0x5ca   : > { %v12080_v21 = vpop.permute.xlu1 %2118  ;;  %15443 = vst [vmem:[#allocation76_spill] sm:$0xff] %v12150_v23  ;;  %15444 = vst [vmem:[#allocation77_spill] sm:$0xff] %v12154_v36  ;;  %v12183_v17 = vmul.f32 %v12179_v54, %v15448_v33  ;;  %v12192_v38 = vmul.f32 %v12188_v3, %v15339_v6  ;;  %v15451_v13 = vld [vmem:[#allocation94_spill] sm:$0xff]  ;;  %v3015_v10 = vmul.f32 %v12179_v54, %v15452_v42  ;;  %v12206_v33 = vld [vmem:[%s14780_s14 + $0x70] sm:$0xff] }
 0x5cb   : > { %15445 = vst [vmem:[#allocation79_spill] sm:$0xff] %v12163_v44  ;;  %15446 = vst [vmem:[#allocation80_spill] sm:$0xff] %v12167_v31  ;;  %v3097_v56 = vmul.f32 %v15451_v13, %v2969_v34  ;;  %v15455_v57 = vld [vmem:[#allocation32_spill] sm:$0xff]  ;;  %v15456_v34 = vld [vmem:[#allocation85_spill] sm:$0xff]  ;;  %v3162_v1 = vadd.f32 %v3098_v2, %v3034_v8 }
 0x5cc   : > { %v2790_v37 = vpop.permute.xlu0 %2789  ;;  %15447 = vst [vmem:[#allocation192_spill] sm:$0xff] %v12179_v54  ;;  %15449 = vst [vmem:[#allocation143_spill] sm:$0xff] %v12183_v17  ;;  %v2297_v13 = vsel %vm2248_vm0, %v15456_v34, %v15455_v57  ;;  %v15457_v42 = vld [vmem:[#allocation97_spill] sm:$0xff]  ;;  %v15458_v61 = vld [vmem:[#allocation31_spill] sm:$0xff] }
 0x5cd   : > { %v2951_v60 = vsel %vm2248_vm0, %v2598_v18, %v2790_v37  ;;  %15450 = vst [vmem:[#allocation193_spill] sm:$0xff] %v12192_v38  ;;  %v15453_v18 = vld [vmem:[#allocation152_spill] sm:$0xff]  ;;  %v15454_v37 = vld [vmem:[#allocation153_spill] sm:$0xff]  ;;  %v15459_v44 = vld [vmem:[#allocation110_spill] sm:$0xff] }
 0x5ce   : > { %v2600_v59 = vpop.permute.xlu1 %2599  ;;  %v3016_v9 = vmul.f32 %v12188_v3, %v15453_v18  ;;  %v12201_v40 = vmul.f32 %v12179_v54, %v15454_v37  ;;  %v3079_v6 = vmul.f32 %v12206_v33, %v2951_v60  ;;  %v2298_v18 = vsel %vm2248_vm0, %v15458_v61, %v15457_v42  ;;  %v15460_v23 = vld [vmem:[#allocation92_spill] sm:$0xff]  ;;  %v15461_v50 = vld [vmem:[#allocation55_spill] sm:$0xff]  ;;  %v15463_v36 = vld [vmem:[#allocation37_spill] sm:$0xff] }
 0x5cf   : > { %v2267_v37 = vsel %vm2248_vm0, %v15460_v23, %v15459_v44  ;;  %v2268_v60 = vsel %vm2248_vm0, %v15462_v14, %v15461_v50  ;;  %v15464_v28 = vld [vmem:[#allocation71_spill] sm:$0xff]  ;;  %v3243_v57 = vld [vmem:[#allocation11 + $0x10] sm:$0xff]  ;;  %v15465_v8 = vld [vmem:[#allocation102_spill] sm:$0xff] }
 0x5d0   : > { %v12170_v25 = vpop.permute.xlu0 %2629  ;;  %v2284_v47 = vsel %vm2248_vm0, %v15464_v28, %v15463_v36  ;;  %v12228_v61 = vld [vmem:[%s14780_s14 + $0x78] sm:$0xff]  ;;  %v15467_v14 = vld [vmem:[#allocation50_spill] sm:$0xff]  ;;  %v15468_v50 = vld [vmem:[#allocation43_spill] sm:$0xff] }
 0x5d1   : > { %v2972_v2 = vsel %vm2248_vm0, %v15468_v50, %v15467_v14  ;;  %v15469_v28 = vld [vmem:[#allocation87_spill] sm:$0xff]  ;;  %v15470_v36 = vld [vmem:[#allocation52_spill] sm:$0xff]  ;;  %v15471_v17 = vld [vmem:[#allocation58_spill] sm:$0xff] }
 0x5d2   : > { %v2792_v4 = vpop.permute.xlu1 %2791  ;;  %v2270_v42 = vsel %vm2248_vm0, %v15470_v36, %v15469_v28  ;;  %v15472_v39 = vld [vmem:[#allocation57_spill] sm:$0xff]  ;;  %v15476_v31 = vld [vmem:[#allocation56_spill] sm:$0xff]  ;;  %v12253_v28 = vadd.f32 %v15477_v12, %v3243_v57 }
 0x5d3   : > { %v2952_v54 = vsel %vm2248_vm0, %v2600_v59, %v2792_v4  ;;  %v3161_v4 = vadd.f32 %v3097_v56, %v12040_v29  ;;  %v15466_v59 = vld [vmem:[#allocation103_spill] sm:$0xff]  ;;  %v2971_v38 = vsel %vm2248_vm0, %v15472_v39, %v15471_v17  ;;  %v3143_v56 = vadd.f32 %v3079_v6, %v3015_v10  ;;  %v15478_v17 = vld [vmem:[#allocation88_spill] sm:$0xff] }
 0x5d4   : > { %v3080_v34 = vmul.f32 %v12228_v61, %v2952_v54  ;;  %v2822_v23 = vpop.permute.xlu0 %2821  ;;  %v2283_v44 = vsel %vm2248_vm0, %v15466_v59, %v15465_v8  ;;  %v15473_v54 = vld [vmem:[#allocation130_spill] sm:$0xff]  ;;  %v15475_v8 = vld [vmem:[#allocation44_spill] sm:$0xff]  ;;  %v2396_v14 = vmul.f32 %v15476_v31, %v2268_v60  ;;  %v2412_v50 = vmul.f32 %v15476_v31, %v2284_v47  ;;  %v15480_v60 = vld [vmem:[#allocation59_spill] sm:$0xff] }
 0x5d5   : > { %v2269_v29 = vsel %vm2248_vm0, %v15474_v0, %v15473_v54  ;;  %v2395_v59 = vmul.f32 %v15475_v8, %v2267_v37  ;;  %v3201_v36 = vpack.c.bf16 %v3162_v1, %v3161_v4  ;;  %v3100_v39 = vmul.f32 %v15476_v31, %v2972_v2  ;;  %v9087_v1 = vld [vmem:[%s14780_s14] sm:$0xff]  ;;  %v15482_v4 = vld [vmem:[#allocation84_spill] sm:$0xff] }
 0x5d6   : > { %v3144_v48 = vadd.f32 %v3080_v34, %v3016_v9  ;;  %v12247_v32 = vpop.permute.xlu1 %2166  ;;  %v2398_v55 = vmul.f32 %v15478_v17, %v2270_v42  ;;  %v15479_v9 = vld [vmem:[#allocation155_spill] sm:$0xff]  ;;  %v2411_v37 = vmul.f32 %v15475_v8, %v2283_v44  ;;  %v3099_v47 = vmul.f32 %v15475_v8, %v2971_v38  ;;  %v15481_v34 = vld [vmem:[#allocation49_spill] sm:$0xff]  ;;  %v15483_v54 = vld [vmem:[#allocation104_spill] sm:$0xff] }
 0x5d7   : > { %v12261_v6 = vmul.f32 %v12188_v3, %v15479_v9  ;;  %v2397_v12 = vmul.f32 %v15480_v60, %v2269_v29  ;;  %v12270_v31 = vmul.f32 %v9087_v1, %v2297_v13  ;;  %v2285_v38 = vsel %vm2248_vm0, %v15482_v4, %v15481_v34  ;;  %v15484_v29 = vld [vmem:[#allocation100_spill] sm:$0xff] }
 0x5d8   : > { %v3192_v0 = vpack.c.bf16 %v3144_v48, %v3143_v56  ;;  %v12257_v10 = vpop.permute.xlu0 %2661  ;;  %v9088_v48 = vld [vmem:[%s14780_s14 + $0x8] sm:$0xff]  ;;  %v2460_v42 = vadd.f32 %v2396_v14, %v12050_v7  ;;  %v12286_v13 = vadd.f32 %v2412_v50, %v12058_v26  ;;  %v15485_v56 = vld [vmem:[#allocation157_spill] sm:$0xff]  ;;  %v2459_v9 = vadd.f32 %v2395_v59, %v12046_v11 }
 0x5d9   : > { %3842 = vmax.xlane.f32.xlu0 %v12253_v28  ;;  %v12275_v57 = vmul.f32 %v9088_v48, %v2298_v18  ;;  %v2272_v18 = vsel %vm2248_vm0, %v15484_v29, %v15483_v54  ;;  %v12292_v8 = vadd.f32 %v15485_v56, %v3244_v22  ;;  %v3164_v1 = vadd.f32 %v3100_v39, %v12074_v20  ;;  %v15486_v20 = vld [vmem:[#allocation98_spill] sm:$0xff]  ;;  %v15488_v59 = vld [vmem:[#allocation99_spill] sm:$0xff]  ;;  %v15489_v39 = vld [vmem:[#allocation96_spill] sm:$0xff] }
 0x5da   : > { %v12280_v44 = vpop.permute.xlu1 %1946  ;;  %8114 = vmatprep.subr.msk.bf16.mxu1 %vm3257_vm1, %v3192_v0  ;;  %v3449_v2 = vsel %vm3257_vm1, %v3192_v0, 0  ;;  %v2462_v48 = vadd.f32 %v2398_v55, %v12078_v53  ;;  %v3242_v0 = vld [vmem:[#allocation11 + $0x8] sm:$0xff]  ;;  %v3718_v26 = vsel %vm3257_vm1, %v3201_v36, 0  ;;  %v12302_v14 = vadd.f32 %v2411_v37, %v12054_v30  ;;  %v15487_v53 = vld [vmem:[#allocation93_spill] sm:$0xff]  ;;  %v15491_v30 = vld [vmem:[#allocation136_spill] sm:$0xff] }
 0x5db   : > { %7842 = vmatpush3.bf16.xpose.msra.mxu1 %v3449_v2  ;;  %v3163_v22 = vadd.f32 %v3099_v47, %v12062_v46  ;;  %v2461_v50 = vadd.f32 %v2397_v12, %v12066_v16  ;;  %v2413_v11 = vmul.f32 %v15480_v60, %v2285_v38  ;;  %v2271_v55 = vsel %vm2248_vm0, %v15487_v53, %v15486_v20  ;;  %v15492_v37 = vld [vmem:[#allocation131_spill] sm:$0xff]  ;;  %v12320_v38 = vld [vmem:[#allocation11] sm:$0xff]  ;;  %v15495_v20 = vld [vmem:[#allocation60_spill] sm:$0xff] }
 0x5dc   : > { %8123 = vmatprep.subr.msk.bf16.mxu1 %vm3257_vm1, %v3201_v36  ;;  %v12298_v7 = vpop.permute.xlu0 %2853  ;;  %v2974_v34 = vsel %vm2248_vm0, %v15489_v39, %v15488_v59  ;;  %v15490_v36 = vld [vmem:[#allocation121_spill] sm:$0xff]  ;;  %v2274_v46 = vsel %vm2248_vm0, %v15492_v37, %v15491_v30  ;;  %v2514_v16 = vpack.c.bf16 %v2460_v42, %v2459_v9  ;;  %v15493_v2 = vld [vmem:[#allocation158_spill] sm:$0xff]  ;;  %v2967_v29 = vsel %vm2248_vm0, %v12170_v25, %v2822_v23  ;;  %v15497_v39 = vld [vmem:[#allocation132_spill] sm:$0xff] }
 0x5dd   : > { %3844 = vmax.xlane.f32.xlu0 %v12292_v8  ;;  %v2400_v4 = vmul.f32 %v15490_v36, %v2272_v18  ;;  %v12323_v54 = vadd.f32 %v15493_v2, %v3242_v0  ;;  %v12327_v56 = vpack.c.bf16 %v3164_v1, %v3163_v22  ;;  %v2515_v18 = vpack.c.bf16 %v2462_v48, %v2461_v50  ;;  %v15496_v53 = vld [vmem:[#allocation54_spill] sm:$0xff]  ;;  %v15498_v42 = vld [vmem:[#allocation127_spill] sm:$0xff]  ;;  %v12335_v30 = vld [vmem:[#allocation11 + $0x38] sm:$0xff] }
 0x5de   : > { %v2632_v47 = vpop.permute.xlu1 %2631  ;;  %v2286_v59 = vsel %vm2248_vm0, %v15496_v53, %v15495_v20  ;;  %v2273_v9 = vsel %vm2248_vm0, %v15498_v42, %v15497_v39  ;;  %15499 = vst [vmem:[#allocation151_spill] sm:$0xff] %v12335_v30  ;;  %v15500_v0 = vld [vmem:[#allocation91_spill] sm:$0xff]  ;;  %v15502_v25 = vld [vmem:[#allocation116_spill] sm:$0xff]  ;;  %v3102_v1 = vmul.f32 %v15478_v17, %v2974_v34  ;;  %v12347_v50 = vadd.f32 %v2413_v11, %v12070_v5 }
 0x5df   : > { %15494 = vst [vmem:[#allocation94_spill] sm:$0xff] %v12323_v54  ;;  %v15501_v2 = vld [vmem:[#allocation63_spill] sm:$0xff]  ;;  %v2399_v23 = vmul.f32 %v15502_v25, %v2271_v55  ;;  %v15503_v48 = vld [vmem:[#allocation140_spill] sm:$0xff]  ;;  %v2464_v20 = vadd.f32 %v2400_v4, %v12104_v15  ;;  %v3095_v42 = vmul.f32 %v12206_v33, %v2967_v29  ;;  %v2414_v15 = vmul.f32 %v15478_v17, %v2286_v59  ;;  %v15509_v17 = vld [vmem:[#allocation162_spill] sm:$0xff] }
 0x5e0   : > { %v12337_v37 = vpop.permute.xlu0 %1944  ;;  %v2973_v12 = vsel %vm2248_vm0, %v15501_v2, %v15500_v0  ;;  %v2402_v22 = vmul.f32 %v15503_v48, %v2274_v46  ;;  %v15504_v53 = vld [vmem:[#allocation124_spill] sm:$0xff]  ;;  %v15505_v55 = vld [vmem:[#allocation139_spill] sm:$0xff] }
 0x5e1   : > { %3840 = vmax.xlane.f32.xlu0 %v12323_v54  ;;  %v12352_v39 = vadd.f32 %v15504_v53, %v12320_v38  ;;  %v2401_v34 = vmul.f32 %v15505_v55, %v2273_v9  ;;  %v12357_v2 = vld [vmem:[#allocation11 + $0x30] sm:$0xff]  ;;  %v3101_v11 = vmul.f32 %v15480_v60, %v2973_v12  ;;  %v12367_v4 = vld [vmem:[#allocation11 + $0x28] sm:$0xff]  ;;  %v15511_v12 = vld [vmem:[#allocation161_spill] sm:$0xff]  ;;  %v2278_v53 = vsel %vm2248_vm0, %v11946_v63, %v11952_v52 }
 0x5e2   : > { %v2824_v0 = vpop.permute.xlu1 %2823  ;;  %7844 = vmatmul.mubr.msk.bf16.vlgmr.msra.gmra.mrb[16].mxu1 %vm3257_vm1, %v2514_v16  ;;  %15506 = vst [vmem:[#allocation152_spill] sm:$0xff] %v12357_v2  ;;  %v15507_v46 = vld [vmem:[#allocation164_spill] sm:$0xff]  ;;  %15508 = vst [vmem:[#allocation153_spill] sm:$0xff] %v12367_v4  ;;  %v12384_v9 = vadd.f32 %v15511_v12, %v12357_v2  ;;  %v15517_v63 = vld [vmem:[#allocation126_spill] sm:$0xff] }
 0x5e3   : > { %v12361_v54 = vadd.f32 %v15507_v46, %v12335_v30  ;;  %v2968_v5 = vsel %vm2248_vm0, %v2632_v47, %v2824_v0  ;;  %7847 = vmatprep.mubr.msk.bf16.mxu1 %vm3257_vm1, %v2515_v18  ;;  %7892 = vmatpush3.bf16.xpose.msra.mxu1 %v3718_v26  ;;  %v2463_v47 = vadd.f32 %v2399_v23, %v12092_v27  ;;  %v15510_v59 = vld [vmem:[#allocation160_spill] sm:$0xff]  ;;  %v15513_v0 = vld [vmem:[#allocation111_spill] sm:$0xff]  ;;  %v15538_v30 = vld [vmem:[#allocation190_spill] sm:$0xff] }
 0x5e4   : > { %v3096_v16 = vmul.f32 %v12228_v61, %v2968_v5  ;;  %3838 = vmax.xlane.f32.xlu1 %v12352_v39  ;;  %8124 = vmatprep.subr.msk.bf16.mxu1 %vm3257_vm1, %v12327_v56  ;;  %v12373_v29 = vpop.permute.xlu0 %2136  ;;  %v3166_v18 = vadd.f32 %v3102_v1, %v12100_v51  ;;  %v2466_v26 = vadd.f32 %v2402_v22, %v12131_v45  ;;  %v15512_v22 = vld [vmem:[#allocation159_spill] sm:$0xff]  ;;  %v12397_v5 = vld [vmem:[#allocation11 + $0x20] sm:$0xff]  ;;  %v15516_v52 = vld [vmem:[#allocation128_spill] sm:$0xff] }
 0x5e5   : > { %v2276_v60 = vsel %vm2248_vm0, %v15510_v59, %v15509_v17  ;;  %3852 = vmax.xlane.f32.xlu0 %v12361_v54  ;;  %v3159_v27 = vadd.f32 %v3095_v42, %v12201_v40  ;;  %v2516_v45 = vpack.c.bf16 %v2464_v20, %v2463_v47  ;;  %v2465_v1 = vadd.f32 %v2401_v34, %v12116_v43  ;;  %v15515_v17 = vld [vmem:[#allocation165_spill] sm:$0xff]  ;;  %v15518_v42 = vld [vmem:[#allocation182_spill] sm:$0xff]  ;;  %v15519_v20 = vld [vmem:[#allocation180_spill] sm:$0xff] }
 0x5e6   : > { %v3160_v51 = vadd.f32 %v3096_v16, %v12261_v6  ;;  %v12391_v23 = vpop.permute.xlu1 %2663  ;;  %v2275_v46 = vsel %vm2248_vm0, %v15513_v0, %v15512_v22  ;;  %15514 = vst [vmem:[#allocation32_spill] sm:$0xff] %v12397_v5  ;;  %v12401_v59 = vadd.f32 %v15515_v17, %v12367_v4  ;;  %v2976_v40 = vsel %vm2248_vm0, %v15517_v63, %v15516_v52  ;;  %v12417_v0 = vld [vmem:[#allocation11 + $0x58] sm:$0xff]  ;;  %v15522_v52 = vld [vmem:[#allocation118_spill] sm:$0xff] }
 0x5e7   : > { %v2404_v6 = vmul.f32 %v11891_v19, %v2276_v60  ;;  %v2277_v43 = vsel %vm2248_vm0, %v15519_v20, %v15518_v42  ;;  %v12414_v47 = vadd.f32 %v2414_v15, %v12084_v62  ;;  %v3165_v12 = vadd.f32 %v3101_v11, %v12088_v41  ;;  %15520 = vst [vmem:[#allocation85_spill] sm:$0xff] %v12417_v0  ;;  %v15521_v60 = vld [vmem:[#allocation123_spill] sm:$0xff] }
 0x5e8   : > { %v3200_v34 = vpack.c.bf16 %v3160_v51, %v3159_v27  ;;  %3850 = vmax.xlane.f32.xlu1 %v12384_v9  ;;  %v12411_v16 = vpop.permute.xlu0 %1948  ;;  %v2517_v22 = vpack.c.bf16 %v2466_v26, %v2465_v1  ;;  %v2406_v17 = vmul.f32 %v11989_v58, %v2278_v53  ;;  %v2975_v27 = vsel %vm2248_vm0, %v15522_v52, %v15521_v60  ;;  %v15523_v51 = vld [vmem:[#allocation167_spill] sm:$0xff]  ;;  %v12435_v26 = vld [vmem:[#allocation11 + $0x50] sm:$0xff]  ;;  %v15527_v60 = vld [vmem:[#allocation113_spill] sm:$0xff] }
 0x5e9   : > { %3848 = vmax.xlane.f32.xlu0 %v12401_v59  ;;  %v2403_v63 = vmul.f32 %v15523_v51, %v2275_v46  ;;  %v15524_v42 = vld [vmem:[#allocation163_spill] sm:$0xff]  ;;  %v3203_v15 = vpack.c.bf16 %v3166_v18, %v3165_v12  ;;  %v3104_v11 = vmul.f32 %v15490_v36, %v2976_v40  ;;  %15525 = vst [vmem:[#allocation97_spill] sm:$0xff] %v12435_v26  ;;  %v3721_v1 = vsel %vm3257_vm1, %v12327_v56, 0  ;;  %v15528_v18 = vld [vmem:[#allocation169_spill] sm:$0xff] }
 0x5ea   : > { %v12427_v20 = vadd.f32 %v15524_v42, %v12397_v5  ;;  %v12429_v62 = vpop.permute.xlu1 %2855  ;;  %7848 = vmatmul.mubr.msk.bf16.gmra.mrb[20].mxu1 %vm3257_vm1, %v2516_v45  ;;  %8122 = vmatprep.subr.msk.bf16.mxu0 %vm3257_vm1, %v3200_v34  ;;  %v3594_v41 = vsel %vm3257_vm1, %v3200_v34, 0  ;;  %v2405_v53 = vmul.f32 %v11966_v24, %v2277_v43  ;;  %v15526_v46 = vld [vmem:[#allocation115_spill] sm:$0xff]  ;;  %v2468_v52 = vadd.f32 %v2404_v6, %v12159_v35  ;;  %v15531_v35 = vld [vmem:[#allocation30_spill] sm:$0xff]  ;;  %v15539_v5 = vld [vmem:[#allocation188_spill] sm:$0xff] }
 0x5eb   : > { %7851 = vmatprep.mubr.msk.bf16.mxu1 %vm3257_vm1, %v2517_v22  ;;  %7874 = vmatpush3.bf16.xpose.msra.mxu0 %v3594_v41  ;;  %v2288_v45 = vsel %vm2248_vm0, %v15527_v60, %v15526_v46  ;;  %v12447_v34 = vadd.f32 %v15528_v18, %v12417_v0  ;;  %v3103_v43 = vmul.f32 %v15502_v25, %v2975_v27  ;;  %v12453_v12 = vld [vmem:[#allocation11 + $0x48] sm:$0xff]  ;;  %v15535_v18 = vld [vmem:[#allocation166_spill] sm:$0xff]  ;;  %v15537_v0 = vld [vmem:[#allocation80_spill] sm:$0xff] }
 0x5ec   : > { %7894 = vmatpush3.bf16.xpose.msra.mxu1 %v3721_v1  ;;  %3846 = vmax.xlane.f32.xlu1 %v12427_v20  ;;  %v12450_v40 = vpop.permute.xlu0 %1976  ;;  %15529 = vst [vmem:[#allocation31_spill] sm:$0xff] %v12453_v12  ;;  %v2470_v56 = vadd.f32 %v2406_v17, %v12174_v49  ;;  %v15530_v22 = vld [vmem:[#allocation191_spill] sm:$0xff]  ;;  %v2523_v6 = vpack.c.bf16 %v12414_v47, %v12347_v50  ;;  %v15533_v1 = vld [vmem:[#allocation105_spill] sm:$0xff]  ;;  %v15536_v17 = vld [vmem:[#allocation68_spill] sm:$0xff] }
 0x5ed   : > { %v2280_v42 = vsel %vm2248_vm0, %v15530_v22, %v12080_v21  ;;  %8125 = vmatprep.subr.msk.bf16.mxu1 %vm3257_vm1, %v3203_v15  ;;  %7923 = vmatprep.subr.bf16.mxu0 %v15531_v35  ;;  %v15532_v41 = vld [vmem:[#allocation107_spill] sm:$0xff]  ;;  %v12469_v49 = vadd.f32 %v15535_v18, %v12435_v26  ;;  %v3168_v22 = vadd.f32 %v3104_v11, %v15536_v17  ;;  %v15615_v26 = vld [vmem:[#allocation109_spill] sm:$0xff] }
 0x5ee   : > { %v2287_v46 = vsel %vm2248_vm0, %v15533_v1, %v15532_v41  ;;  %v15534_v27 = vld [vmem:[#allocation75_spill] sm:$0xff]  ;;  %3860 = vmax.xlane.f32.xlu0 %v12447_v34  ;;  %v2139_v21 = vpop.permute.xlu1 %2138  ;;  %v2469_v4 = vadd.f32 %v2405_v53, %v15537_v0  ;;  %v2279_v50 = vsel %vm2248_vm0, %v15539_v5, %v15538_v30  ;;  %v12480_v1 = vld [vmem:[#allocation11 + $0x40] sm:$0xff]  ;;  %v2408_v11 = vmul.f32 %v12228_v61, %v2280_v42  ;;  %v15543_v30 = vld [vmem:[#allocation120_spill] sm:$0xff] }
 0x5ef   : > { %v2467_v60 = vadd.f32 %v2403_v63, %v15534_v27  ;;  %v2290_v47 = vsel %vm2248_vm0, %v12280_v44, %v2139_v21  ;;  %v2416_v63 = vmul.f32 %v15490_v36, %v2288_v45  ;;  %15540 = vst [vmem:[#allocation110_spill] sm:$0xff] %v12480_v1  ;;  %v15541_v27 = vld [vmem:[#allocation172_spill] sm:$0xff]  ;;  %v15542_v53 = vld [vmem:[#allocation66_spill] sm:$0xff]  ;;  %v2289_v36 = vsel %vm2248_vm0, %v12337_v37, %v12373_v29 }
 0x5f0   : > { %v12484_v18 = vadd.f32 %v15541_v27, %v12453_v12  ;;  %3858 = vmax.xlane.f32.xlu1 %v12469_v49  ;;  %v2141_v0 = vpop.permute.xlu0 %2140  ;;  %v3167_v17 = vadd.f32 %v3103_v43, %v15542_v53  ;;  %v15544_v5 = vld [vmem:[#allocation148_spill] sm:$0xff]  ;;  %v2519_v21 = vpack.c.bf16 %v2470_v56, %v2469_v4  ;;  %v12498_v27 = vld [vmem:[#allocation11 + $0x68] sm:$0xff]  ;;  %v2407_v42 = vmul.f32 %v12206_v33, %v2279_v50 }
 0x5f1   : > { %v2518_v41 = vpack.c.bf16 %v2468_v52, %v2467_v60  ;;  %v2978_v44 = vsel %vm2248_vm0, %v15544_v5, %v15543_v30  ;;  %v15545_v45 = vld [vmem:[#allocation144_spill] sm:$0xff]  ;;  %v15546_v52 = vld [vmem:[#allocation141_spill] sm:$0xff]  ;;  %15547 = vst [vmem:[#allocation92_spill] sm:$0xff] %v12498_v27  ;;  %v2418_v12 = vmul.f32 %v15503_v48, %v2290_v47  ;;  %v2415_v4 = vmul.f32 %v15502_v25, %v2287_v46  ;;  %v12516_v30 = vld [vmem:[#allocation11 + $0x60] sm:$0xff] }
 0x5f2   : > { %v2977_v60 = vsel %vm2248_vm0, %v15546_v52, %v15545_v45  ;;  %3856 = vmax.xlane.f32.xlu0 %v12484_v18  ;;  %v1951_v43 = vpop.permute.xlu1 %1950  ;;  %v3204_v56 = vpack.c.bf16 %v3168_v22, %v3167_v17  ;;  %v15548_v37 = vld [vmem:[#allocation168_spill] sm:$0xff]  ;;  %v15549_v53 = vpack.c.bf16 %v12286_v13, %v12302_v14  ;;  %v3724_v50 = vsel %vm3257_vm1, %v3203_v15, 0  ;;  %15550 = vst [vmem:[#allocation55_spill] sm:$0xff] %v12516_v30  ;;  %v15552_v13 = vld [vmem:[#allocation65_spill] sm:$0xff]  ;;  %v15559_v52 = vld [vmem:[#allocation62_spill] sm:$0xff] }
 0x5f3   : > { %7852 = vmatmul.mubr.msk.bf16.gmra.mrb[24].mxu1 %vm3257_vm1, %v2518_v41  ;;  %v12507_v29 = vadd.f32 %v15548_v37, %v12480_v1  ;;  %v3106_v47 = vmul.f32 %v15503_v48, %v2978_v44  ;;  %v15551_v41 = vld [vmem:[#allocation193_spill] sm:$0xff]  ;;  %v2417_v46 = vmul.f32 %v15505_v55, %v2289_v36  ;;  %v2480_v14 = vadd.f32 %v2416_v63, %v15552_v13  ;;  %v15557_v36 = vld [vmem:[#allocation72_spill] sm:$0xff]  ;;  %v15564_v13 = vld [vmem:[#allocation179_spill] sm:$0xff] }
 0x5f4   : > { %7876 = vmatmul.mubr.msk.bf16.vlgmr.msra.gmra.mrb[48].mxu0 %vm3257_vm1, %v15549_v53  ;;  %7855 = vmatprep.mubr.msk.bf16.mxu1 %vm3257_vm1, %v2519_v21  ;;  %v2472_v25 = vadd.f32 %v2408_v11, %v15551_v41  ;;  %v12521_v22 = vpop.permute.xlu0 %2168  ;;  %v3105_v17 = vmul.f32 %v15505_v55, %v2977_v60  ;;  %v15553_v5 = vld [vmem:[#allocation177_spill] sm:$0xff]  ;;  %v2482_v45 = vadd.f32 %v2418_v12, %v15557_v36  ;;  %v15558_v55 = vld [vmem:[#allocation28_spill] sm:$0xff]  ;;  %v15561_v53 = vld [vmem:[#allocation175_spill] sm:$0xff] }
 0x5f5   : > { %7879 = vmatprep.mubr.msk.bf16.mxu0 %vm3257_vm1, %v2523_v6  ;;  %7896 = vmatpush3.bf16.xpose.msra.mxu1 %v3724_v50  ;;  %v12527_v15 = vadd.f32 %v15553_v5, %v12498_v27  ;;  %v15554_v48 = vld [vmem:[#allocation61_spill] sm:$0xff]  ;;  %v15556_v6 = vld [vmem:[#allocation143_spill] sm:$0xff]  ;;  %v15560_v60 = vld [vmem:[#allocation64_spill] sm:$0xff] }
 0x5f6   : > { %7924 = vmatpush3.bf16.msra.mxu0 %v15531_v35  ;;  %3854 = vmax.xlane.f32.xlu1 %v12507_v29  ;;  %v2489_v11 = vadd.f32 %v12270_v31, %v15554_v48  ;;  %v12533_v44 = vld [vmem:[#allocation11 + $0x78] sm:$0xff]  ;;  %v2471_v21 = vadd.f32 %v2407_v42, %v15556_v6  ;;  %v12539_v63 = vpop.permute.xlu1 %1978  ;;  %v2490_v35 = vadd.f32 %v12275_v57, %v15559_v52  ;;  %v15565_v6 = vld [vmem:[#allocation67_spill] sm:$0xff]  ;;  %v15566_v52 = vld [vmem:[#allocation74_spill] sm:$0xff] }
 0x5f7   : > { %15555 = vst [vmem:[#allocation38_spill] sm:$0xff] %v12533_v44  ;;  %8126 = vmatprep.subr.msk.bf16.mxu1 %vm3257_vm1, %v3204_v56  ;;  %7925 = vmatprep.subr.bf16.mxu0 %v15558_v55  ;;  %v2479_v37 = vadd.f32 %v2415_v4, %v15560_v60  ;;  %v12546_v31 = vadd.f32 %v15561_v53, %v12516_v30  ;;  %v15562_v12 = vld [vmem:[#allocation77_spill] sm:$0xff]  ;;  %v12559_v53 = vld [vmem:[#allocation11 + $0x70] sm:$0xff]  ;;  %v15614_v1 = vld [vmem:[#allocation114_spill] sm:$0xff] }
 0x5f8   : > { %v2291_v42 = vsel %vm2248_vm0, %v12411_v16, %v2141_v0  ;;  %3864 = vmax.xlane.f32.xlu0 %v12527_v15  ;;  %v3170_v50 = vadd.f32 %v3106_v47, %v15562_v12  ;;  %v15563_v41 = vld [vmem:[#allocation181_spill] sm:$0xff]  ;;  %v2520_v48 = vpack.c.bf16 %v2472_v25, %v2471_v21  ;;  %v2481_v57 = vadd.f32 %v2417_v46, %v15565_v6  ;;  %v12556_v36 = vpop.permute.xlu0 %1980  ;;  %v15568_v16 = vld [vmem:[#allocation176_spill] sm:$0xff]  ;;  %v15569_v47 = vld [vmem:[#allocation178_spill] sm:$0xff] }
 0x5f9   : > { %v2980_v5 = vsel %vm2248_vm0, %v15564_v13, %v15563_v41  ;;  %v2524_v4 = vpack.c.bf16 %v2480_v14, %v2479_v37  ;;  %v3169_v60 = vadd.f32 %v3105_v17, %v15566_v52  ;;  %15567 = vst [vmem:[#allocation37_spill] sm:$0xff] %v12559_v53  ;;  %v12563_v0 = vadd.f32 %v15568_v16, %v12533_v44  ;;  %v15570_v12 = vld [vmem:[#allocation173_spill] sm:$0xff]  ;;  %v15571_v14 = vld [vmem:[#allocation36_spill] sm:$0xff]  ;;  %v15578_v16 = vld [vmem:[#allocation170_spill] sm:$0xff] }
 0x5fa   : > { %7926 = vmatpush3.bf16.msra.mxu0 %v15558_v55  ;;  %3862 = vmax.xlane.f32.xlu1 %v12546_v31  ;;  %v2979_v25 = vsel %vm2248_vm0, %v15570_v12, %v15569_v47  ;;  %v2525_v46 = vpack.c.bf16 %v2482_v45, %v2481_v57  ;;  %v2419_v21 = vmul.f32 %v15523_v51, %v2291_v42  ;;  %v2143_v17 = vpop.permute.xlu1 %2142  ;;  %v3727_v13 = vsel %vm3257_vm1, %v3204_v56, 0  ;;  %v15572_v45 = vld [vmem:[#allocation174_spill] sm:$0xff]  ;;  %v15575_v56 = vld [vmem:[#allocation76_spill] sm:$0xff] }
 0x5fb   : > { %7927 = vmatprep.subr.bf16.mxu0 %v15571_v14  ;;  %7856 = vmatmul.mubr.msk.bf16.gmra.mrb[28].mxu1 %vm3257_vm1, %v2520_v48  ;;  %v2529_v37 = vpack.c.bf16 %v2490_v35, %v2489_v11  ;;  %v3108_v41 = vmul.f32 %v11891_v19, %v2980_v5  ;;  %v2292_v55 = vsel %vm2248_vm0, %v1951_v43, %v2143_v17  ;;  %v15573_v35 = vld [vmem:[#allocation134_spill] sm:$0xff]  ;;  %v15574_v5 = vld [vmem:[#allocation171_spill] sm:$0xff] }
 0x5fc   : > { %3868 = vmax.xlane.f32.xlu0 %v12563_v0  ;;  %7880 = vmatmul.mubr.msk.bf16.gmra.mrb[52].mxu0 %vm3257_vm1, %v2524_v4  ;;  %v3205_v6 = vpack.c.bf16 %v3170_v50, %v3169_v60  ;;  %v12580_v42 = vadd.f32 %v15572_v45, %v12559_v53  ;;  %v2420_v57 = vmul.f32 %v11891_v19, %v2292_v55  ;;  %v12584_v11 = vpop.permute.xlu0 %2172  ;;  %v15576_v4 = vld [vmem:[#allocation79_spill] sm:$0xff]  ;;  %v15577_v60 = vld [vmem:[#allocation129_spill] sm:$0xff]  ;;  %v15582_v55 = vld [vmem:[#allocation186_spill] sm:$0xff] }
 0x5fd   : > { %7883 = vmatprep.mubr.msk.bf16.mxu0 %vm3257_vm1, %v2525_v46  ;;  %7898 = vmatpush3.bf16.xpose.msra.mxu1 %v3727_v13  ;;  %v3044_v48 = vmul.f32 %v15574_v5, %v15573_v35  ;;  %v3107_v43 = vmul.f32 %v15523_v51, %v2979_v25  ;;  %v2483_v50 = vadd.f32 %v2419_v21, %v15575_v56  ;;  %v15579_v46 = vld [vmem:[#allocation34_spill] sm:$0xff]  ;;  %v15580_v51 = vld [vmem:[#allocation189_spill] sm:$0xff]  ;;  %v15581_v25 = vld [vmem:[#allocation187_spill] sm:$0xff] }
 0x5fe   : > { %7907 = vmatprep.mubr.msk.bf16.mxu1 %vm3257_vm1, %v2529_v37  ;;  %7928 = vmatpush3.bf16.msra.mxu0 %v15571_v14  ;;  %v2484_v52 = vadd.f32 %v2420_v57, %v15576_v4  ;;  %v12595_v19 = vpop.permute.xlu1 %2170  ;;  %v3043_v47 = vmul.f32 %v15578_v16, %v15577_v60  ;;  %v2982_v14 = vsel %vm2248_vm0, %v15581_v25, %v15580_v51  ;;  %v15583_v13 = vld [vmem:[#allocation185_spill] sm:$0xff]  ;;  %v15584_v57 = vld [vmem:[#allocation42_spill] sm:$0xff]  ;;  %v15587_v60 = vld [vmem:[#allocation40_spill] sm:$0xff] }
 0x5ff   : > { %3866 = vmax.xlane.f32.xlu1 %v12580_v42  ;;  %8127 = vmatprep.subr.msk.bf16.mxu1 %vm3257_vm1, %v3205_v6  ;;  %v3172_v12 = vadd.f32 %v3108_v41, %v3044_v48  ;;  %v2981_v45 = vsel %vm2248_vm0, %v15583_v13, %v15582_v55  ;;  %v3110_v5 = vmul.f32 %v11989_v58, %v2982_v14  ;;  %v3730_v48 = vsel %vm3257_vm1, %v3205_v6, 0 }
 0x600   : > { %7929 = vmatprep.subr.bf16.mxu0 %v15579_v46  ;;  %v2526_v17 = vpack.c.bf16 %v2484_v52, %v2483_v50  ;;  %v1953_v21 = vpop.permute.xlu0 %1952  ;;  %v3171_v37 = vadd.f32 %v3107_v43, %v3043_v47  ;;  %v15585_v43 = vld [vmem:[#allocation146_spill] sm:$0xff]  ;;  %v15586_v50 = vld [vmem:[#allocation184_spill] sm:$0xff]  ;;  %v3109_v52 = vmul.f32 %v11966_v24, %v2981_v45  ;;  %v2984_v6 = vsel %vm2248_vm0, %v12391_v23, %v12429_v62 }
 0x601   : > { %v3046_v4 = vmul.f32 %v15586_v50, %v15585_v43  ;;  %v15588_v47 = vld [vmem:[#allocation142_spill] sm:$0xff]  ;;  %v3112_v45 = vmul.f32 %v12228_v61, %v2984_v6  ;;  %v15591_v62 = vld [vmem:[#allocation156_spill] sm:$0xff]  ;;  %v15597_v6 = vld [vmem:[#allocation137_spill] sm:$0xff]  ;;  %v2303_v2 = vsel %vm2248_vm0, %v15615_v26, %v15614_v1 }
 0x602   : > { %7930 = vmatpush3.bf16.msra.mxu0 %v15579_v46  ;;  %v12608_v35 = vpop.permute.xlu1 %1982  ;;  %v3206_v41 = vpack.c.bf16 %v3172_v12, %v3171_v37  ;;  %v15589_v12 = vld [vmem:[#allocation183_spill] sm:$0xff]  ;;  %v15590_v37 = vld [vmem:[#allocation48_spill] sm:$0xff] }
 0x603   : > { %7931 = vmatprep.subr.bf16.mxu0 %v15584_v57  ;;  %v3045_v46 = vmul.f32 %v15589_v12, %v15588_v47  ;;  %v3174_v51 = vadd.f32 %v3110_v5, %v3046_v4  ;;  %v9099_v1 = vld [vmem:[%s14779_s13 + $0x38] sm:$0xff] }
 0x604   : > { %7884 = vmatmul.mubr.msk.bf16.gmra.mrb[56].mxu0 %vm3257_vm1, %v2526_v17  ;;  %v2145_v56 = vpop.permute.xlu0 %2144  ;;  %v2983_v17 = vsel %vm2248_vm0, %v12257_v10, %v12298_v7  ;;  %v3733_v5 = vsel %vm3257_vm1, %v3206_v41, 0  ;;  %v15592_v7 = vld [vmem:[#allocation45_spill] sm:$0xff] }
 0x605   : > { %7900 = vmatpush3.bf16.xpose.msra.mxu1 %v3730_v48  ;;  %v3173_v14 = vadd.f32 %v3109_v52, %v3045_v46  ;;  %v3048_v48 = vmul.f32 %v12188_v3, %v15591_v62  ;;  %v3111_v43 = vmul.f32 %v12206_v33, %v2983_v17  ;;  %v15596_v46 = vld [vmem:[#allocation133_spill] sm:$0xff] }
 0x606   : > { %7932 = vmatpush3.bf16.msra.mxu0 %v15584_v57  ;;  %8128 = vmatprep.subr.msk.bf16.mxu1 %vm3257_vm1, %v3206_v41  ;;  %v12619_v16 = vpop.permute.xlu1 %2174  ;;  %v2293_v57 = vsel %vm2248_vm0, %v1953_v21, %v2145_v56  ;;  %v15593_v21 = vld [vmem:[#allocation154_spill] sm:$0xff]  ;;  %v15594_v56 = vld [vmem:[#allocation192_spill] sm:$0xff] }
 0x607   : > { %7933 = vmatprep.subr.bf16.mxu0 %v15587_v60  ;;  %v3207_v13 = vpack.c.bf16 %v3174_v51, %v3173_v14  ;;  %v2421_v10 = vmul.f32 %v11966_v24, %v2293_v57  ;;  %v3047_v41 = vmul.f32 %v15594_v56, %v15593_v21  ;;  %v3176_v52 = vadd.f32 %v3112_v45, %v3048_v48 }
 0x608   : > { %v1957_v25 = vpop.permute.xlu0 %1956  ;;  %v2357_v51 = vmul.f32 %v15589_v12, %v15596_v46  ;;  %v2358_v14 = vmul.f32 %v15586_v50, %v15597_v6  ;;  %v15603_v6 = vld [vmem:[#allocation89_spill] sm:$0xff] }
 0x609   : > { %v3175_v57 = vadd.f32 %v3111_v43, %v3047_v41  ;;  %v15600_v43 = vld [vmem:[#allocation101_spill] sm:$0xff] }
 0x60a   : > { %7934 = vmatpush3.bf16.msra.mxu0 %v15587_v60  ;;  %v1955_v55 = vpop.permute.xlu1 %1954  ;;  %v15595_v60 = vld [vmem:[#allocation46_spill] sm:$0xff]  ;;  %v2485_v45 = vadd.f32 %v2421_v10, %v2357_v51  ;;  %v15602_v10 = vld [vmem:[#allocation83_spill] sm:$0xff] }
 0x60b   : > { %7935 = vmatprep.subr.bf16.mxu0 %v15590_v37  ;;  %v3208_v21 = vpack.c.bf16 %v3176_v52, %v3175_v57  ;;  %v9089_v57 = vld [vmem:[%s14780_s14 + $0x18] sm:$0xff] }
 0x60c   : > { %v12634_v23 = vpop.permute.xlu0 %1984 }
 0x60d   : > { %7902 = vmatpush3.bf16.xpose.msra.mxu1 %v3733_v5  ;;  %v15598_v5 = vld [vmem:[#allocation29_spill] sm:$0xff] }
 0x60e   : > { %7936 = vmatpush3.bf16.msra.mxu0 %v15590_v37  ;;  %8129 = vmatprep.subr.msk.bf16.mxu1 %vm3257_vm1, %v3207_v13  ;;  %v2147_v4 = vpop.permute.xlu1 %2146 }
 0x60f   : > { %7937 = vmatprep.subr.bf16.mxu0 %v15592_v7  ;;  %v2294_v47 = vsel %vm2248_vm0, %v1955_v55, %v2147_v4  ;;  %v3736_v55 = vsel %vm3257_vm1, %v3207_v13, 0  ;;  %v15604_v13 = vld [vmem:[#allocation53_spill] sm:$0xff] }
 0x610   : > { %8283 = vrot.lane.b32.xlu1 %v15595_v60, %s9404_s20  ;;  %v2422_v17 = vmul.f32 %v11989_v58, %v2294_v47  ;;  %v2149_v37 = vpop.permute.xlu0 %2148  ;;  %v15599_v47 = vld [vmem:[#allocation117_spill] sm:$0xff] }
 0x611   : > { %v2300_v41 = vsel %vm2248_vm0, %v15600_v43, %v15599_v47  ;;  %v15605_v47 = vld [vmem:[#allocation86_spill] sm:$0xff] }
 0x612   : > { %8288 = vrot.lane.b32.xlu0 %v15598_v5, %s9407_s17  ;;  %7938 = vmatpush3.bf16.msra.mxu0 %v15592_v7  ;;  %v2486_v62 = vadd.f32 %v2422_v17, %v2358_v14  ;;  %v1959_v48 = vpop.permute.xlu1 %1958  ;;  %v15601_v7 = vld [vmem:[#allocation70_spill] sm:$0xff]  ;;  %v2302_v14 = vsel %vm2248_vm0, %v15604_v13, %v15603_v6  ;;  %v2295_v17 = vsel %vm2248_vm0, %v1957_v25, %v2149_v37  ;;  %v9091_v25 = vld [vmem:[%s14779_s13 + $0x10] sm:$0xff]  ;;  %v15607_v37 = vld [vmem:[#allocation69_spill] sm:$0xff] }
 0x613   : > { %v2299_v51 = vsel %vm2248_vm0, %v15602_v10, %v15601_v7  ;;  %v2363_v7 = vmul.f32 %v9091_v25, %v15607_v37  ;;  %v15608_v10 = vld [vmem:[#allocation73_spill] sm:$0xff] }
 0x614   : > { %8293 = vrot.lane.b32.xlu1 %v15598_v5, %s9408_s19  ;;  %v2527_v4 = vpack.c.bf16 %v2486_v62, %v2485_v45  ;;  %v12659_v46 = vpop.permute.xlu0 %2176  ;;  %v2428_v5 = vmul.f32 %v9089_v57, %v2300_v41  ;;  %v9090_v62 = vld [vmem:[%s14780_s14 + $0x10] sm:$0xff]  ;;  %v9092_v41 = vld [vmem:[%s14779_s13 + $0x18] sm:$0xff]  ;;  %v2423_v57 = vmul.f32 %v12206_v33, %v2295_v17  ;;  %v9095_v17 = vld [vmem:[%s14780_s14 + $0x20] sm:$0xff] }
 0x615   : > { %7904 = vmatpush3.bf16.xpose.msra.mxu1 %v3736_v55  ;;  %v2427_v55 = vmul.f32 %v9090_v62, %v2299_v51  ;;  %v2364_v6 = vmul.f32 %v9092_v41, %v15608_v10  ;;  %v9093_v51 = vld [vmem:[%s14780_s14 + $0x28] sm:$0xff]  ;;  %v15610_v37 = vld [vmem:[#allocation145_spill] sm:$0xff]  ;;  %v3739_v41 = vsel %vm3257_vm1, %v3208_v21, 0 }
 0x616   : > { %8130 = vmatprep.subr.msk.bf16.mxu1 %vm3257_vm1, %v3208_v21  ;;  %v12668_v52 = vpop.permute.xlu1 %1986  ;;  %7887 = vmatprep.mubr.msk.bf16.mxu0 %vm3257_vm1, %v2527_v4  ;;  %v15606_v4 = vld [vmem:[#allocation51_spill] sm:$0xff]  ;;  %v2430_v13 = vmul.f32 %v9093_v51, %v2302_v14  ;;  %v2359_v60 = vmul.f32 %v15594_v56, %v15610_v37  ;;  %v15611_v10 = vld [vmem:[#allocation149_spill] sm:$0xff] }
 0x617   : > { %v2301_v43 = vsel %vm2248_vm0, %v15606_v4, %v15605_v47  ;;  %v9094_v47 = vld [vmem:[%s14779_s13 + $0x28] sm:$0xff]  ;;  %v15609_v4 = vld [vmem:[#allocation81_spill] sm:$0xff]  ;;  %v2360_v44 = vmul.f32 %v12188_v3, %v15611_v10  ;;  %v2492_v14 = vadd.f32 %v2428_v5, %v2364_v6 }
 0x618   : > { %v12678_v45 = vpop.permute.xlu0 %1988  ;;  %v2366_v25 = vmul.f32 %v9094_v47, %v15609_v4  ;;  %v2429_v51 = vmul.f32 %v9095_v17, %v2301_v43  ;;  %v2491_v4 = vadd.f32 %v2427_v55, %v2363_v7  ;;  %v15613_v5 = vld [vmem:[#allocation119_spill] sm:$0xff]  ;;  %v2487_v10 = vadd.f32 %v2423_v57, %v2359_v60  ;;  %v9097_v7 = vld [vmem:[%s14780_s14 + $0x38] sm:$0xff] }
 0x619   : > { %v2304_v6 = vsel %vm2248_vm0, %v15613_v5, %v12247_v32 }
 0x61a   : > { %v2151_v62 = vpop.permute.xlu1 %2150  ;;  %v2494_v37 = vadd.f32 %v2430_v13, %v2366_v25  ;;  %v2432_v32 = vmul.f32 %v9097_v7, %v2304_v6 }
 0x61b   : > { %v2296_v27 = vsel %vm2248_vm0, %v1959_v48, %v2151_v62  ;;  %v9096_v48 = vld [vmem:[%s14779_s13 + $0x20] sm:$0xff] }
 0x61c   : > { %v2424_v30 = vmul.f32 %v12228_v61, %v2296_v27  ;;  %v12712_v47 = vpop.permute.xlu0 %2180  ;;  %v15612_v62 = vld [vmem:[#allocation78_spill] sm:$0xff]  ;;  %v2306_v27 = vsel %vm2248_vm0, %v12539_v63, %v12595_v19 }
 0x61d   : > { %7906 = vmatpush3.bf16.xpose.msra.mxu1 %v3739_v41  ;;  %v2365_v21 = vmul.f32 %v9096_v48, %v15612_v62  ;;  %v2530_v41 = vpack.c.bf16 %v2492_v14, %v2491_v4  ;;  %v9098_v19 = vld [vmem:[%s14780_s14 + $0x48] sm:$0xff] }
 0x61e   : > { %v2488_v53 = vadd.f32 %v2424_v30, %v2360_v44  ;;  %v2179_v43 = vpop.permute.xlu1 %2178  ;;  %v2305_v30 = vsel %vm2248_vm0, %v12450_v40, %v12521_v22  ;;  %v2434_v13 = vmul.f32 %v9098_v19, %v2306_v27  ;;  %v9100_v40 = vld [vmem:[%s14780_s14 + $0x30] sm:$0xff]  ;;  %v9101_v14 = vld [vmem:[%s14779_s13 + $0x48] sm:$0xff]  ;;  %v9105_v19 = vld [vmem:[%s14780_s14 + $0x58] sm:$0xff] }
 0x61f   : > { %v2493_v17 = vadd.f32 %v2429_v51, %v2365_v21  ;;  %v2431_v22 = vmul.f32 %v9100_v40, %v2303_v2  ;;  %v15617_v51 = vld [vmem:[#allocation112_spill] sm:$0xff]  ;;  %v9102_v21 = vld [vmem:[%s14780_s14 + $0x40] sm:$0xff] }
 0x620   : > { %v2528_v48 = vpack.c.bf16 %v2488_v53, %v2487_v10  ;;  %v8249_v55 = vpop.permute.xlu0 %8248  ;;  %v15616_v53 = vld [vmem:[#allocation95_spill] sm:$0xff]  ;;  %v2370_v62 = vmul.f32 %v9101_v14, %v15617_v51  ;;  %v2433_v4 = vmul.f32 %v9102_v21, %v2305_v30  ;;  %v9104_v10 = vld [vmem:[%s14779_s13 + $0x40] sm:$0xff]  ;;  %v15619_v27 = vld [vmem:[#allocation108_spill] sm:$0xff]  ;;  %v2307_v30 = vsel %vm2248_vm0, %v12556_v36, %v12584_v11 }
 0x621   : > { %v8251_v44 = vunpack.i.h.bf16 %v8249_v55  ;;  %v8250_v60 = vunpack.i.l.bf16 %v8249_v55  ;;  %v2531_v63 = vpack.c.bf16 %v2494_v37, %v2493_v17  ;;  %v2368_v57 = vmul.f32 %v9099_v1, %v15616_v53  ;;  %v9103_v2 = vld [vmem:[%s14779_s13 + $0x30] sm:$0xff]  ;;  %v15618_v37 = vld [vmem:[#allocation90_spill] sm:$0xff]  ;;  %v15620_v36 = vld [vmem:[#allocation125_spill] sm:$0xff] }
 0x622   : > { %v1991_v26 = vpop.permute.xlu1 %1990  ;;  %7888 = vmatmul.mubr.msk.bf16.gmra.mrb[60].mxu0 %vm3257_vm1, %v2528_v48  ;;  %v2367_v5 = vmul.f32 %v9103_v2, %v15618_v37  ;;  %v2498_v17 = vadd.f32 %v2434_v13, %v2370_v62  ;;  %v2308_v48 = vsel %vm2248_vm0, %v12608_v35, %v12619_v16  ;;  %v2309_v35 = vsel %vm2248_vm0, %v12634_v23, %v12659_v46  ;;  %v9106_v16 = vld [vmem:[%s14779_s13 + $0x58] sm:$0xff]  ;;  %v15621_v23 = vld [vmem:[#allocation138_spill] sm:$0xff]  ;;  %v9108_v62 = vld [vmem:[%s14779_s13 + $0x50] sm:$0xff] }
 0x623   : > { %v3217_v25 = vpack.c.bf16 %v8251_v44, %v8250_v60  ;;  %v2496_v6 = vadd.f32 %v2432_v32, %v2368_v57  ;;  %v2310_v32 = vsel %vm2248_vm0, %v12668_v52, %v2179_v43  ;;  %v2436_v13 = vmul.f32 %v9105_v19, %v2308_v48  ;;  %v9107_v52 = vld [vmem:[%s14780_s14 + $0x50] sm:$0xff]  ;;  %v15622_v21 = vld [vmem:[#allocation122_spill] sm:$0xff] }
 0x624   : > { %7908 = vmatmul.mubr.msk.bf16.vlgmr.msra.gmra.mrb[32].mxu1 %vm3257_vm1, %v2530_v41  ;;  %v2369_v41 = vmul.f32 %v9104_v10, %v15619_v27  ;;  %v2495_v7 = vadd.f32 %v2431_v22, %v2367_v5  ;;  %v8259_v60 = vpop.permute.xlu0 %8258  ;;  %v2372_v11 = vmul.f32 %v9106_v16, %v15620_v36  ;;  %v2435_v43 = vmul.f32 %v9107_v52, %v2307_v30  ;;  %v15623_v37 = vld [vmem:[#allocation135_spill] sm:$0xff] }
 0x625   : > { %7911 = vmatprep.mubr.msk.bf16.mxu1 %vm3257_vm1, %v2531_v63  ;;  %7955 = vmatprep.subr.bf16.mxu1 %v3217_v25  ;;  %v2438_v53 = vmul.f32 %v11989_v58, %v2310_v32  ;;  %v8261_v40 = vunpack.i.h.bf16 %v8259_v60  ;;  %v8260_v22 = vunpack.i.l.bf16 %v8259_v60  ;;  %v2374_v46 = vmul.f32 %v15586_v50, %v15621_v23 }
 0x626   : > { %v2183_v55 = vpop.permute.xlu1 %2182  ;;  %7956 = vmatpush3.bf16.msra.mxu1 %v3217_v25  ;;  %v2497_v44 = vadd.f32 %v2433_v4, %v2369_v41  ;;  %v2532_v63 = vpack.c.bf16 %v2496_v6, %v2495_v7  ;;  %v2437_v51 = vmul.f32 %v11966_v24, %v2309_v35  ;;  %v2371_v58 = vmul.f32 %v9108_v62, %v15622_v21 }
 0x627   : > { %v2500_v4 = vadd.f32 %v2436_v13, %v2372_v11  ;;  %v2373_v5 = vmul.f32 %v15589_v12, %v15623_v37  ;;  %v2502_v6 = vadd.f32 %v2438_v53, %v2374_v46  ;;  %v2312_v10 = vsel %vm2248_vm0, %v1991_v26, %v2183_v55  ;;  %v15624_v12 = vld [vmem:[#allocation150_spill] sm:$0xff] }
 0x628   : > { %v2533_v1 = vpack.c.bf16 %v2498_v17, %v2497_v44  ;;  %v2499_v50 = vadd.f32 %v2435_v43, %v2371_v58  ;;  %v3219_v17 = vpack.c.bf16 %v8261_v40, %v8260_v22  ;;  %v2311_v7 = vsel %vm2248_vm0, %v12678_v45, %v12712_v47  ;;  %v8269_v30 = vpop.permute.xlu0 %8268  ;;  %v15625_v45 = vld [vmem:[#allocation147_spill] sm:$0xff] }
 0x629   : > { %v2501_v48 = vadd.f32 %v2437_v51, %v2373_v5  ;;  %v2440_v44 = vmul.f32 %v12228_v61, %v2312_v10  ;;  %v2376_v26 = vmul.f32 %v12188_v3, %v15624_v12  ;;  %v2439_v60 = vmul.f32 %v12206_v33, %v2311_v7  ;;  %v15626_v51 = vld [vmem:[#allocation94_spill] sm:$0xff] }
 0x62a   : > { %v8254_v57 = vpop.permute.xlu1 %8253  ;;  %v2534_v32 = vpack.c.bf16 %v2500_v4, %v2499_v50  ;;  %v8270_v19 = vunpack.i.l.bf16 %v8269_v30  ;;  %v2375_v47 = vmul.f32 %v15594_v56, %v15625_v45 }
 0x62b   : > { %v8256_v25 = vunpack.i.h.bf16 %v8254_v57  ;;  %v8255_v14 = vunpack.i.l.bf16 %v8254_v57  ;;  %v2535_v55 = vpack.c.bf16 %v2502_v6, %v2501_v48  ;;  %v2504_v61 = vadd.f32 %v2440_v44, %v2376_v26 }
 0x62c   : > { %7912 = vmatmul.mubr.msk.bf16.gmra.mrb[36].mxu1 %vm3257_vm1, %v2532_v63  ;;  %v8271_v63 = vunpack.i.h.bf16 %v8269_v30  ;;  %v2503_v16 = vadd.f32 %v2439_v60, %v2375_v47  ;;  %v8279_v52 = vpop.permute.xlu0 %8278 }
 0x62d   : > { %7915 = vmatprep.mubr.msk.bf16.mxu1 %vm3257_vm1, %v2533_v1  ;;  %v3218_v2 = vpack.c.bf16 %v8256_v25, %v8255_v14  ;;  %v8281_v43 = vunpack.i.h.bf16 %v8279_v52  ;;  %v8280_v1 = vunpack.i.l.bf16 %v8279_v52 }
 0x62e   : > { %v8264_v27 = vpop.permute.xlu1 %8263  ;;  %v3221_v11 = vpack.c.bf16 %v8271_v63, %v8270_v19  ;;  %v2536_v33 = vpack.c.bf16 %v2504_v61, %v2503_v16 }
 0x62f   : > { %v8266_v41 = vunpack.i.h.bf16 %v8264_v27  ;;  %v8265_v24 = vunpack.i.l.bf16 %v8264_v27  ;;  %7957 = vmatprep.subr.bf16.mxu1 %v3218_v2  ;;  %v3223_v57 = vpack.c.bf16 %v8281_v43, %v8280_v1 }
 0x630   : > { %7958 = vmatpush3.bf16.msra.mxu1 %v3218_v2 }
 0x631   : > { %7959 = vmatprep.subr.bf16.mxu1 %v3219_v17  ;;  %v3220_v13 = vpack.c.bf16 %v8266_v41, %v8265_v24 }
 0x632   : > { %v8274_v35 = vpop.permute.xlu1 %8273 }
 0x633   : > { %v8276_v36 = vunpack.i.h.bf16 %v8274_v35  ;;  %v8275_v3 = vunpack.i.l.bf16 %v8274_v35 }
 0x634   : > { %7916 = vmatmul.mubr.msk.bf16.gmra.mrb[40].mxu1 %vm3257_vm1, %v2534_v32 }
 0x635   : > { %7919 = vmatprep.mubr.msk.bf16.mxu1 %vm3257_vm1, %v2535_v55  ;;  %7960 = vmatpush3.bf16.msra.mxu1 %v3219_v17  ;;  %v3222_v53 = vpack.c.bf16 %v8276_v36, %v8275_v3 }
 0x636   : > { %7961 = vmatprep.subr.bf16.mxu1 %v3220_v13 }
 0x639   : > { %7962 = vmatpush3.bf16.msra.mxu1 %v3220_v13 }
 0x63a   : > { %7963 = vmatprep.subr.bf16.mxu1 %v3221_v11 }
 0x63c   : > { %7920 = vmatmul.mubr.msk.bf16.gmra.mrb[44].mxu1 %vm3257_vm1, %v2536_v33 }
 0x63d   : > { %7964 = vmatpush3.bf16.msra.mxu1 %v3221_v11 }
 0x63e   : > { %7965 = vmatprep.subr.bf16.mxu1 %v3222_v53 }
 0x641   : > { %7966 = vmatpush3.bf16.msra.mxu1 %v3222_v53 }
 0x642   : > { %7967 = vmatprep.subr.bf16.mxu1 %v3223_v57 }
 0x645   : > { %7968 = vmatpush3.bf16.msra.mxu1 %v3223_v57 }
 0x666   : > { %v3843_v56 = vpop.xlane.xlu0 %3842 }
 0x667   : > { %v3968_v14 = vsub.f32 %v12253_v28, %v3843_v56 }
 0x66a   : > { %v3845_v40 = vpop.xlane.xlu0 %3844 }
 0x66b   : > { %v3969_v22 = vsub.f32 %v12292_v8, %v3845_v40 }
 0x66d   : > { %v4031_v23 = vpack.c.bf16 %v3969_v22, %v3968_v14 }
 0x66e   : > { %v3841_v25 = vpop.xlane.xlu0 %3840 }
 0x66f   : > { %v3967_v62 = vsub.f32 %v15626_v51, %v3841_v25  ;;  %v4066_v2 = vmul.bf16 1069105081, %v4031_v23  ;;  %v12850_v51 = vld [vmem:[#allocation11 + $0x10] sm:$0xff] }
 0x671   : > { %v3839_v46 = vpop.xlane.xlu1 %3838 }
 0x672   : > { %v3966_v21 = vsub.f32 %v12352_v39, %v3839_v46  ;;  %v3853_v58 = vpop.xlane.xlu0 %3852 }
 0x673   : > { %v3973_v27 = vsub.f32 %v12361_v54, %v3853_v58 }
 0x674   : > { %v4030_v4 = vpack.c.bf16 %v3967_v62, %v3966_v21 }
 0x675   : > { %v3851_v37 = vpop.xlane.xlu1 %3850 }
 0x676   : > { %v4063_v5 = vmul.bf16 1069105081, %v4030_v4  ;;  %v3972_v6 = vsub.f32 %v12384_v9, %v3851_v37  ;;  %v3849_v10 = vpop.xlane.xlu0 %3848 }
 0x677   : > { %v3971_v50 = vsub.f32 %v12401_v59, %v3849_v10 }
 0x678   : > { %8671 = vpow.bf16 %v4063_v5  ;;  %v4033_v8 = vpack.c.bf16 %v3973_v27, %v3972_v6 }
 0x679   : > { %8673 = vpow.bf16 %v4066_v2  ;;  %v3847_v28 = vpop.xlane.xlu1 %3846 }
 0x67a   : > { %v3970_v41 = vsub.f32 %v12427_v20, %v3847_v28  ;;  %v4072_v17 = vmul.bf16 1069105081, %v4033_v8 }
 0x67b   : > { %v3861_v24 = vpop.xlane.xlu0 %3860 }
 0x67c   : > { %v4032_v39 = vpack.c.bf16 %v3971_v50, %v3970_v41  ;;  %v3977_v9 = vsub.f32 %v12447_v34, %v3861_v24 }
 0x67d   : > { %v3859_v48 = vpop.xlane.xlu1 %3858 }
 0x67e   : > { %v4069_v7 = vmul.bf16 1069105081, %v4032_v39  ;;  %v3976_v30 = vsub.f32 %v12469_v49, %v3859_v48 }
 0x67f   : > { %v3857_v32 = vpop.xlane.xlu0 %3856 }
 0x680   : > { %8675 = vpow.bf16 %v4069_v7  ;;  %v4035_v54 = vpack.c.bf16 %v3977_v9, %v3976_v30  ;;  %v3975_v59 = vsub.f32 %v12484_v18, %v3857_v32  ;;  %v12868_v30 = vld [vmem:[#allocation11 + $0x18] sm:$0xff] }
 0x681   : > { %8677 = vpow.bf16 %v4072_v17 }
 0x682   : > { %v4078_v49 = vmul.bf16 1069105081, %v4035_v54 }
 0x683   : > { %v3855_v44 = vpop.xlane.xlu1 %3854  ;;  %v12817_v12 = vpop.eup %8671 }
 0x684   : > { %15627 = vst [vmem:[#allocation71_spill] sm:$0xff] %v12817_v12  ;;  %v3974_v20 = vsub.f32 %v12507_v29, %v3855_v44  ;;  %v12821_v26 = vpop.eup %8673  ;;  %7939 = vmatprep.mubr.bf16.mxu0 %v12817_v12 }
 0x685   : > { %15628 = vst [vmem:[#allocation102_spill] sm:$0xff] %v12821_v26  ;;  %v3865_v55 = vpop.xlane.xlu0 %3864  ;;  %7940 = vmatmul.mubr.bf16.vlgmr.msra.gmra.mrb[64].mxu0 %v12821_v26 }
 0x686   : > { %v4034_v60 = vpack.c.bf16 %v3975_v59, %v3974_v20  ;;  %v3979_v19 = vsub.f32 %v12527_v15, %v3865_v55  ;;  %v12880_v59 = vld [vmem:[#allocation11 + $0x8] sm:$0xff] }
 0x687   : > { %v3863_v63 = vpop.xlane.xlu1 %3862 }
 0x688   : > { %v4075_v34 = vmul.bf16 1069105081, %v4034_v60  ;;  %v3978_v13 = vsub.f32 %v12546_v31, %v3863_v63 }
 0x689   : > { %v3869_v35 = vpop.xlane.xlu0 %3868 }
 0x68a   : > { %8679 = vpow.bf16 %v4075_v34  ;;  %v4036_v18 = vpack.c.bf16 %v3979_v19, %v3978_v13  ;;  %v3981_v16 = vsub.f32 %v12563_v0, %v3869_v35 }
 0x68b   : > { %8681 = vpow.bf16 %v4078_v49  ;;  %v12827_v29 = vpop.eup %8675  ;;  %v15635_v49 = vld [vmem:[#allocation152_spill] sm:$0xff] }
 0x68c   : > { %15629 = vst [vmem:[#allocation103_spill] sm:$0xff] %v12827_v29  ;;  %v4081_v45 = vmul.bf16 1069105081, %v4036_v18  ;;  %v3867_v47 = vpop.xlane.xlu1 %3866  ;;  %v12829_v61 = vpop.eup %8677  ;;  %7943 = vmatprep.mubr.bf16.mxu0 %v12827_v29  ;;  %v15636_v18 = vld [vmem:[#allocation32_spill] sm:$0xff] }
 0x68d   : > { %15630 = vst [vmem:[#allocation50_spill] sm:$0xff] %v12829_v61  ;;  %v3980_v36 = vsub.f32 %v12580_v42, %v3867_v47  ;;  %v8289_v3 = vpop.permute.xlu0 %8288  ;;  %7944 = vmatmul.mubr.bf16.gmra.mrb[68].mxu0 %v12829_v61 }
 0x68e   : > { %8683 = vpow.bf16 %v4081_v45  ;;  %v8291_v15 = vunpack.i.h.bf16 %v8289_v3  ;;  %v8290_v31 = vunpack.i.l.bf16 %v8289_v3 }
 0x68f   : > { %v4037_v11 = vpack.c.bf16 %v3981_v16, %v3980_v36  ;;  %v15637_v16 = vld [vmem:[#allocation151_spill] sm:$0xff] }
 0x690   : > { %v8284_v52 = vpop.permute.xlu1 %8283  ;;  %v3225_v33 = vpack.c.bf16 %v8291_v15, %v8290_v31  ;;  %v15638_v15 = vld [vmem:[#allocation97_spill] sm:$0xff] }
 0x691   : > { %v4084_v43 = vmul.bf16 1069105081, %v4037_v11  ;;  %v8286_v1 = vunpack.i.h.bf16 %v8284_v52  ;;  %v8285_v53 = vunpack.i.l.bf16 %v8284_v52 }
 0x692   : > { %7987 = vmatprep.subr.bf16.mxu0 %v3225_v33 }
 0x693   : > { %8685 = vpow.bf16 %v4084_v43  ;;  %7988 = vmatpush3.bf16.msra.mxu0 %v3225_v33  ;;  %v3224_v0 = vpack.c.bf16 %v8286_v1, %v8285_v53  ;;  %v15639_v33 = vld [vmem:[#allocation153_spill] sm:$0xff]  ;;  %v15640_v1 = vld [vmem:[#allocation110_spill] sm:$0xff] }
 0x694   : > { %v8294_v57 = vpop.permute.xlu1 %8293 }
 0x695   : > { %v12835_v42 = vpop.eup %8679  ;;  %v8296_v56 = vunpack.i.h.bf16 %v8294_v57  ;;  %v8295_v40 = vunpack.i.l.bf16 %v8294_v57  ;;  %7969 = vmatprep.subr.bf16.mxu1 %v3224_v0 }
 0x696   : > { %15631 = vst [vmem:[#allocation43_spill] sm:$0xff] %v12835_v42  ;;  %v12837_v22 = vpop.eup %8681  ;;  %7970 = vmatpush3.bf16.msra.mxu1 %v3224_v0  ;;  %7947 = vmatprep.mubr.bf16.mxu0 %v12835_v42  ;;  %v15641_v0 = vld [vmem:[#allocation85_spill] sm:$0xff] }
 0x697   : > { %15632 = vst [vmem:[#allocation87_spill] sm:$0xff] %v12837_v22  ;;  %7948 = vmatmul.mubr.bf16.gmra.mrb[72].mxu0 %v12837_v22  ;;  %v12841_v25 = vpack.c.bf16 %v8296_v56, %v8295_v40  ;;  %v15642_v56 = vld [vmem:[#allocation37_spill] sm:$0xff] }
 0x699   : > { %v12843_v14 = vpop.eup %8683  ;;  %8019 = vmatprep.subr.bf16.mxu1 %v12841_v25 }
 0x69a   : > { %15633 = vst [vmem:[#allocation52_spill] sm:$0xff] %v12843_v14  ;;  %7951 = vmatprep.mubr.bf16.mxu0 %v12843_v14  ;;  %v9113_v14 = vld [vmem:[#allocation11 + $0x20] sm:$0xff] }
 0x69e   : > { %v12847_v23 = vpop.eup %8685 }
 0x69f   : > { %15634 = vst [vmem:[#allocation58_spill] sm:$0xff] %v12847_v23  ;;  %7952 = vmatmul.mubr.bf16.gmra.mrb[76].mxu0 %v12847_v23 }
 0x6b5   : > { %v7845_v46 = vpop.f32.mrb[16].mxu1 }
 0x6b6   : > { %v12853_v62 = vadd.f32 %v12850_v51, %v7845_v46  ;;  %v3485_v21 = vpop.f32.mrb[17].mxu1  ;;  %v15643_v46 = vld [vmem:[#allocation31_spill] sm:$0xff] }
 0x6b7   : > { %v7846_v58 = vpop.f32.mrb[18].mxu1  ;;  %v12857_v2 = vadd.f32 %v3485_v21, %v12320_v38 }
 0x6b8   : > { %3874 = vmax.xlane.f32.xlu1 %v12853_v62  ;;  %v3488_v4 = vpop.f32.mrb[19].mxu1  ;;  %v12871_v32 = vadd.f32 %v12868_v30, %v7846_v58  ;;  %v15644_v58 = vld [vmem:[#allocation55_spill] sm:$0xff] }
 0x6b9   : > { %v12883_v20 = vadd.f32 %v12880_v59, %v3488_v4 }
 0x6bc   : > { %3870 = vmax.xlane.f32.xlu1 %v12857_v2 }
 0x6bd   : > { %v7849_v37 = vpop.f32.mrb[20].mxu1 }
 0x6be   : > { %v3501_v5 = vpop.f32.mrb[21].mxu1  ;;  %v12888_v63 = vadd.f32 %v7849_v37, %v15635_v49  ;;  %v15645_v37 = vld [vmem:[#allocation38_spill] sm:$0xff] }
 0x6bf   : > { %v7850_v6 = vpop.f32.mrb[22].mxu1  ;;  %v12900_v45 = vadd.f32 %v3501_v5, %v15636_v18 }
 0x6c0   : > { %v3504_v10 = vpop.f32.mrb[23].mxu1  ;;  %v12907_v36 = vadd.f32 %v7850_v6, %v15637_v16  ;;  %v15646_v6 = vld [vmem:[#allocation92_spill] sm:$0xff]  ;;  %v15649_v16 = vld [vmem:[#allocation33_spill] sm:$0xff] }
 0x6c1   : > { %v12921_v43 = vadd.f32 %v3504_v10, %v15639_v33  ;;  %v15650_v33 = vld [vmem:[#allocation41_spill] sm:$0xff] }
 0x6c6   : > { %v7853_v27 = vpop.f32.mrb[24].mxu1 }
 0x6c7   : > { %v7877_v8 = vpop.f32.mrb[48].mxu0  ;;  %v3517_v28 = vpop.f32.mrb[25].mxu1  ;;  %v12912_v31 = vadd.f32 %v7853_v27, %v15638_v15 }
 0x6c8   : > { %v12861_v50 = vadd.f32 %v12850_v51, %v7877_v8  ;;  %v3630_v41 = vpop.f32.mrb[49].mxu0  ;;  %v7854_v24 = vpop.f32.mrb[26].mxu1  ;;  %v12924_v53 = vadd.f32 %v3517_v28, %v15640_v1 }
 0x6c9   : > { %v12864_v39 = vadd.f32 %v3630_v41, %v12320_v38  ;;  %v7878_v17 = vpop.f32.mrb[50].mxu0  ;;  %v3520_v48 = vpop.f32.mrb[27].mxu1  ;;  %v12929_v57 = vadd.f32 %v7854_v24, %v15641_v0  ;;  %v15647_v41 = vld [vmem:[#allocation27_spill] sm:$0xff] }
 0x6ca   : > { %3906 = vmax.xlane.f32.xlu0 %v12861_v50  ;;  %v3633_v7 = vpop.f32.mrb[51].mxu0  ;;  %v12874_v9 = vadd.f32 %v12868_v30, %v7878_v17  ;;  %v12937_v21 = vadd.f32 %v3520_v48, %v15643_v46 }
 0x6cb   : > { %3902 = vmax.xlane.f32.xlu1 %v12864_v39  ;;  %v12897_v35 = vadd.f32 %v12880_v59, %v3633_v7 }
 0x6ce   : > { %3876 = vmax.xlane.f32.xlu0 %v12871_v32  ;;  %v7857_v54 = vpop.f32.mrb[28].mxu1 }
 0x6cf   : > { %v12877_v38 = vpop.f32.mrb[52].mxu0  ;;  %3908 = vmax.xlane.f32.xlu1 %v12874_v9  ;;  %v3533_v44 = vpop.f32.mrb[29].mxu1  ;;  %v12932_v40 = vadd.f32 %v7857_v54, %v15642_v56 }
 0x6d0   : > { %v12885_v55 = vpop.f32.mrb[53].mxu0  ;;  %v7858_v60 = vpop.f32.mrb[30].mxu1  ;;  %v12940_v4 = vadd.f32 %v3533_v44, %v15644_v58  ;;  %v15648_v44 = vld [vmem:[#allocation35_spill] sm:$0xff] }
 0x6d1   : > { %v12890_v34 = vpop.f32.mrb[54].mxu0  ;;  %v3536_v19 = vpop.f32.mrb[31].mxu1  ;;  %v12945_v5 = vadd.f32 %v7858_v60, %v15645_v37 }
 0x6d2   : > { %3872 = vmax.xlane.f32.xlu0 %v12883_v20  ;;  %v12893_v13 = vpop.f32.mrb[55].mxu0  ;;  %v12949_v10 = vadd.f32 %v3536_v19, %v15646_v6 }
 0x6d3   : > { %3882 = vmax.xlane.f32.xlu1 %v12888_v63 }
 0x6d6   : > { %3904 = vmax.xlane.f32.xlu0 %v12897_v35 }
 0x6d7   : > { %3878 = vmax.xlane.f32.xlu1 %v12900_v45  ;;  %v12904_v47 = vpop.f32.mrb[56].mxu0 }
 0x6d8   : > { %v12909_v3 = vpop.f32.mrb[57].mxu0 }
 0x6d9   : > { %v12914_v11 = vpop.f32.mrb[58].mxu0 }
 0x6da   : > { %3884 = vmax.xlane.f32.xlu0 %v12907_v36  ;;  %v12917_v52 = vpop.f32.mrb[59].mxu0 }
 0x6db   : > { %3890 = vmax.xlane.f32.xlu1 %v12912_v31 }
 0x6de   : > { %3880 = vmax.xlane.f32.xlu0 %v12921_v43 }
 0x6df   : > { %3886 = vmax.xlane.f32.xlu1 %v12924_v53 }
 0x6e2   : > { %3892 = vmax.xlane.f32.xlu0 %v12929_v57 }
 0x6e3   : > { %3898 = vmax.xlane.f32.xlu1 %v12932_v40 }
 0x6e6   : > { %3888 = vmax.xlane.f32.xlu0 %v12937_v21 }
 0x6e7   : > { %3894 = vmax.xlane.f32.xlu1 %v12940_v4 }
 0x6ea   : > { %3900 = vmax.xlane.f32.xlu0 %v12945_v5 }
 0x6ee   : > { %3896 = vmax.xlane.f32.xlu0 %v12949_v10 }
 0x6f5   : > { %v12952_v27 = vpop.f32.mrb[60].mxu0 }
 0x6f6   : > { %v12954_v28 = vpop.f32.mrb[61].mxu0 }
 0x6f7   : > { %v7909_v8 = vpop.f32.mrb[32].mxu1  ;;  %v12958_v17 = vpop.f32.mrb[62].mxu0 }
 0x6f8   : > { %8303 = vrot.lane.b32.xlu1 %v15647_v41, %s9408_s19  ;;  %v3775_v24 = vpop.f32.mrb[33].mxu1  ;;  %v12960_v7 = vpop.f32.mrb[63].mxu0 }
 0x6f9   : > { %v7910_v48 = vpop.f32.mrb[34].mxu1 }
 0x6fa   : > { %v3778_v54 = vpop.f32.mrb[35].mxu1 }
 0x6fb   : > { %v13003_v23 = vadd.f32 %v12880_v59, %v3778_v54 }
 0x6fc   : > { %8308 = vrot.lane.b32.xlu1 %v15648_v44, %s9407_s17 }
 0x6ff   : > { %v7913_v60 = vpop.f32.mrb[36].mxu1 }
 0x700   : > { %8313 = vrot.lane.b32.xlu1 %v15648_v44, %s9408_s19  ;;  %v3791_v49 = vpop.f32.mrb[37].mxu1  ;;  %v12996_v44 = vadd.f32 %v12868_v30, %v7910_v48  ;;  %v9114_v30 = vld [vmem:[#allocation11 + $0x28] sm:$0xff] }
 0x701   : > { %v7914_v19 = vpop.f32.mrb[38].mxu1 }
 0x702   : > { %v3794_v18 = vpop.f32.mrb[39].mxu1 }
 0x703   : > { %v13018_v48 = vadd.f32 %v9114_v30, %v3794_v18  ;;  %v15654_v18 = vld [vmem:[#allocation39_spill] sm:$0xff] }
 0x704   : > { %8298 = vrot.lane.b32.xlu0 %v15647_v41, %s9407_s17  ;;  %8323 = vrot.lane.b32.xlu1 %v15649_v16, %s9408_s19  ;;  %v12993_v41 = vadd.f32 %v12850_v51, %v7909_v8  ;;  %v13008_v51 = vadd.f32 %v9113_v14, %v12885_v55  ;;  %v13011_v8 = vadd.f32 %v9114_v30, %v12893_v13  ;;  %v9116_v55 = vld [vmem:[#allocation11 + $0x38] sm:$0xff] }
 0x705   : > { %v13023_v54 = vadd.f32 %v9116_v55, %v12890_v34  ;;  %v13025_v13 = vadd.f32 %v9116_v55, %v7914_v19  ;;  %v15655_v34 = vld [vmem:[#allocation47_spill] sm:$0xff] }
 0x707   : > { %v12970_v15 = vpop.f32.mrb[40].mxu1  ;;  %15651 = vst [vmem:[#allocation57_spill] sm:$0xff] %v13025_v13 }
 0x708   : > { %8318 = vrot.lane.b32.xlu0 %v15649_v16, %s9407_s17  ;;  %8333 = vrot.lane.b32.xlu1 %v15650_v33, %s9408_s19  ;;  %v12976_v1 = vpop.f32.mrb[41].mxu1  ;;  %v9112_v16 = vld [vmem:[#allocation11] sm:$0xff] }
 0x709   : > { %v12978_v0 = vpop.f32.mrb[42].mxu1 }
 0x70a   : > { %v12980_v56 = vpop.f32.mrb[43].mxu1 }
 0x70c   : > { %8328 = vrot.lane.b32.xlu0 %v15650_v33, %s9407_s17  ;;  %v13000_v33 = vadd.f32 %v9112_v16, %v3775_v24  ;;  %v9115_v24 = vld [vmem:[#allocation11 + $0x30] sm:$0xff]  ;;  %v13029_v16 = vadd.f32 %v9113_v14, %v3791_v49  ;;  %v15656_v49 = vld [vmem:[#allocation46_spill] sm:$0xff] }
 0x70d   : > { %v13016_v59 = vadd.f32 %v9115_v24, %v12877_v38  ;;  %v13032_v38 = vadd.f32 %v9115_v24, %v7913_v60 }
 0x70e   : > { %15652 = vst [vmem:[#allocation130_spill] sm:$0xff] %v13029_v16 }
 0x70f   : > { %v12984_v46 = vpop.f32.mrb[44].mxu1  ;;  %15653 = vst [vmem:[#allocation82_spill] sm:$0xff] %v13032_v38 }
 0x710   : > { %v12986_v58 = vpop.f32.mrb[45].mxu1 }
 0x711   : > { %v12988_v37 = vpop.f32.mrb[46].mxu1 }
 0x712   : > { %v12990_v6 = vpop.f32.mrb[47].mxu1 }
 0x72b   : > { %3938 = vmax.xlane.f32.xlu0 %v12993_v41 }
 0x72c   : > { %3940 = vmax.xlane.f32.xlu1 %v12996_v44 }
 0x72f   : > { %3934 = vmax.xlane.f32.xlu0 %v13000_v33 }
 0x730   : > { %3936 = vmax.xlane.f32.xlu1 %v13003_v23 }
 0x733   : > { %3910 = vmax.xlane.f32.xlu0 %v13008_v51 }
 0x734   : > { %3912 = vmax.xlane.f32.xlu1 %v13011_v8 }
 0x737   : > { %3914 = vmax.xlane.f32.xlu0 %v13016_v59 }
 0x738   : > { %3944 = vmax.xlane.f32.xlu1 %v13018_v48 }
 0x73b   : > { %3916 = vmax.xlane.f32.xlu0 %v13023_v54 }
 0x73c   : > { %3948 = vmax.xlane.f32.xlu1 %v13025_v13 }
 0x73f   : > { %3942 = vmax.xlane.f32.xlu0 %v13029_v16 }
 0x743   : > { %3946 = vmax.xlane.f32.xlu0 %v13032_v38 }
 0x745   : > { %v3875_v30 = vpop.xlane.xlu1 %3874 }
 0x746   : > { %v3984_v26 = vsub.f32 %v12853_v62, %v3875_v30 }
 0x749   : > { %v3871_v19 = vpop.xlane.xlu1 %3870 }
 0x74d   : > { %8343 = vrot.lane.b32.xlu1 %v15654_v18, %s9408_s19 }
 0x751   : > { %8348 = vrot.lane.b32.xlu1 %v15655_v34, %s9407_s17 }
 0x755   : > { %8353 = vrot.lane.b32.xlu1 %v15655_v34, %s9408_s19 }
 0x757   : > { %v13041_v55 = vpop.xlane.xlu0 %3906 }
 0x758   : > { %v3903_v14 = vpop.xlane.xlu1 %3902  ;;  %v13047_v60 = vpop.f32.mrb[64].mxu0 }
 0x759   : > { %8363 = vrot.lane.b32.xlu1 %v15656_v49, %s9408_s19  ;;  %8338 = vrot.lane.b32.xlu0 %v15654_v18, %s9407_s17  ;;  %15657 = vst [vmem:[#allocation44_spill] sm:$0xff] %v13047_v60  ;;  %v13049_v24 = vpop.f32.mrb[65].mxu0  ;;  %v3982_v60 = vsub.f32 %v12857_v2, %v3871_v19  ;;  %v3998_v62 = vsub.f32 %v12864_v39, %v3903_v14 }
 0x75a   : > { %15658 = vst [vmem:[#allocation56_spill] sm:$0xff] %v13049_v24  ;;  %v13051_v42 = vpop.f32.mrb[66].mxu0 }
 0x75b   : > { %v3877_v22 = vpop.xlane.xlu0 %3876  ;;  %15659 = vst [vmem:[#allocation106_spill] sm:$0xff] %v13051_v42  ;;  %v13056_v34 = vpop.f32.mrb[67].mxu0 }
 0x75c   : > { %v3985_v61 = vsub.f32 %v12871_v32, %v3877_v22  ;;  %v13054_v29 = vpop.xlane.xlu1 %3908  ;;  %15660 = vst [vmem:[#allocation88_spill] sm:$0xff] %v13056_v34 }
 0x75d   : > { %8358 = vrot.lane.b32.xlu0 %v15656_v49, %s9407_s17 }
 0x75e   : > { %v4039_v12 = vpack.c.bf16 %v3985_v61, %v3984_v26 }
 0x75f   : > { %v3873_v18 = vpop.xlane.xlu0 %3872 }
 0x760   : > { %v3983_v24 = vsub.f32 %v12883_v20, %v3873_v18  ;;  %v3883_v38 = vpop.xlane.xlu1 %3882  ;;  %v13063_v13 = vpop.f32.mrb[68].mxu0  ;;  %v4090_v32 = vmul.bf16 1069105081, %v4039_v12 }
 0x761   : > { %v13065_v22 = vpop.f32.mrb[69].mxu0  ;;  %v3988_v12 = vsub.f32 %v12888_v63, %v3883_v38 }
 0x762   : > { %v4038_v42 = vpack.c.bf16 %v3983_v24, %v3982_v60  ;;  %15661 = vst [vmem:[#allocation155_spill] sm:$0xff] %v13065_v22  ;;  %v13067_v34 = vpop.f32.mrb[70].mxu0 }
 0x763   : > { %v3905_v16 = vpop.xlane.xlu0 %3904  ;;  %v13071_v49 = vpop.f32.mrb[71].mxu0 }
 0x764   : > { %v4087_v30 = vmul.bf16 1069105081, %v4038_v42  ;;  %v3999_v26 = vsub.f32 %v12897_v35, %v3905_v16  ;;  %v3879_v61 = vpop.xlane.xlu1 %3878  ;;  %15662 = vst [vmem:[#allocation59_spill] sm:$0xff] %v13071_v49 }
 0x765   : > { %v3986_v16 = vsub.f32 %v12900_v45, %v3879_v61 }
 0x766   : > { %8687 = vpow.bf16 %v4087_v30  ;;  %v4046_v2 = vpack.c.bf16 %v3999_v26, %v3998_v62 }
 0x767   : > { %8689 = vpow.bf16 %v4090_v32  ;;  %v3885_v20 = vpop.xlane.xlu0 %3884 }
 0x768   : > { %v4111_v19 = vmul.bf16 1069105081, %v4046_v2  ;;  %v3989_v60 = vsub.f32 %v12907_v36, %v3885_v20  ;;  %v3891_v24 = vpop.xlane.xlu1 %3890 }
 0x769   : > { %v3992_v45 = vsub.f32 %v12912_v31, %v3891_v24 }
 0x76a   : > { %8691 = vpow.bf16 %v4111_v19  ;;  %v13075_v18 = vpop.f32.mrb[72].mxu0  ;;  %v4041_v39 = vpack.c.bf16 %v3989_v60, %v3988_v12 }
 0x76b   : > { %v13077_v42 = vpop.f32.mrb[73].mxu0  ;;  %v3881_v35 = vpop.xlane.xlu0 %3880 }
 0x76c   : > { %v3987_v14 = vsub.f32 %v12921_v43, %v3881_v35  ;;  %v3887_v62 = vpop.xlane.xlu1 %3886  ;;  %v13081_v32 = vpop.f32.mrb[74].mxu0  ;;  %v4096_v26 = vmul.bf16 1069105081, %v4041_v39 }
 0x76d   : > { %v13083_v30 = vpop.f32.mrb[75].mxu0 }
 0x76e   : > { %v4040_v36 = vpack.c.bf16 %v3987_v14, %v3986_v16 }
 0x76f   : > { %v3893_v2 = vpop.xlane.xlu0 %3892 }
 0x770   : > { %v4093_v63 = vmul.bf16 1069105081, %v4040_v36  ;;  %v3993_v38 = vsub.f32 %v12929_v57, %v3893_v2  ;;  %v3899_v20 = vpop.xlane.xlu1 %3898  ;;  %v3990_v57 = vsub.f32 %v12924_v53, %v3887_v62 }
 0x771   : > { %v13086_v19 = vpop.eup %8687 }
 0x772   : > { %v13088_v60 = vpop.eup %8689  ;;  %8693 = vpow.bf16 %v4093_v63  ;;  %v13091_v43 = vpop.f32.mrb[76].mxu0  ;;  %7971 = vmatprep.mubr.bf16.mxu1 %v13086_v19  ;;  %v4043_v39 = vpack.c.bf16 %v3993_v38, %v3992_v45  ;;  %v9117_v45 = vld [vmem:[#allocation11 + $0x40] sm:$0xff] }
 0x773   : > { %8695 = vpow.bf16 %v4096_v26  ;;  %v13094_v61 = vpop.f32.mrb[77].mxu0  ;;  %v3889_v12 = vpop.xlane.xlu0 %3888  ;;  %7972 = vmatmul.mubr.bf16.vlgmr.msra.gmra.mrb[48].mxu1 %v13088_v60 }
 0x774   : > { %v3991_v35 = vsub.f32 %v12937_v21, %v3889_v12  ;;  %8020 = vmatpush3.bf16.msra.mxu1 %v12841_v25  ;;  %v3895_v16 = vpop.xlane.xlu1 %3894  ;;  %v13100_v31 = vpop.f32.mrb[78].mxu0  ;;  %v4102_v2 = vmul.bf16 1069105081, %v4043_v39  ;;  %v13109_v25 = vadd.f32 %v9117_v45, %v12909_v3  ;;  %v3996_v12 = vsub.f32 %v12932_v40, %v3899_v20 }
 0x775   : > { %15663 = vst [vmem:[#allocation49_spill] sm:$0xff] %v13100_v31  ;;  %v13102_v24 = vpop.eup %8691  ;;  %v13104_v14 = vpop.f32.mrb[79].mxu0  ;;  %v9118_v31 = vld [vmem:[#allocation11 + $0x48] sm:$0xff]  ;;  %v3994_v39 = vsub.f32 %v12940_v4, %v3895_v16 }
 0x776   : > { %15664 = vst [vmem:[#allocation84_spill] sm:$0xff] %v13104_v14  ;;  %v4042_v36 = vpack.c.bf16 %v3991_v35, %v3990_v57  ;;  %8003 = vmatprep.mubr.bf16.mxu0 %v13102_v24  ;;  %v13113_v57 = vadd.f32 %v9118_v31, %v12917_v52  ;;  %v9119_v52 = vld [vmem:[#allocation11 + $0x50] sm:$0xff]  ;;  %v13128_v4 = vadd.f32 %v9118_v31, %v12980_v56 }
 0x777   : > { %v3901_v26 = vpop.xlane.xlu0 %3900  ;;  %v13124_v20 = vadd.f32 %v9119_v52, %v12904_v47 }
 0x778   : > { %v4099_v63 = vmul.bf16 1069105081, %v4042_v36  ;;  %v3997_v53 = vsub.f32 %v12945_v5, %v3901_v26  ;;  %v8304_v62 = vpop.permute.xlu1 %8303 }
 0x779   : > { %v8306_v38 = vunpack.i.h.bf16 %v8304_v62  ;;  %v8305_v21 = vunpack.i.l.bf16 %v8304_v62 }
 0x77a   : > { %8697 = vpow.bf16 %v4099_v63  ;;  %v4045_v5 = vpack.c.bf16 %v3997_v53, %v3996_v12 }
 0x77b   : > { %v3897_v35 = vpop.xlane.xlu0 %3896  ;;  %v3234_v14 = vpack.c.bf16 %v8306_v38, %v8305_v21  ;;  %8699 = vpow.bf16 %v4102_v2 }
 0x77c   : > { %v3995_v36 = vsub.f32 %v12949_v10, %v3897_v35  ;;  %v8309_v26 = vpop.permute.xlu1 %8308  ;;  %3918 = vmax.xlane.f32.xlu0 %v13109_v25  ;;  %v4108_v16 = vmul.bf16 1069105081, %v4045_v5 }
 0x77d   : > { %v13118_v3 = vpop.eup %8693  ;;  %3920 = vmax.xlane.f32.xlu1 %v13113_v57  ;;  %8021 = vmatprep.subr.bf16.mxu1 %v3234_v14  ;;  %v8311_v21 = vunpack.i.h.bf16 %v8309_v26  ;;  %v8310_v47 = vunpack.i.l.bf16 %v8309_v26 }
 0x77e   : > { %v13121_v40 = vpop.eup %8695  ;;  %v4044_v2 = vpack.c.bf16 %v3995_v36, %v3994_v39  ;;  %7975 = vmatprep.mubr.bf16.mxu1 %v13118_v3  ;;  %8022 = vmatpush3.bf16.msra.mxu1 %v3234_v14  ;;  %v9120_v14 = vld [vmem:[#allocation11 + $0x58] sm:$0xff] }
 0x77f   : > { %v8299_v10 = vpop.permute.xlu0 %8298  ;;  %7976 = vmatmul.mubr.bf16.gmra.mrb[52].mxu1 %v13121_v40  ;;  %v13134_v56 = vadd.f32 %v9120_v14, %v12914_v11  ;;  %v13137_v39 = vadd.f32 %v9120_v14, %v12978_v0  ;;  %v3227_v11 = vpack.c.bf16 %v8311_v21, %v8310_v47  ;;  %v13144_v0 = vadd.f32 %v9117_v45, %v12976_v1 }
 0x780   : > { %v4105_v63 = vmul.bf16 1069105081, %v4044_v2  ;;  %v8301_v53 = vunpack.i.h.bf16 %v8299_v10  ;;  %v8300_v62 = vunpack.i.l.bf16 %v8299_v10  ;;  %v8314_v38 = vpop.permute.xlu1 %8313  ;;  %3922 = vmax.xlane.f32.xlu0 %v13124_v20 }
 0x781   : > { %v8316_v12 = vunpack.i.h.bf16 %v8314_v38  ;;  %v8315_v35 = vunpack.i.l.bf16 %v8314_v38  ;;  %3952 = vmax.xlane.f32.xlu1 %v13128_v4 }
 0x782   : > { %8701 = vpow.bf16 %v4105_v63  ;;  %v3226_v31 = vpack.c.bf16 %v8301_v53, %v8300_v62  ;;  %v9121_v63 = vld [vmem:[#allocation11 + $0x68] sm:$0xff] }
 0x783   : > { %v8319_v5 = vpop.permute.xlu0 %8318  ;;  %v3235_v36 = vpack.c.bf16 %v8316_v12, %v8315_v35  ;;  %8703 = vpow.bf16 %v4108_v16  ;;  %v13150_v53 = vadd.f32 %v9121_v63, %v12960_v7  ;;  %v4001_v12 = vsub.f32 %v12874_v9, %v13054_v29 }
 0x784   : > { %v8321_v2 = vunpack.i.h.bf16 %v8319_v5  ;;  %v8320_v10 = vunpack.i.l.bf16 %v8319_v5  ;;  %v8324_v49 = vpop.permute.xlu1 %8323  ;;  %3924 = vmax.xlane.f32.xlu0 %v13134_v56  ;;  %7989 = vmatprep.subr.bf16.mxu0 %v3226_v31  ;;  %v13158_v7 = vadd.f32 %v9119_v52, %v12970_v15  ;;  %v4000_v9 = vsub.f32 %v12861_v50, %v13041_v55  ;;  %v9123_v52 = vld [vmem:[#allocation11 + $0x60] sm:$0xff] }
 0x785   : > { %v13140_v26 = vpop.eup %8697  ;;  %v8326_v38 = vunpack.i.h.bf16 %v8324_v49  ;;  %v8325_v22 = vunpack.i.l.bf16 %v8324_v49  ;;  %3956 = vmax.xlane.f32.xlu1 %v13137_v39  ;;  %7990 = vmatpush3.bf16.msra.mxu0 %v3226_v31  ;;  %v13176_v50 = vadd.f32 %v9121_v63, %v12990_v6  ;;  %v13190_v6 = vadd.f32 %v9123_v52, %v12986_v58 }
 0x786   : > { %8023 = vmatprep.subr.bf16.mxu1 %v3235_v36  ;;  %7979 = vmatprep.mubr.bf16.mxu1 %v13140_v26  ;;  %v13147_v16 = vpop.eup %8699  ;;  %v3228_v45 = vpack.c.bf16 %v8321_v2, %v8320_v10  ;;  %v13170_v2 = vadd.f32 %v9123_v52, %v12954_v28  ;;  %v9124_v28 = vld [vmem:[#allocation11 + $0x70] sm:$0xff]  ;;  %v4176_v58 = vunpack.c.l.bf16 %v13088_v60 }
 0x787   : > { %7991 = vmatprep.subr.bf16.mxu0 %v3227_v11  ;;  %8024 = vmatpush3.bf16.msra.mxu1 %v3235_v36  ;;  %v8329_v62 = vpop.permute.xlu0 %8328  ;;  %v3236_v49 = vpack.c.bf16 %v8326_v38, %v8325_v22  ;;  %v9122_v22 = vld [vmem:[#allocation11 + $0x78] sm:$0xff]  ;;  %v4047_v36 = vpack.c.bf16 %v4001_v12, %v4000_v9  ;;  %v13182_v10 = vadd.f32 %v9124_v28, %v12952_v27  ;;  %v4177_v27 = vunpack.c.h.bf16 %v13088_v60 }
 0x788   : > { %7980 = vmatmul.mubr.bf16.gmra.mrb[56].mxu1 %v13147_v16  ;;  %v8334_v1 = vpop.permute.xlu1 %8333  ;;  %3950 = vmax.xlane.f32.xlu0 %v13144_v0  ;;  %v8331_v21 = vunpack.i.h.bf16 %v8329_v62  ;;  %v8330_v47 = vunpack.i.l.bf16 %v8329_v62  ;;  %v13161_v29 = vadd.f32 %v9122_v22, %v12958_v17  ;;  %v13185_v38 = vadd.f32 %v9122_v22, %v12988_v37 }
 0x789   : > { %v8336_v35 = vunpack.i.h.bf16 %v8334_v1  ;;  %v8335_v14 = vunpack.i.l.bf16 %v8334_v1  ;;  %3928 = vmax.xlane.f32.xlu1 %v13150_v53  ;;  %7992 = vmatpush3.bf16.msra.mxu0 %v3227_v11  ;;  %v4114_v55 = vmul.bf16 1069105081, %v4047_v36  ;;  %v4175_v11 = vunpack.c.h.bf16 %v13086_v19 }
 0x78a   : > { %8025 = vmatprep.subr.bf16.mxu1 %v3236_v49  ;;  %7993 = vmatprep.subr.bf16.mxu0 %v3228_v45  ;;  %v3229_v15 = vpack.c.bf16 %v8331_v21, %v8330_v47  ;;  %v13195_v63 = vadd.f32 %v9124_v28, %v12984_v46  ;;  %v4174_v37 = vunpack.c.l.bf16 %v13086_v19  ;;  %v4191_v62 = vunpack.c.h.bf16 %v13102_v24 }
 0x78b   : > { %8026 = vmatpush3.bf16.msra.mxu1 %v3236_v49  ;;  %v3237_v31 = vpack.c.bf16 %v8336_v35, %v8335_v14  ;;  %8705 = vpow.bf16 %v4114_v55  ;;  %v4190_v46 = vunpack.c.l.bf16 %v13102_v24  ;;  %v4179_v1 = vunpack.c.h.bf16 %v13118_v3 }
 0x78c   : > { %3954 = vmax.xlane.f32.xlu0 %v13158_v7  ;;  %v4178_v21 = vunpack.c.l.bf16 %v13118_v3  ;;  %v4180_v60 = vunpack.c.l.bf16 %v13121_v40 }
 0x78d   : > { %v13166_v5 = vpop.eup %8701  ;;  %3932 = vmax.xlane.f32.xlu1 %v13161_v29  ;;  %7994 = vmatpush3.bf16.msra.mxu0 %v3228_v45  ;;  %v4181_v45 = vunpack.c.h.bf16 %v13121_v40 }
 0x78e   : > { %8027 = vmatprep.subr.bf16.mxu1 %v3237_v31  ;;  %7983 = vmatprep.mubr.bf16.mxu1 %v13166_v5  ;;  %v13173_v17 = vpop.eup %8703 }
 0x78f   : > { %7995 = vmatprep.subr.bf16.mxu0 %v3229_v15  ;;  %8028 = vmatpush3.bf16.msra.mxu1 %v3237_v31 }
 0x790   : > { %7984 = vmatmul.mubr.bf16.gmra.mrb[60].mxu1 %v13173_v17  ;;  %3926 = vmax.xlane.f32.xlu0 %v13170_v2 }
 0x791   : > { %3960 = vmax.xlane.f32.xlu1 %v13176_v50  ;;  %7996 = vmatpush3.bf16.msra.mxu0 %v3229_v15 }
 0x794   : > { %3930 = vmax.xlane.f32.xlu0 %v13182_v10 }
 0x795   : > { %3964 = vmax.xlane.f32.xlu1 %v13185_v38 }
 0x796   : > { %v13201_v49 = vpop.eup %8705 }
 0x797   : > { %v4193_v12 = vunpack.c.h.bf16 %v13201_v49  ;;  %v4192_v19 = vunpack.c.l.bf16 %v13201_v49 }
 0x798   : > { %3958 = vmax.xlane.f32.xlu0 %v13190_v6 }
 0x799   : > { %4256 = vadd.xlane.f32.xlu1 %v4175_v11 }
 0x79c   : > { %3962 = vmax.xlane.f32.xlu0 %v13195_v63 }
 0x79d   : > { %4260 = vadd.xlane.f32.xlu1 %v4177_v27 }
 0x7a0   : > { %4254 = vadd.xlane.f32.xlu0 %v4174_v37 }
 0x7a1   : > { %4288 = vadd.xlane.f32.xlu1 %v4191_v62 }
 0x7a4   : > { %4258 = vadd.xlane.f32.xlu0 %v4176_v58 }
 0x7a5   : > { %4292 = vadd.xlane.f32.xlu1 %v4193_v12 }
 0x7a8   : > { %4286 = vadd.xlane.f32.xlu0 %v4190_v46 }
 0x7a9   : > { %4264 = vadd.xlane.f32.xlu1 %v4179_v1 }
 0x7ac   : > { %4290 = vadd.xlane.f32.xlu0 %v4192_v19 }
 0x7ad   : > { %4268 = vadd.xlane.f32.xlu1 %v4181_v45 }
 0x7b0   : > { %4262 = vadd.xlane.f32.xlu0 %v4178_v21  ;;  %v15665_v21 = vld [vmem:[#allocation130_spill] sm:$0xff] }
 0x7b4   : > { %4266 = vadd.xlane.f32.xlu0 %v4180_v60 }
 0x7b8   : > { %v3939_v47 = vpop.xlane.xlu0 %3938 }
 0x7b9   : > { %v3941_v35 = vpop.xlane.xlu1 %3940  ;;  %v4016_v11 = vsub.f32 %v12993_v41, %v3939_v47 }
 0x7ba   : > { %v4017_v27 = vsub.f32 %v12996_v44, %v3941_v35 }
 0x7bc   : > { %v3935_v14 = vpop.xlane.xlu0 %3934 }
 0x7bd   : > { %v4014_v24 = vsub.f32 %v13000_v33, %v3935_v14  ;;  %v3937_v22 = vpop.xlane.xlu1 %3936 }
 0x7be   : > { %v4015_v9 = vsub.f32 %v13003_v23, %v3937_v22  ;;  %v4055_v23 = vpack.c.bf16 %v4017_v27, %v4016_v11 }
 0x7c0   : > { %v4054_v31 = vpack.c.bf16 %v4015_v9, %v4014_v24  ;;  %v3911_v36 = vpop.xlane.xlu0 %3910  ;;  %v15667_v9 = vld [vmem:[#allocation82_spill] sm:$0xff] }
 0x7c1   : > { %v4002_v15 = vsub.f32 %v13008_v51, %v3911_v36  ;;  %v3913_v52 = vpop.xlane.xlu1 %3912 }
 0x7c2   : > { %v4135_v55 = vmul.bf16 1069105081, %v4054_v31  ;;  %v4003_v3 = vsub.f32 %v13011_v8, %v3913_v52  ;;  %v4138_v8 = vmul.bf16 1069105081, %v4055_v23 }
 0x7c4   : > { %8707 = vpow.bf16 %v4135_v55  ;;  %v4048_v28 = vpack.c.bf16 %v4003_v3, %v4002_v15  ;;  %v3915_v40 = vpop.xlane.xlu0 %3914 }
 0x7c5   : > { %v3945_v37 = vpop.xlane.xlu1 %3944  ;;  %v4004_v58 = vsub.f32 %v13016_v59, %v3915_v40 }
 0x7c6   : > { %v4117_v33 = vmul.bf16 1069105081, %v4048_v28  ;;  %v4019_v19 = vsub.f32 %v13018_v48, %v3945_v37 }
 0x7c8   : > { %8709 = vpow.bf16 %v4117_v33  ;;  %v3917_v62 = vpop.xlane.xlu0 %3916 }
 0x7c9   : > { %v4005_v51 = vsub.f32 %v13023_v54, %v3917_v62  ;;  %v3949_v12 = vpop.xlane.xlu1 %3948  ;;  %v15666_v54 = vld [vmem:[#allocation57_spill] sm:$0xff] }
 0x7ca   : > { %v4021_v22 = vsub.f32 %v15666_v54, %v3949_v12 }
 0x7cb   : > { %v4049_v46 = vpack.c.bf16 %v4005_v51, %v4004_v58 }
 0x7cc   : > { %v3943_v1 = vpop.xlane.xlu0 %3942 }
 0x7cd   : > { %v4120_v45 = vmul.bf16 1069105081, %v4049_v46  ;;  %v4018_v41 = vsub.f32 %v15665_v21, %v3943_v1  ;;  %v8344_v60 = vpop.permute.xlu1 %8343 }
 0x7ce   : > { %v8346_v44 = vunpack.i.h.bf16 %v8344_v60  ;;  %v8345_v47 = vunpack.i.l.bf16 %v8344_v60 }
 0x7cf   : > { %v13221_v35 = vpop.eup %8707  ;;  %8711 = vpow.bf16 %v4120_v45  ;;  %v4056_v14 = vpack.c.bf16 %v4019_v19, %v4018_v41 }
 0x7d0   : > { %v3947_v24 = vpop.xlane.xlu0 %3946  ;;  %8035 = vmatprep.mubr.bf16.mxu1 %v13221_v35  ;;  %v3238_v59 = vpack.c.bf16 %v8346_v44, %v8345_v47  ;;  %8713 = vpow.bf16 %v4138_v8 }
 0x7d1   : > { %v4020_v31 = vsub.f32 %v15667_v9, %v3947_v24  ;;  %v8349_v48 = vpop.permute.xlu1 %8348  ;;  %v4141_v15 = vmul.bf16 1069105081, %v4056_v14 }
 0x7d2   : > { %8029 = vmatprep.subr.bf16.mxu1 %v3238_v59  ;;  %v8351_v55 = vunpack.i.h.bf16 %v8349_v48  ;;  %v8350_v27 = vunpack.i.l.bf16 %v8349_v48  ;;  %v4206_v48 = vunpack.c.l.bf16 %v13221_v35 }
 0x7d3   : > { %v8710_v36 = vpop.eup %8709  ;;  %v4057_v52 = vpack.c.bf16 %v4021_v22, %v4020_v31  ;;  %8030 = vmatpush3.bf16.msra.mxu1 %v3238_v59  ;;  %8715 = vpow.bf16 %v4141_v15  ;;  %v4207_v31 = vunpack.c.h.bf16 %v13221_v35  ;;  %v4182_v35 = vunpack.c.l.bf16 %v13140_v26 }
 0x7d4   : > { %v8339_v3 = vpop.permute.xlu0 %8338  ;;  %v4195_v28 = vunpack.c.h.bf16 %v8710_v36  ;;  %v4194_v40 = vunpack.c.l.bf16 %v8710_v36  ;;  %v3231_v45 = vpack.c.bf16 %v8351_v55, %v8350_v27 }
 0x7d5   : > { %v4144_v11 = vmul.bf16 1069105081, %v4057_v52  ;;  %v8341_v37 = vunpack.i.h.bf16 %v8339_v3  ;;  %v8340_v33 = vunpack.i.l.bf16 %v8339_v3  ;;  %v8354_v62 = vpop.permute.xlu1 %8353 }
 0x7d6   : > { %v8356_v23 = vunpack.i.h.bf16 %v8354_v62  ;;  %v8355_v58 = vunpack.i.l.bf16 %v8354_v62  ;;  %4296 = vadd.xlane.f32.xlu1 %v4195_v28  ;;  %4294 = vadd.xlane.f32.xlu0 %v4194_v40  ;;  %v4183_v40 = vunpack.c.h.bf16 %v13140_v26 }
 0x7d7   : > { %v3230_v51 = vpack.c.bf16 %v8341_v37, %v8340_v33  ;;  %8717 = vpow.bf16 %v4144_v11  ;;  %v4185_v11 = vunpack.c.h.bf16 %v13147_v16 }
 0x7d8   : > { %v8359_v12 = vpop.permute.xlu0 %8358  ;;  %v3239_v46 = vpack.c.bf16 %v8356_v23, %v8355_v58 }
 0x7d9   : > { %v8361_v1 = vunpack.i.h.bf16 %v8359_v12  ;;  %v8360_v8 = vunpack.i.l.bf16 %v8359_v12  ;;  %v8364_v19 = vpop.permute.xlu1 %8363  ;;  %7997 = vmatprep.subr.bf16.mxu0 %v3230_v51 }
 0x7da   : > { %v8712_v21 = vpop.eup %8711  ;;  %v8366_v41 = vunpack.i.h.bf16 %v8364_v19  ;;  %v8365_v60 = vunpack.i.l.bf16 %v8364_v19  ;;  %7998 = vmatpush3.bf16.msra.mxu0 %v3230_v51  ;;  %8031 = vmatprep.subr.bf16.mxu1 %v3239_v46 }
 0x7db   : > { %7999 = vmatprep.subr.bf16.mxu0 %v3231_v45  ;;  %8032 = vmatpush3.bf16.msra.mxu1 %v3239_v46  ;;  %v4197_v44 = vunpack.c.h.bf16 %v8712_v21  ;;  %v4196_v47 = vunpack.c.l.bf16 %v8712_v21  ;;  %v8714_v14 = vpop.eup %8713  ;;  %v3232_v59 = vpack.c.bf16 %v8361_v1, %v8360_v8 }
 0x7dc   : > { %v3240_v24 = vpack.c.bf16 %v8366_v41, %v8365_v60  ;;  %v4209_v54 = vunpack.c.h.bf16 %v8714_v14  ;;  %v4208_v22 = vunpack.c.l.bf16 %v8714_v14 }
 0x7dd   : > { %4300 = vadd.xlane.f32.xlu1 %v4197_v44  ;;  %4298 = vadd.xlane.f32.xlu0 %v4196_v47 }
 0x7de   : > { %8000 = vmatpush3.bf16.msra.mxu0 %v3231_v45  ;;  %8033 = vmatprep.subr.bf16.mxu1 %v3240_v24  ;;  %v8716_v9 = vpop.eup %8715 }
 0x7df   : > { %8001 = vmatprep.subr.bf16.mxu0 %v3232_v59  ;;  %8034 = vmatpush3.bf16.msra.mxu1 %v3240_v24  ;;  %v4211_v3 = vunpack.c.h.bf16 %v8716_v9  ;;  %v4210_v28 = vunpack.c.l.bf16 %v8716_v9 }
 0x7e1   : > { %4324 = vadd.xlane.f32.xlu1 %v4209_v54  ;;  %4322 = vadd.xlane.f32.xlu0 %v4208_v22 }
 0x7e2   : > { %8002 = vmatpush3.bf16.msra.mxu0 %v3232_v59  ;;  %8036 = vmatmul.mubr.bf16.vlgmr.msra.gmra.mrb[64].mxu1 %v8714_v14  ;;  %v8718_v15 = vpop.eup %8717 }
 0x7e3   : > { %8039 = vmatprep.mubr.bf16.mxu1 %v8716_v9  ;;  %v4213_v52 = vunpack.c.h.bf16 %v8718_v15  ;;  %v4212_v55 = vunpack.c.l.bf16 %v8718_v15 }
 0x7e5   : > { %4320 = vadd.xlane.f32.xlu1 %v4207_v31  ;;  %4318 = vadd.xlane.f32.xlu0 %v4206_v48 }
 0x7e6   : > { %8004 = vmatmul.mubr.bf16.vlgmr.msra.gmra.mrb[80].mxu0 %v13201_v49  ;;  %v4184_v49 = vunpack.c.l.bf16 %v13147_v16 }
 0x7e7   : > { %8007 = vmatprep.mubr.bf16.mxu0 %v8710_v36 }
 0x7e9   : > { %4332 = vadd.xlane.f32.xlu1 %v4213_v52  ;;  %4330 = vadd.xlane.f32.xlu0 %v4212_v55 }
 0x7ea   : > { %8040 = vmatmul.mubr.bf16.gmra.mrb[68].mxu1 %v8718_v15 }
 0x7ed   : > { %4328 = vadd.xlane.f32.xlu1 %v4211_v3  ;;  %4326 = vadd.xlane.f32.xlu0 %v4210_v28 }
 0x7ee   : > { %8008 = vmatmul.mubr.bf16.gmra.mrb[84].mxu0 %v8712_v21 }
 0x7f1   : > { %4272 = vadd.xlane.f32.xlu1 %v4183_v40  ;;  %4270 = vadd.xlane.f32.xlu0 %v4182_v35 }
 0x7f5   : > { %4276 = vadd.xlane.f32.xlu1 %v4185_v11  ;;  %4274 = vadd.xlane.f32.xlu0 %v4184_v49 }
 0x809   : > { %v3919_v36 = vpop.xlane.xlu0 %3918 }
 0x80a   : > { %v4006_v27 = vsub.f32 %v13109_v25, %v3919_v36  ;;  %v3921_v37 = vpop.xlane.xlu1 %3920 }
 0x80b   : > { %v4007_v33 = vsub.f32 %v13113_v57, %v3921_v37 }
 0x80d   : > { %v4050_v62 = vpack.c.bf16 %v4007_v33, %v4006_v27  ;;  %v3923_v23 = vpop.xlane.xlu0 %3922 }
 0x80e   : > { %v3953_v58 = vpop.xlane.xlu1 %3952  ;;  %v4008_v12 = vsub.f32 %v13124_v20, %v3923_v23 }
 0x80f   : > { %v4123_v51 = vmul.bf16 1069105081, %v4050_v62  ;;  %v4023_v19 = vsub.f32 %v13128_v4, %v3953_v58 }
 0x811   : > { %8719 = vpow.bf16 %v4123_v51  ;;  %v3925_v26 = vpop.xlane.xlu0 %3924 }
 0x812   : > { %v4009_v46 = vsub.f32 %v13134_v56, %v3925_v26  ;;  %v3957_v1 = vpop.xlane.xlu1 %3956 }
 0x813   : > { %v4025_v60 = vsub.f32 %v13137_v39, %v3957_v1 }
 0x814   : > { %v4051_v16 = vpack.c.bf16 %v4009_v46, %v4008_v12 }
 0x815   : > { %v3951_v8 = vpop.xlane.xlu0 %3950 }
 0x816   : > { %v4126_v45 = vmul.bf16 1069105081, %v4051_v16  ;;  %v4022_v25 = vsub.f32 %v13144_v0, %v3951_v8  ;;  %v3929_v21 = vpop.xlane.xlu1 %3928 }
 0x817   : > { %v4011_v54 = vsub.f32 %v13150_v53, %v3929_v21 }
 0x818   : > { %8721 = vpow.bf16 %v4126_v45  ;;  %v4058_v57 = vpack.c.bf16 %v4023_v19, %v4022_v25  ;;  %v4189_v45 = vunpack.c.h.bf16 %v13173_v17  ;;  %v4188_v25 = vunpack.c.l.bf16 %v13173_v17 }
 0x819   : > { %v3955_v41 = vpop.xlane.xlu0 %3954  ;;  %v15668_v17 = vmov 0  }
 0x81a   : > { %v4147_v44 = vmul.bf16 1069105081, %v4058_v57  ;;  %v4024_v47 = vsub.f32 %v13158_v7, %v3955_v41  ;;  %v3933_v20 = vpop.xlane.xlu1 %3932 }
 0x81b   : > { %v4013_v7 = vsub.f32 %v13161_v29, %v3933_v20 }
 0x81c   : > { %v8720_v14 = vpop.eup %8719  ;;  %8723 = vpow.bf16 %v4147_v44  ;;  %v4059_v56 = vpack.c.bf16 %v4025_v60, %v4024_v47 }
 0x81d   : > { %v3927_v24 = vpop.xlane.xlu0 %3926  ;;  %8011 = vmatprep.mubr.bf16.mxu0 %v8720_v14  ;;  %v4199_v59 = vunpack.c.h.bf16 %v8720_v14  ;;  %v4198_v4 = vunpack.c.l.bf16 %v8720_v14 }
 0x81e   : > { %v4150_v0 = vmul.bf16 1069105081, %v4059_v56  ;;  %v4010_v22 = vsub.f32 %v13170_v2, %v3927_v24  ;;  %v3961_v9 = vpop.xlane.xlu1 %3960 }
 0x81f   : > { %4304 = vadd.xlane.f32.xlu1 %v4199_v59  ;;  %4302 = vadd.xlane.f32.xlu0 %v4198_v4  ;;  %v4027_v2 = vsub.f32 %v13176_v50, %v3961_v9 }
 0x820   : > { %8725 = vpow.bf16 %v4150_v0  ;;  %v4052_v39 = vpack.c.bf16 %v4011_v54, %v4010_v22 }
 0x821   : > { %v3931_v31 = vpop.xlane.xlu0 %3930 }
 0x822   : > { %v4129_v48 = vmul.bf16 1069105081, %v4052_v39  ;;  %v4012_v15 = vsub.f32 %v13182_v10, %v3931_v31  ;;  %v3965_v52 = vpop.xlane.xlu1 %3964 }
 0x823   : > { %v8722_v55 = vpop.eup %8721  ;;  %v4029_v33 = vsub.f32 %v13185_v38, %v3965_v52  ;;  %v4187_v38 = vunpack.c.h.bf16 %v13166_v5 }
 0x824   : > { %8727 = vpow.bf16 %v4129_v48  ;;  %v4053_v3 = vpack.c.bf16 %v4013_v7, %v4012_v15  ;;  %8012 = vmatmul.mubr.bf16.gmra.mrb[88].mxu0 %v8722_v55  ;;  %v4201_v53 = vunpack.c.h.bf16 %v8722_v55  ;;  %v4200_v28 = vunpack.c.l.bf16 %v8722_v55  ;;  %v15669_v55 = vld [vmem:[#allocation71_spill] sm:$0xff] }
 0x825   : > { %v3959_v40 = vpop.xlane.xlu0 %3958 }
 0x826   : > { %v4132_v35 = vmul.bf16 1069105081, %v4053_v3  ;;  %v4026_v11 = vsub.f32 %v13190_v6, %v3959_v40  ;;  %4308 = vadd.xlane.f32.xlu1 %v4201_v53  ;;  %4306 = vadd.xlane.f32.xlu0 %v4200_v28  ;;  %v4257_v36 = vpop.xlane.xlu1 %4256  ;;  %v4159_v3 = vunpack.c.h.bf16 %v15669_v55  ;;  %v4158_v53 = vunpack.c.l.bf16 %v15669_v55 }
 0x827   : > { %v8724_v49 = vpop.eup %8723 }
 0x828   : > { %8729 = vpow.bf16 %v4132_v35  ;;  %v4060_v29 = vpack.c.bf16 %v4027_v2, %v4026_v11  ;;  %8043 = vmatprep.mubr.bf16.mxu1 %v8724_v49  ;;  %v4215_v10 = vunpack.c.h.bf16 %v8724_v49  ;;  %v4214_v27 = vunpack.c.l.bf16 %v8724_v49 }
 0x829   : > { %v3963_v37 = vpop.xlane.xlu0 %3962 }
 0x82a   : > { %v4153_v62 = vmul.bf16 1069105081, %v4060_v29  ;;  %v4028_v23 = vsub.f32 %v13195_v63, %v3963_v37  ;;  %4336 = vadd.xlane.f32.xlu1 %v4215_v10  ;;  %4334 = vadd.xlane.f32.xlu0 %v4214_v27  ;;  %v4261_v46 = vpop.xlane.xlu1 %4260  ;;  %v4186_v63 = vunpack.c.l.bf16 %v13166_v5  ;;  %v15670_v10 = vld [vmem:[#allocation102_spill] sm:$0xff] }
 0x82b   : > { %v8726_v50 = vpop.eup %8725  ;;  %v4161_v27 = vunpack.c.h.bf16 %v15670_v10  ;;  %v4160_v37 = vunpack.c.l.bf16 %v15670_v10 }
 0x82c   : > { %8731 = vpow.bf16 %v4153_v62  ;;  %v4061_v6 = vpack.c.bf16 %v4029_v33, %v4028_v23  ;;  %8044 = vmatmul.mubr.bf16.gmra.mrb[72].mxu1 %v8726_v50  ;;  %v4217_v58 = vunpack.c.h.bf16 %v8726_v50  ;;  %v4216_v51 = vunpack.c.l.bf16 %v8726_v50  ;;  %v15671_v33 = vld [vmem:[#allocation103_spill] sm:$0xff] }
 0x82d   : > { %v4255_v26 = vpop.xlane.xlu0 %4254  ;;  %v4163_v62 = vunpack.c.h.bf16 %v15671_v33  ;;  %v4162_v23 = vunpack.c.l.bf16 %v15671_v33 }
 0x82e   : > { %v4156_v12 = vmul.bf16 1069105081, %v4061_v6  ;;  %4340 = vadd.xlane.f32.xlu1 %v4217_v58  ;;  %4338 = vadd.xlane.f32.xlu0 %v4216_v51  ;;  %v13251_v19 = vpop.xlane.xlu1 %4288 }
 0x82f   : > { %v8728_v1 = vpop.eup %8727 }
 0x830   : > { %8733 = vpow.bf16 %v4156_v12  ;;  %8015 = vmatprep.mubr.bf16.mxu0 %v8728_v1  ;;  %v4203_v41 = vunpack.c.h.bf16 %v8728_v1  ;;  %v4202_v60 = vunpack.c.l.bf16 %v8728_v1 }
 0x831   : > { %v4259_v16 = vpop.xlane.xlu0 %4258  ;;  %8735 = vrcp.f32 %v4257_v36 }
 0x832   : > { %4280 = vadd.xlane.f32.xlu1 %v4187_v38  ;;  %4278 = vadd.xlane.f32.xlu0 %v4186_v63  ;;  %v13257_v5 = vpop.xlane.xlu1 %4292  ;;  %8737 = vrcp.f32 %v4261_v46  ;;  %v15672_v46 = vld [vmem:[#allocation50_spill] sm:$0xff] }
 0x833   : > { %v8730_v8 = vpop.eup %8729  ;;  %8739 = vrcp.f32 %v4259_v16  ;;  %v4165_v1 = vunpack.c.h.bf16 %v15672_v46  ;;  %v4164_v38 = vunpack.c.l.bf16 %v15672_v46  ;;  %v15675_v46 = vld [vmem:[#allocation52_spill] sm:$0xff] }
 0x834   : > { %8016 = vmatmul.mubr.bf16.gmra.mrb[92].mxu0 %v8730_v8  ;;  %v4205_v20 = vunpack.c.h.bf16 %v8730_v8  ;;  %v4204_v14 = vunpack.c.l.bf16 %v8730_v8  ;;  %8741 = vrcp.f32 %v4255_v26 }
 0x835   : > { %v13255_v21 = vpop.xlane.xlu0 %4286 }
 0x836   : > { %4284 = vadd.xlane.f32.xlu1 %v4189_v45  ;;  %4282 = vadd.xlane.f32.xlu0 %v4188_v25  ;;  %v4265_v56 = vpop.xlane.xlu1 %4264 }
 0x837   : > { %v8732_v57 = vpop.eup %8731  ;;  %8743 = vrcp.f32 %v4265_v56 }
 0x838   : > { %8047 = vmatprep.mubr.bf16.mxu1 %v8732_v57  ;;  %v4219_v24 = vunpack.c.h.bf16 %v8732_v57  ;;  %v4218_v59 = vunpack.c.l.bf16 %v8732_v57 }
 0x839   : > { %v13259_v47 = vpop.xlane.xlu0 %4290 }
 0x83a   : > { %4312 = vadd.xlane.f32.xlu1 %v4203_v41  ;;  %4310 = vadd.xlane.f32.xlu0 %v4202_v60  ;;  %v4269_v9 = vpop.xlane.xlu1 %4268 }
 0x83b   : > { %v8734_v44 = vpop.eup %8733  ;;  %8745 = vrcp.f32 %v4269_v9 }
 0x83c   : > { %8048 = vmatmul.mubr.bf16.gmra.mrb[76].mxu1 %v8734_v44  ;;  %v4221_v54 = vunpack.c.h.bf16 %v8734_v44  ;;  %v4220_v0 = vunpack.c.l.bf16 %v8734_v44  ;;  %v8736_v22 = vpop.eup %8735  ;;  %v15673_v44 = vld [vmem:[#allocation43_spill] sm:$0xff] }
 0x83d   : > { %5888 = vmatprep.mubr.bf16.mxu1 %v15668_v17  ;;  %v4263_v4 = vpop.xlane.xlu0 %4262  ;;  %v8738_v31 = vpop.eup %8737 }
 0x83e   : > { %4316 = vadd.xlane.f32.xlu1 %v4205_v20  ;;  %4314 = vadd.xlane.f32.xlu0 %v4204_v14  ;;  %v8740_v15 = vpop.eup %8739  ;;  %v4167_v20 = vunpack.c.h.bf16 %v15673_v44  ;;  %v4166_v14 = vunpack.c.l.bf16 %v15673_v44 }
 0x83f   : > { %v8742_v28 = vpop.eup %8741 }
 0x841   : > { %v4267_v7 = vpop.xlane.xlu0 %4266  ;;  %v8744_v50 = vpop.eup %8743 }
 0x842   : > { %4344 = vadd.xlane.f32.xlu1 %v4219_v24  ;;  %4342 = vadd.xlane.f32.xlu0 %v4218_v59  ;;  %8747 = vrcp.f32 %v4267_v7  ;;  %v15674_v59 = vld [vmem:[#allocation87_spill] sm:$0xff] }
 0x843   : > { %8749 = vrcp.f32 %v4263_v4  ;;  %v4168_v4 = vunpack.c.l.bf16 %v15674_v59 }
 0x845   : > { %v8746_v58 = vpop.eup %8745 }
 0x846   : > { %4348 = vadd.xlane.f32.xlu1 %v4221_v54  ;;  %4346 = vadd.xlane.f32.xlu0 %v4220_v0  ;;  %v7973_v39 = vpop.f32.mrb[48].mxu1 }
 0x847   : > { %v4481_v48 = vpop.f32.mrb[49].mxu1  ;;  %v4820_v40 = vmul.f32 %v8740_v15, %v7973_v39 }
 0x848   : > { %v7974_v52 = vpop.f32.mrb[50].mxu1  ;;  %v4818_v11 = vmul.f32 %v8742_v28, %v4481_v48 }
 0x849   : > { %v4821_v2 = vmul.f32 %v8738_v31, %v7974_v52  ;;  %v4484_v35 = vpop.f32.mrb[51].mxu1 }
 0x84a   : > { %v4819_v49 = vmul.f32 %v8736_v22, %v4484_v35  ;;  %4224 = vadd.xlane.f32.xlu1 %v4159_v3  ;;  %4222 = vadd.xlane.f32.xlu0 %v4158_v53  ;;  %v4169_v22 = vunpack.c.h.bf16 %v15674_v59 }
 0x84b   : > { %v8367_v29 = vpack.i.bf16 %v4821_v2, %v4820_v40 }
 0x84c   : > { %v8377_v36 = vpack.i.bf16 %v4819_v49, %v4818_v11  ;;  %v8748_v26 = vpop.eup %8747 }
 0x84d   : > { %v8750_v63 = vpop.eup %8749 }
 0x84e   : > { %4228 = vadd.xlane.f32.xlu1 %v4161_v27  ;;  %4226 = vadd.xlane.f32.xlu0 %v4160_v37 }
 0x852   : > { %4232 = vadd.xlane.f32.xlu1 %v4163_v62  ;;  %4230 = vadd.xlane.f32.xlu0 %v4162_v23  ;;  %v7977_v6 = vpop.f32.mrb[52].mxu1 }
 0x853   : > { %v4497_v51 = vpop.f32.mrb[53].mxu1  ;;  %v13270_v16 = vmul.f32 %v8748_v26, %v7977_v6 }
 0x854   : > { %v7978_v12 = vpop.f32.mrb[54].mxu1  ;;  %v4822_v25 = vmul.f32 %v8750_v63, %v4497_v51 }
 0x855   : > { %v13272_v8 = vmul.f32 %v8746_v58, %v7978_v12  ;;  %v4500_v45 = vpop.f32.mrb[55].mxu1 }
 0x856   : > { %v4823_v57 = vmul.f32 %v8744_v50, %v4500_v45  ;;  %4236 = vadd.xlane.f32.xlu1 %v4165_v1  ;;  %4234 = vadd.xlane.f32.xlu0 %v4164_v38  ;;  %v4170_v1 = vunpack.c.l.bf16 %v15675_v46  ;;  %v15676_v38 = vld [vmem:[#allocation58_spill] sm:$0xff] }
 0x857   : > { %v8387_v41 = vpack.i.bf16 %v13272_v8, %v13270_v16  ;;  %v4172_v63 = vunpack.c.l.bf16 %v15676_v38  ;;  %v8519_v45 = vld [vmem:[%s14771_s5] sm:$0xff]  }
 0x858   : > { %v8397_v60 = vpack.i.bf16 %v4823_v57, %v4822_v25  ;;  %8051 = vmatprep.subr.bf16.mxu0 %v8519_v45  ;;  %v8520_v25 = vld [vmem:[%s14771_s5 + $0x8] sm:$0xff]  }
 0x859   : > { %8052 = vmatpush3.bf16.msra.mxu0 %v8519_v45  ;;  %v8523_v45 = vld [vmem:[%s14771_s5 + $0x20] sm:$0xff]  }
 0x85a   : > { %4240 = vadd.xlane.f32.xlu1 %v4167_v20  ;;  %4238 = vadd.xlane.f32.xlu0 %v4166_v14 }
 0x85b   : > { %v7981_v56 = vpop.f32.mrb[56].mxu1  ;;  %8053 = vmatprep.subr.bf16.mxu0 %v8520_v25 }
 0x85c   : > { %v4513_v24 = vpop.f32.mrb[57].mxu1 }
 0x85d   : > { %v7982_v54 = vpop.f32.mrb[58].mxu1  ;;  %8054 = vmatpush3.bf16.msra.mxu0 %v8520_v25 }
 0x85e   : > { %v4516_v0 = vpop.f32.mrb[59].mxu1  ;;  %4242 = vadd.xlane.f32.xlu0 %v4168_v4 }
 0x862   : > { %4244 = vadd.xlane.f32.xlu0 %v4169_v22 }
 0x863   : > { %v13280_v9 = vpop.f32.mrb[60].mxu1  ;;  %v13284_v31 = vpop.xlane.xlu1 %4296 }
 0x864   : > { %v13282_v39 = vpop.f32.mrb[61].mxu1  ;;  %v13288_v48 = vpop.xlane.xlu0 %4294 }
 0x865   : > { %v13286_v7 = vpop.f32.mrb[62].mxu1 }
 0x866   : > { %v13290_v15 = vpop.f32.mrb[63].mxu1 }
 0x86a   : > { %v13292_v52 = vpop.xlane.xlu1 %4300  ;;  %v13294_v55 = vpop.xlane.xlu0 %4298 }
 0x86b   : > { %8368 = vrot.lane.b32.xlu1 %v8367_v29, %s9408_s19 }
 0x86e   : > { %v4325_v3 = vpop.xlane.xlu1 %4324  ;;  %v4323_v53 = vpop.xlane.xlu0 %4322 }
 0x872   : > { %v4321_v28 = vpop.xlane.xlu1 %4320  ;;  %v4319_v40 = vpop.xlane.xlu0 %4318 }
 0x876   : > { %v4333_v2 = vpop.xlane.xlu1 %4332  ;;  %v4331_v35 = vpop.xlane.xlu0 %4330 }
 0x878   : > { %8378 = vrot.lane.b32.xlu0 %v8377_v36, %s9408_s19 }
 0x87a   : > { %v4329_v11 = vpop.xlane.xlu1 %4328  ;;  %v4327_v49 = vpop.xlane.xlu0 %4326 }
 0x87c   : > { %8398 = vrot.lane.b32.xlu0 %v8397_v60, %s9408_s19 }
 0x87e   : > { %v4273_v10 = vpop.xlane.xlu1 %4272  ;;  %v4271_v27 = vpop.xlane.xlu0 %4270 }
 0x87f   : > { %8751 = vrcp.f32 %v4273_v10 }
 0x880   : > { %8753 = vrcp.f32 %v4271_v27 }
 0x882   : > { %v4277_v37 = vpop.xlane.xlu1 %4276  ;;  %v4275_v33 = vpop.xlane.xlu0 %4274 }
 0x883   : > { %8755 = vrcp.f32 %v4277_v37 }
 0x884   : > { %8757 = vrcp.f32 %v4275_v33 }
 0x885   : > { %8759 = vrcp.f32 %v13251_v19 }
 0x886   : > { %8761 = vrcp.f32 %v4325_v3 }
 0x887   : > { %8763 = vrcp.f32 %v4323_v53 }
 0x888   : > { %8765 = vrcp.f32 %v4321_v28 }
 0x889   : > { %v8752_v29 = vpop.eup %8751  ;;  %8767 = vrcp.f32 %v4319_v40 }
 0x88a   : > { %v8754_v62 = vpop.eup %8753  ;;  %v13299_v23 = vmul.f32 %v8752_v29, %v4516_v0  ;;  %8769 = vrcp.f32 %v13257_v5 }
 0x88b   : > { %v13301_v50 = vmul.f32 %v8754_v62, %v4513_v24  ;;  %8771 = vrcp.f32 %v13259_v47 }
 0x88c   : > { %8773 = vrcp.f32 %v13255_v21 }
 0x88d   : > { %v8756_v6 = vpop.eup %8755  ;;  %v8427_v36 = vpack.i.bf16 %v13299_v23, %v13301_v50  ;;  %8775 = vrcp.f32 %v4333_v2 }
 0x88e   : > { %v8758_v58 = vpop.eup %8757  ;;  %v13305_v51 = vmul.f32 %v8756_v6, %v7982_v54  ;;  %8777 = vrcp.f32 %v4331_v35 }
 0x88f   : > { %v13307_v26 = vmul.f32 %v8758_v58, %v7981_v56  ;;  %v8760_v20 = vpop.eup %8759  ;;  %8779 = vrcp.f32 %v4329_v11  ;;  %v8521_v56 = vld [vmem:[%s14771_s5 + $0x10] sm:$0xff]  }
 0x890   : > { %v8762_v24 = vpop.eup %8761  ;;  %8781 = vrcp.f32 %v4327_v49  ;;  %8055 = vmatprep.subr.bf16.mxu0 %v8521_v56 }
 0x891   : > { %v8432_v12 = vpack.i.bf16 %v13305_v51, %v13307_v26  ;;  %v8764_v59 = vpop.eup %8763  ;;  %8783 = vrcp.f32 %v13284_v31  ;;  %8056 = vmatpush3.bf16.msra.mxu0 %v8521_v56  ;;  %v8522_v31 = vld [vmem:[%s14771_s5 + $0x18] sm:$0xff]  }
 0x892   : > { %v8766_v4 = vpop.eup %8765  ;;  %8785 = vrcp.f32 %v13292_v52  ;;  %8057 = vmatprep.subr.bf16.mxu0 %v8522_v31 }
 0x893   : > { %v8768_v0 = vpop.eup %8767  ;;  %8787 = vrcp.f32 %v13294_v55 }
 0x894   : > { %v8770_v40 = vpop.eup %8769  ;;  %8789 = vrcp.f32 %v13288_v48 }
 0x895   : > { %v8772_v11 = vpop.eup %8771  ;;  %8058 = vmatpush3.bf16.msra.mxu0 %v8522_v31 }
 0x896   : > { %v8774_v27 = vpop.eup %8773  ;;  %8059 = vmatprep.subr.bf16.mxu0 %v8523_v45 }
 0x897   : > { %v8776_v48 = vpop.eup %8775 }
 0x898   : > { %v8778_v25 = vpop.eup %8777 }
 0x899   : > { %8060 = vmatpush3.bf16.msra.mxu0 %v8523_v45 }
 0x89b   : > { %4246 = vadd.xlane.f32.xlu0 %v4170_v1 }
 0x89f   : > { %4250 = vadd.xlane.f32.xlu0 %v4172_v63 }
 0x8ac   : > { %v13320_v57 = vpop.xlane.xlu1 %4304  ;;  %v13322_v60 = vpop.xlane.xlu0 %4302 }
 0x8b3   : > { %v13327_v19 = vpop.xlane.xlu1 %4308  ;;  %v13329_v44 = vpop.xlane.xlu0 %4306 }
 0x8b5   : > { %v8037_v14 = vpop.f32.mrb[64].mxu1 }
 0x8b6   : > { %v4675_v5 = vpop.f32.mrb[65].mxu1  ;;  %v13341_v22 = vmul.f32 %v8764_v59, %v8037_v14 }
 0x8b7   : > { %v13335_v21 = vpop.xlane.xlu1 %4336  ;;  %v13337_v47 = vpop.xlane.xlu0 %4334  ;;  %v4850_v2 = vmul.f32 %v8768_v0, %v4675_v5 }
 0x8b8   : > { %v8038_v54 = vpop.f32.mrb[66].mxu1 }
 0x8b9   : > { %v13343_v3 = vmul.f32 %v8762_v24, %v8038_v54  ;;  %v8005_v53 = vpop.f32.mrb[80].mxu0  ;;  %v4678_v28 = vpop.f32.mrb[67].mxu1 }
 0x8ba   : > { %v4851_v52 = vmul.f32 %v8766_v4, %v4678_v28  ;;  %v4578_v35 = vpop.f32.mrb[81].mxu0  ;;  %v4836_v37 = vmul.f32 %v8772_v11, %v8005_v53  ;;  %v8780_v24 = vpop.eup %8779 }
 0x8bb   : > { %v8407_v55 = vpack.i.bf16 %v13343_v3, %v13341_v22  ;;  %v8006_v49 = vpop.f32.mrb[82].mxu0  ;;  %v13351_v10 = vpop.xlane.xlu1 %4340  ;;  %v4834_v58 = vmul.f32 %v8774_v27, %v4578_v35  ;;  %v8524_v35 = vld [vmem:[%s14771_s5 + $0x28] sm:$0xff]  }
 0x8bc   : > { %v8412_v33 = vpack.i.bf16 %v4851_v52, %v4850_v2  ;;  %v4837_v29 = vmul.f32 %v8770_v40, %v8006_v49  ;;  %v13353_v62 = vpop.xlane.xlu0 %4338  ;;  %v4581_v6 = vpop.f32.mrb[83].mxu0  ;;  %8061 = vmatprep.subr.bf16.mxu0 %v8524_v35 }
 0x8bd   : > { %v4835_v1 = vmul.f32 %v8760_v20, %v4581_v6  ;;  %v8041_v63 = vpop.f32.mrb[68].mxu1  ;;  %v8782_v54 = vpop.eup %8781  ;;  %8062 = vmatpush3.bf16.msra.mxu0 %v8524_v35 }
 0x8be   : > { %v8372_v14 = vpack.i.bf16 %v4837_v29, %v4836_v37  ;;  %8413 = vrot.lane.b32.xlu0 %v8412_v33, %s9404_s20  ;;  %v4691_v56 = vpop.f32.mrb[69].mxu1  ;;  %v13359_v0 = vmul.f32 %v8778_v25, %v8041_v63  ;;  %v8784_v31 = vpop.eup %8783 }
 0x8bf   : > { %v8382_v5 = vpack.i.bf16 %v4835_v1, %v4834_v58  ;;  %v4281_v59 = vpop.xlane.xlu1 %4280  ;;  %v8042_v4 = vpop.f32.mrb[70].mxu1  ;;  %v4854_v40 = vmul.f32 %v8782_v54, %v4691_v56  ;;  %v8525_v56 = vld [vmem:[%s14771_s5 + $0x30] sm:$0xff]  }
 0x8c0   : > { %8791 = vrcp.f32 %v4281_v59  ;;  %v4279_v20 = vpop.xlane.xlu0 %4278  ;;  %8373 = vrot.lane.b32.xlu1 %v8372_v14, %s9407_s17  ;;  %v13362_v53 = vmul.f32 %v8776_v48, %v8042_v4  ;;  %v4694_v28 = vpop.f32.mrb[71].mxu1  ;;  %8063 = vmatprep.subr.bf16.mxu0 %v8525_v56 }
 0x8c1   : > { %8793 = vrcp.f32 %v4279_v20  ;;  %v8009_v2 = vpop.f32.mrb[84].mxu0  ;;  %v4855_v52 = vmul.f32 %v8780_v24, %v4694_v28  ;;  %v8786_v11 = vpop.eup %8785  ;;  %8064 = vmatpush3.bf16.msra.mxu0 %v8525_v56  ;;  %v8526_v20 = vld [vmem:[%s14771_s5 + $0x38] sm:$0xff]  }
 0x8c2   : > { %v8417_v49 = vpack.i.bf16 %v13362_v53, %v13359_v0  ;;  %v4594_v27 = vpop.f32.mrb[85].mxu0  ;;  %v8788_v37 = vpop.eup %8787  ;;  %8065 = vmatprep.subr.bf16.mxu0 %v8526_v20 }
 0x8c3   : > { %v8422_v33 = vpack.i.bf16 %v4855_v52, %v4854_v40  ;;  %v8010_v29 = vpop.f32.mrb[86].mxu0  ;;  %v4285_v6 = vpop.xlane.xlu1 %4284  ;;  %v4840_v58 = vmul.f32 %v8788_v37, %v8009_v2 }
 0x8c4   : > { %v8790_v48 = vpop.eup %8789  ;;  %v4841_v1 = vmul.f32 %v8786_v11, %v8010_v29  ;;  %8795 = vrcp.f32 %v4285_v6  ;;  %v4283_v63 = vpop.xlane.xlu0 %4282  ;;  %8383 = vrot.lane.b32.xlu1 %v8382_v5, %s9407_s17 }
 0x8c5   : > { %v4597_v45 = vpop.f32.mrb[87].mxu0  ;;  %v4838_v25 = vmul.f32 %v8790_v48, %v4594_v27  ;;  %8797 = vrcp.f32 %v4283_v63  ;;  %8423 = vrot.lane.b32.xlu0 %v8422_v33, %s9404_s20  ;;  %8066 = vmatpush3.bf16.msra.mxu0 %v8526_v20 }
 0x8c6   : > { %v4839_v14 = vmul.f32 %v8784_v31, %v4597_v45  ;;  %v8392_v24 = vpack.i.bf16 %v4841_v1, %v4840_v58  ;;  %v4173_v1 = vunpack.c.h.bf16 %v15676_v38 }
 0x8c7   : > { %v13374_v4 = vpop.xlane.xlu1 %4312 }
 0x8c8   : > { %v8402_v59 = vpack.i.bf16 %v4839_v14, %v4838_v25  ;;  %v13376_v54 = vpop.xlane.xlu0 %4310  ;;  %8388 = vrot.lane.b32.xlu1 %v8387_v41, %s9408_s19 }
 0x8ca   : > { %v8792_v5 = vpop.eup %8791 }
 0x8cb   : > { %v8794_v28 = vpop.eup %8793  ;;  %v13385_v31 = vpop.xlane.xlu1 %4316  ;;  %v13388_v40 = vmul.f32 %v8792_v5, %v13290_v15 }
 0x8cc   : > { %v13390_v2 = vpop.xlane.xlu0 %4314  ;;  %8393 = vrot.lane.b32.xlu1 %v8392_v24, %s9407_s17  ;;  %v13394_v52 = vmul.f32 %v8794_v28, %v13282_v39 }
 0x8ce   : > { %v8796_v16 = vpop.eup %8795  ;;  %v8457_v8 = vpack.i.bf16 %v13388_v40, %v13394_v52 }
 0x8cf   : > { %v8798_v41 = vpop.eup %8797  ;;  %v13398_v35 = vpop.xlane.xlu1 %4344  ;;  %v13401_v11 = vmul.f32 %v8796_v16, %v13286_v7 }
 0x8d0   : > { %v13403_v15 = vpop.xlane.xlu0 %4342  ;;  %8403 = vrot.lane.b32.xlu1 %v8402_v59, %s9407_s17  ;;  %v13407_v27 = vmul.f32 %v8798_v41, %v13280_v9 }
 0x8d2   : > { %v8462_v39 = vpack.i.bf16 %v13401_v11, %v13407_v27 }
 0x8d3   : > { %v13411_v37 = vpop.xlane.xlu1 %4348 }
 0x8d4   : > { %v13413_v33 = vpop.xlane.xlu0 %4346  ;;  %8408 = vrot.lane.b32.xlu1 %v8407_v55, %s9404_s20 }
 0x8d7   : > { %v13419_v7 = vpop.xlane.xlu1 %4224 }
 0x8d8   : > { %v13421_v29 = vpop.xlane.xlu0 %4222 }
 0x8db   : > { %v13423_v6 = vpop.xlane.xlu1 %4228 }
 0x8dc   : > { %v13425_v9 = vpop.xlane.xlu0 %4226 }
 0x8df   : > { %v13427_v48 = vpop.xlane.xlu1 %4232 }
 0x8e0   : > { %v13429_v58 = vpop.xlane.xlu0 %4230 }
 0x8e3   : > { %v4237_v63 = vpop.xlane.xlu1 %4236 }
 0x8e4   : > { %8799 = vrcp.f32 %v4237_v63  ;;  %v4235_v45 = vpop.xlane.xlu0 %4234  ;;  %4252 = vadd.xlane.f32.xlu0 %v4173_v1 }
 0x8e5   : > { %8801 = vrcp.f32 %v4235_v45 }
 0x8e7   : > { %v4241_v22 = vpop.xlane.xlu1 %4240 }
 0x8e8   : > { %8803 = vrcp.f32 %v4241_v22  ;;  %v4239_v3 = vpop.xlane.xlu0 %4238 }
 0x8e9   : > { %8805 = vrcp.f32 %v4239_v3 }
 0x8ea   : > { %8807 = vrcp.f32 %v13320_v57 }
 0x8ec   : > { %v4243_v55 = vpop.xlane.xlu0 %4242 }
 0x8ed   : > { %8809 = vrcp.f32 %v4243_v55 }
 0x8ee   : > { %v8800_v25 = vpop.eup %8799  ;;  %8811 = vrcp.f32 %v13327_v19 }
 0x8ef   : > { %v8802_v14 = vpop.eup %8801  ;;  %8813 = vrcp.f32 %v13329_v44  ;;  %v13436_v38 = vmul.f32 %v8800_v25, %v13067_v34  ;;  %v4171_v34 = vunpack.c.h.bf16 %v15675_v46 }
 0x8f0   : > { %8815 = vrcp.f32 %v13322_v60  ;;  %v4245_v56 = vpop.xlane.xlu0 %4244  ;;  %v13440_v24 = vmul.f32 %v8802_v14, %v13063_v13 }
 0x8f1   : > { %8817 = vrcp.f32 %v4245_v56 }
 0x8f2   : > { %v8804_v59 = vpop.eup %8803  ;;  %8819 = vrcp.f32 %v13335_v21 }
 0x8f3   : > { %v8806_v57 = vpop.eup %8805  ;;  %v13443_v5 = vmul.f32 %v8804_v59, %v13083_v30  ;;  %8821 = vrcp.f32 %v13351_v10 }
 0x8f4   : > { %v13446_v19 = vmul.f32 %v8806_v57, %v13077_v42  ;;  %v8808_v44 = vpop.eup %8807  ;;  %8823 = vrcp.f32 %v13353_v62  ;;  %v8379_v51 = vpop.permute.xlu0 %8378 }
 0x8f5   : > { %8825 = vrcp.f32 %v13337_v47 }
 0x8f6   : > { %8827 = vrcp.f32 %v13374_v4 }
 0x8f7   : > { %v8810_v60 = vpop.eup %8809  ;;  %v8013_v13 = vpop.f32.mrb[88].mxu0  ;;  %8829 = vrcp.f32 %v13385_v31 }
 0x8f8   : > { %v8812_v20 = vpop.eup %8811  ;;  %4248 = vadd.xlane.f32.xlu1 %v4171_v34  ;;  %v4610_v30 = vpop.f32.mrb[89].mxu0  ;;  %v13454_v28 = vmul.f32 %v8810_v60, %v13075_v18  ;;  %8831 = vrcp.f32 %v13390_v2 }
 0x8f9   : > { %v8814_v42 = vpop.eup %8813  ;;  %v8014_v16 = vpop.f32.mrb[90].mxu0  ;;  %8833 = vrcp.f32 %v13376_v54 }
 0x8fa   : > { %v8816_v21 = vpop.eup %8815  ;;  %v13456_v41 = vmul.f32 %v8814_v42, %v8013_v13  ;;  %v13458_v10 = vmul.f32 %v8812_v20, %v8014_v16  ;;  %v4613_v46 = vpop.f32.mrb[91].mxu0  ;;  %8428 = vrot.lane.b32.xlu0 %v8427_v36, %s9408_s19  ;;  %8835 = vrcp.f32 %v13398_v35 }
 0x8fb   : > { %v8818_v62 = vpop.eup %8817  ;;  %v4842_v47 = vmul.f32 %v8816_v21, %v4610_v30  ;;  %v4843_v1 = vmul.f32 %v8808_v44, %v4613_v46  ;;  %8837 = vrcp.f32 %v13411_v37  ;;  %v13500_v26 = vpop.permute.xlu0 %8398 }
 0x8fc   : > { %v8442_v18 = vpack.i.bf16 %v13458_v10, %v13456_v41  ;;  %v13467_v63 = vmul.f32 %v8818_v62, %v13081_v32  ;;  %v8820_v22 = vpop.eup %8819  ;;  %8839 = vrcp.f32 %v13413_v33 }
 0x8fd   : > { %v8437_v45 = vpack.i.bf16 %v4843_v1, %v4842_v47  ;;  %v8822_v23 = vpop.eup %8821  ;;  %8841 = vrcp.f32 %v13403_v15 }
 0x8fe   : > { %v8824_v36 = vpop.eup %8823  ;;  %8843 = vrcp.f32 %v13419_v7 }
 0x8ff   : > { %v8045_v3 = vpop.f32.mrb[72].mxu1  ;;  %v8826_v25 = vpop.eup %8825  ;;  %8845 = vrcp.f32 %v13421_v29  ;;  %v15677_v29 = vld [vmem:[#allocation88_spill] sm:$0xff] }
 0x900   : > { %v4707_v50 = vpop.f32.mrb[73].mxu1  ;;  %v4860_v14 = vmul.f32 %v8824_v36, %v8045_v3  ;;  %v8828_v2 = vpop.eup %8827 }
 0x901   : > { %v8046_v55 = vpop.f32.mrb[74].mxu1  ;;  %v4858_v59 = vmul.f32 %v8826_v25, %v4707_v50  ;;  %v8830_v54 = vpop.eup %8829  ;;  %v8380_v50 = vunpack.i.l.bf16 %v8379_v51  ;;  %v15678_v25 = vld [vmem:[#allocation56_spill] sm:$0xff] }
 0x902   : > { %v4861_v56 = vmul.f32 %v8822_v23, %v8046_v55  ;;  %v4710_v32 = vpop.f32.mrb[75].mxu1  ;;  %v8832_v60 = vpop.eup %8831  ;;  %v8381_v23 = vunpack.i.h.bf16 %v8379_v51 }
 0x903   : > { %v4859_v57 = vmul.f32 %v8820_v22, %v4710_v32  ;;  %v8834_v13 = vpop.eup %8833 }
 0x904   : > { %v8452_v4 = vpack.i.bf16 %v4861_v56, %v4860_v14  ;;  %v8836_v0 = vpop.eup %8835 }
 0x905   : > { %v8447_v31 = vpack.i.bf16 %v4859_v57, %v4858_v59 }
 0x907   : > { %v8017_v44 = vpop.f32.mrb[92].mxu0  ;;  %8448 = vrot.lane.b32.xlu0 %v8447_v31, %s9404_s20 }
 0x908   : > { %v4626_v34 = vpop.f32.mrb[93].mxu0  ;;  %v4848_v20 = vmul.f32 %v8832_v60, %v8017_v44 }
 0x909   : > { %8418 = vrot.lane.b32.xlu1 %v8417_v49, %s9404_s20  ;;  %v8018_v35 = vpop.f32.mrb[94].mxu0  ;;  %v4846_v42 = vmul.f32 %v8834_v13, %v4626_v34  ;;  %v8838_v49 = vpop.eup %8837 }
 0x90a   : > { %v4849_v37 = vmul.f32 %v8830_v54, %v8018_v35  ;;  %v4629_v30 = vpop.f32.mrb[95].mxu0  ;;  %v8840_v41 = vpop.eup %8839 }
 0x90b   : > { %v4847_v33 = vmul.f32 %v8828_v2, %v4629_v30  ;;  %8458 = vrot.lane.b32.xlu0 %v8457_v8, %s9408_s19  ;;  %v8842_v46 = vpop.eup %8841 }
 0x90c   : > { %v8472_v15 = vpack.i.bf16 %v4849_v37, %v4848_v20  ;;  %v8844_v3 = vpop.eup %8843 }
 0x90d   : > { %v8467_v16 = vpack.i.bf16 %v4847_v33, %v4846_v42  ;;  %8433 = vrot.lane.b32.xlu1 %v8432_v12, %s9408_s19  ;;  %v8846_v11 = vpop.eup %8845  ;;  %v4803_v36 = vmul.f32 %v8844_v3, %v15677_v29  ;;  %v8401_v33 = vunpack.i.h.bf16 %v13500_v26 }
 0x90e   : > { %v4802_v14 = vmul.f32 %v8846_v11, %v15678_v25 }
 0x90f   : > { %8468 = vrot.lane.b32.xlu0 %v8467_v16, %s9407_s17  ;;  %v8049_v53 = vpop.f32.mrb[76].mxu1 }
 0x910   : > { %v4723_v21 = vpop.f32.mrb[77].mxu1  ;;  %v4864_v40 = vmul.f32 %v8840_v41, %v8049_v53  ;;  %v15680_v41 = vld [vmem:[#allocation59_spill] sm:$0xff] }
 0x911   : > { %8438 = vrot.lane.b32.xlu1 %v8437_v45, %s9407_s17  ;;  %v8050_v10 = vpop.f32.mrb[78].mxu1  ;;  %v4862_v62 = vmul.f32 %v8842_v46, %v4723_v21  ;;  %v13505_v45 = vpop.permute.xlu1 %8368 }
 0x912   : > { %v4865_v52 = vmul.f32 %v8838_v49, %v8050_v10  ;;  %v4726_v8 = vpop.f32.mrb[79].mxu1  ;;  %v15679_v49 = vld [vmem:[#allocation155_spill] sm:$0xff] }
 0x913   : > { %v4863_v47 = vmul.f32 %v8836_v0, %v4726_v8  ;;  %v8371_v8 = vunpack.i.h.bf16 %v13505_v45 }
 0x914   : > { %v8482_v1 = vpack.i.bf16 %v4865_v52, %v4864_v40  ;;  %v15681_v40 = vld [vmem:[#allocation106_spill] sm:$0xff] }
 0x915   : > { %v8477_v22 = vpack.i.bf16 %v4863_v47, %v4862_v62  ;;  %8443 = vrot.lane.b32.xlu1 %v8442_v18, %s9407_s17  ;;  %v8370_v62 = vunpack.i.l.bf16 %v13505_v45 }
 0x917   : > { %8478 = vrot.lane.b32.xlu0 %v8477_v22, %s9404_s20 }
 0x919   : > { %8453 = vrot.lane.b32.xlu1 %v8452_v4, %s9404_s20 }
 0x91d   : > { %8463 = vrot.lane.b32.xlu1 %v8462_v39, %s9408_s19 }
 0x921   : > { %8473 = vrot.lane.b32.xlu1 %v8472_v15, %s9407_s17  ;;  %v8400_v15 = vunpack.i.l.bf16 %v13500_v26 }
 0x925   : > { %8483 = vrot.lane.b32.xlu1 %v8482_v1, %s9404_s20 }
 0x928   : > { %v4247_v12 = vpop.xlane.xlu0 %4246 }
 0x929   : > { %8847 = vrcp.f32 %v4247_v12 }
 0x92c   : > { %v4251_v18 = vpop.xlane.xlu0 %4250 }
 0x92d   : > { %8849 = vrcp.f32 %v4251_v18 }
 0x92e   : > { %8851 = vrcp.f32 %v13427_v48  ;;  %v5059_v48 = vsel %vm3257_vm1, %v4803_v36, %v8381_v23 }
 0x92f   : > { %8853 = vrcp.f32 %v13429_v58 }
 0x930   : > { %8855 = vrcp.f32 %v13423_v6  ;;  %v8414_v55 = vpop.permute.xlu0 %8413 }
 0x931   : > { %8857 = vrcp.f32 %v13425_v9  ;;  %v8416_v57 = vunpack.i.h.bf16 %v8414_v55  ;;  %v8415_v4 = vunpack.i.l.bf16 %v8414_v55 }
 0x932   : > { %v13507_v27 = vpop.permute.xlu1 %8373 }
 0x933   : > { %v8848_v39 = vpop.eup %8847  ;;  %v8376_v12 = vunpack.i.h.bf16 %v13507_v27  ;;  %v8375_v18 = vunpack.i.l.bf16 %v13507_v27 }
 0x934   : > { %v13512_v7 = vmul.f32 %v8848_v39, %v13094_v61  ;;  %v5058_v61 = vsel %vm3257_vm1, %v4802_v14, %v8380_v50  ;;  %v15682_v39 = vld [vmem:[#allocation44_spill] sm:$0xff] }
 0x936   : > { %v8384_v56 = vpop.permute.xlu1 %8383 }
 0x937   : > { %v8850_v32 = vpop.eup %8849  ;;  %v8386_v58 = vunpack.i.h.bf16 %v8384_v56  ;;  %v8385_v59 = vunpack.i.l.bf16 %v8384_v56  ;;  %v8424_v46 = vpop.permute.xlu0 %8423 }
 0x938   : > { %v13521_v6 = vmul.f32 %v8850_v32, %v13091_v43  ;;  %v8852_v13 = vpop.eup %8851  ;;  %v8426_v3 = vunpack.i.h.bf16 %v8424_v46  ;;  %v8425_v11 = vunpack.i.l.bf16 %v8424_v46 }
 0x939   : > { %v5075_v31 = vsel %vm5074_vm2, %v5058_v61, %v8385_v59  ;;  %v5076_v2 = vsel %vm5074_vm2, %v5059_v48, %v8386_v58  ;;  %v8854_v37 = vpop.eup %8853  ;;  %v4807_v10 = vmul.f32 %v8852_v13, %v15680_v41  ;;  %v15683_v41 = vld [vmem:[#allocation84_spill] sm:$0xff] }
 0x93a   : > { %v8389_v44 = vpop.permute.xlu1 %8388  ;;  %v5092_v54 = vsel %vm5091_vm3, %v5075_v31, %v8415_v4  ;;  %v5093_v9 = vsel %vm5091_vm3, %v5076_v2, %v8416_v57  ;;  %v8856_v42 = vpop.eup %8855  ;;  %v4806_v21 = vmul.f32 %v8854_v37, %v15679_v49 }
 0x93b   : > { %v8391_v34 = vunpack.i.h.bf16 %v8389_v44  ;;  %v8390_v60 = vunpack.i.l.bf16 %v8389_v44  ;;  %v5108_v35 = vpack.c.bf16 %v5093_v9, %v5092_v54  ;;  %v8858_v53 = vpop.eup %8857  ;;  %v4805_v52 = vmul.f32 %v8856_v42, %v15681_v40 }
 0x93c   : > { %v5063_v1 = vsel %vm3257_vm1, %v4807_v10, %v8401_v33  ;;  %v5062_v22 = vsel %vm3257_vm1, %v4806_v21, %v8400_v15  ;;  %v4804_v23 = vmul.f32 %v8858_v53, %v15682_v39 }
 0x93d   : > { %v5065_v20 = vsel %vm3257_vm1, %v13436_v38, %v8391_v34  ;;  %v5064_v43 = vsel %vm3257_vm1, %v13440_v24, %v8390_v60  ;;  %8067 = vmatprep.mubr.bf16.mxu0 %v5108_v35  ;;  %v5061_v45 = vsel %vm3257_vm1, %v4805_v52, %v8371_v8 }
 0x93e   : > { %v8394_v30 = vpop.permute.xlu1 %8393  ;;  %v5060_v14 = vsel %vm3257_vm1, %v4804_v23, %v8370_v62  ;;  %v5078_v58 = vsel %vm5074_vm2, %v5061_v45, %v8376_v12 }
 0x93f   : > { %v8396_v16 = vunpack.i.h.bf16 %v8394_v30  ;;  %v8395_v0 = vunpack.i.l.bf16 %v8394_v30  ;;  %v5077_v48 = vsel %vm5074_vm2, %v5060_v14, %v8375_v18 }
 0x941   : > { %v5081_v38 = vsel %vm5074_vm2, %v5064_v43, %v8395_v0  ;;  %v5082_v24 = vsel %vm5074_vm2, %v5065_v20, %v8396_v16 }
 0x942   : > { %v8404_v47 = vpop.permute.xlu1 %8403 }
 0x943   : > { %v8406_v51 = vunpack.i.h.bf16 %v8404_v47  ;;  %v8405_v26 = vunpack.i.l.bf16 %v8404_v47 }
 0x945   : > { %v5079_v50 = vsel %vm5074_vm2, %v5062_v22, %v8405_v26  ;;  %v5080_v29 = vsel %vm5074_vm2, %v5063_v1, %v8406_v51 }
 0x946   : > { %v8409_v36 = vpop.permute.xlu1 %8408  ;;  %v5096_v55 = vsel %vm5091_vm3, %v5079_v50, %v8425_v11  ;;  %v5097_v25 = vsel %vm5091_vm3, %v5080_v29, %v8426_v3 }
 0x947   : > { %v8411_v56 = vunpack.i.h.bf16 %v8409_v36  ;;  %v8410_v32 = vunpack.i.l.bf16 %v8409_v36  ;;  %v5110_v27 = vpack.c.bf16 %v5097_v25, %v5096_v55 }
 0x949   : > { %v5095_v59 = vsel %vm5091_vm3, %v5078_v58, %v8411_v56  ;;  %v5094_v61 = vsel %vm5091_vm3, %v5077_v48, %v8410_v32 }
 0x94a   : > { %v5109_v57 = vpack.c.bf16 %v5095_v59, %v5094_v61 }
 0x94c   : > { %8068 = vmatmul.mubr.bf16.vlgmr.msra.gmra.mrb[96].mxu0 %v5109_v57 }
 0x94d   : > { %8071 = vmatprep.mubr.bf16.mxu0 %v5110_v27 }
 0x971   : > { %v4253_v4 = vpop.xlane.xlu0 %4252 }
 0x975   : > { %v8429_v31 = vpop.permute.xlu0 %8428 }
 0x976   : > { %v8431_v13 = vunpack.i.h.bf16 %v8429_v31  ;;  %v8430_v37 = vunpack.i.l.bf16 %v8429_v31 }
 0x978   : > { %v5067_v0 = vsel %vm3257_vm1, %v13443_v5, %v8431_v13  ;;  %v5066_v49 = vsel %vm3257_vm1, %v13446_v19, %v8430_v37 }
 0x979   : > { %v8449_v2 = vpop.permute.xlu0 %8448 }
 0x97a   : > { %v8450_v62 = vunpack.i.l.bf16 %v8449_v2 }
 0x97d   : > { %v8459_v44 = vpop.permute.xlu0 %8458 }
 0x97e   : > { %v8460_v15 = vunpack.i.l.bf16 %v8459_v44  ;;  %v8461_v21 = vunpack.i.h.bf16 %v8459_v44 }
 0x980   : > { %v5070_v47 = vsel %vm3257_vm1, %v13512_v7, %v8460_v15 }
 0x981   : > { %v8469_v34 = vpop.permute.xlu0 %8468 }
 0x982   : > { %v8470_v53 = vunpack.i.l.bf16 %v8469_v34  ;;  %v8471_v40 = vunpack.i.h.bf16 %v8469_v34 }
 0x984   : > { %v5087_v22 = vsel %vm5074_vm2, %v5070_v47, %v8470_v53 }
 0x985   : > { %v4249_v54 = vpop.xlane.xlu1 %4248 }
 0x986   : > { %8859 = vrcp.f32 %v4249_v54  ;;  %v15684_v54 = vld [vmem:[#allocation49_spill] sm:$0xff] }
 0x987   : > { %8861 = vrcp.f32 %v4253_v4 }
 0x989   : > { %v8419_v9 = vpop.permute.xlu1 %8418  ;;  %v8479_v33 = vpop.permute.xlu0 %8478 }
 0x98a   : > { %v8421_v60 = vunpack.i.h.bf16 %v8419_v9  ;;  %v8420_v35 = vunpack.i.l.bf16 %v8419_v9  ;;  %v8480_v46 = vunpack.i.l.bf16 %v8479_v33  ;;  %v8481_v1 = vunpack.i.h.bf16 %v8479_v33 }
 0x98c   : > { %v5098_v20 = vsel %vm5091_vm3, %v5081_v38, %v8420_v35  ;;  %v5099_v43 = vsel %vm5091_vm3, %v5082_v24, %v8421_v60  ;;  %v8451_v24 = vunpack.i.h.bf16 %v8449_v2  ;;  %v5104_v11 = vsel %vm5091_vm3, %v5087_v22, %v8480_v46 }
 0x98d   : > { %v8434_v30 = vpop.permute.xlu1 %8433  ;;  %v5111_v42 = vpack.c.bf16 %v5099_v43, %v5098_v20 }
 0x98e   : > { %v8436_v39 = vunpack.i.h.bf16 %v8434_v30  ;;  %v8435_v23 = vunpack.i.l.bf16 %v8434_v30 }
 0x98f   : > { %8072 = vmatmul.mubr.bf16.gmra.mrb[100].mxu0 %v5111_v42 }
 0x990   : > { %v8860_v16 = vpop.eup %8859  ;;  %v5069_v25 = vsel %vm3257_vm1, %v13467_v63, %v8436_v39  ;;  %v5068_v14 = vsel %vm3257_vm1, %v13454_v28, %v8435_v23  ;;  %v9131_v23 = vld [vmem:[%s9705_s30 + $0x30] sm:$0xff] }
 0x991   : > { %v4815_v10 = vmul.f32 %v8860_v16, %v15683_v41  ;;  %v8439_v38 = vpop.permute.xlu1 %8438  ;;  %v8862_v4 = vpop.eup %8861  ;;  %v9125_v41 = vld [vmem:[%s9705_s30] sm:$0xff] }
 0x992   : > { %v8441_v52 = vunpack.i.h.bf16 %v8439_v38  ;;  %v8440_v8 = vunpack.i.l.bf16 %v8439_v38  ;;  %v4817_v9 = vmul.f32 %v8862_v4, %v15684_v54  ;;  %v9126_v38 = vld [vmem:[%s9705_s30 + $0x8] sm:$0xff]  ;;  %v9135_v4 = vld [vmem:[%s9705_s30 + $0x50] sm:$0xff] }
 0x993   : > { %v5071_v5 = vsel %vm3257_vm1, %v4815_v10, %v8461_v21 }
 0x994   : > { %v5083_v19 = vsel %vm5074_vm2, %v5066_v49, %v8440_v8  ;;  %v5084_v51 = vsel %vm5074_vm2, %v5067_v0, %v8441_v52  ;;  %v5088_v26 = vsel %vm5074_vm2, %v5071_v5, %v8471_v40  ;;  %v9127_v40 = vld [vmem:[%s9705_s30 + $0x10] sm:$0xff] }
 0x995   : > { %v8444_v12 = vpop.permute.xlu1 %8443  ;;  %v5100_v18 = vsel %vm5091_vm3, %v5083_v19, %v8450_v62  ;;  %v5101_v3 = vsel %vm5091_vm3, %v5084_v51, %v8451_v24  ;;  %v5105_v7 = vsel %vm5091_vm3, %v5088_v26, %v8481_v1  ;;  %v9128_v62 = vld [vmem:[%s9705_s30 + $0x18] sm:$0xff] }
 0x996   : > { %v5112_v50 = vpack.c.bf16 %v5101_v3, %v5100_v18  ;;  %v5114_v29 = vpack.c.bf16 %v5105_v7, %v5104_v11  ;;  %v8446_v45 = vunpack.i.h.bf16 %v8444_v12  ;;  %v8445_v36 = vunpack.i.l.bf16 %v8444_v12  ;;  %v9129_v12 = vld [vmem:[%s9705_s30 + $0x20] sm:$0xff]  ;;  %v9130_v7 = vld [vmem:[%s9705_s30 + $0x28] sm:$0xff] }
 0x998   : > { %8075 = vmatprep.mubr.bf16.mxu0 %v5112_v50  ;;  %v5085_v27 = vsel %vm5074_vm2, %v5068_v14, %v8445_v36  ;;  %v5086_v48 = vsel %vm5074_vm2, %v5069_v25, %v8446_v45 }
 0x999   : > { %v8454_v55 = vpop.permute.xlu1 %8453 }
 0x99a   : > { %v8456_v56 = vunpack.i.h.bf16 %v8454_v55  ;;  %v8455_v32 = vunpack.i.l.bf16 %v8454_v55 }
 0x99c   : > { %v5102_v58 = vsel %vm5091_vm3, %v5085_v27, %v8455_v32  ;;  %v5103_v59 = vsel %vm5091_vm3, %v5086_v48, %v8456_v56  ;;  %v9133_v27 = vld [vmem:[%s9705_s30 + $0x40] sm:$0xff] }
 0x99d   : > { %v8464_v61 = vpop.permute.xlu1 %8463  ;;  %v5113_v57 = vpack.c.bf16 %v5103_v59, %v5102_v58 }
 0x99e   : > { %v8466_v63 = vunpack.i.h.bf16 %v8464_v61  ;;  %v8465_v2 = vunpack.i.l.bf16 %v8464_v61  ;;  %v9134_v61 = vld [vmem:[%s9705_s30 + $0x48] sm:$0xff] }
 0x99f   : > { %8076 = vmatmul.mubr.bf16.gmra.mrb[104].mxu0 %v5113_v57 }
 0x9a0   : > { %8079 = vmatprep.mubr.bf16.mxu0 %v5114_v29  ;;  %v5073_v60 = vsel %vm3257_vm1, %v4817_v9, %v8466_v63  ;;  %v5072_v35 = vsel %vm3257_vm1, %v13521_v6, %v8465_v2  ;;  %v13593_v6 = vld [vmem:[%s14772_s6] ss:$0 sm:$0xff]  ;;  %v9132_v29 = vld [vmem:[%s9705_s30 + $0x38] sm:$0xff] }
 0x9a1   : > { %v8474_v31 = vpop.permute.xlu1 %8473  ;;  %v9136_v63 = vld [vmem:[%s9705_s30 + $0x58] sm:$0xff] }
 0x9a2   : > { %v8476_v44 = vunpack.i.h.bf16 %v8474_v31  ;;  %v8475_v28 = vunpack.i.l.bf16 %v8474_v31 }
 0x9a4   : > { %v5089_v43 = vsel %vm5074_vm2, %v5072_v35, %v8475_v28  ;;  %v5090_v37 = vsel %vm5074_vm2, %v5073_v60, %v8476_v44  ;;  %v9137_v35 = vld [vmem:[%s9705_s30 + $0x60] sm:$0xff] }
 0x9a5   : > { %v8484_v34 = vpop.permute.xlu1 %8483 }
 0x9a6   : > { %v8486_v13 = vunpack.i.h.bf16 %v8484_v34  ;;  %v8485_v20 = vunpack.i.l.bf16 %v8484_v34 }
 0x9a8   : > { %v5106_v30 = vsel %vm5091_vm3, %v5089_v43, %v8485_v20  ;;  %v5107_v42 = vsel %vm5091_vm3, %v5090_v37, %v8486_v13  ;;  %v9138_v37 = vld [vmem:[%s9705_s30 + $0x68] sm:$0xff] }
 0x9a9   : > { %v5115_v33 = vpack.c.bf16 %v5107_v42, %v5106_v30  ;;  %v9139_v42 = vld [vmem:[%s9705_s30 + $0x70] sm:$0xff] }
 0x9ab   : > { %8080 = vmatmul.mubr.bf16.gmra.mrb[108].mxu0 %v5115_v33 }
 0x9ac   : > { %6001 = vmatprep.mubr.bf16.mxu0 %v15668_v17 }
 0xa1f   : > { %v8069_v15 = vpop.f32.mrb[96].mxu0 }
 0xa20   : > { %v5221_v16 = vpop.f32.mrb[97].mxu0  ;;  %v5230_v21 = vadd.f32 %v8069_v15, %v13593_v6  ;;  %v9140_v15 = vld [vmem:[%s9705_s30 + $0x78] sm:$0xff]  ;;  %s15788_s30 = sld [smem:[#allocation198_spill]] }
 0xa21   : > { %v5222_v0 = vadd.f32 %v13593_v6, %v5221_v16  ;;  %v8070_v53 = vpop.f32.mrb[98].mxu0 }
 0xa22   : > { %v5224_v49 = vpop.f32.mrb[99].mxu0  ;;  %v13606_v52 = vadd.f32 %v9127_v40, %v5230_v21  ;;  %v5233_v8 = vadd.f32 %v8070_v53, %v13593_v6 }
 0xa23   : > { %v13598_v10 = vadd.f32 %v9125_v41, %v5222_v0  ;;  %v5225_v46 = vadd.f32 %v13593_v6, %v5224_v49 }
 0xa24   : > { %15687 = vst [vmem:[#allocation157_spill] sm:$0xff] %v13606_v52  ;;  %v13612_v47 = vadd.f32 %v9128_v62, %v5233_v8 }
 0xa25   : > { %15685 = vst [vmem:[#allocation104_spill] sm:$0xff] %v13598_v10  ;;  %v13602_v24 = vadd.f32 %v9126_v38, %v5225_v46  ;;  %5302 = vadd.xlane.f32.xlu0 %v13598_v10 }
 0xa26   : > { %15688 = vst [vmem:[#allocation98_spill] sm:$0xff] %v13612_v47  ;;  %s14716_s19 = scalar_lea.hbm %s15788_s30, %s7474_s27 }
 0xa27   : > { %15686 = vst [vmem:[#allocation100_spill] sm:$0xff] %v13602_v24  ;;  %5304 = vadd.xlane.f32.xlu1 %v13602_v24 }
 0xa29   : > { %5306 = vadd.xlane.f32.xlu0 %v13606_v52 }
 0xa2d   : > { %5308 = vadd.xlane.f32.xlu0 %v13612_v47 }
 0xa62   : > { %v8073_v1 = vpop.f32.mrb[100].mxu0 }
 0xa63   : > { %v5237_v5 = vpop.f32.mrb[101].mxu0  ;;  %v5246_v26 = vadd.f32 %v8073_v1, %v13593_v6 }
 0xa64   : > { %v5238_v22 = vadd.f32 %v13593_v6, %v5237_v5  ;;  %v8074_v19 = vpop.f32.mrb[102].mxu0 }
 0xa65   : > { %v5240_v51 = vpop.f32.mrb[103].mxu0  ;;  %v5249_v11 = vadd.f32 %v8074_v19, %v13593_v6  ;;  %v13627_v50 = vadd.f32 %v9131_v23, %v5246_v26  ;;  %v8529_v26 = vld [vmem:[#allocation8 + $0x4] ss:$16 sps:$4 sm:$0xff]   ;;  %v8538_v23 = vld [vmem:[#allocation8 + $0x2c] ss:$16 sps:$4 sm:$0xff]  }
 0xa66   : > { %v13618_v18 = vadd.f32 %v9129_v12, %v5238_v22  ;;  %v5241_v3 = vadd.f32 %v13593_v6, %v5240_v51  ;;  %v8532_v12 = vld [vmem:[#allocation8 + $0xc] ss:$16 sps:$4 sm:$0xff]   ;;  %5856 = vmatprep.subr.bf16.mxu1 %v8529_v26 }
 0xa67   : > { %15691 = vst [vmem:[#allocation96_spill] sm:$0xff] %v13627_v50  ;;  %v13631_v45 = vadd.f32 %v9132_v29, %v5249_v11  ;;  %v8530_v11 = vld [vmem:[#allocation8 + $0x8] ss:$16 sps:$4 sm:$0xff]   ;;  %5969 = vmatprep.subr.bf16.mxu0 %v8532_v12  ;;  %v8533_v29 = vld [vmem:[#allocation8 + $0x20] ss:$16 sps:$4 sm:$0xff]  }
 0xa68   : > { %15689 = vst [vmem:[#allocation93_spill] sm:$0xff] %v13618_v18  ;;  %v13623_v39 = vadd.f32 %v9130_v7, %v5241_v3  ;;  %5310 = vadd.xlane.f32.xlu0 %v13618_v18  ;;  %v8527_v3 = vld [vmem:[#allocation8] ss:$16 sps:$4 sm:$0xff]   ;;  %5970 = vmatpush1.bf16.msra.mxu0 %v8530_v11  ;;  %v8535_v7 = vld [vmem:[#allocation8 + $0x24] ss:$16 sps:$4 sm:$0xff]  }
 0xa69   : > { %15692 = vst [vmem:[#allocation121_spill] sm:$0xff] %v13631_v45  ;;  %5857 = vmatpush1.bf16.msra.mxu1 %v8527_v3  ;;  %5971 = vmatprep.subr.bf16.mxu0 %v8538_v23 }
 0xa6a   : > { %15690 = vst [vmem:[#allocation99_spill] sm:$0xff] %v13623_v39  ;;  %5312 = vadd.xlane.f32.xlu1 %v13623_v39  ;;  %5858 = vmatprep.subr.bf16.mxu1 %v8535_v7 }
 0xa6c   : > { %5314 = vadd.xlane.f32.xlu0 %v13627_v50 }
 0xa6d   : > { %5859 = vmatpush1.bf16.msra.mxu1 %v8533_v29 }
 0xa6e   : > { %5316 = vadd.xlane.f32.xlu1 %v13631_v45 }
 0xa72   : > { %v8077_v36 = vpop.f32.mrb[104].mxu0 }
 0xa73   : > { %v5253_v55 = vpop.f32.mrb[105].mxu0  ;;  %v5262_v32 = vadd.f32 %v8077_v36, %v13593_v6  ;;  %v8536_v36 = vld [vmem:[#allocation8 + $0x28] ss:$16 sps:$4 sm:$0xff]  }
 0xa74   : > { %v5254_v25 = vadd.f32 %v13593_v6, %v5253_v55  ;;  %v8078_v14 = vpop.f32.mrb[106].mxu0  ;;  %5972 = vmatpush1.bf16.msra.mxu0 %v8536_v36  ;;  %v8541_v55 = vld [vmem:[#allocation8 + $0x44] ss:$16 sps:$4 sm:$0xff]  }
 0xa75   : > { %v5256_v56 = vpop.f32.mrb[107].mxu0  ;;  %v5265_v59 = vadd.f32 %v8078_v14, %v13593_v6  ;;  %v13647_v31 = vadd.f32 %v9135_v4, %v5262_v32  ;;  %v8539_v14 = vld [vmem:[#allocation8 + $0x40] ss:$16 sps:$4 sm:$0xff]   ;;  %5860 = vmatprep.subr.bf16.mxu1 %v8541_v55  ;;  %v8547_v32 = vld [vmem:[#allocation8 + $0x64] ss:$16 sps:$4 sm:$0xff]  }
 0xa76   : > { %v13638_v48 = vadd.f32 %v9133_v27, %v5254_v25  ;;  %v5257_v58 = vadd.f32 %v13593_v6, %v5256_v56  ;;  %v8544_v25 = vld [vmem:[#allocation8 + $0x4c] ss:$16 sps:$4 sm:$0xff]   ;;  %v8542_v56 = vld [vmem:[#allocation8 + $0x48] ss:$16 sps:$4 sm:$0xff]   ;;  %5861 = vmatpush1.bf16.msra.mxu1 %v8539_v14  ;;  %v8553_v4 = vld [vmem:[#allocation8 + $0x84] ss:$16 sps:$4 sm:$0xff]  }
 0xa77   : > { %15695 = vst [vmem:[#allocation158_spill] sm:$0xff] %v13647_v31  ;;  %v13651_v2 = vadd.f32 %v9136_v63, %v5265_v59  ;;  %5973 = vmatprep.subr.bf16.mxu0 %v8544_v25  ;;  %v8550_v27 = vld [vmem:[#allocation8 + $0x6c] ss:$16 sps:$4 sm:$0xff]   ;;  %v8548_v59 = vld [vmem:[#allocation8 + $0x68] ss:$16 sps:$4 sm:$0xff]   ;;  %5862 = vmatprep.subr.bf16.mxu1 %v8547_v32 }
 0xa78   : > { %15693 = vst [vmem:[#allocation136_spill] sm:$0xff] %v13638_v48  ;;  %v13643_v57 = vadd.f32 %v9134_v61, %v5257_v58  ;;  %5318 = vadd.xlane.f32.xlu0 %v13638_v48  ;;  %5974 = vmatpush1.bf16.msra.mxu0 %v8542_v56  ;;  %v8545_v58 = vld [vmem:[#allocation8 + $0x60] ss:$16 sps:$4 sm:$0xff]   ;;  %v8554_v63 = vld [vmem:[#allocation8 + $0x88] ss:$16 sps:$4 sm:$0xff]  }
 0xa79   : > { %15696 = vst [vmem:[#allocation60_spill] sm:$0xff] %v13651_v2  ;;  %5975 = vmatprep.subr.bf16.mxu0 %v8550_v27  ;;  %v8551_v61 = vld [vmem:[#allocation8 + $0x80] ss:$16 sps:$4 sm:$0xff]  }
 0xa7a   : > { %15694 = vst [vmem:[#allocation131_spill] sm:$0xff] %v13643_v57  ;;  %5320 = vadd.xlane.f32.xlu1 %v13643_v57  ;;  %5863 = vmatpush1.bf16.msra.mxu1 %v8545_v58 }
 0xa7b   : > { %5864 = vmatprep.subr.bf16.mxu1 %v8553_v4 }
 0xa7c   : > { %5322 = vadd.xlane.f32.xlu0 %v13647_v31  ;;  %5976 = vmatpush1.bf16.msra.mxu0 %v8548_v59 }
 0xa7e   : > { %5324 = vadd.xlane.f32.xlu1 %v13651_v2  ;;  %v8081_v44 = vpop.f32.mrb[108].mxu0  ;;  %5865 = vmatpush1.bf16.msra.mxu1 %v8551_v61 }
 0xa7f   : > { %v5269_v28 = vpop.f32.mrb[109].mxu0  ;;  %v5278_v60 = vadd.f32 %v8081_v44, %v13593_v6  ;;  %v8556_v44 = vld [vmem:[#allocation8 + $0x8c] ss:$16 sps:$4 sm:$0xff]  }
 0xa80   : > { %v5270_v54 = vadd.f32 %v13593_v6, %v5269_v28  ;;  %v8082_v9 = vpop.f32.mrb[110].mxu0  ;;  %v8559_v28 = vld [vmem:[#allocation8 + $0xa4] ss:$16 sps:$4 sm:$0xff]   ;;  %5977 = vmatprep.subr.bf16.mxu0 %v8556_v44 }
 0xa81   : > { %v5272_v34 = vpop.f32.mrb[111].mxu0  ;;  %v5281_v43 = vadd.f32 %v8082_v9, %v13593_v6  ;;  %v13667_v33 = vadd.f32 %v9139_v42, %v5278_v60  ;;  %5978 = vmatpush1.bf16.msra.mxu0 %v8554_v63  ;;  %v8557_v9 = vld [vmem:[#allocation8 + $0xa0] ss:$16 sps:$4 sm:$0xff]   ;;  %5866 = vmatprep.subr.bf16.mxu1 %v8559_v28  ;;  %v8565_v60 = vld [vmem:[#allocation8 + $0xc4] ss:$16 sps:$4 sm:$0xff]  }
 0xa82   : > { %v13658_v13 = vadd.f32 %v9137_v35, %v5270_v54  ;;  %v5273_v20 = vadd.f32 %v13593_v6, %v5272_v34  ;;  %v8562_v54 = vld [vmem:[#allocation8 + $0xac] ss:$16 sps:$4 sm:$0xff]   ;;  %v8560_v34 = vld [vmem:[#allocation8 + $0xa8] ss:$16 sps:$4 sm:$0xff]   ;;  %5867 = vmatpush1.bf16.msra.mxu1 %v8557_v9 }
 0xa83   : > { %15699 = vst [vmem:[#allocation127_spill] sm:$0xff] %v13667_v33  ;;  %v13671_v16 = vadd.f32 %v9140_v15, %v5281_v43  ;;  %5979 = vmatprep.subr.bf16.mxu0 %v8562_v54  ;;  %v8568_v35 = vld [vmem:[#allocation8 + $0xcc] ss:$16 sps:$4 sm:$0xff]   ;;  %v8566_v43 = vld [vmem:[#allocation8 + $0xc8] ss:$16 sps:$4 sm:$0xff]   ;;  %5868 = vmatprep.subr.bf16.mxu1 %v8565_v60 }
 0xa84   : > { %15697 = vst [vmem:[#allocation54_spill] sm:$0xff] %v13658_v13  ;;  %v13663_v30 = vadd.f32 %v9138_v37, %v5273_v20  ;;  %5326 = vadd.xlane.f32.xlu0 %v13658_v13  ;;  %v8563_v20 = vld [vmem:[#allocation8 + $0xc0] ss:$16 sps:$4 sm:$0xff]   ;;  %v8571_v37 = vld [vmem:[#allocation8 + $0xe4] ss:$16 sps:$4 sm:$0xff]  }
 0xa85   : > { %15700 = vst [vmem:[#allocation91_spill] sm:$0xff] %v13671_v16  ;;  %5980 = vmatpush1.bf16.msra.mxu0 %v8560_v34  ;;  %v8574_v42 = vld [vmem:[#allocation8 + $0xec] ss:$16 sps:$4 sm:$0xff]   ;;  %v8569_v15 = vld [vmem:[#allocation8 + $0xe0] ss:$16 sps:$4 sm:$0xff]  }
 0xa86   : > { %15698 = vst [vmem:[#allocation132_spill] sm:$0xff] %v13663_v30  ;;  %5328 = vadd.xlane.f32.xlu1 %v13663_v30  ;;  %5981 = vmatprep.subr.bf16.mxu0 %v8568_v35 }
 0xa87   : > { %5869 = vmatpush1.bf16.msra.mxu1 %v8563_v20 }
 0xa88   : > { %5330 = vadd.xlane.f32.xlu0 %v13667_v33  ;;  %5870 = vmatprep.subr.bf16.mxu1 %v8571_v37 }
 0xa89   : > { %5982 = vmatpush1.bf16.msra.mxu0 %v8566_v43 }
 0xa8a   : > { %5332 = vadd.xlane.f32.xlu1 %v13671_v16  ;;  %5983 = vmatprep.subr.bf16.mxu0 %v8574_v42 }
 0xa8b   : > { %5871 = vmatpush1.bf16.msra.mxu1 %v8569_v15 }
 0xab2   : > { %v5303_v0 = vpop.xlane.xlu0 %5302 }
 0xab3   : > { %v5334_v53 = vmul.f32 0.0078125, %v5303_v0  ;;  %v8572_v0 = vld [vmem:[#allocation8 + $0xe8] ss:$16 sps:$4 sm:$0xff]  }
 0xab4   : > { %v5305_v6 = vpop.xlane.xlu1 %5304  ;;  %5984 = vmatpush1.bf16.msra.mxu0 %v8572_v0 }
 0xab5   : > { %v13676_v49 = vsub.f32 %v13598_v10, %v5334_v53  ;;  %v5335_v21 = vmul.f32 0.0078125, %v5305_v6 }
 0xab6   : > { %v5307_v41 = vpop.xlane.xlu0 %5306 }
 0xab7   : > { %v13679_v46 = vsub.f32 %v13602_v24, %v5335_v21  ;;  %v5336_v38 = vmul.f32 0.0078125, %v5307_v41  ;;  %v5366_v40 = vmul.f32 %v13676_v49, %v13676_v49 }
 0xab9   : > { %v13684_v8 = vsub.f32 %v13606_v52, %v5336_v38  ;;  %5382 = vadd.xlane.f32.xlu0 %v5366_v40  ;;  %v5367_v62 = vmul.f32 %v13679_v46, %v13679_v46 }
 0xaba   : > { %v5309_v1 = vpop.xlane.xlu0 %5308 }
 0xabb   : > { %v5337_v5 = vmul.f32 0.0078125, %v5309_v1  ;;  %5384 = vadd.xlane.f32.xlu1 %v5367_v62  ;;  %v5368_v22 = vmul.f32 %v13684_v8, %v13684_v8 }
 0xabd   : > { %v13691_v19 = vsub.f32 %v13612_v47, %v5337_v5  ;;  %5386 = vadd.xlane.f32.xlu0 %v5368_v22 }
 0xabf   : > { %v5369_v51 = vmul.f32 %v13691_v19, %v13691_v19 }
 0xac1   : > { %5388 = vadd.xlane.f32.xlu1 %v5369_v51 }
 0xaf5   : > { %v5311_v53 = vpop.xlane.xlu0 %5310 }
 0xaf6   : > { %v5338_v6 = vmul.f32 0.0078125, %v5311_v53 }
 0xaf7   : > { %v5313_v21 = vpop.xlane.xlu1 %5312 }
 0xaf8   : > { %v13696_v41 = vsub.f32 %v13618_v18, %v5338_v6  ;;  %v5339_v38 = vmul.f32 0.0078125, %v5313_v21 }
 0xaf9   : > { %v5315_v40 = vpop.xlane.xlu0 %5314 }
 0xafa   : > { %v13699_v62 = vsub.f32 %v13623_v39, %v5339_v38  ;;  %v5340_v1 = vmul.f32 0.0078125, %v5315_v40  ;;  %v5370_v5 = vmul.f32 %v13696_v41, %v13696_v41 }
 0xafb   : > { %v5317_v22 = vpop.xlane.xlu1 %5316 }
 0xafc   : > { %v13704_v51 = vsub.f32 %v13627_v50, %v5340_v1  ;;  %v5341_v26 = vmul.f32 0.0078125, %v5317_v22  ;;  %5390 = vadd.xlane.f32.xlu0 %v5370_v5  ;;  %v5371_v12 = vmul.f32 %v13699_v62, %v13699_v62 }
 0xafe   : > { %v13709_v3 = vsub.f32 %v13631_v45, %v5341_v26  ;;  %5392 = vadd.xlane.f32.xlu1 %v5371_v12  ;;  %v5372_v11 = vmul.f32 %v13704_v51, %v13704_v51 }
 0xb00   : > { %5394 = vadd.xlane.f32.xlu0 %v5372_v11  ;;  %v5373_v7 = vmul.f32 %v13709_v3, %v13709_v3 }
 0xb02   : > { %5396 = vadd.xlane.f32.xlu1 %v5373_v7 }
 0xb05   : > { %v5319_v23 = vpop.xlane.xlu0 %5318 }
 0xb06   : > { %v5342_v29 = vmul.f32 0.0078125, %v5319_v23 }
 0xb07   : > { %v5321_v36 = vpop.xlane.xlu1 %5320 }
 0xb08   : > { %v13716_v55 = vsub.f32 %v13638_v48, %v5342_v29  ;;  %v5343_v25 = vmul.f32 0.0078125, %v5321_v36 }
 0xb09   : > { %v5323_v14 = vpop.xlane.xlu0 %5322 }
 0xb0a   : > { %v13719_v56 = vsub.f32 %v13643_v57, %v5343_v25  ;;  %v5344_v32 = vmul.f32 0.0078125, %v5323_v14  ;;  %v5374_v27 = vmul.f32 %v13716_v55, %v13716_v55 }
 0xb0b   : > { %v5325_v58 = vpop.xlane.xlu1 %5324 }
 0xb0c   : > { %v13724_v59 = vsub.f32 %v13647_v31, %v5344_v32  ;;  %v5345_v61 = vmul.f32 0.0078125, %v5325_v58  ;;  %5398 = vadd.xlane.f32.xlu0 %v5374_v27  ;;  %v5375_v4 = vmul.f32 %v13719_v56, %v13719_v56 }
 0xb0e   : > { %v13729_v63 = vsub.f32 %v13651_v2, %v5345_v61  ;;  %5400 = vadd.xlane.f32.xlu1 %v5375_v4  ;;  %v5376_v44 = vmul.f32 %v13724_v59, %v13724_v59 }
 0xb10   : > { %5402 = vadd.xlane.f32.xlu0 %v5376_v44  ;;  %v5377_v28 = vmul.f32 %v13729_v63, %v13729_v63 }
 0xb11   : > { %v5327_v54 = vpop.xlane.xlu0 %5326 }
 0xb12   : > { %v5346_v9 = vmul.f32 0.0078125, %v5327_v54  ;;  %5404 = vadd.xlane.f32.xlu1 %v5377_v28 }
 0xb13   : > { %v5329_v34 = vpop.xlane.xlu1 %5328 }
 0xb14   : > { %v13736_v60 = vsub.f32 %v13658_v13, %v5346_v9  ;;  %v5347_v35 = vmul.f32 0.0078125, %v5329_v34 }
 0xb15   : > { %v5331_v20 = vpop.xlane.xlu0 %5330 }
 0xb16   : > { %v13739_v43 = vsub.f32 %v13663_v30, %v5347_v35  ;;  %v5348_v37 = vmul.f32 0.0078125, %v5331_v20  ;;  %v5378_v42 = vmul.f32 %v13736_v60, %v13736_v60 }
 0xb17   : > { %v5333_v15 = vpop.xlane.xlu1 %5332 }
 0xb18   : > { %v13744_v0 = vsub.f32 %v13667_v33, %v5348_v37  ;;  %v5349_v53 = vmul.f32 0.0078125, %v5333_v15  ;;  %5406 = vadd.xlane.f32.xlu0 %v5378_v42  ;;  %v5379_v6 = vmul.f32 %v13739_v43, %v13739_v43 }
 0xb1a   : > { %v13749_v21 = vsub.f32 %v13671_v16, %v5349_v53  ;;  %5408 = vadd.xlane.f32.xlu1 %v5379_v6  ;;  %v5380_v38 = vmul.f32 %v13744_v0, %v13744_v0 }
 0xb1c   : > { %5410 = vadd.xlane.f32.xlu0 %v5380_v38  ;;  %v5381_v40 = vmul.f32 %v13749_v21, %v13749_v21 }
 0xb1e   : > { %5412 = vadd.xlane.f32.xlu1 %v5381_v40 }
 0xb46   : > { %v5383_v1 = vpop.xlane.xlu0 %5382 }
 0xb47   : > { %v5414_v5 = vmul.f32 0.007874016, %v5383_v1 }
 0xb48   : > { %v5385_v22 = vpop.xlane.xlu1 %5384 }
 0xb49   : > { %8863 = vrsqrt.f32 %v5414_v5  ;;  %v5415_v26 = vmul.f32 0.007874016, %v5385_v22  ;;  %vm5432_vm4 = vcmp.eq.f32.partialorder %v5414_v5, inf  ;;  %v5435_v25 = vand.u32 2147483648, %v5414_v5  ;;  %v13758_v22 = vld [vmem:[%s14773_s7] ss:$0 sm:$0xff] }
 0xb4a   : > { %v5387_v12 = vpop.xlane.xlu0 %5386  ;;  %vm5434_vm6 = vcmp.eq.f32.partialorder %v5414_v5, 0.0 }
 0xb4b   : > { %v5416_v11 = vmul.f32 0.007874016, %v5387_v12  ;;  %8865 = vrsqrt.f32 %v5415_v26  ;;  %vm5439_vm5 = vcmp.eq.f32.partialorder %v5415_v26, inf  ;;  %v5442_v44 = vand.u32 2147483648, %v5415_v26 }
 0xb4c   : > { %vm5441_vm8 = vcmp.eq.f32.partialorder %v5415_v26, 0.0 }
 0xb4d   : > { %8867 = vrsqrt.f32 %v5416_v11  ;;  %vm5446_vm7 = vcmp.eq.f32.partialorder %v5416_v11, inf  ;;  %v5449_v9 = vand.u32 2147483648, %v5416_v11  ;;  %vm5448_vm9 = vcmp.eq.f32.partialorder %v5416_v11, 0.0 }
 0xb4e   : > { %v5389_v7 = vpop.xlane.xlu1 %5388 }
 0xb4f   : > { %v5417_v23 = vmul.f32 0.007874016, %v5389_v7 }
 0xb51   : > { %8869 = vrsqrt.f32 %v5417_v23  ;;  %vm5453_vm10 = vcmp.eq.f32.partialorder %v5417_v23, inf  ;;  %v5456_v6 = vand.u32 2147483648, %v5417_v23  ;;  %vm5455_vm11 = vcmp.eq.f32.partialorder %v5417_v23, 0.0 }
 0xb53   : > { %v8864_v29 = vpop.eup %8863 }
 0xb54   : > { %v5431_v36 = vmul.f32 %v8864_v29, %v5414_v5 }
 0xb55   : > { %v8866_v14 = vpop.eup %8865 }
 0xb56   : > { %v5433_v32 = vsel %vm5432_vm4, %v5414_v5, %v5431_v36  ;;  %v5438_v61 = vmul.f32 %v8866_v14, %v5415_v26 }
 0xb57   : > { %v8868_v27 = vpop.eup %8867  ;;  %v5436_v58 = vsel %vm5434_vm6, %v5435_v25, %v5433_v32 }
 0xb58   : > { %v5542_v4 = vadd.f32 1e-06, %v5436_v58  ;;  %v5445_v28 = vmul.f32 %v8868_v27, %v5416_v11  ;;  %v5440_v54 = vsel %vm5439_vm5, %v5415_v26, %v5438_v61 }
 0xb59   : > { %v5443_v34 = vsel %vm5441_vm8, %v5442_v44, %v5440_v54 }
 0xb5a   : > { %8871 = vrcp.f32 %v5542_v4  ;;  %v5447_v35 = vsel %vm5446_vm7, %v5416_v11, %v5445_v28  ;;  %v5543_v37 = vadd.f32 1e-06, %v5443_v34 }
 0xb5b   : > { %v8870_v20 = vpop.eup %8869  ;;  %v5450_v42 = vsel %vm5448_vm9, %v5449_v9, %v5447_v35 }
 0xb5c   : > { %v5544_v15 = vadd.f32 1e-06, %v5450_v42  ;;  %v5452_v53 = vmul.f32 %v8870_v20, %v5417_v23  ;;  %8873 = vrcp.f32 %v5543_v37 }
 0xb5e   : > { %v5454_v38 = vsel %vm5453_vm10, %v5417_v23, %v5452_v53  ;;  %8875 = vrcp.f32 %v5544_v15  ;;  %v13766_v23 = vld [vmem:[%s14774_s8] ss:$0 sm:$0xff] }
 0xb5f   : > { %v5457_v40 = vsel %vm5455_vm11, %v5456_v6, %v5454_v38 }
 0xb60   : > { %v5545_v1 = vadd.f32 1e-06, %v5457_v40 }
 0xb62   : > { %8877 = vrcp.f32 %v5545_v1 }
 0xb64   : > { %v8872_v5 = vpop.eup %8871 }
 0xb65   : > { %v5559_v26 = vmul.f32 %v8872_v5, %v13676_v49 }
 0xb66   : > { %v8874_v12 = vpop.eup %8873 }
 0xb67   : > { %v5561_v11 = vmul.f32 %v8874_v12, %v13679_v46  ;;  %v5596_v7 = vmul.f32 %v13758_v22, %v5559_v26 }
 0xb68   : > { %v8876_v29 = vpop.eup %8875 }
 0xb69   : > { %v5597_v36 = vmul.f32 %v13758_v22, %v5561_v11  ;;  %v5618_v14 = vadd.f32 %v13766_v23, %v5596_v7  ;;  %v5563_v49 = vmul.f32 %v8876_v29, %v13684_v8 }
 0xb6b   : > { %v5619_v32 = vadd.f32 %v13766_v23, %v5597_v36  ;;  %v5598_v61 = vmul.f32 %v13758_v22, %v5563_v49 }
 0xb6c   : > { %v8878_v25 = vpop.eup %8877 }
 0xb6d   : > { %v5565_v27 = vmul.f32 %v8878_v25, %v13691_v19  ;;  %v5634_v46 = vpack.c.bf16 %v5619_v32, %v5618_v14  ;;  %v5620_v44 = vadd.f32 %v13766_v23, %v5598_v61 }
 0xb6f   : > { %v5599_v58 = vmul.f32 %v13758_v22, %v5565_v27  ;;  %5889 = vmatmul.mubr.bf16.vlgmr.msra.gmra.mrb[80].mxu1 %v5634_v46  ;;  %6002 = vmatmul.mubr.bf16.vlgmr.msra.gmra.mrb[112].mxu0 %v5634_v46 }
 0xb70   : > { %5898 = vmatprep.mubr.bf16.mxu1 %v15668_v17  ;;  %6011 = vmatprep.mubr.bf16.mxu0 %v15668_v17 }
 0xb71   : > { %v5621_v4 = vadd.f32 %v13766_v23, %v5599_v58 }
 0xb73   : > { %v5635_v28 = vpack.c.bf16 %v5621_v4, %v5620_v44 }
 0xb77   : > { %5899 = vmatmul.mubr.bf16.gmra.mrb[84].mxu1 %v5635_v28  ;;  %6012 = vmatmul.mubr.bf16.gmra.mrb[116].mxu0 %v5635_v28 }
 0xb78   : > { %5908 = vmatprep.mubr.bf16.mxu1 %v15668_v17  ;;  %6021 = vmatprep.mubr.bf16.mxu0 %v15668_v17 }
 0xb89   : > { %v5391_v8 = vpop.xlane.xlu0 %5390 }
 0xb8a   : > { %v5418_v19 = vmul.f32 0.007874016, %v5391_v8 }
 0xb8b   : > { %v5393_v54 = vpop.xlane.xlu1 %5392 }
 0xb8c   : > { %8879 = vrsqrt.f32 %v5418_v19  ;;  %v5419_v9 = vmul.f32 0.007874016, %v5393_v54  ;;  %vm5460_vm12 = vcmp.eq.f32.partialorder %v5418_v19, inf  ;;  %v5463_v38 = vand.u32 2147483648, %v5418_v19 }
 0xb8d   : > { %v5395_v34 = vpop.xlane.xlu0 %5394  ;;  %vm5462_vm15 = vcmp.eq.f32.partialorder %v5418_v19, 0.0 }
 0xb8e   : > { %v5420_v35 = vmul.f32 0.007874016, %v5395_v34  ;;  %8881 = vrsqrt.f32 %v5419_v9  ;;  %vm5467_vm13 = vcmp.eq.f32.partialorder %v5419_v9, inf  ;;  %v5470_v11 = vand.u32 2147483648, %v5419_v9 }
 0xb8f   : > { %v5397_v20 = vpop.xlane.xlu1 %5396  ;;  %vm5469_vm14 = vcmp.eq.f32.partialorder %v5419_v9, 0.0 }
 0xb90   : > { %8883 = vrsqrt.f32 %v5420_v35  ;;  %v5421_v37 = vmul.f32 0.007874016, %v5397_v20  ;;  %vm5474_vm0 = vcmp.eq.f32.partialorder %v5420_v35, inf  ;;  %vm5476_vm1 = vcmp.eq.f32.partialorder %v5420_v35, 0.0 }
 0xb91   : > { %v5477_v58 = vand.u32 2147483648, %v5420_v35 }
 0xb92   : > { %8885 = vrsqrt.f32 %v5421_v37  ;;  %vm5481_vm2 = vcmp.eq.f32.partialorder %v5421_v37, inf  ;;  %vm5483_vm3 = vcmp.eq.f32.partialorder %v5421_v37, 0.0  ;;  %v5484_v44 = vand.u32 2147483648, %v5421_v37 }
 0xb96   : > { %v8880_v42 = vpop.eup %8879 }
 0xb97   : > { %v5459_v15 = vmul.f32 %v8880_v42, %v5418_v19 }
 0xb98   : > { %v8882_v53 = vpop.eup %8881 }
 0xb99   : > { %v5461_v6 = vsel %vm5460_vm12, %v5418_v19, %v5459_v15  ;;  %v5399_v40 = vpop.xlane.xlu0 %5398  ;;  %v5466_v5 = vmul.f32 %v8882_v53, %v5419_v9 }
 0xb9a   : > { %v8884_v1 = vpop.eup %8883  ;;  %v5422_v26 = vmul.f32 0.007874016, %v5399_v40  ;;  %v5464_v12 = vsel %vm5462_vm15, %v5463_v38, %v5461_v6 }
 0xb9b   : > { %v5473_v7 = vmul.f32 %v8884_v1, %v5420_v35  ;;  %v5401_v29 = vpop.xlane.xlu1 %5400  ;;  %v5468_v36 = vsel %vm5467_vm13, %v5419_v9, %v5466_v5  ;;  %v5546_v46 = vadd.f32 1e-06, %v5464_v12 }
 0xb9c   : > { %8887 = vrsqrt.f32 %v5422_v26  ;;  %v8886_v25 = vpop.eup %8885  ;;  %v5471_v14 = vsel %vm5469_vm14, %v5470_v11, %v5468_v36  ;;  %v5423_v49 = vmul.f32 0.007874016, %v5401_v29  ;;  %vm5488_vm4 = vcmp.eq.f32.partialorder %v5422_v26, inf }
 0xb9d   : > { %v5475_v32 = vsel %vm5474_vm0, %v5420_v35, %v5473_v7  ;;  %v5403_v27 = vpop.xlane.xlu0 %5402  ;;  %v5480_v61 = vmul.f32 %v8886_v25, %v5421_v37  ;;  %v5547_v8 = vadd.f32 1e-06, %v5471_v14  ;;  %v5491_v40 = vand.u32 2147483648, %v5422_v26 }
 0xb9e   : > { %v13781_v4 = vmul.f32 0.007874016, %v5403_v27  ;;  %8889 = vrsqrt.f32 %v5423_v49  ;;  %v5478_v19 = vsel %vm5476_vm1, %v5477_v58, %v5475_v32  ;;  %vm5490_vm6 = vcmp.eq.f32.partialorder %v5422_v26, 0.0 }
 0xb9f   : > { %v5405_v28 = vpop.xlane.xlu1 %5404  ;;  %v5482_v54 = vsel %vm5481_vm2, %v5421_v37, %v5480_v61  ;;  %v5548_v42 = vadd.f32 1e-06, %v5478_v19  ;;  %vm5495_vm5 = vcmp.eq.f32.partialorder %v5423_v49, inf  ;;  %vm5497_vm8 = vcmp.eq.f32.partialorder %v5423_v49, 0.0 }
 0xba0   : > { %8891 = vrsqrt.f32 %v13781_v4  ;;  %v5485_v9 = vsel %vm5483_vm3, %v5484_v44, %v5482_v54  ;;  %v5425_v34 = vmul.f32 0.007874016, %v5405_v28  ;;  %v5498_v25 = vand.u32 2147483648, %v5423_v49 }
 0xba1   : > { %v5549_v20 = vadd.f32 1e-06, %v5485_v9  ;;  %8893 = vrcp.f32 %v5546_v46  ;;  %vm5502_vm7 = vcmp.eq.f32.partialorder %v13781_v4, inf  ;;  %vm5504_vm9 = vcmp.eq.f32.partialorder %v13781_v4, 0.0 }
 0xba2   : > { %8895 = vrsqrt.f32 %v5425_v34  ;;  %vm5509_vm10 = vcmp.eq.f32.partialorder %v5425_v34, inf  ;;  %v5512_v54 = vand.u32 2147483648, %v5425_v34  ;;  %vm5511_vm11 = vcmp.eq.f32.partialorder %v5425_v34, 0.0 }
 0xba3   : > { %8897 = vrcp.f32 %v5547_v8  ;;  %v5505_v8 = vand.u32 2147483648, %v13781_v4 }
 0xba4   : > { %8899 = vrcp.f32 %v5549_v20 }
 0xba5   : > { %v5407_v35 = vpop.xlane.xlu0 %5406  ;;  %8901 = vrcp.f32 %v5548_v42 }
 0xba6   : > { %v8888_v15 = vpop.eup %8887  ;;  %v13784_v53 = vmul.f32 0.007874016, %v5407_v35 }
 0xba7   : > { %v5487_v6 = vmul.f32 %v8888_v15, %v5422_v26  ;;  %v5409_v38 = vpop.xlane.xlu1 %5408 }
 0xba8   : > { %8903 = vrsqrt.f32 %v13784_v53  ;;  %v8890_v37 = vpop.eup %8889  ;;  %v13787_v5 = vmul.f32 0.007874016, %v5409_v38  ;;  %vm5516_vm12 = vcmp.eq.f32.partialorder %v13784_v53, inf  ;;  %vm5518_vm15 = vcmp.eq.f32.partialorder %v13784_v53, 0.0 }
 0xba9   : > { %v5489_v1 = vsel %vm5488_vm4, %v5422_v26, %v5487_v6  ;;  %v5411_v12 = vpop.xlane.xlu0 %5410  ;;  %v5494_v29 = vmul.f32 %v8890_v37, %v5423_v49 }
 0xbaa   : > { %v8892_v11 = vpop.eup %8891  ;;  %v5492_v7 = vsel %vm5490_vm6, %v5491_v40, %v5489_v1  ;;  %v13789_v36 = vmul.f32 0.007874016, %v5411_v12  ;;  %8905 = vrsqrt.f32 %v13787_v5  ;;  %vm5523_vm13 = vcmp.eq.f32.partialorder %v13787_v5, inf }
 0xbab   : > { %v5501_v14 = vmul.f32 %v8892_v11, %v13781_v4  ;;  %v8894_v32 = vpop.eup %8893  ;;  %v5550_v27 = vadd.f32 1e-06, %v5492_v7  ;;  %v5496_v46 = vsel %vm5495_vm5, %v5423_v49, %v5494_v29  ;;  %v5413_v26 = vpop.xlane.xlu1 %5412  ;;  %vm5525_vm14 = vcmp.eq.f32.partialorder %v13787_v5, 0.0 }
 0xbac   : > { %8907 = vrsqrt.f32 %v13789_v36  ;;  %v8896_v58 = vpop.eup %8895  ;;  %v5499_v61 = vsel %vm5497_vm8, %v5498_v25, %v5496_v46  ;;  %v13798_v20 = vmul.f32 0.007874016, %v5413_v26  ;;  %v5567_v49 = vmul.f32 %v8894_v32, %v13696_v41 }
 0xbad   : > { %v5503_v44 = vsel %vm5502_vm7, %v13781_v4, %v5501_v14  ;;  %v8898_v28 = vpop.eup %8897  ;;  %v5508_v19 = vmul.f32 %v8896_v58, %v5425_v34  ;;  %v5551_v9 = vadd.f32 1e-06, %v5499_v61  ;;  %8909 = vrcp.f32 %v5550_v27 }
 0xbae   : > { %v5569_v42 = vmul.f32 %v8898_v28, %v13699_v62  ;;  %v8900_v35 = vpop.eup %8899  ;;  %v5506_v15 = vsel %vm5504_vm9, %v5505_v8, %v5503_v44  ;;  %8911 = vrsqrt.f32 %v13798_v20  ;;  %v5600_v1 = vmul.f32 %v13758_v22, %v5567_v49 }
 0xbaf   : > { %v5510_v6 = vsel %vm5509_vm10, %v5425_v34, %v5508_v19  ;;  %v8902_v38 = vpop.eup %8901  ;;  %v5552_v11 = vadd.f32 1e-06, %v5506_v15  ;;  %v5573_v62 = vmul.f32 %v8900_v35, %v13709_v3  ;;  %8913 = vrcp.f32 %v5551_v9 }
 0xbb0   : > { %v5513_v40 = vsel %vm5511_vm11, %v5512_v54, %v5510_v6  ;;  %v5601_v12 = vmul.f32 %v13758_v22, %v5569_v42  ;;  %v5622_v34 = vadd.f32 %v13766_v23, %v5600_v1  ;;  %v5571_v29 = vmul.f32 %v8902_v38, %v13704_v51 }
 0xbb1   : > { %v5553_v37 = vadd.f32 1e-06, %v5513_v40  ;;  %v5519_v27 = vand.u32 2147483648, %v13784_v53  ;;  %v5603_v3 = vmul.f32 %v13758_v22, %v5573_v62  ;;  %v5526_v58 = vand.u32 2147483648, %v13787_v5 }
 0xbb2   : > { %v8904_v4 = vpop.eup %8903  ;;  %v5623_v7 = vadd.f32 %v13766_v23, %v5601_v12  ;;  %v5602_v44 = vmul.f32 %v13758_v22, %v5571_v29  ;;  %vm5530_vm0 = vcmp.eq.f32.partialorder %v13789_v36, inf  ;;  %v5533_v42 = vand.u32 2147483648, %v13789_v36 }
 0xbb3   : > { %v5515_v41 = vmul.f32 %v8904_v4, %v13784_v53  ;;  %8915 = vrcp.f32 %v5553_v37  ;;  %v5625_v54 = vadd.f32 %v13766_v23, %v5603_v3  ;;  %vm5537_vm1 = vcmp.eq.f32.partialorder %v13798_v20, inf }
 0xbb4   : > { %v8906_v25 = vpop.eup %8905  ;;  %v5636_v26 = vpack.c.bf16 %v5623_v7, %v5622_v34  ;;  %8917 = vrcp.f32 %v5552_v11  ;;  %v5624_v15 = vadd.f32 %v13766_v23, %v5602_v44  ;;  %vm5539_vm2 = vcmp.eq.f32.partialorder %v13798_v20, 0.0 }
 0xbb5   : > { %v5517_v14 = vsel %vm5516_vm12, %v13784_v53, %v5515_v41  ;;  %v5522_v46 = vmul.f32 %v8906_v25, %v13787_v5  ;;  %v5540_v40 = vand.u32 2147483648, %v13798_v20  ;;  %vm5532_vm3 = vcmp.eq.f32.partialorder %v13789_v36, 0.0 }
 0xbb6   : > { %v8908_v32 = vpop.eup %8907  ;;  %v5520_v51 = vsel %vm5518_vm15, %v5519_v27, %v5517_v14  ;;  %5909 = vmatmul.mubr.bf16.gmra.mrb[88].mxu1 %v5636_v26  ;;  %6022 = vmatmul.mubr.bf16.gmra.mrb[120].mxu0 %v5636_v26  ;;  %v5637_v37 = vpack.c.bf16 %v5625_v54, %v5624_v15  ;;  %v8583_v15 = vld [vmem:[#allocation10 + $0x50] sm:$0xff]  }
 0xbb7   : > { %v5524_v61 = vsel %vm5523_vm13, %v13787_v5, %v5522_v46  ;;  %v5529_v8 = vmul.f32 %v8908_v32, %v13789_v36  ;;  %5918 = vmatprep.mubr.bf16.mxu1 %v15668_v17  ;;  %6031 = vmatprep.mubr.bf16.mxu0 %v15668_v17  ;;  %v8910_v53 = vpop.eup %8909  ;;  %v5554_v49 = vadd.f32 1e-06, %v5520_v51  ;;  %v8577_v51 = vld [vmem:[#allocation10] sm:$0xff]  }
 0xbb8   : > { %v5527_v28 = vsel %vm5525_vm14, %v5526_v58, %v5524_v61  ;;  %v8912_v9 = vpop.eup %8911  ;;  %v5575_v5 = vmul.f32 %v8910_v53, %v13716_v55  ;;  %v8575_v58 = vld [vmem:[#allocation10 + $0x40] sm:$0xff]  }
 0xbb9   : > { %v5555_v19 = vadd.f32 1e-06, %v5527_v28  ;;  %v5536_v35 = vmul.f32 %v8912_v9, %v13798_v20  ;;  %v8914_v6 = vpop.eup %8913  ;;  %v5531_v38 = vsel %vm5530_vm0, %v13789_v36, %v5529_v8  ;;  %v13853_v61 = vld [vmem:[#allocation10 + $0x80] sm:$0xff]   ;;  %7635 = vmatprep.subr.bf16.mxu1 %v8575_v58  ;;  %v8581_v9 = vld [vmem:[#allocation10 + $0x8] sm:$0xff]   ;;  %v13911_v58 = vld [vmem:[#allocation10 + $0xb8] sm:$0xff]  }
 0xbba   : > { %v5577_v55 = vmul.f32 %v8914_v6, %v13719_v56  ;;  %v5604_v1 = vmul.f32 %v13758_v22, %v5575_v5  ;;  %v5534_v41 = vsel %vm5532_vm3, %v5533_v42, %v5531_v38  ;;  %7636 = vmatpush3.bf16.msra.mxu1 %v8577_v51  ;;  %v13871_v6 = vld [vmem:[#allocation10 + $0xd0] sm:$0xff]   ;;  %v5674_v51 = vld [vmem:[%s14776_s10] sm:$0xf] }
 0xbbb   : > { %8919 = vrcp.f32 %v5555_v19  ;;  %v5538_v4 = vsel %vm5537_vm1, %v13798_v20, %v5536_v35  ;;  %v5556_v36 = vadd.f32 1e-06, %v5534_v41  ;;  %v13860_v19 = vld [vmem:[#allocation10 + $0xc8] sm:$0xff]   ;;  %v13885_v41 = vld [vmem:[#allocation10 + $0xd8] sm:$0xff]  }
 0xbbc   : > { %v5541_v11 = vsel %vm5539_vm2, %v5540_v40, %v5538_v4  ;;  %8921 = vrcp.f32 %v5554_v49  ;;  %v5605_v62 = vmul.f32 %v13758_v22, %v5577_v55  ;;  %v5626_v56 = vadd.f32 %v13766_v23, %v5604_v1  ;;  %v13862_v49 = vld [vmem:[#allocation10 + $0x88] sm:$0xff]   ;;  %v8585_v1 = vld [vmem:[#allocation10 + $0x10] sm:$0xff]  }
 0xbbd   : > { %v8916_v12 = vpop.eup %8915  ;;  %v5557_v7 = vadd.f32 1e-06, %v5541_v11  ;;  %v8587_v11 = vld [vmem:[#allocation10 + $0x58] sm:$0xff]  }
 0xbbe   : > { %5919 = vmatmul.mubr.bf16.gmra.mrb[92].mxu1 %v5637_v37  ;;  %6032 = vmatmul.mubr.bf16.gmra.mrb[124].mxu0 %v5637_v37  ;;  %v8918_v34 = vpop.eup %8917  ;;  %v5627_v20 = vadd.f32 %v13766_v23, %v5605_v62  ;;  %v5581_v29 = vmul.f32 %v8916_v12, %v13729_v63  ;;  %v13881_v12 = vld [vmem:[#allocation10 + $0x90] sm:$0xff]  }
 0xbbf   : > { %5928 = vmatprep.mubr.bf16.mxu1 %v15668_v17  ;;  %6041 = vmatprep.mubr.bf16.mxu0 %v15668_v17  ;;  %v5579_v14 = vmul.f32 %v8918_v34, %v13724_v59  ;;  %8923 = vrcp.f32 %v5557_v7  ;;  %v13851_v59 = vld [vmem:[#allocation10 + $0xc0] sm:$0xff]   ;;  %v8589_v34 = vld [vmem:[#allocation10 + $0x18] sm:$0xff]  }
 0xbc0   : > { %v5638_v25 = vpack.c.bf16 %v5627_v20, %v5626_v56  ;;  %v5607_v32 = vmul.f32 %v13758_v22, %v5581_v29  ;;  %8925 = vrcp.f32 %v5556_v36  ;;  %7699 = vmatprep.subr.bf16.mxu0 %v13851_v59  ;;  %v8593_v7 = vld [vmem:[#allocation10 + $0x20] sm:$0xff]   ;;  %v8595_v20 = vld [vmem:[#allocation10 + $0x68] sm:$0xff]  }
 0xbc1   : > { %v5606_v46 = vmul.f32 %v13758_v22, %v5579_v14  ;;  %7700 = vmatpush3.bf16.msra.mxu0 %v13853_v61  ;;  %v13893_v56 = vld [vmem:[#allocation10 + $0xa0] sm:$0xff]   ;;  %v13897_v29 = vld [vmem:[#allocation10 + $0xe8] sm:$0xff]   ;;  %v8599_v14 = vld [vmem:[#allocation10 + $0x70] sm:$0xff]  }
 0xbc2   : > { %v5629_v63 = vadd.f32 %v13766_v23, %v5607_v32  ;;  %7701 = vmatprep.subr.bf16.mxu0 %v13860_v19  ;;  %v8597_v36 = vld [vmem:[#allocation10 + $0x28] sm:$0xff]   ;;  %v13903_v32 = vld [vmem:[#allocation10 + $0xf0] sm:$0xff]  }
 0xbc3   : > { %v5628_v44 = vadd.f32 %v13766_v23, %v5606_v46  ;;  %v13905_v46 = vld [vmem:[#allocation10 + $0xb0] sm:$0xff]  }
 0xbc5   : > { %v8920_v27 = vpop.eup %8919  ;;  %v5639_v8 = vpack.c.bf16 %v5629_v63, %v5628_v44  ;;  %7702 = vmatpush3.bf16.msra.mxu0 %v13862_v49  ;;  %v13907_v63 = vld [vmem:[#allocation10 + $0xf8] sm:$0xff]   ;;  %v15701_v44 = vld [vmem:[#allocation26_spill] sm:$0xff] }
 0xbc6   : > { %5929 = vmatmul.mubr.bf16.gmra.mrb[96].mxu1 %v5638_v25  ;;  %6042 = vmatmul.mubr.bf16.gmra.mrb[128].mxu0 %v5638_v25  ;;  %v8922_v26 = vpop.eup %8921  ;;  %v5585_v3 = vmul.f32 %v8920_v27, %v13739_v43  ;;  %v8579_v43 = vld [vmem:[#allocation10 + $0x48] sm:$0xff]   ;;  %v8601_v27 = vld [vmem:[#allocation10 + $0x30] sm:$0xff]  }
 0xbc7   : > { %5938 = vmatprep.mubr.bf16.mxu1 %v15668_v17  ;;  %6051 = vmatprep.mubr.bf16.mxu0 %v15668_v17  ;;  %v5583_v28 = vmul.f32 %v8922_v26, %v13736_v60  ;;  %v13899_v25 = vld [vmem:[#allocation10 + $0xa8] sm:$0xff]   ;;  %v8603_v26 = vld [vmem:[#allocation10 + $0x78] sm:$0xff]  }
 0xbc8   : > { %v5609_v53 = vmul.f32 %v13758_v22, %v5585_v3  ;;  %7637 = vmatprep.subr.bf16.mxu1 %v8579_v43  ;;  %7703 = vmatprep.subr.bf16.mxu0 %v13871_v6  ;;  %v8605_v3 = vld [vmem:[#allocation10 + $0x38] sm:$0xff]   ;;  %v15703_v43 = vsub.s32 2, %v15701_v44 }
 0xbc9   : > { %v8924_v54 = vpop.eup %8923  ;;  %v5608_v60 = vmul.f32 %v13758_v22, %v5583_v28  ;;  %7638 = vmatpush3.bf16.msra.mxu1 %v8581_v9  ;;  %7704 = vmatpush3.bf16.msra.mxu0 %v13881_v12  ;;  %v5690_v28 = vsub.s32 3, %v15701_v44  ;;  %v15704_v9 = vsub.s32 1, %v15701_v44 }
 0xbca   : > { %v8926_v5 = vpop.eup %8925  ;;  %v5631_v42 = vadd.f32 %v13766_v23, %v5609_v53  ;;  %v5589_v35 = vmul.f32 %v8924_v54, %v13749_v21  ;;  %7639 = vmatprep.subr.bf16.mxu1 %v8583_v15  ;;  %7705 = vmatprep.subr.bf16.mxu0 %v13885_v41  ;;  %v13926_v54 = vrot.slane %v5674_v51, %v15703_v43 }
 0xbcb   : > { %v5630_v38 = vadd.f32 %v13766_v23, %v5608_v60  ;;  %v5587_v40 = vmul.f32 %v8926_v5, %v13744_v0  ;;  %v13930_v60 = vrot.slane %v5674_v51, %v15704_v9  ;;  %v13932_v5 = vrot.slane %v5674_v51, %v5690_v28 }
 0xbcc   : > { %v5611_v37 = vmul.f32 %v13758_v22, %v5589_v35 }
 0xbcd   : > { %v5640_v4 = vpack.c.bf16 %v5631_v42, %v5630_v38  ;;  %v5610_v21 = vmul.f32 %v13758_v22, %v5587_v40  ;;  %7640 = vmatpush3.bf16.msra.mxu1 %v8585_v1  ;;  %v13887_v22 = vld [vmem:[#allocation10 + $0x98] sm:$0xff]  }
 0xbce   : > { %5939 = vmatmul.mubr.bf16.gmra.mrb[100].mxu1 %v5639_v8  ;;  %6052 = vmatmul.mubr.bf16.gmra.mrb[132].mxu0 %v5639_v8  ;;  %v5633_v55 = vadd.f32 %v13766_v23, %v5611_v37  ;;  %v15702_v8 = vsub.s32 0, %v15701_v44 }
 0xbcf   : > { %5948 = vmatprep.mubr.bf16.mxu1 %v15668_v17  ;;  %6061 = vmatprep.mubr.bf16.mxu0 %v15668_v17  ;;  %v5632_v0 = vadd.f32 %v13766_v23, %v5610_v21  ;;  %v13891_v23 = vld [vmem:[#allocation10 + $0xe0] sm:$0xff]  }
 0xbd0   : > { %7641 = vmatprep.subr.bf16.mxu1 %v8587_v11  ;;  %7706 = vmatpush3.bf16.msra.mxu0 %v13887_v22  ;;  %v13922_v53 = vrot.slane %v5674_v51, %v15702_v8 }
 0xbd1   : > { %v5641_v62 = vpack.c.bf16 %v5633_v55, %v5632_v0  ;;  %7642 = vmatpush3.bf16.msra.mxu1 %v8589_v34  ;;  %7707 = vmatprep.subr.bf16.mxu0 %v13891_v23 }
 0xbd4   : > { %7708 = vmatpush3.bf16.msra.mxu0 %v13893_v56 }
 0xbd5   : > { %7709 = vmatprep.subr.bf16.mxu0 %v13897_v29 }
 0xbd6   : > { %5949 = vmatmul.mubr.bf16.gmra.mrb[104].mxu1 %v5640_v4  ;;  %6062 = vmatmul.mubr.bf16.gmra.mrb[136].mxu0 %v5640_v4 }
 0xbd7   : > { %5958 = vmatprep.mubr.bf16.mxu1 %v15668_v17  ;;  %6071 = vmatprep.mubr.bf16.mxu0 %v15668_v17  ;;  %v8591_v17 = vld [vmem:[#allocation10 + $0x60] sm:$0xff]  }
 0xbd8   : > { %7643 = vmatprep.subr.bf16.mxu1 %v8591_v17  ;;  %7710 = vmatpush3.bf16.msra.mxu0 %v13899_v25 }
 0xbd9   : > { %7644 = vmatpush3.bf16.msra.mxu1 %v8593_v7  ;;  %7711 = vmatprep.subr.bf16.mxu0 %v13903_v32 }
 0xbda   : > { %7645 = vmatprep.subr.bf16.mxu1 %v8595_v20 }
 0xbdc   : > { %7712 = vmatpush3.bf16.msra.mxu0 %v13905_v46 }
 0xbdd   : > { %7646 = vmatpush3.bf16.msra.mxu1 %v8597_v36  ;;  %7713 = vmatprep.subr.bf16.mxu0 %v13907_v63 }
 0xbde   : > { %5959 = vmatmul.mubr.bf16.gmra.mrb[108].mxu1 %v5641_v62  ;;  %6072 = vmatmul.mubr.bf16.gmra.mrb[140].mxu0 %v5641_v62 }
 0xbdf   : > { %7647 = vmatprep.subr.bf16.mxu1 %v8599_v14 }
 0xbe0   : > { %7714 = vmatpush3.bf16.msra.mxu0 %v13911_v58 }
 0xbe1   : > { %7648 = vmatpush3.bf16.msra.mxu1 %v8601_v27 }
 0xbe2   : > { %7649 = vmatprep.subr.bf16.mxu1 %v8603_v26 }
 0xbe5   : > { %7650 = vmatpush3.bf16.msra.mxu1 %v8605_v3 }
 0xbe6   : > { %8083 = vmatprep.subr.bf16.mxu1 %v13851_v59 }
 0xc42   : > { %v5890_v59 = vpop.f32.mrb[80].mxu1  ;;  %v6003_v42 = vpop.f32.mrb[112].mxu0 }
 0xc43   : > { %v5891_v35 = vadd.f32 %v5890_v59, %v13922_v53  ;;  %v6004_v15 = vadd.f32 %v6003_v42, %v13926_v54  ;;  %v5892_v38 = vpop.f32.mrb[81].mxu1  ;;  %v6005_v40 = vpop.f32.mrb[113].mxu0 }
 0xc44   : > { %v13937_v4 = vadd.f32 %v5892_v38, %v13930_v60  ;;  %v13940_v37 = vadd.f32 %v6005_v40, %v13932_v5  ;;  %v5894_v21 = vpop.f32.mrb[82].mxu1  ;;  %v6007_v55 = vpop.f32.mrb[114].mxu0 }
 0xc45   : > { %v13942_v1 = vmul.f32 0.5, %v5891_v35  ;;  %v6146_v0 = vmul.f32 %v5891_v35, %v5891_v35  ;;  %v13944_v11 = vmul.f32 0.5, %v6004_v15  ;;  %v6148_v62 = vmul.f32 %v6004_v15, %v6004_v15  ;;  %v5896_v34 = vpop.f32.mrb[83].mxu1  ;;  %v6009_v17 = vpop.f32.mrb[115].mxu0 }
 0xc46   : > { %v6147_v7 = vmul.f32 %v13937_v4, %v13937_v4  ;;  %v6149_v20 = vmul.f32 %v13940_v37, %v13940_v37  ;;  %v5895_v36 = vadd.f32 %v5894_v21, %v13922_v53  ;;  %v6008_v14 = vadd.f32 %v6007_v55, %v13926_v54 }
 0xc47   : > { %v6210_v27 = vmul.f32 %v6146_v0, %v5891_v35  ;;  %v6212_v26 = vmul.f32 %v6148_v62, %v6004_v15  ;;  %v13953_v3 = vadd.f32 %v5896_v34, %v13930_v60  ;;  %v13956_v51 = vadd.f32 %v6009_v17, %v13932_v5 }
 0xc48   : > { %v6211_v44 = vmul.f32 %v6147_v7, %v13937_v4  ;;  %v6213_v28 = vmul.f32 %v6149_v20, %v13940_v37  ;;  %v13960_v8 = vmul.f32 0.5, %v5895_v36  ;;  %v6150_v43 = vmul.f32 %v5895_v36, %v5895_v36 }
 0xc49   : > { %v6274_v9 = vmul.f32 0.044715, %v6210_v27  ;;  %v6276_v59 = vmul.f32 0.044715, %v6212_v26  ;;  %v13962_v42 = vmul.f32 0.5, %v6008_v14  ;;  %v6152_v38 = vmul.f32 %v6008_v14, %v6008_v14 }
 0xc4a   : > { %v6275_v40 = vmul.f32 0.044715, %v6211_v44  ;;  %v6277_v21 = vmul.f32 0.044715, %v6213_v28  ;;  %v6214_v55 = vmul.f32 %v6150_v43, %v5895_v36  ;;  %v6151_v0 = vmul.f32 %v13953_v3, %v13953_v3  ;;  %v5900_v62 = vpop.f32.mrb[84].mxu1  ;;  %v6013_v34 = vpop.f32.mrb[116].mxu0 }
 0xc4b   : > { %v6338_v17 = vadd.f32 %v6274_v9, %v5891_v35  ;;  %v6340_v7 = vadd.f32 %v6276_v59, %v6004_v15  ;;  %v6216_v16 = vmul.f32 %v6152_v38, %v6008_v14  ;;  %v6153_v20 = vmul.f32 %v13956_v51, %v13956_v51  ;;  %v5902_v33 = vpop.f32.mrb[85].mxu1  ;;  %v6015_v27 = vpop.f32.mrb[117].mxu0 }
 0xc4c   : > { %v6339_v26 = vadd.f32 %v6275_v40, %v13937_v4  ;;  %v6341_v30 = vadd.f32 %v6277_v21, %v13940_v37  ;;  %v6278_v44 = vmul.f32 0.044715, %v6214_v55  ;;  %v6215_v28 = vmul.f32 %v6151_v0, %v13953_v3  ;;  %v5904_v43 = vpop.f32.mrb[86].mxu1  ;;  %v6017_v13 = vpop.f32.mrb[118].mxu0 }
 0xc4d   : > { %v6402_v2 = vmul.f32 0.7978846, %v6338_v17  ;;  %v6404_v31 = vmul.f32 0.7978846, %v6340_v7  ;;  %v6280_v57 = vmul.f32 0.044715, %v6216_v16  ;;  %v6217_v35 = vmul.f32 %v6153_v20, %v13956_v51 }
 0xc4e   : > { %v6403_v15 = vmul.f32 0.7978846, %v6339_v26  ;;  %v6405_v9 = vmul.f32 0.7978846, %v6341_v30  ;;  %v6342_v59 = vadd.f32 %v6278_v44, %v5895_v36  ;;  %v6279_v38 = vmul.f32 0.044715, %v6215_v28 }
 0xc4f   : > { %8927 = vtanh.f32 %v6402_v2  ;;  %v6344_v48 = vadd.f32 %v6280_v57, %v6008_v14  ;;  %v6281_v45 = vmul.f32 0.044715, %v6217_v35  ;;  %v13973_v40 = vadd.f32 %v5900_v62, %v13922_v53  ;;  %v5906_v21 = vpop.f32.mrb[87].mxu1  ;;  %v6019_v55 = vpop.f32.mrb[119].mxu0 }
 0xc50   : > { %8929 = vtanh.f32 %v6404_v31  ;;  %v6406_v0 = vmul.f32 0.7978846, %v6342_v59  ;;  %v6343_v17 = vadd.f32 %v6279_v38, %v13953_v3  ;;  %v13977_v16 = vadd.f32 %v6013_v34, %v13926_v54 }
 0xc51   : > { %8931 = vtanh.f32 %v6403_v15  ;;  %v6408_v7 = vmul.f32 0.7978846, %v6344_v48  ;;  %v6345_v30 = vadd.f32 %v6281_v45, %v13956_v51  ;;  %v6154_v57 = vmul.f32 %v13973_v40, %v13973_v40 }
 0xc52   : > { %8933 = vtanh.f32 %v6405_v9  ;;  %v6407_v2 = vmul.f32 0.7978846, %v6343_v17  ;;  %v6156_v36 = vmul.f32 %v13977_v16, %v13977_v16  ;;  %v13985_v31 = vadd.f32 %v5902_v33, %v13930_v60 }
 0xc53   : > { %8935 = vtanh.f32 %v6406_v0  ;;  %v6409_v14 = vmul.f32 0.7978846, %v6345_v30  ;;  %v6218_v62 = vmul.f32 %v6154_v57, %v13973_v40  ;;  %v13989_v34 = vadd.f32 %v6015_v27, %v13932_v5 }
 0xc54   : > { %8937 = vtanh.f32 %v6408_v7  ;;  %v6220_v45 = vmul.f32 %v6156_v36, %v13977_v16  ;;  %v6155_v48 = vmul.f32 %v13985_v31, %v13985_v31  ;;  %v13995_v20 = vadd.f32 %v5904_v43, %v13922_v53 }
 0xc55   : > { %8939 = vtanh.f32 %v6407_v2  ;;  %v6282_v26 = vmul.f32 0.044715, %v6218_v62  ;;  %v6157_v33 = vmul.f32 %v13989_v34, %v13989_v34  ;;  %v14000_v44 = vadd.f32 %v6017_v13, %v13926_v54 }
 0xc56   : > { %8941 = vtanh.f32 %v6409_v14  ;;  %v6284_v27 = vmul.f32 0.044715, %v6220_v45  ;;  %v6219_v28 = vmul.f32 %v6155_v48, %v13985_v31  ;;  %v6158_v35 = vmul.f32 %v13995_v20, %v13995_v20 }
 0xc57   : > { %v6346_v15 = vadd.f32 %v6282_v26, %v13973_v40  ;;  %v6221_v43 = vmul.f32 %v6157_v33, %v13989_v34  ;;  %v6160_v9 = vmul.f32 %v14000_v44, %v14000_v44  ;;  %v14010_v59 = vadd.f32 %v5906_v21, %v13930_v60 }
 0xc58   : > { %v6348_v13 = vadd.f32 %v6284_v27, %v13977_v16  ;;  %v6283_v38 = vmul.f32 0.044715, %v6219_v28  ;;  %v6222_v0 = vmul.f32 %v6158_v35, %v13995_v20  ;;  %v14015_v17 = vadd.f32 %v6019_v55, %v13932_v5 }
 0xc59   : > { %v8928_v7 = vpop.eup %8927  ;;  %v6410_v30 = vmul.f32 0.7978846, %v6346_v15  ;;  %v6285_v57 = vmul.f32 0.044715, %v6221_v43  ;;  %v6224_v2 = vmul.f32 %v6160_v9, %v14000_v44  ;;  %v6159_v36 = vmul.f32 %v14010_v59, %v14010_v59 }
 0xc5a   : > { %v8930_v14 = vpop.eup %8929  ;;  %v6530_v62 = vadd.f32 1.0, %v8928_v7  ;;  %v6412_v21 = vmul.f32 0.7978846, %v6348_v13  ;;  %v6347_v45 = vadd.f32 %v6283_v38, %v13985_v31  ;;  %v6286_v48 = vmul.f32 0.044715, %v6222_v0 }
 0xc5b   : > { %v8932_v26 = vpop.eup %8931  ;;  %v6532_v33 = vadd.f32 1.0, %v8930_v14  ;;  %8943 = vtanh.f32 %v6410_v30  ;;  %v6349_v55 = vadd.f32 %v6285_v57, %v13989_v34  ;;  %v6288_v27 = vmul.f32 0.044715, %v6224_v2 }
 0xc5c   : > { %v8934_v28 = vpop.eup %8933  ;;  %v6594_v35 = vmul.f32 %v6530_v62, %v13942_v1  ;;  %8945 = vtanh.f32 %v6412_v21  ;;  %v6411_v15 = vmul.f32 0.7978846, %v6347_v45  ;;  %v6350_v43 = vadd.f32 %v6286_v48, %v13995_v20 }
 0xc5d   : > { %v8936_v9 = vpop.eup %8935  ;;  %v6596_v7 = vmul.f32 %v6532_v33, %v13944_v11  ;;  %v6413_v13 = vmul.f32 0.7978846, %v6349_v55  ;;  %v6352_v38 = vadd.f32 %v6288_v27, %v14000_v44  ;;  %v6223_v0 = vmul.f32 %v6159_v36, %v14010_v59 }
 0xc5e   : > { %v8938_v14 = vpop.eup %8937  ;;  %v6534_v30 = vadd.f32 1.0, %v8936_v9  ;;  %8947 = vtanh.f32 %v6411_v15  ;;  %v6414_v57 = vmul.f32 0.7978846, %v6350_v43  ;;  %v6161_v2 = vmul.f32 %v14015_v17, %v14015_v17 }
 0xc5f   : > { %v8940_v1 = vpop.eup %8939  ;;  %v6536_v62 = vadd.f32 1.0, %v8938_v14  ;;  %8949 = vtanh.f32 %v6413_v13  ;;  %v6416_v21 = vmul.f32 0.7978846, %v6352_v38  ;;  %v6287_v45 = vmul.f32 0.044715, %v6223_v0 }
 0xc60   : > { %v8942_v48 = vpop.eup %8941  ;;  %v6598_v11 = vmul.f32 %v6534_v30, %v13960_v8  ;;  %8951 = vtanh.f32 %v6414_v57  ;;  %v6225_v33 = vmul.f32 %v6161_v2, %v14015_v17  ;;  %v6083_v36 = vmul.f32 0.5, %v13937_v4 }
 0xc61   : > { %v6600_v55 = vmul.f32 %v6536_v62, %v13962_v42  ;;  %8953 = vtanh.f32 %v6416_v21  ;;  %v6351_v27 = vadd.f32 %v6287_v45, %v14010_v59  ;;  %v6087_v15 = vmul.f32 0.5, %v13953_v3 }
 0xc62   : > { %v6289_v43 = vmul.f32 0.044715, %v6225_v33  ;;  %v6531_v9 = vadd.f32 1.0, %v8932_v26  ;;  %v6535_v13 = vadd.f32 1.0, %v8940_v1  ;;  %v6085_v38 = vmul.f32 0.5, %v13940_v37 }
 0xc63   : > { %v6415_v0 = vmul.f32 0.7978846, %v6351_v27  ;;  %v6089_v8 = vmul.f32 0.5, %v13956_v51  ;;  %v6533_v14 = vadd.f32 1.0, %v8934_v28  ;;  %v6537_v30 = vadd.f32 1.0, %v8942_v48 }
 0xc64   : > { %v6353_v57 = vadd.f32 %v6289_v43, %v14015_v17  ;;  %v6595_v4 = vmul.f32 %v6531_v9, %v6083_v36  ;;  %v6599_v2 = vmul.f32 %v6535_v13, %v6087_v15  ;;  %v6658_v42 = vpack.c.bf16 %v6598_v11, %v6594_v35 }
 0xc65   : > { %v8944_v62 = vpop.eup %8943  ;;  %8955 = vtanh.f32 %v6415_v0  ;;  %v6597_v21 = vmul.f32 %v6533_v14, %v6085_v38  ;;  %v6601_v45 = vmul.f32 %v6537_v30, %v6089_v8  ;;  %v6660_v3 = vpack.c.bf16 %v6600_v55, %v6596_v7 }
 0xc66   : > { %v8946_v33 = vpop.eup %8945  ;;  %v6417_v26 = vmul.f32 0.7978846, %v6353_v57  ;;  %v6659_v1 = vpack.c.bf16 %v6599_v2, %v6595_v4  ;;  %v6538_v28 = vadd.f32 1.0, %v8944_v62  ;;  %v6090_v11 = vmul.f32 0.5, %v13973_v40 }
 0xc67   : > { %v6661_v50 = vpack.c.bf16 %v6601_v45, %v6597_v21  ;;  %v6540_v36 = vadd.f32 1.0, %v8946_v33  ;;  %v6094_v7 = vmul.f32 0.5, %v13995_v20  ;;  %v6092_v27 = vmul.f32 0.5, %v13977_v16 }
 0xc68   : > { %v8948_v37 = vpop.eup %8947  ;;  %8957 = vtanh.f32 %v6417_v26  ;;  %6985 = vmatprep.mubr.bf16.mxu1 %v6659_v1  ;;  %v6096_v15 = vmul.f32 0.5, %v14000_v44  ;;  %v6602_v43 = vmul.f32 %v6538_v28, %v6090_v11  ;;  %v6091_v40 = vmul.f32 0.5, %v13985_v31 }
 0xc69   : > { %v8950_v51 = vpop.eup %8949  ;;  %7082 = vmatprep.mubr.bf16.mxu0 %v6661_v50  ;;  %6986 = vmatmul.mubr.bf16.vlgmr.msra.gmra.mrb[112].mxu1 %v6658_v42  ;;  %v6539_v13 = vadd.f32 1.0, %v8948_v37  ;;  %v6604_v38 = vmul.f32 %v6540_v36, %v6092_v27  ;;  %v6093_v4 = vmul.f32 0.5, %v13989_v34 }
 0xc6a   : > { %v8952_v48 = vpop.eup %8951  ;;  %7083 = vmatmul.mubr.bf16.vlgmr.msra.gmra.mrb[144].mxu0 %v6660_v3  ;;  %8091 = vmatpush3.bf16.msra.mxu1 %v13853_v61  ;;  %v6541_v14 = vadd.f32 1.0, %v8950_v51 }
 0xc6b   : > { %v8954_v35 = vpop.eup %8953  ;;  %v6542_v55 = vadd.f32 1.0, %v8952_v48  ;;  %8084 = vmatprep.subr.bf16.mxu1 %v13860_v19  ;;  %v6095_v19 = vmul.f32 0.5, %v14010_v59  ;;  %v6603_v30 = vmul.f32 %v6539_v13, %v6091_v40 }
 0xc6c   : > { %v6544_v50 = vadd.f32 1.0, %v8954_v35  ;;  %v6605_v42 = vmul.f32 %v6541_v14, %v6093_v4 }
 0xc6d   : > { %v6606_v9 = vmul.f32 %v6542_v55, %v6094_v7 }
 0xc6e   : > { %v6608_v0 = vmul.f32 %v6544_v50, %v6096_v15  ;;  %8092 = vmatpush3.bf16.msra.mxu1 %v13862_v49  ;;  %v6097_v49 = vmul.f32 0.5, %v14015_v17 }
 0xc6f   : > { %v8956_v61 = vpop.eup %8955  ;;  %v6662_v8 = vpack.c.bf16 %v6606_v9, %v6602_v43  ;;  %8085 = vmatprep.subr.bf16.mxu1 %v13871_v6 }
 0xc70   : > { %v6543_v20 = vadd.f32 1.0, %v8956_v61  ;;  %v6664_v16 = vpack.c.bf16 %v6608_v0, %v6604_v38 }
 0xc72   : > { %v8958_v44 = vpop.eup %8957  ;;  %v6607_v57 = vmul.f32 %v6543_v20, %v6095_v19  ;;  %8093 = vmatpush3.bf16.msra.mxu1 %v13881_v12 }
 0xc73   : > { %v6545_v2 = vadd.f32 1.0, %v8958_v44  ;;  %8086 = vmatprep.subr.bf16.mxu1 %v13885_v41 }
 0xc74   : > { %v6663_v6 = vpack.c.bf16 %v6607_v57, %v6603_v30 }
 0xc75   : > { %v6609_v31 = vmul.f32 %v6545_v2, %v6097_v49 }
 0xc76   : > { %6993 = vmatprep.mubr.bf16.mxu1 %v6663_v6  ;;  %8094 = vmatpush3.bf16.msra.mxu1 %v13887_v22 }
 0xc77   : > { %v6665_v59 = vpack.c.bf16 %v6609_v31, %v6605_v42  ;;  %6994 = vmatmul.mubr.bf16.gmra.mrb[116].mxu1 %v6662_v8  ;;  %8087 = vmatprep.subr.bf16.mxu1 %v13891_v23 }
 0xc79   : > { %7090 = vmatprep.mubr.bf16.mxu0 %v6665_v59 }
 0xc7a   : > { %7091 = vmatmul.mubr.bf16.gmra.mrb[148].mxu0 %v6664_v16  ;;  %8095 = vmatpush3.bf16.msra.mxu1 %v13893_v56 }
 0xc7b   : > { %8088 = vmatprep.subr.bf16.mxu1 %v13897_v29 }
 0xc7e   : > { %8096 = vmatpush3.bf16.msra.mxu1 %v13899_v25 }
 0xc7f   : > { %8089 = vmatprep.subr.bf16.mxu1 %v13903_v32 }
 0xc82   : > { %8097 = vmatpush3.bf16.msra.mxu1 %v13905_v46 }
 0xc83   : > { %8090 = vmatprep.subr.bf16.mxu1 %v13907_v63 }
 0xc86   : > { %8098 = vmatpush3.bf16.msra.mxu1 %v13911_v58 }
 0xc89   : > { %v5910_v12 = vpop.f32.mrb[88].mxu1  ;;  %v6023_v41 = vpop.f32.mrb[120].mxu0 }
 0xc8a   : > { %v14062_v22 = vadd.f32 %v5910_v12, %v13922_v53  ;;  %v14065_v23 = vadd.f32 %v6023_v41, %v13926_v54  ;;  %v5912_v56 = vpop.f32.mrb[89].mxu1  ;;  %v6025_v29 = vpop.f32.mrb[121].mxu0 }
 0xc8b   : > { %v14068_v25 = vadd.f32 %v5912_v56, %v13930_v60  ;;  %v14071_v32 = vadd.f32 %v6025_v29, %v13932_v5  ;;  %v5914_v46 = vpop.f32.mrb[90].mxu1  ;;  %v6027_v63 = vpop.f32.mrb[122].mxu0 }
 0xc8c   : > { %v6162_v58 = vmul.f32 %v14062_v22, %v14062_v22  ;;  %v6164_v34 = vmul.f32 %v14065_v23, %v14065_v23  ;;  %v14078_v17 = vadd.f32 %v5914_v46, %v13922_v53  ;;  %v14081_v62 = vadd.f32 %v6027_v63, %v13926_v54  ;;  %v5916_v21 = vpop.f32.mrb[91].mxu1  ;;  %v6029_v45 = vpop.f32.mrb[123].mxu0 }
 0xc8d   : > { %v6163_v3 = vmul.f32 %v14068_v25, %v14068_v25  ;;  %v6165_v33 = vmul.f32 %v14071_v32, %v14071_v32  ;;  %v14088_v26 = vadd.f32 %v5916_v21, %v13930_v60  ;;  %v14091_v1 = vadd.f32 %v6029_v45, %v13932_v5 }
 0xc8e   : > { %v6226_v37 = vmul.f32 %v6162_v58, %v14062_v22  ;;  %v6228_v51 = vmul.f32 %v6164_v34, %v14065_v23  ;;  %v6166_v28 = vmul.f32 %v14078_v17, %v14078_v17  ;;  %v6168_v48 = vmul.f32 %v14081_v62, %v14081_v62 }
 0xc8f   : > { %v6227_v36 = vmul.f32 %v6163_v3, %v14068_v25  ;;  %v6229_v35 = vmul.f32 %v6165_v33, %v14071_v32  ;;  %v6167_v11 = vmul.f32 %v14088_v26, %v14088_v26  ;;  %v6169_v7 = vmul.f32 %v14091_v1, %v14091_v1 }
 0xc90   : > { %v6290_v55 = vmul.f32 0.044715, %v6226_v37  ;;  %v6292_v27 = vmul.f32 0.044715, %v6228_v51  ;;  %v6230_v15 = vmul.f32 %v6166_v28, %v14078_v17  ;;  %v6232_v50 = vmul.f32 %v6168_v48, %v14081_v62 }
 0xc91   : > { %v6291_v43 = vmul.f32 0.044715, %v6227_v36  ;;  %v6293_v9 = vmul.f32 0.044715, %v6229_v35  ;;  %v6231_v13 = vmul.f32 %v6167_v11, %v14088_v26  ;;  %v6233_v38 = vmul.f32 %v6169_v7, %v14091_v1  ;;  %v5920_v0 = vpop.f32.mrb[92].mxu1  ;;  %v6033_v61 = vpop.f32.mrb[124].mxu0 }
 0xc92   : > { %v6354_v8 = vadd.f32 %v6290_v55, %v14062_v22  ;;  %v6356_v40 = vadd.f32 %v6292_v27, %v14065_v23  ;;  %v6294_v19 = vmul.f32 0.044715, %v6230_v15  ;;  %v6296_v20 = vmul.f32 0.044715, %v6232_v50  ;;  %v5922_v16 = vpop.f32.mrb[93].mxu1  ;;  %v6035_v14 = vpop.f32.mrb[125].mxu0 }
 0xc93   : > { %v6355_v44 = vadd.f32 %v6291_v43, %v14068_v25  ;;  %v6357_v30 = vadd.f32 %v6293_v9, %v14071_v32  ;;  %v6295_v57 = vmul.f32 0.044715, %v6231_v13  ;;  %v6297_v4 = vmul.f32 0.044715, %v6233_v38  ;;  %v5924_v49 = vpop.f32.mrb[94].mxu1  ;;  %v6037_v2 = vpop.f32.mrb[126].mxu0 }
 0xc94   : > { %v6418_v6 = vmul.f32 0.7978846, %v6354_v8  ;;  %v6420_v42 = vmul.f32 0.7978846, %v6356_v40  ;;  %v6358_v31 = vadd.f32 %v6294_v19, %v14078_v17  ;;  %v6360_v59 = vadd.f32 %v6296_v20, %v14081_v62  ;;  %v5926_v12 = vpop.f32.mrb[95].mxu1  ;;  %v6039_v41 = vpop.f32.mrb[127].mxu0 }
 0xc95   : > { %v6419_v56 = vmul.f32 0.7978846, %v6355_v44  ;;  %v6421_v29 = vmul.f32 0.7978846, %v6357_v30  ;;  %v6359_v46 = vadd.f32 %v6295_v57, %v14088_v26  ;;  %v6361_v63 = vadd.f32 %v6297_v4, %v14091_v1 }
 0xc96   : > { %8959 = vtanh.f32 %v6418_v6  ;;  %v6422_v58 = vmul.f32 0.7978846, %v6358_v31  ;;  %v6424_v34 = vmul.f32 0.7978846, %v6360_v59  ;;  %v14118_v21 = vadd.f32 %v5920_v0, %v13922_v53 }
 0xc97   : > { %8961 = vtanh.f32 %v6420_v42  ;;  %v6423_v45 = vmul.f32 0.7978846, %v6359_v46  ;;  %v6425_v3 = vmul.f32 0.7978846, %v6361_v63  ;;  %v14121_v33 = vadd.f32 %v6033_v61, %v13926_v54 }
 0xc98   : > { %15705 = vst [vmem:[#allocation63_spill] sm:$0xff] %v14118_v21  ;;  %8963 = vtanh.f32 %v6419_v56  ;;  %v6170_v37 = vmul.f32 %v14118_v21, %v14118_v21  ;;  %v14126_v51 = vadd.f32 %v5922_v16, %v13930_v60  ;;  %v14129_v28 = vadd.f32 %v6035_v14, %v13932_v5 }
 0xc99   : > { %15706 = vst [vmem:[#allocation116_spill] sm:$0xff] %v14121_v33  ;;  %8965 = vtanh.f32 %v6421_v29  ;;  %v6172_v48 = vmul.f32 %v14121_v33, %v14121_v33  ;;  %v14134_v36 = vadd.f32 %v5924_v49, %v13922_v53  ;;  %v14137_v35 = vadd.f32 %v6037_v2, %v13926_v54  ;;  %v5930_v11 = vpop.f32.mrb[96].mxu1  ;;  %v6043_v7 = vpop.f32.mrb[128].mxu0 }
 0xc9a   : > { %8967 = vtanh.f32 %v6422_v58  ;;  %v6234_v55 = vmul.f32 %v6170_v37, %v14118_v21  ;;  %v6171_v27 = vmul.f32 %v14126_v51, %v14126_v51  ;;  %v6173_v15 = vmul.f32 %v14129_v28, %v14129_v28  ;;  %v5932_v50 = vpop.f32.mrb[97].mxu1  ;;  %v6045_v43 = vpop.f32.mrb[129].mxu0 }
 0xc9b   : > { %15707 = vst [vmem:[#allocation140_spill] sm:$0xff] %v14134_v36  ;;  %15708 = vst [vmem:[#allocation124_spill] sm:$0xff] %v14137_v35  ;;  %8969 = vtanh.f32 %v6424_v34  ;;  %v6236_v9 = vmul.f32 %v6172_v48, %v14121_v33  ;;  %v6174_v13 = vmul.f32 %v14134_v36, %v14134_v36  ;;  %v6176_v38 = vmul.f32 %v14137_v35, %v14137_v35  ;;  %v14149_v0 = vpop.f32.mrb[98].mxu1  ;;  %v14151_v61 = vpop.f32.mrb[130].mxu0 }
 0xc9c   : > { %8971 = vtanh.f32 %v6423_v45  ;;  %v6298_v8 = vmul.f32 0.044715, %v6234_v55  ;;  %v6235_v40 = vmul.f32 %v6171_v27, %v14126_v51  ;;  %v6237_v19 = vmul.f32 %v6173_v15, %v14129_v28  ;;  %v14155_v20 = vpop.f32.mrb[99].mxu1  ;;  %v14157_v16 = vpop.f32.mrb[131].mxu0 }
 0xc9d   : > { %8973 = vtanh.f32 %v6425_v3  ;;  %v6300_v14 = vmul.f32 0.044715, %v6236_v9  ;;  %v6238_v44 = vmul.f32 %v6174_v13, %v14134_v36  ;;  %v6240_v30 = vmul.f32 %v6176_v38, %v14137_v35 }
 0xc9e   : > { %v6362_v57 = vadd.f32 %v6298_v8, %v14118_v21  ;;  %v6299_v4 = vmul.f32 0.044715, %v6235_v40  ;;  %v6301_v49 = vmul.f32 0.044715, %v6237_v19  ;;  %v14163_v2 = vadd.f32 %v5926_v12, %v13930_v60 }
 0xc9f   : > { %v6364_v6 = vadd.f32 %v6300_v14, %v14121_v33  ;;  %v6302_v42 = vmul.f32 0.044715, %v6238_v44  ;;  %v6304_v31 = vmul.f32 0.044715, %v6240_v30  ;;  %v14167_v59 = vadd.f32 %v6039_v41, %v13932_v5 }
 0xca0   : > { %v14169_v56 = vpop.eup %8959  ;;  %v6426_v29 = vmul.f32 0.7978846, %v6362_v57  ;;  %v6363_v46 = vadd.f32 %v6299_v4, %v14126_v51  ;;  %v6365_v63 = vadd.f32 %v6301_v49, %v14129_v28  ;;  %v6175_v58 = vmul.f32 %v14163_v2, %v14163_v2 }
 0xca1   : > { %v14175_v34 = vpop.eup %8961  ;;  %v6428_v12 = vmul.f32 0.7978846, %v6364_v6  ;;  %v6366_v45 = vadd.f32 %v6302_v42, %v14134_v36  ;;  %v6368_v3 = vadd.f32 %v6304_v31, %v14137_v35  ;;  %v6177_v41 = vmul.f32 %v14167_v59, %v14167_v59  ;;  %v14181_v37 = vpop.f32.mrb[100].mxu1 }
 0xca2   : > { %v14183_v48 = vpop.f32.mrb[132].mxu0  ;;  %v14185_v55 = vpop.eup %8963  ;;  %8975 = vtanh.f32 %v6426_v29  ;;  %v6427_v27 = vmul.f32 0.7978846, %v6363_v46  ;;  %v6429_v15 = vmul.f32 0.7978846, %v6365_v63  ;;  %v6239_v9 = vmul.f32 %v6175_v58, %v14163_v2 }
 0xca3   : > { %v14188_v13 = vpop.f32.mrb[101].mxu1  ;;  %v14190_v38 = vpop.f32.mrb[133].mxu0  ;;  %8977 = vtanh.f32 %v6428_v12  ;;  %v6430_v40 = vmul.f32 0.7978846, %v6366_v45  ;;  %v6432_v19 = vmul.f32 0.7978846, %v6368_v3  ;;  %v6241_v14 = vmul.f32 %v6177_v41, %v14167_v59 }
 0xca4   : > { %v14192_v8 = vpop.eup %8965  ;;  %v14195_v44 = vpop.f32.mrb[102].mxu1  ;;  %8979 = vtanh.f32 %v6427_v27  ;;  %v6303_v4 = vmul.f32 0.044715, %v6239_v9  ;;  %v14202_v49 = vadd.f32 %v5930_v11, %v13922_v53  ;;  %v14205_v6 = vadd.f32 %v6043_v7, %v13926_v54 }
 0xca5   : > { %v14197_v30 = vpop.f32.mrb[134].mxu0  ;;  %v14199_v57 = vpop.eup %8967  ;;  %8981 = vtanh.f32 %v6429_v15  ;;  %v6305_v46 = vmul.f32 0.044715, %v6241_v14  ;;  %v14214_v63 = vadd.f32 %v5932_v50, %v13930_v60  ;;  %v14217_v58 = vadd.f32 %v6045_v43, %v13932_v5 }
 0xca6   : > { %15709 = vst [vmem:[#allocation139_spill] sm:$0xff] %v14202_v49  ;;  %15710 = vst [vmem:[#allocation164_spill] sm:$0xff] %v14205_v6  ;;  %v14207_v42 = vpop.f32.mrb[103].mxu1  ;;  %v14209_v31 = vpop.f32.mrb[135].mxu0  ;;  %8983 = vtanh.f32 %v6430_v40  ;;  %v6367_v11 = vadd.f32 %v6303_v4, %v14163_v2  ;;  %v6178_v7 = vmul.f32 %v14202_v49, %v14202_v49  ;;  %v6180_v45 = vmul.f32 %v14205_v6, %v14205_v6 }
 0xca7   : > { %v14211_v29 = vpop.eup %8969  ;;  %15711 = vst [vmem:[#allocation162_spill] sm:$0xff] %v14214_v63  ;;  %15712 = vst [vmem:[#allocation160_spill] sm:$0xff] %v14217_v58  ;;  %8985 = vtanh.f32 %v6432_v19  ;;  %v6369_v50 = vadd.f32 %v6305_v46, %v14167_v59  ;;  %v6179_v43 = vmul.f32 %v14214_v63, %v14214_v63  ;;  %v6181_v41 = vmul.f32 %v14217_v58, %v14217_v58 }
 0xca8   : > { %v14219_v12 = vpop.eup %8971  ;;  %v6431_v27 = vmul.f32 0.7978846, %v6367_v11  ;;  %v6242_v15 = vmul.f32 %v6178_v7, %v14202_v49  ;;  %v6244_v9 = vmul.f32 %v6180_v45, %v14205_v6  ;;  %v14237_v40 = vadd.f32 %v14149_v0, %v13922_v53 }
 0xca9   : > { %v14226_v3 = vpop.eup %8973  ;;  %v6433_v14 = vmul.f32 0.7978846, %v6369_v50  ;;  %v6243_v19 = vmul.f32 %v6179_v43, %v14214_v63  ;;  %v6245_v4 = vmul.f32 %v6181_v41, %v14217_v58  ;;  %v14243_v46 = vadd.f32 %v14151_v61, %v13926_v54  ;;  %v14245_v39 = vpop.f32.mrb[104].mxu1 }
 0xcaa   : > { %15713 = vst [vmem:[#allocation161_spill] sm:$0xff] %v14237_v40  ;;  %v14247_v11 = vpop.f32.mrb[136].mxu0  ;;  %8987 = vtanh.f32 %v6431_v27  ;;  %v6306_v7 = vmul.f32 0.044715, %v6242_v15  ;;  %v6308_v45 = vmul.f32 0.044715, %v6244_v9  ;;  %v6182_v0 = vmul.f32 %v14237_v40, %v14237_v40 }
 0xcab   : > { %15714 = vst [vmem:[#allocation159_spill] sm:$0xff] %v14243_v46  ;;  %v14251_v18 = vpop.f32.mrb[105].mxu1  ;;  %v14253_v50 = vpop.f32.mrb[137].mxu0  ;;  %8989 = vtanh.f32 %v6433_v14  ;;  %v6307_v43 = vmul.f32 0.044715, %v6243_v19  ;;  %v6184_v61 = vmul.f32 %v14243_v46, %v14243_v46  ;;  %v14268_v14 = vadd.f32 %v14155_v20, %v13930_v60 }
 0xcac   : > { %v6309_v41 = vmul.f32 0.044715, %v6245_v4  ;;  %v14257_v47 = vpop.f32.mrb[106].mxu1  ;;  %v14259_v52 = vpop.f32.mrb[138].mxu0  ;;  %v6370_v15 = vadd.f32 %v6306_v7, %v14202_v49  ;;  %v6372_v9 = vadd.f32 %v6308_v45, %v14205_v6  ;;  %v6246_v24 = vmul.f32 %v6182_v0, %v14237_v40 }
 0xcad   : > { %v14261_v27 = vpop.eup %8975  ;;  %15716 = vst [vmem:[#allocation165_spill] sm:$0xff] %v14268_v14  ;;  %v14270_v19 = vpop.f32.mrb[107].mxu1  ;;  %v6371_v35 = vadd.f32 %v6307_v43, %v14214_v63  ;;  %v6248_v7 = vmul.f32 %v6184_v61, %v14243_v46  ;;  %v14281_v45 = vadd.f32 %v14157_v16, %v13932_v5 }
 0xcae   : > { %15715 = vst [vmem:[#allocation111_spill] sm:$0xff] %v14261_v27  ;;  %v14272_v4 = vpop.f32.mrb[139].mxu0  ;;  %v14274_v10 = vpop.eup %8977  ;;  %v6373_v33 = vadd.f32 %v6309_v41, %v14217_v58  ;;  %v6434_v20 = vmul.f32 0.7978846, %v6370_v15  ;;  %v6436_v6 = vmul.f32 0.7978846, %v6372_v9  ;;  %v6183_v27 = vmul.f32 %v14268_v14, %v14268_v14 }
 0xcaf   : > { %15717 = vst [vmem:[#allocation128_spill] sm:$0xff] %v14274_v10  ;;  %15718 = vst [vmem:[#allocation126_spill] sm:$0xff] %v14281_v45  ;;  %v14283_v0 = vpop.eup %8979  ;;  %v6310_v49 = vmul.f32 0.044715, %v6246_v24  ;;  %v6435_v10 = vmul.f32 0.7978846, %v6371_v35  ;;  %v6185_v41 = vmul.f32 %v14281_v45, %v14281_v45  ;;  %v14297_v24 = vadd.f32 %v14181_v37, %v13922_v53 }
 0xcb0   : > { %v14287_v36 = vpop.eup %8981  ;;  %v6437_v43 = vmul.f32 0.7978846, %v6373_v33  ;;  %v6312_v63 = vmul.f32 0.044715, %v6248_v7  ;;  %8991 = vtanh.f32 %v6434_v20  ;;  %v6247_v15 = vmul.f32 %v6183_v27, %v14268_v14 }
 0xcb1   : > { %v14291_v61 = vpop.eup %8983  ;;  %v6374_v16 = vadd.f32 %v6310_v49, %v14237_v40  ;;  %15720 = vst [vmem:[#allocation180_spill] sm:$0xff] %v14297_v24  ;;  %8993 = vtanh.f32 %v6436_v6  ;;  %v6249_v35 = vmul.f32 %v6185_v41, %v14281_v45  ;;  %v14305_v7 = vadd.f32 %v14183_v48, %v13926_v54  ;;  %v14307_v20 = vpop.f32.mrb[108].mxu1 }
 0xcb2   : > { %15719 = vst [vmem:[#allocation182_spill] sm:$0xff] %v14291_v61  ;;  %v14299_v9 = vpop.eup %8985  ;;  %v6376_v33 = vadd.f32 %v6312_v63, %v14243_v46  ;;  %v14309_v49 = vpop.f32.mrb[140].mxu0  ;;  %8995 = vtanh.f32 %v6435_v10  ;;  %v6311_v40 = vmul.f32 0.044715, %v6247_v15  ;;  %v6186_v37 = vmul.f32 %v14297_v24, %v14297_v24 }
 0xcb3   : > { %15721 = vst [vmem:[#allocation123_spill] sm:$0xff] %v14299_v9  ;;  %15722 = vst [vmem:[#allocation118_spill] sm:$0xff] %v14305_v7  ;;  %v6438_v27 = vmul.f32 0.7978846, %v6374_v16  ;;  %v14313_v58 = vpop.f32.mrb[109].mxu1  ;;  %v14315_v6 = vpop.f32.mrb[141].mxu0  ;;  %8997 = vtanh.f32 %v6437_v43  ;;  %v6188_v48 = vmul.f32 %v14305_v7, %v14305_v7  ;;  %v14329_v61 = vadd.f32 %v14188_v13, %v13930_v60 }
 0xcb4   : > { %v6440_v63 = vmul.f32 0.7978846, %v6376_v33  ;;  %v6313_v41 = vmul.f32 0.044715, %v6249_v35  ;;  %v14319_v46 = vpop.f32.mrb[110].mxu1  ;;  %v14321_v9 = vpop.f32.mrb[142].mxu0  ;;  %v6375_v16 = vadd.f32 %v6311_v40, %v14268_v14  ;;  %v6250_v15 = vmul.f32 %v6186_v37, %v14297_v24 }
 0xcb5   : > { %15723 = vst [vmem:[#allocation167_spill] sm:$0xff] %v14321_v9  ;;  %v14323_v10 = vpop.eup %8987  ;;  %8999 = vtanh.f32 %v6438_v27  ;;  %15724 = vst [vmem:[#allocation163_spill] sm:$0xff] %v14329_v61  ;;  %v14331_v43 = vpop.f32.mrb[111].mxu1  ;;  %v6252_v9 = vmul.f32 %v6188_v48, %v14305_v7  ;;  %v14341_v40 = vadd.f32 %v14190_v38, %v13932_v5  ;;  %v6187_v13 = vmul.f32 %v14329_v61, %v14329_v61 }
 0xcb6   : > { %15725 = vst [vmem:[#allocation115_spill] sm:$0xff] %v14331_v43  ;;  %v14333_v33 = vpop.f32.mrb[143].mxu0  ;;  %v14335_v35 = vpop.eup %8989  ;;  %9001 = vtanh.f32 %v6440_v63  ;;  %v6377_v21 = vadd.f32 %v6313_v41, %v14281_v45  ;;  %v6439_v27 = vmul.f32 0.7978846, %v6375_v16  ;;  %v6314_v37 = vmul.f32 0.044715, %v6250_v15 }
 0xcb7   : > { %15726 = vst [vmem:[#allocation113_spill] sm:$0xff] %v14333_v33  ;;  %15727 = vst [vmem:[#allocation169_spill] sm:$0xff] %v14341_v40  ;;  %v14347_v14 = vadd.f32 %v14195_v44, %v13922_v53  ;;  %v6316_v43 = vmul.f32 0.044715, %v6252_v9  ;;  %v6189_v63 = vmul.f32 %v14341_v40, %v14341_v40  ;;  %v14353_v41 = vadd.f32 %v14197_v30, %v13926_v54 }
 0xcb8   : > { %v6441_v33 = vmul.f32 0.7978846, %v6377_v21  ;;  %9003 = vtanh.f32 %v6439_v27  ;;  %v6378_v38 = vadd.f32 %v6314_v37, %v14297_v24  ;;  %v6251_v48 = vmul.f32 %v6187_v13, %v14329_v61 }
 0xcb9   : > { %15728 = vst [vmem:[#allocation191_spill] sm:$0xff] %v14347_v14  ;;  %15729 = vst [vmem:[#allocation30_spill] sm:$0xff] %v14353_v41  ;;  %v6190_v16 = vmul.f32 %v14347_v14, %v14347_v14  ;;  %v6380_v44 = vadd.f32 %v6316_v43, %v14305_v7  ;;  %v6253_v21 = vmul.f32 %v6189_v63, %v14341_v40 }
 0xcba   : > { %9005 = vtanh.f32 %v6441_v33  ;;  %v6192_v9 = vmul.f32 %v14353_v41, %v14353_v41  ;;  %v14363_v15 = vpop.eup %8991  ;;  %v6442_v30 = vmul.f32 0.7978846, %v6378_v38  ;;  %v6315_v45 = vmul.f32 0.044715, %v6251_v48 }
 0xcbb   : > { %15730 = vst [vmem:[#allocation107_spill] sm:$0xff] %v14363_v15  ;;  %v6254_v27 = vmul.f32 %v6190_v16, %v14347_v14  ;;  %v14368_v37 = vadd.f32 %v14207_v42, %v13930_v60  ;;  %v14370_v13 = vpop.eup %8993  ;;  %v6444_v33 = vmul.f32 0.7978846, %v6380_v44  ;;  %v6317_v24 = vmul.f32 0.044715, %v6253_v21 }
 0xcbc   : > { %15732 = vst [vmem:[#allocation75_spill] sm:$0xff] %v14370_v13  ;;  %v6256_v43 = vmul.f32 %v6192_v9, %v14353_v41  ;;  %v14375_v63 = vadd.f32 %v14209_v31, %v13932_v5  ;;  %v14377_v7 = vpop.eup %8995  ;;  %9007 = vtanh.f32 %v6442_v30  ;;  %v6379_v38 = vadd.f32 %v6315_v45, %v14329_v61 }
 0xcbd   : > { %15731 = vst [vmem:[#allocation105_spill] sm:$0xff] %v14368_v37  ;;  %v6318_v48 = vmul.f32 0.044715, %v6254_v27  ;;  %v6191_v42 = vmul.f32 %v14368_v37, %v14368_v37  ;;  %v14382_v16 = vpop.eup %8997  ;;  %9009 = vtanh.f32 %v6444_v33  ;;  %v6381_v44 = vadd.f32 %v6317_v24, %v14341_v40 }
 0xcbe   : > { %15733 = vst [vmem:[#allocation166_spill] sm:$0xff] %v14375_v63  ;;  %v6320_v21 = vmul.f32 0.044715, %v6256_v43  ;;  %v6193_v9 = vmul.f32 %v14375_v63, %v14375_v63  ;;  %v6443_v13 = vmul.f32 0.7978846, %v6379_v38  ;;  %v14393_v27 = vadd.f32 %v14245_v39, %v13922_v53 }
 0xcbf   : > { %v14387_v31 = vpop.eup %8999  ;;  %v6382_v30 = vadd.f32 %v6318_v48, %v14347_v14  ;;  %v6255_v45 = vmul.f32 %v6191_v42, %v14368_v37  ;;  %v6445_v33 = vmul.f32 0.7978846, %v6381_v44  ;;  %v6064_v40 = vadd.f32 %v14247_v11, %v13926_v54 }
 0xcc0   : > { %15734 = vst [vmem:[#allocation68_spill] sm:$0xff] %v14387_v31  ;;  %15735 = vst [vmem:[#allocation80_spill] sm:$0xff] %v14393_v27  ;;  %v14395_v61 = vpop.eup %9001  ;;  %v6384_v24 = vadd.f32 %v6320_v21, %v14353_v41  ;;  %v6257_v43 = vmul.f32 %v6193_v9, %v14375_v63  ;;  %9011 = vtanh.f32 %v6443_v13  ;;  %v6194_v48 = vmul.f32 %v14393_v27, %v14393_v27 }
 0xcc1   : > { %15736 = vst [vmem:[#allocation190_spill] sm:$0xff] %v14395_v61  ;;  %v6446_v38 = vmul.f32 0.7978846, %v6382_v30  ;;  %v6319_v31 = vmul.f32 0.044715, %v6255_v45  ;;  %9013 = vtanh.f32 %v6445_v33  ;;  %v14403_v14 = vmul.f32 0.5, %v6064_v40 }
 0xcc2   : > { %v6448_v42 = vmul.f32 0.7978846, %v6384_v24  ;;  %v6321_v39 = vmul.f32 0.044715, %v6257_v43  ;;  %v14405_v61 = vpop.eup %9003  ;;  %v6258_v21 = vmul.f32 %v6194_v48, %v14393_v27  ;;  %v6196_v9 = vmul.f32 %v6064_v40, %v6064_v40 }
 0xcc3   : > { %9015 = vtanh.f32 %v6446_v38  ;;  %v6383_v44 = vadd.f32 %v6319_v31, %v14368_v37  ;;  %v14414_v30 = vadd.f32 %v14251_v18, %v13930_v60  ;;  %v14418_v45 = vadd.f32 %v14253_v50, %v13932_v5 }
 0xcc4   : > { %v14409_v11 = vpop.eup %9005  ;;  %9017 = vtanh.f32 %v6448_v42  ;;  %v6385_v13 = vadd.f32 %v6321_v39, %v14375_v63  ;;  %v6322_v24 = vmul.f32 0.044715, %v6258_v21  ;;  %v6260_v43 = vmul.f32 %v6196_v9, %v6064_v40 }
 0xcc5   : > { %v6447_v33 = vmul.f32 0.7978846, %v6383_v44  ;;  %v6099_v31 = vmul.f32 0.5, %v14068_v25  ;;  %v6195_v48 = vmul.f32 %v14414_v30, %v14414_v30  ;;  %v6197_v42 = vmul.f32 %v14418_v45, %v14418_v45 }
 0xcc6   : > { %v6449_v38 = vmul.f32 0.7978846, %v6385_v13  ;;  %v6103_v39 = vmul.f32 0.5, %v14088_v26  ;;  %v14426_v18 = vpop.eup %9007  ;;  %v6386_v50 = vadd.f32 %v6322_v24, %v14393_v27  ;;  %v6324_v41 = vmul.f32 0.044715, %v6260_v43 }
 0xcc7   : > { %15737 = vst [vmem:[#allocation188_spill] sm:$0xff] %v14426_v18  ;;  %9019 = vtanh.f32 %v6447_v33  ;;  %v6547_v44 = vadd.f32 1.0, %v14185_v55  ;;  %v14430_v21 = vpop.eup %9009  ;;  %v6259_v25 = vmul.f32 %v6195_v48, %v14414_v30  ;;  %v6261_v9 = vmul.f32 %v6197_v42, %v14418_v45 }
 0xcc8   : > { %9021 = vtanh.f32 %v6449_v38  ;;  %v6551_v13 = vadd.f32 1.0, %v14219_v12  ;;  %v6450_v63 = vmul.f32 0.7978846, %v6386_v50  ;;  %v6388_v37 = vadd.f32 %v6324_v41, %v6064_v40 }
 0xcc9   : > { %v6611_v26 = vmul.f32 %v6547_v44, %v6099_v31  ;;  %v6101_v18 = vmul.f32 0.5, %v14071_v32  ;;  %v6323_v33 = vmul.f32 0.044715, %v6259_v25  ;;  %v6325_v15 = vmul.f32 0.044715, %v6261_v9 }
 0xcca   : > { %v6615_v24 = vmul.f32 %v6551_v13, %v6103_v39  ;;  %v6105_v43 = vmul.f32 0.5, %v14091_v1  ;;  %v14437_v55 = vpop.eup %9011  ;;  %9023 = vtanh.f32 %v6450_v63  ;;  %v6452_v38 = vmul.f32 0.7978846, %v6388_v37 }
 0xccb   : > { %v6549_v48 = vadd.f32 1.0, %v14192_v8  ;;  %v6553_v42 = vadd.f32 1.0, %v14226_v3  ;;  %v14441_v27 = vpop.eup %9013  ;;  %v6387_v12 = vadd.f32 %v6323_v33, %v14414_v30  ;;  %v6389_v40 = vadd.f32 %v6325_v15, %v14418_v45 }
 0xccc   : > { %v6667_v32 = vpack.c.bf16 %v6615_v24, %v6611_v26  ;;  %v14447_v41 = vadd.f32 %v14257_v47, %v13922_v53  ;;  %9025 = vtanh.f32 %v6452_v38  ;;  %v6068_v8 = vadd.f32 %v14259_v52, %v13926_v54 }
 0xccd   : > { %v14449_v1 = vpop.eup %9015  ;;  %v6613_v63 = vmul.f32 %v6549_v48, %v6101_v18  ;;  %v6617_v37 = vmul.f32 %v6553_v42, %v6105_v43  ;;  %v6451_v31 = vmul.f32 0.7978846, %v6387_v12  ;;  %v6453_v39 = vmul.f32 0.7978846, %v6389_v40 }
 0xcce   : > { %v14453_v3 = vpop.eup %9017  ;;  %7001 = vmatprep.mubr.bf16.mxu1 %v6667_v32  ;;  %v6198_v15 = vmul.f32 %v14447_v41, %v14447_v41  ;;  %v6098_v50 = vmul.f32 0.5, %v14062_v22  ;;  %v14458_v44 = vmul.f32 0.5, %v6068_v8  ;;  %v6200_v25 = vmul.f32 %v6068_v8, %v6068_v8 }
 0xccf   : > { %v6669_v47 = vpack.c.bf16 %v6617_v37, %v6613_v63  ;;  %v6102_v18 = vmul.f32 0.5, %v14078_v17  ;;  %9027 = vtanh.f32 %v6451_v31  ;;  %v6546_v52 = vadd.f32 1.0, %v14169_v56 }
 0xcd0   : > { %v6262_v9 = vmul.f32 %v6198_v15, %v14447_v41  ;;  %v6550_v13 = vadd.f32 1.0, %v14199_v57  ;;  %9029 = vtanh.f32 %v6453_v39  ;;  %v6264_v33 = vmul.f32 %v6200_v25, %v6068_v8 }
 0xcd1   : > { %v14464_v26 = vpop.eup %9019  ;;  %7098 = vmatprep.mubr.bf16.mxu0 %v6669_v47  ;;  %v6100_v22 = vmul.f32 0.5, %v14065_v23  ;;  %v6104_v24 = vmul.f32 0.5, %v14081_v62  ;;  %v6610_v17 = vmul.f32 %v6546_v52, %v6098_v50  ;;  %v6548_v42 = vadd.f32 1.0, %v14175_v34 }
 0xcd2   : > { %v14468_v43 = vpop.eup %9021  ;;  %v6326_v38 = vmul.f32 0.044715, %v6262_v9  ;;  %v6614_v48 = vmul.f32 %v6550_v13, %v6102_v18  ;;  %v6328_v12 = vmul.f32 0.044715, %v6264_v33  ;;  %v6552_v56 = vadd.f32 1.0, %v14211_v29 }
 0xcd3   : > { %v14474_v57 = vadd.f32 %v14270_v19, %v13930_v60  ;;  %v14478_v40 = vadd.f32 %v14272_v4, %v13932_v5  ;;  %v6612_v32 = vmul.f32 %v6548_v42, %v6100_v22  ;;  %v14483_v63 = vadd.f32 %v14307_v20, %v13922_v53 }
 0xcd4   : > { %v6390_v23 = vadd.f32 %v6326_v38, %v14447_v41  ;;  %v6666_v62 = vpack.c.bf16 %v6614_v48, %v6610_v17  ;;  %v14485_v34 = vpop.eup %9023  ;;  %v6392_v37 = vadd.f32 %v6328_v12, %v6068_v8  ;;  %v6616_v29 = vmul.f32 %v6552_v56, %v6104_v24 }
 0xcd5   : > { %v6199_v19 = vmul.f32 %v14474_v57, %v14474_v57  ;;  %v6201_v31 = vmul.f32 %v14478_v40, %v14478_v40  ;;  %v6202_v39 = vmul.f32 %v14483_v63, %v14483_v63  ;;  %v14495_v15 = vadd.f32 %v14309_v49, %v13926_v54 }
 0xcd6   : > { %v6454_v4 = vmul.f32 0.7978846, %v6390_v23  ;;  %7002 = vmatmul.mubr.bf16.gmra.mrb[120].mxu1 %v6666_v62  ;;  %v14499_v20 = vadd.f32 %v14313_v58, %v13930_v60  ;;  %v9026_v8 = vpop.eup %9025  ;;  %v6456_v50 = vmul.f32 0.7978846, %v6392_v37  ;;  %v6668_v47 = vpack.c.bf16 %v6616_v29, %v6612_v32 }
 0xcd7   : > { %v6263_v25 = vmul.f32 %v6199_v19, %v14474_v57  ;;  %v6265_v18 = vmul.f32 %v6201_v31, %v14478_v40  ;;  %v6580_v9 = vadd.f32 1.0, %v9026_v8  ;;  %v6266_v52 = vmul.f32 %v6202_v39, %v14483_v63 }
 0xcd8   : > { %9031 = vtanh.f32 %v6454_v4  ;;  %v6204_v13 = vmul.f32 %v14495_v15, %v14495_v15  ;;  %7099 = vmatmul.mubr.bf16.gmra.mrb[152].mxu0 %v6668_v47  ;;  %v6203_v58 = vmul.f32 %v14499_v20, %v14499_v20  ;;  %v14516_v48 = vadd.f32 %v14315_v6, %v13932_v5 }
 0xcd9   : > { %9033 = vtanh.f32 %v6456_v50  ;;  %v6327_v49 = vmul.f32 0.044715, %v6263_v25  ;;  %v6329_v33 = vmul.f32 0.044715, %v6265_v18  ;;  %v14508_v22 = vpop.eup %9027  ;;  %v14511_v24 = vmul.f32 %v6580_v9, %v14403_v14 }
 0xcda   : > { %v6330_v38 = vmul.f32 0.044715, %v6266_v52  ;;  %v6268_v17 = vmul.f32 %v6204_v13, %v14495_v15  ;;  %v14518_v42 = vpop.eup %9029  ;;  %v6267_v23 = vmul.f32 %v6203_v58, %v14499_v20  ;;  %v6107_v62 = vmul.f32 0.5, %v14126_v51 }
 0xcdb   : > { %v6391_v12 = vadd.f32 %v6327_v49, %v14474_v57  ;;  %v6393_v56 = vadd.f32 %v6329_v33, %v14478_v40  ;;  %v6205_v37 = vmul.f32 %v14516_v48, %v14516_v48  ;;  %v6111_v29 = vmul.f32 0.5, %v14163_v2 }
 0xcdc   : > { %v6394_v14 = vadd.f32 %v6330_v38, %v14483_v63  ;;  %v6332_v32 = vmul.f32 0.044715, %v6268_v17  ;;  %v6331_v31 = vmul.f32 0.044715, %v6267_v23  ;;  %v14530_v4 = vadd.f32 %v14319_v46, %v13922_v53  ;;  %v15738_v17 = vld [vmem:[#allocation167_spill] sm:$0xff] }
 0xcdd   : > { %v6455_v6 = vmul.f32 0.7978846, %v6391_v12  ;;  %v6457_v19 = vmul.f32 0.7978846, %v6393_v56  ;;  %v6269_v51 = vmul.f32 %v6205_v37, %v14516_v48  ;;  %v6555_v50 = vadd.f32 1.0, %v14283_v0  ;;  %v15740_v37 = vld [vmem:[#allocation140_spill] sm:$0xff] }
 0xcde   : > { %v6458_v39 = vmul.f32 0.7978846, %v6394_v14  ;;  %v6396_v8 = vadd.f32 %v6332_v32, %v14495_v15  ;;  %v6395_v47 = vadd.f32 %v6331_v31, %v14499_v20  ;;  %v6559_v25 = vadd.f32 1.0, %v14323_v10 }
 0xcdf   : > { %9035 = vtanh.f32 %v6455_v6  ;;  %v6109_v2 = vmul.f32 0.5, %v14129_v28  ;;  %v6333_v9 = vmul.f32 0.044715, %v6269_v51  ;;  %v6619_v52 = vmul.f32 %v6555_v50, %v6107_v62  ;;  %v15742_v51 = vld [vmem:[#allocation182_spill] sm:$0xff] }
 0xce0   : > { %9037 = vtanh.f32 %v6457_v19  ;;  %v6460_v18 = vmul.f32 0.7978846, %v6396_v8  ;;  %v6459_v53 = vmul.f32 0.7978846, %v6395_v47  ;;  %v6623_v46 = vmul.f32 %v6559_v25, %v6111_v29  ;;  %v15741_v19 = vld [vmem:[#allocation111_spill] sm:$0xff]  ;;  %v15743_v47 = vld [vmem:[#allocation116_spill] sm:$0xff] }
 0xce1   : > { %9039 = vtanh.f32 %v6458_v39  ;;  %v6113_v13 = vmul.f32 0.5, %v14167_v59  ;;  %v6397_v0 = vadd.f32 %v6333_v9, %v14516_v48  ;;  %v6557_v33 = vadd.f32 1.0, %v14287_v36 }
 0xce2   : > { %v14539_v49 = vpop.eup %9031  ;;  %9041 = vtanh.f32 %v6460_v18  ;;  %v6561_v10 = vadd.f32 1.0, %v14335_v35  ;;  %v6671_v28 = vpack.c.bf16 %v6623_v46, %v6619_v52  ;;  %v6206_v38 = vmul.f32 %v14530_v4, %v14530_v4  ;;  %v15739_v35 = vld [vmem:[#allocation63_spill] sm:$0xff]  ;;  %v15744_v18 = vld [vmem:[#allocation124_spill] sm:$0xff] }
 0xce3   : > { %v9034_v58 = vpop.eup %9033  ;;  %9043 = vtanh.f32 %v6459_v53  ;;  %v14548_v12 = vadd.f32 %v15738_v17, %v13926_v54  ;;  %v6461_v56 = vmul.f32 0.7978846, %v6397_v0  ;;  %v6621_v23 = vmul.f32 %v6557_v33, %v6109_v2  ;;  %v15745_v52 = vld [vmem:[#allocation128_spill] sm:$0xff]  ;;  %v15746_v46 = vld [vmem:[#allocation123_spill] sm:$0xff] }
 0xce4   : > { %v6584_v59 = vadd.f32 1.0, %v9034_v58  ;;  %v6625_v62 = vmul.f32 %v6561_v10, %v6113_v13  ;;  %7009 = vmatprep.mubr.bf16.mxu1 %v6671_v28  ;;  %v6270_v14 = vmul.f32 %v6206_v38, %v14530_v4  ;;  %v6106_v32 = vmul.f32 0.5, %v15739_v35  ;;  %v15747_v58 = vld [vmem:[#allocation115_spill] sm:$0xff] }
 0xce5   : > { %v6208_v36 = vmul.f32 %v14548_v12, %v14548_v12  ;;  %v6110_v29 = vmul.f32 0.5, %v15740_v37  ;;  %9045 = vtanh.f32 %v6461_v56  ;;  %v6554_v31 = vadd.f32 1.0, %v15741_v19  ;;  %v15748_v56 = vld [vmem:[#allocation113_spill] sm:$0xff] }
 0xce6   : > { %v14556_v6 = vmul.f32 %v6584_v59, %v14458_v44  ;;  %v6673_v54 = vpack.c.bf16 %v6625_v62, %v6621_v23  ;;  %v6334_v39 = vmul.f32 0.044715, %v6270_v14  ;;  %v6558_v50 = vadd.f32 1.0, %v15742_v51  ;;  %v15749_v62 = vld [vmem:[#allocation162_spill] sm:$0xff] }
 0xce7   : > { %v6272_v8 = vmul.f32 %v6208_v36, %v14548_v12  ;;  %v6108_v25 = vmul.f32 0.5, %v15743_v47  ;;  %v6618_v2 = vmul.f32 %v6554_v31, %v6106_v32  ;;  %v6112_v9 = vmul.f32 0.5, %v15744_v18  ;;  %v15750_v31 = vld [vmem:[#allocation165_spill] sm:$0xff]  ;;  %v15751_v18 = vld [vmem:[#allocation160_spill] sm:$0xff] }
 0xce8   : > { %7106 = vmatprep.mubr.bf16.mxu0 %v6673_v54  ;;  %v6556_v53 = vadd.f32 1.0, %v15745_v52  ;;  %v6560_v44 = vadd.f32 1.0, %v15746_v46  ;;  %v6398_v0 = vadd.f32 %v6334_v39, %v14530_v4  ;;  %v6622_v10 = vmul.f32 %v6558_v50, %v6110_v29  ;;  %v15752_v52 = vld [vmem:[#allocation126_spill] sm:$0xff] }
 0xce9   : > { %v14565_v13 = vpop.eup %9035  ;;  %v6336_v33 = vmul.f32 0.044715, %v6272_v8  ;;  %v14570_v28 = vadd.f32 %v15747_v58, %v13930_v60  ;;  %v14576_v23 = vadd.f32 %v15748_v56, %v13932_v5  ;;  %v6115_v14 = vmul.f32 0.5, %v15749_v62  ;;  %v15753_v58 = vld [vmem:[#allocation139_spill] sm:$0xff] }
 0xcea   : > { %v14572_v38 = vpop.eup %9037  ;;  %v6620_v17 = vmul.f32 %v6556_v53, %v6108_v25  ;;  %v6624_v59 = vmul.f32 %v6560_v44, %v6112_v9  ;;  %v6462_v35 = vmul.f32 0.7978846, %v6398_v0  ;;  %v6670_v37 = vpack.c.bf16 %v6622_v10, %v6618_v2 }
 0xceb   : > { %v14579_v36 = vpop.eup %9039  ;;  %v6400_v32 = vadd.f32 %v6336_v33, %v14548_v12  ;;  %v6207_v60 = vmul.f32 %v14570_v28, %v14570_v28  ;;  %v6209_v19 = vmul.f32 %v14576_v23, %v14576_v23  ;;  %v6119_v5 = vmul.f32 0.5, %v15750_v31 }
 0xcec   : > { %v14584_v29 = vpop.eup %9041  ;;  %v6672_v54 = vpack.c.bf16 %v6624_v59, %v6620_v17  ;;  %v6563_v39 = vadd.f32 1.0, %v14377_v7  ;;  %9047 = vtanh.f32 %v6462_v35  ;;  %7010 = vmatmul.mubr.bf16.gmra.mrb[124].mxu1 %v6670_v37  ;;  %v6567_v47 = vadd.f32 1.0, %v14405_v61  ;;  %v15754_v17 = vld [vmem:[#allocation161_spill] sm:$0xff]  ;;  %v15755_v35 = vld [vmem:[#allocation107_spill] sm:$0xff] }
 0xced   : > { %v14590_v8 = vpop.eup %9043  ;;  %v6464_v51 = vmul.f32 0.7978846, %v6400_v32  ;;  %v6271_v50 = vmul.f32 %v6207_v60, %v14570_v28  ;;  %v6273_v25 = vmul.f32 %v6209_v19, %v14576_v23  ;;  %v6117_v9 = vmul.f32 0.5, %v15751_v18  ;;  %v15757_v19 = vld [vmem:[#allocation164_spill] sm:$0xff] }
 0xcee   : > { %7107 = vmatmul.mubr.bf16.gmra.mrb[156].mxu0 %v6672_v54  ;;  %v6627_v2 = vmul.f32 %v6563_v39, %v6115_v14  ;;  %v6121_v53 = vmul.f32 0.5, %v15752_v52  ;;  %v6631_v7 = vmul.f32 %v6567_v47, %v6119_v5  ;;  %v6565_v44 = vadd.f32 1.0, %v14382_v16  ;;  %v15756_v54 = vld [vmem:[#allocation68_spill] sm:$0xff]  ;;  %v15758_v39 = vld [vmem:[#allocation159_spill] sm:$0xff] }
 0xcef   : > { %9049 = vtanh.f32 %v6464_v51  ;;  %v6335_v46 = vmul.f32 0.044715, %v6271_v50  ;;  %v14598_v0 = vpop.eup %9045  ;;  %v6337_v33 = vmul.f32 0.044715, %v6273_v25  ;;  %v6569_v10 = vadd.f32 1.0, %v14409_v11  ;;  %v15759_v50 = vld [vmem:[#allocation75_spill] sm:$0xff] }
 0xcf0   : > { %v6114_v61 = vmul.f32 0.5, %v15753_v58  ;;  %v6118_v59 = vmul.f32 0.5, %v15754_v17  ;;  %v6675_v62 = vpack.c.bf16 %v6631_v7, %v6627_v2  ;;  %v6629_v14 = vmul.f32 %v6565_v44, %v6117_v9  ;;  %v15760_v9 = vld [vmem:[#allocation190_spill] sm:$0xff]  ;;  %v15761_v7 = vld [vmem:[#allocation163_spill] sm:$0xff]  ;;  %v15762_v44 = vld [vmem:[#allocation105_spill] sm:$0xff] }
 0xcf1   : > { %v6399_v56 = vadd.f32 %v6335_v46, %v14570_v28  ;;  %v6562_v32 = vadd.f32 1.0, %v15755_v35  ;;  %v6401_v37 = vadd.f32 %v6337_v33, %v14576_v23  ;;  %v6633_v60 = vmul.f32 %v6569_v10, %v6121_v53 }
 0xcf2   : > { %v6566_v16 = vadd.f32 1.0, %v15756_v54  ;;  %v6116_v31 = vmul.f32 0.5, %v15757_v19  ;;  %7017 = vmatprep.mubr.bf16.mxu1 %v6675_v62  ;;  %v6120_v51 = vmul.f32 0.5, %v15758_v39  ;;  %v6564_v47 = vadd.f32 1.0, %v15759_v50  ;;  %v15763_v62 = vld [vmem:[#allocation169_spill] sm:$0xff] }
 0xcf3   : > { %v6463_v5 = vmul.f32 0.7978846, %v6399_v56  ;;  %v6626_v11 = vmul.f32 %v6562_v32, %v6114_v61  ;;  %v6465_v25 = vmul.f32 0.7978846, %v6401_v37  ;;  %v6677_v18 = vpack.c.bf16 %v6633_v60, %v6629_v14 }
 0xcf4   : > { %v6630_v2 = vmul.f32 %v6566_v16, %v6118_v59  ;;  %v6568_v52 = vadd.f32 1.0, %v15760_v9  ;;  %v6628_v46 = vmul.f32 %v6564_v47, %v6116_v31  ;;  %v6123_v53 = vmul.f32 0.5, %v15761_v7  ;;  %v15764_v59 = vld [vmem:[#allocation166_spill] sm:$0xff]  ;;  %v15765_v16 = vld [vmem:[#allocation180_spill] sm:$0xff] }
 0xcf5   : > { %9051 = vtanh.f32 %v6463_v5  ;;  %v6127_v33 = vmul.f32 0.5, %v15762_v44  ;;  %7114 = vmatprep.mubr.bf16.mxu0 %v6677_v18  ;;  %v6571_v61 = vadd.f32 1.0, %v14437_v55  ;;  %v6575_v56 = vadd.f32 1.0, %v14464_v26  ;;  %v15767_v26 = vld [vmem:[#allocation188_spill] sm:$0xff]  ;;  %v15769_v18 = vld [vmem:[#allocation30_spill] sm:$0xff] }
 0xcf6   : > { %9053 = vtanh.f32 %v6465_v25  ;;  %v6674_v10 = vpack.c.bf16 %v6630_v2, %v6626_v11  ;;  %v6632_v58 = vmul.f32 %v6568_v52, %v6120_v51  ;;  %v9048_v17 = vpop.eup %9047  ;;  %v6125_v14 = vmul.f32 0.5, %v15763_v62  ;;  %v15766_v11 = vld [vmem:[#allocation191_spill] sm:$0xff]  ;;  %v15770_v62 = vld [vmem:[#allocation80_spill] sm:$0xff] }
 0xcf7   : > { %v6129_v35 = vmul.f32 0.5, %v15764_v59  ;;  %v6573_v32 = vadd.f32 1.0, %v14441_v27  ;;  %v6635_v60 = vmul.f32 %v6571_v61, %v6123_v53  ;;  %v6577_v54 = vadd.f32 1.0, %v14468_v43  ;;  %v15768_v27 = vld [vmem:[#allocation118_spill] sm:$0xff] }
 0xcf8   : > { %7018 = vmatmul.mubr.bf16.gmra.mrb[128].mxu1 %v6674_v10  ;;  %v6676_v37 = vpack.c.bf16 %v6632_v58, %v6628_v46  ;;  %v6122_v19 = vmul.f32 0.5, %v15765_v16  ;;  %v6639_v5 = vmul.f32 %v6575_v56, %v6127_v33  ;;  %v6126_v39 = vmul.f32 0.5, %v15766_v11 }
 0xcf9   : > { %v14620_v31 = vpop.eup %9049  ;;  %v6637_v55 = vmul.f32 %v6573_v32, %v6125_v14  ;;  %v6570_v51 = vadd.f32 1.0, %v15767_v26  ;;  %v6641_v50 = vmul.f32 %v6577_v54, %v6129_v35  ;;  %v6574_v47 = vadd.f32 1.0, %v14449_v1 }
 0xcfa   : > { %7115 = vmatmul.mubr.bf16.gmra.mrb[160].mxu0 %v6676_v37  ;;  %v6124_v25 = vmul.f32 0.5, %v15768_v27  ;;  %v6128_v2 = vmul.f32 0.5, %v15769_v18  ;;  %v6679_v9 = vpack.c.bf16 %v6639_v5, %v6635_v60  ;;  %v6572_v52 = vadd.f32 1.0, %v14430_v21 }
 0xcfb   : > { %v6634_v43 = vmul.f32 %v6570_v51, %v6122_v19  ;;  %v6576_v46 = vadd.f32 1.0, %v14453_v3  ;;  %v6681_v7 = vpack.c.bf16 %v6641_v50, %v6637_v55  ;;  %v6638_v53 = vmul.f32 %v6574_v47, %v6126_v39 }
 0xcfc   : > { %v6131_v44 = vmul.f32 0.5, %v14414_v30  ;;  %v6135_v33 = vmul.f32 0.5, %v14474_v57  ;;  %7025 = vmatprep.mubr.bf16.mxu1 %v6679_v9  ;;  %v6636_v10 = vmul.f32 %v6572_v52, %v6124_v25  ;;  %v6579_v1 = vadd.f32 1.0, %v14508_v22 }
 0xcfd   : > { %v6640_v58 = vmul.f32 %v6576_v46, %v6128_v2  ;;  %v6583_v61 = vadd.f32 1.0, %v14565_v13  ;;  %7122 = vmatprep.mubr.bf16.mxu0 %v6681_v7  ;;  %v6678_v56 = vpack.c.bf16 %v6638_v53, %v6634_v43  ;;  %v6130_v14 = vmul.f32 0.5, %v15770_v62 }
 0xcfe   : > { %v6134_v21 = vmul.f32 0.5, %v14447_v41  ;;  %v6578_v3 = vadd.f32 1.0, %v14485_v34  ;;  %v6643_v30 = vmul.f32 %v6579_v1, %v6131_v44  ;;  %v6582_v57 = vadd.f32 1.0, %v14539_v49 }
 0xcff   : > { %v9052_v59 = vpop.eup %9051  ;;  %v6680_v35 = vpack.c.bf16 %v6640_v58, %v6636_v10  ;;  %v6647_v32 = vmul.f32 %v6583_v61, %v6135_v33  ;;  %v6139_v22 = vmul.f32 0.5, %v14499_v20  ;;  %v6143_v13 = vmul.f32 0.5, %v14570_v28 }
 0xd00   : > { %v9054_v37 = vpop.eup %9053  ;;  %7026 = vmatmul.mubr.bf16.gmra.mrb[132].mxu1 %v6678_v56  ;;  %v6642_v60 = vmul.f32 %v6578_v3, %v6130_v14  ;;  %v6587_v54 = vadd.f32 1.0, %v14590_v8  ;;  %v6646_v19 = vmul.f32 %v6582_v57, %v6134_v21  ;;  %v6591_v41 = vadd.f32 1.0, %v9052_v59  ;;  %v15772_v21 = vld [vmem:[#allocation104_spill] sm:$0xff] }
 0xd01   : > { %v6683_v16 = vpack.c.bf16 %v6647_v32, %v6643_v30  ;;  %v6138_v34 = vmul.f32 0.5, %v14483_v63  ;;  %v6142_v55 = vmul.f32 0.5, %v14530_v4  ;;  %v6586_v49 = vadd.f32 1.0, %v14579_v36 }
 0xd02   : > { %7123 = vmatmul.mubr.bf16.gmra.mrb[164].mxu0 %v6680_v35  ;;  %v6651_v5 = vmul.f32 %v6587_v54, %v6139_v22  ;;  %v6590_v11 = vadd.f32 1.0, %v9048_v17  ;;  %v6682_v39 = vpack.c.bf16 %v6646_v19, %v6642_v60  ;;  %v6655_v26 = vmul.f32 %v6591_v41, %v6143_v13  ;;  %v15773_v35 = vld [vmem:[#allocation100_spill] sm:$0xff] }
 0xd03   : > { %7033 = vmatprep.mubr.bf16.mxu1 %v6683_v16  ;;  %v6133_v20 = vmul.f32 0.5, %v14418_v45  ;;  %v6137_v28 = vmul.f32 0.5, %v14478_v40  ;;  %v6650_v8 = vmul.f32 %v6586_v49, %v6138_v34  ;;  %v6581_v50 = vadd.f32 1.0, %v14518_v42 }
 0xd04   : > { %v6654_v51 = vmul.f32 %v6590_v11, %v6142_v55  ;;  %v6585_v63 = vadd.f32 1.0, %v14572_v38  ;;  %v6687_v47 = vpack.c.bf16 %v6655_v26, %v6651_v5  ;;  %v6684_v4 = vpack.c.bf16 %v14556_v6, %v14511_v24 }
 0xd05   : > { %v6645_v36 = vmul.f32 %v6581_v50, %v6133_v20  ;;  %v6589_v25 = vadd.f32 1.0, %v14598_v0  ;;  %v6141_v18 = vmul.f32 0.5, %v14516_v48  ;;  %v6145_v45 = vmul.f32 0.5, %v14576_v23 }
 0xd06   : > { %v6686_v27 = vpack.c.bf16 %v6654_v51, %v6650_v8  ;;  %v6649_v17 = vmul.f32 %v6585_v63, %v6137_v28  ;;  %v6593_v40 = vadd.f32 1.0, %v9054_v37  ;;  %v6588_v2 = vadd.f32 1.0, %v14584_v29  ;;  %v15775_v28 = vld [vmem:[#allocation98_spill] sm:$0xff] }
 0xd07   : > { %v6140_v38 = vmul.f32 0.5, %v14495_v15  ;;  %v6144_v9 = vmul.f32 0.5, %v14548_v12  ;;  %v6592_v24 = vadd.f32 1.0, %v14620_v31  ;;  %v6653_v6 = vmul.f32 %v6589_v25, %v6141_v18  ;;  %v14659_v12 = vld [vmem:[%s15771_s24] ss:$0 sm:$0xff] }
 0xd08   : > { %7034 = vmatmul.mubr.bf16.gmra.mrb[136].mxu1 %v6682_v39  ;;  %v6685_v42 = vpack.c.bf16 %v6649_v17, %v6645_v36  ;;  %v6657_v43 = vmul.f32 %v6593_v40, %v6145_v45  ;;  %v15774_v39 = vld [vmem:[#allocation157_spill] sm:$0xff] }
 0xd09   : > { %7041 = vmatprep.mubr.bf16.mxu1 %v6687_v47  ;;  %v6652_v0 = vmul.f32 %v6588_v2, %v6140_v38  ;;  %v6656_v52 = vmul.f32 %v6592_v24, %v6144_v9  ;;  %v15776_v9 = vld [vmem:[#allocation93_spill] sm:$0xff] }
 0xd0a   : > { %v6689_v48 = vpack.c.bf16 %v6657_v43, %v6653_v6  ;;  %v15777_v43 = vld [vmem:[#allocation99_spill] sm:$0xff] }
 0xd0b   : > { %v6688_v46 = vpack.c.bf16 %v6656_v52, %v6652_v0 }
 0xd10   : > { %7042 = vmatmul.mubr.bf16.gmra.mrb[140].mxu1 %v6686_v27 }
 0xd11   : > { %7130 = vmatprep.mubr.bf16.mxu1 %v6685_v42 }
 0xd18   : > { %7131 = vmatmul.mubr.bf16.vlgmr.msra.gmra.mrb[144].mxu1 %v6684_v4 }
 0xd19   : > { %7138 = vmatprep.mubr.bf16.mxu1 %v6689_v48 }
 0xd20   : > { %7139 = vmatmul.mubr.bf16.gmra.mrb[148].mxu1 %v6688_v46 }
 0xd3c   : > { %v7651_v23 = vpop.f32.mrb[112].mxu1 }
 0xd3d   : > { %v7715_v15 = vpop.f32.mrb[144].mxu0  ;;  %v7652_v29 = vpop.f32.mrb[113].mxu1 }
 0xd3e   : > { %v7653_v31 = vadd.f32 %v7652_v29, %v7651_v23  ;;  %v7716_v7 = vpop.f32.mrb[145].mxu0  ;;  %v7654_v53 = vpop.f32.mrb[114].mxu1 }
 0xd3f   : > { %v7717_v44 = vadd.f32 %v7716_v7, %v7715_v15  ;;  %v7718_v33 = vpop.f32.mrb[146].mxu0  ;;  %v7655_v10 = vpop.f32.mrb[115].mxu1 }
 0xd40   : > { %v6988_v58 = vadd.f32 %v7653_v31, %v14659_v12  ;;  %v7656_v1 = vadd.f32 %v7655_v10, %v7654_v53  ;;  %v7719_v61 = vpop.f32.mrb[147].mxu0 }
 0xd41   : > { %v7720_v56 = vadd.f32 %v7719_v61, %v7718_v33 }
 0xd42   : > { %v7085_v62 = vadd.f32 %v7717_v44, %v6988_v58  ;;  %v6991_v14 = vadd.f32 %v7656_v1, %v14659_v12 }
 0xd44   : > { %v7147_v3 = vadd.f32 %v7085_v62, %v15772_v21  ;;  %v7088_v59 = vadd.f32 %v7720_v56, %v6991_v14  ;;  %v15778_v56 = vld [vmem:[#allocation96_spill] sm:$0xff]  ;;  %v15779_v21 = vld [vmem:[#allocation121_spill] sm:$0xff] }
 0xd46   : > { %7163 = vst [vmem:[%s14667_s16] sm:$0xff] %v7147_v3  ;;  %v7148_v30 = vadd.f32 %v7088_v59, %v15773_v35 }
 0xd48   : > { %7164 = vst [vmem:[%s14667_s16 + $0x8] sm:$0xff] %v7148_v30 }
 0xd4a   : > { %v7657_v32 = vpop.f32.mrb[116].mxu1 }
 0xd4b   : > { %v7658_v57 = vpop.f32.mrb[117].mxu1 }
 0xd4c   : > { %v7659_v37 = vadd.f32 %v7658_v57, %v7657_v32  ;;  %v7660_v60 = vpop.f32.mrb[118].mxu1 }
 0xd4d   : > { %v7721_v22 = vpop.f32.mrb[148].mxu0  ;;  %v7661_v13 = vpop.f32.mrb[119].mxu1 }
 0xd4e   : > { %v6996_v54 = vadd.f32 %v7659_v37, %v14659_v12  ;;  %v7722_v16 = vpop.f32.mrb[149].mxu0  ;;  %v7662_v19 = vadd.f32 %v7661_v13, %v7660_v60 }
 0xd4f   : > { %v7723_v41 = vadd.f32 %v7722_v16, %v7721_v22  ;;  %v7724_v34 = vpop.f32.mrb[150].mxu0 }
 0xd50   : > { %v6999_v5 = vadd.f32 %v7662_v19, %v14659_v12  ;;  %v7725_v55 = vpop.f32.mrb[151].mxu0 }
 0xd51   : > { %v7093_v49 = vadd.f32 %v7723_v41, %v6996_v54  ;;  %v7726_v11 = vadd.f32 %v7725_v55, %v7724_v34  ;;  %v15780_v55 = vld [vmem:[#allocation136_spill] sm:$0xff] }
 0xd53   : > { %v7149_v26 = vadd.f32 %v7093_v49, %v15774_v39  ;;  %v7096_v20 = vadd.f32 %v7726_v11, %v6999_v5 }
 0xd55   : > { %7165 = vst [vmem:[%s14667_s16 + $0x10] sm:$0xff] %v7149_v26  ;;  %v7150_v8 = vadd.f32 %v7096_v20, %v15775_v28  ;;  %v15781_v20 = vld [vmem:[#allocation131_spill] sm:$0xff] }
 0xd57   : > { %7166 = vst [vmem:[%s14667_s16 + $0x18] sm:$0xff] %v7150_v8 }
 0xda9   : > { %v7663_v51 = vpop.f32.mrb[120].mxu1 }
 0xdaa   : > { %v7664_v50 = vpop.f32.mrb[121].mxu1 }
 0xdab   : > { %v7665_v63 = vadd.f32 %v7664_v50, %v7663_v51  ;;  %v7666_v47 = vpop.f32.mrb[122].mxu1  ;;  %v7727_v4 = vpop.f32.mrb[152].mxu0 }
 0xdac   : > { %v7667_v27 = vpop.f32.mrb[123].mxu1  ;;  %v7728_v17 = vpop.f32.mrb[153].mxu0 }
 0xdad   : > { %v7004_v36 = vadd.f32 %v7665_v63, %v14659_v12  ;;  %v7668_v25 = vadd.f32 %v7667_v27, %v7666_v47  ;;  %v7729_v18 = vadd.f32 %v7728_v17, %v7727_v4  ;;  %v7730_v45 = vpop.f32.mrb[154].mxu0 }
 0xdae   : > { %v7731_v2 = vpop.f32.mrb[155].mxu0 }
 0xdaf   : > { %v7007_v40 = vadd.f32 %v7668_v25, %v14659_v12  ;;  %v7101_v42 = vadd.f32 %v7729_v18, %v7004_v36  ;;  %v7732_v38 = vadd.f32 %v7731_v2, %v7730_v45  ;;  %v15782_v2 = vld [vmem:[#allocation158_spill] sm:$0xff] }
 0xdb1   : > { %v7151_v24 = vadd.f32 %v7101_v42, %v15776_v9  ;;  %v7104_v6 = vadd.f32 %v7732_v38, %v7007_v40 }
 0xdb3   : > { %7167 = vst [vmem:[%s14667_s16 + $0x20] sm:$0xff] %v7151_v24  ;;  %v7152_v0 = vadd.f32 %v7104_v6, %v15777_v43  ;;  %v15783_v6 = vld [vmem:[#allocation60_spill] sm:$0xff] }
 0xdb5   : > { %7168 = vst [vmem:[%s14667_s16 + $0x28] sm:$0xff] %v7152_v0 }
 0xdbf   : > { %v7669_v52 = vpop.f32.mrb[124].mxu1 }
 0xdc0   : > { %v7670_v46 = vpop.f32.mrb[125].mxu1 }
 0xdc1   : > { %v7733_v48 = vpop.f32.mrb[156].mxu0  ;;  %v7671_v23 = vadd.f32 %v7670_v46, %v7669_v52  ;;  %v7672_v29 = vpop.f32.mrb[126].mxu1 }
 0xdc2   : > { %v7734_v15 = vpop.f32.mrb[157].mxu0  ;;  %v7673_v53 = vpop.f32.mrb[127].mxu1 }
 0xdc3   : > { %v7735_v31 = vadd.f32 %v7734_v15, %v7733_v48  ;;  %v7736_v7 = vpop.f32.mrb[158].mxu0  ;;  %v7012_v44 = vadd.f32 %v7671_v23, %v14659_v12  ;;  %v7674_v33 = vadd.f32 %v7673_v53, %v7672_v29 }
 0xdc4   : > { %v7737_v10 = vpop.f32.mrb[159].mxu0 }
 0xdc5   : > { %v7738_v58 = vadd.f32 %v7737_v10, %v7736_v7  ;;  %v7109_v1 = vadd.f32 %v7735_v31, %v7012_v44  ;;  %v7015_v61 = vadd.f32 %v7674_v33, %v14659_v12 }
 0xdc7   : > { %v7153_v62 = vadd.f32 %v7109_v1, %v15778_v56  ;;  %v7112_v14 = vadd.f32 %v7738_v58, %v7015_v61 }
 0xdc9   : > { %7169 = vst [vmem:[%s14667_s16 + $0x30] sm:$0xff] %v7153_v62  ;;  %v7154_v3 = vadd.f32 %v7112_v14, %v15779_v21  ;;  %v15784_v21 = vld [vmem:[#allocation54_spill] sm:$0xff] }
 0xdcb   : > { %v7675_v59 = vpop.f32.mrb[128].mxu1  ;;  %7170 = vst [vmem:[%s14667_s16 + $0x38] sm:$0xff] %v7154_v3 }
 0xdcc   : > { %v7676_v35 = vpop.f32.mrb[129].mxu1 }
 0xdcd   : > { %v7739_v30 = vpop.f32.mrb[160].mxu0  ;;  %v7677_v32 = vadd.f32 %v7676_v35, %v7675_v59  ;;  %v7678_v57 = vpop.f32.mrb[130].mxu1  ;;  %v15785_v35 = vld [vmem:[#allocation132_spill] sm:$0xff] }
 0xdce   : > { %v7740_v37 = vpop.f32.mrb[161].mxu0  ;;  %v7679_v60 = vpop.f32.mrb[131].mxu1 }
 0xdcf   : > { %v7020_v22 = vadd.f32 %v7677_v32, %v14659_v12  ;;  %v7741_v13 = vadd.f32 %v7740_v37, %v7739_v30  ;;  %v7742_v54 = vpop.f32.mrb[162].mxu0  ;;  %v7680_v16 = vadd.f32 %v7679_v60, %v7678_v57 }
 0xdd0   : > { %v7743_v19 = vpop.f32.mrb[163].mxu0 }
 0xdd1   : > { %v7117_v41 = vadd.f32 %v7741_v13, %v7020_v22  ;;  %v7023_v34 = vadd.f32 %v7680_v16, %v14659_v12  ;;  %v7744_v5 = vadd.f32 %v7743_v19, %v7742_v54 }
 0xdd3   : > { %v7155_v49 = vadd.f32 %v7117_v41, %v15780_v55  ;;  %v7120_v11 = vadd.f32 %v7744_v5, %v7023_v34  ;;  %v7681_v39 = vpop.f32.mrb[132].mxu1  ;;  %v15787_v41 = vld [vmem:[#allocation127_spill] sm:$0xff] }
 0xdd4   : > { %v7682_v26 = vpop.f32.mrb[133].mxu1  ;;  %v15789_v55 = vld [vmem:[#allocation91_spill] sm:$0xff] }
 0xdd5   : > { %7171 = vst [vmem:[%s14667_s16 + $0x40] sm:$0xff] %v7155_v49  ;;  %v7156_v28 = vadd.f32 %v7120_v11, %v15781_v20  ;;  %v7745_v8 = vpop.f32.mrb[164].mxu0  ;;  %v7683_v51 = vadd.f32 %v7682_v26, %v7681_v39  ;;  %v7684_v50 = vpop.f32.mrb[134].mxu1 }
 0xdd6   : > { %v7746_v63 = vpop.f32.mrb[165].mxu0  ;;  %v7685_v47 = vpop.f32.mrb[135].mxu1 }
 0xdd7   : > { %7172 = vst [vmem:[%s14667_s16 + $0x48] sm:$0xff] %v7156_v28  ;;  %v7028_v4 = vadd.f32 %v7683_v51, %v14659_v12  ;;  %v7747_v27 = vadd.f32 %v7746_v63, %v7745_v8  ;;  %v7748_v36 = vpop.f32.mrb[166].mxu0  ;;  %v7686_v17 = vadd.f32 %v7685_v47, %v7684_v50 }
 0xdd8   : > { %v7749_v25 = vpop.f32.mrb[167].mxu0 }
 0xdd9   : > { %v7125_v18 = vadd.f32 %v7747_v27, %v7028_v4  ;;  %v7031_v45 = vadd.f32 %v7686_v17, %v14659_v12  ;;  %v7750_v40 = vadd.f32 %v7749_v25, %v7748_v36 }
 0xddb   : > { %v7157_v42 = vadd.f32 %v7125_v18, %v15782_v2  ;;  %v7128_v38 = vadd.f32 %v7750_v40, %v7031_v45  ;;  %v7687_v9 = vpop.f32.mrb[136].mxu1 }
 0xddc   : > { %v7688_v24 = vpop.f32.mrb[137].mxu1 }
 0xddd   : > { %7173 = vst [vmem:[%s14667_s16 + $0x50] sm:$0xff] %v7157_v42  ;;  %v7158_v43 = vadd.f32 %v7128_v38, %v15783_v6  ;;  %v7689_v0 = vadd.f32 %v7688_v24, %v7687_v9  ;;  %v7690_v52 = vpop.f32.mrb[138].mxu1 }
 0xdde   : > { %v7691_v48 = vpop.f32.mrb[139].mxu1 }
 0xddf   : > { %7174 = vst [vmem:[%s14667_s16 + $0x58] sm:$0xff] %v7158_v43  ;;  %v7692_v46 = vadd.f32 %v7691_v48, %v7690_v52  ;;  %v7036_v10 = vadd.f32 %v7689_v0, %v14659_v12 }
 0xde1   : > { %v7039_v56 = vadd.f32 %v7692_v46, %v14659_v12 }
 0xde3   : > { %v7693_v23 = vpop.f32.mrb[140].mxu1 }
 0xde4   : > { %v7694_v15 = vpop.f32.mrb[141].mxu1 }
 0xde5   : > { %v7695_v29 = vadd.f32 %v7694_v15, %v7693_v23  ;;  %v7696_v31 = vpop.f32.mrb[142].mxu1 }
 0xde6   : > { %v7697_v7 = vpop.f32.mrb[143].mxu1 }
 0xde7   : > { %v7698_v53 = vadd.f32 %v7697_v7, %v7696_v31  ;;  %v7044_v37 = vadd.f32 %v7695_v29, %v14659_v12 }
 0xde9   : > { %v7047_v54 = vadd.f32 %v7698_v53, %v14659_v12 }
 0xdeb   : > { %v7751_v44 = vpop.f32.mrb[144].mxu1 }
 0xdec   : > { %v7752_v33 = vpop.f32.mrb[145].mxu1 }
 0xded   : > { %v7753_v58 = vadd.f32 %v7752_v33, %v7751_v44  ;;  %v7754_v1 = vpop.f32.mrb[146].mxu1 }
 0xdee   : > { %v7755_v61 = vpop.f32.mrb[147].mxu1 }
 0xdef   : > { %v7133_v62 = vadd.f32 %v7753_v58, %v7036_v10  ;;  %v7756_v14 = vadd.f32 %v7755_v61, %v7754_v1 }
 0xdf1   : > { %v7159_v3 = vadd.f32 %v7133_v62, %v15784_v21  ;;  %v7136_v59 = vadd.f32 %v7756_v14, %v7039_v56 }
 0xdf3   : > { %7175 = vst [vmem:[%s14667_s16 + $0x60] sm:$0xff] %v7159_v3  ;;  %v7160_v30 = vadd.f32 %v7136_v59, %v15785_v35  ;;  %v7757_v32 = vpop.f32.mrb[148].mxu1 }
 0xdf4   : > { %v7758_v57 = vpop.f32.mrb[149].mxu1 }
 0xdf5   : > { %7176 = vst [vmem:[%s14667_s16 + $0x68] sm:$0xff] %v7160_v30  ;;  %v7759_v60 = vadd.f32 %v7758_v57, %v7757_v32  ;;  %v7760_v22 = vpop.f32.mrb[150].mxu1 }
 0xdf6   : > { %v7761_v13 = vpop.f32.mrb[151].mxu1 }
 0xdf7   : > { %v7141_v16 = vadd.f32 %v7759_v60, %v7044_v37  ;;  %v7762_v19 = vadd.f32 %v7761_v13, %v7760_v22 }
 0xdf9   : > { %v7161_v34 = vadd.f32 %v7141_v16, %v15787_v41  ;;  %v7144_v5 = vadd.f32 %v7762_v19, %v7047_v54 }
 0xdfb   : > { %7177 = vst [vmem:[%s14667_s16 + $0x70] sm:$0xff] %v7161_v34  ;;  %v7162_v12 = vadd.f32 %v7144_v5, %v15789_v55 }
 0xdfd   : > { %7178 = vst [vmem:[%s14667_s16 + $0x78] sm:$0xff] %v7162_v12 }
 0xdfe   : > { %9322 = shalt.err (!%p9319_p6)
}
 0xdff   : > { %s9323_s18 = scalar_lea.hbm %s14716_s19, 2048  ;;  %s9327_s26 = scalar_lea.hbm %s15788_s30, 4096 }
 0xe00   : > { %p9324_p5 = scmp.ne.s32.totalorder %s14716_s19, %s9323_s18  ;;  %p9328_p10 = scmp.lt.u32.totalorder %s14716_s19, %s15788_s30 }
 0xe01   : > { %p9329_p2 = scmp.lt.u32.totalorder %s9327_s26, %s9323_s18  ;;  %p9331_p4 = scmp.lt.u32.totalorder %s9323_s18, %s14716_s19 }
 0xe02   : > { %p9325_p9 = pnand %p9324_p5, %p15790_p7 }
 0xe03   : > { %p9330_p3 = por %p9329_p2, %p9328_p10 }
 0xe04   : > { %p9326_p12 = pneg %p9325_p9 }
 0xe05   : > { %p9332_p8 = por %p9331_p4, %p9330_p3 }
 0xe07   : > { %p9333_p11 = pnand %p9332_p8, %p9326_p12 }
 0xe09   : > { %9336 = shalt.err (!%p9333_p11)
}
 0xe0a   : > { %s9410_s27 = smov 128   ;;  %s9411_s20 = smov 8  }
 0xe0b   : > { %8155 = dma.vmem_to_hbm [thread:$0]  (%p15790_p7), %s14718_s21, 2048, %s14716_s19, %s14725_s25, %s9410_s27, %s9410_s27, %s9411_s20  }
 0xe0c PF: > { %s15791_s17 = sld [smem:[#allocation21_spill]]  ;;  %s15792_s28 = sld [smem:[#allocation19_spill]] }
 0xe0d   : > { %s15793_s12 = sld [smem:[#allocation25_spill]] }
 0xe12   : > { %p8192_p13 = scmp.ge.s32.totalorder %s15791_s17, 2  ;;  %s7208_s1 = sand.u32 1, %s15792_s28  }
 0xe13   : > { %p15794_p1 = scmp.ne.s32.totalorder %s15793_s12, 0  ;;  %s7209_s0 = scalar_lea.sflag [#allocation4], %s7208_s1 }
 0xe15   : > { %p8177_p0 = pnand %p8192_p13, %p15794_p1 }
 0xe17   : > { %9370 = dma.done.wait (!%p8177_p0), %s7209_s0, 2048  }
 0xe18   : > { %9372 = vsyncadd (!%p8177_p0), %s7209_s0, 4294965248  ;;  %s15795_s24 = sld [smem:[#allocation22_spill]]  ;;  %s15796_s18 = sld [smem:[#allocation20_spill]] }
 0xe19   : > { %s15797_s23 = sld [smem:[#allocation23_spill]]  ;;  %s15798_s21 = smov %s9379_s22 }
 0xe1e   : > { %p30_p6 = scmp.ge.s32.totalorder %s15795_s24, 4   ;;  %s15799_s22 = smov %s15796_s18 }
 0xe20   :  { %32 = sbr.rel (!%p30_p6) target bundleno = 13 (0xd), region = 144 }
 0xe27   :  { %7214 = vsyncpa [#allocation3], 1 }
 0xe28   :  { %7216 = vsyncpa [#allocation3 + $0x1], 1 }
 0xe29   :  { %7217 = vsyncpa [#allocation6], 1 }
 0xe2a   :  { %7218 = vsyncpa [#allocation9], 1 }
 0xe2b   :  { %7219 = vsyncpa [#allocation12], 1 }
 0xe2c   :  { %7220 = vsyncpa [#allocation4], 1 }
 0xe2d   :  { %7222 = vsyncpa [#allocation4 + $0x1], 1 }

</bundles_post_ra>
